<compile_context>
chip_gen: v7x
topology: tpu7x:2x2x1
jax: 0.10.0
libtpu: 0.0.40
codegen_flags: <defaults>
</compile_context>

<pallas_src>
import functools

import jax
import jax.numpy as jnp
from jax.experimental import pallas as pl
from jax.experimental.pallas import tpu as pltpu

TILE = 8192      # pairs per grid step (outer DMA block)
CHUNK = 128      # pairs per inner one-hot/matmul chunk (one lane group)
F_PAD = 128      # padded number of frames (lane-dense accumulator width)
NUM_CORES = 2    # leading "parallel" grid axis (v7x: one per TensorCore)


def _ev_kernel(rij_ref, idxf_ref, out_ref, *, coeff, exponent):
    """One grid step: TILE pairs -> accumulate per-frame partial energy.

    rij_ref : (TILE//CHUNK, 3, CHUNK)  f32  xyz components, pairs on lanes
    idxf_ref: (TILE//CHUNK, 1, CHUNK)  i32  frame index per pair (>= F_PAD pad)
    out_ref : (1, F_PAD)               f32  per-frame partial accumulator,
                                            resident across the inner grid axis
    """
    @pl.when(pl.program_id(1) == 0)
    def _():
        out_ref[...] = jnp.zeros_like(out_ref)

    # Grid-step invariant, hoisted out of the chunk loop: one-hot row index
    # with frames on sublanes and pairs on lanes.
    frame_iota = jax.lax.broadcasted_iota(jnp.int32, (F_PAD, CHUNK), 0)
    n_chunks = rij_ref.shape[0]

    def chunk_body(c, acc):
        r = rij_ref[c]                                       # (3, CHUNK)
        idxf = idxf_ref[c]                                   # (1, CHUNK)

        d2 = jnp.sum(r * r, axis=0, keepdims=True)           # (1, CHUNK)
        if exponent % 2 == 0:
            e = coeff * (1.0 / d2) ** (exponent // 2)        # (1, CHUNK)
        else:
            e = coeff * jax.lax.rsqrt(d2) ** exponent

        # One-hot (frames on sublanes, pairs on lanes); padded pairs carry a
        # sentinel frame >= F_PAD so their column is all zero.
        onehot = (idxf == frame_iota).astype(jnp.float32)    # (F_PAD, CHUNK)

        # Scatter pair energies into frames on the MXU by contracting the
        # pair (lane) axis of both operands:  (1,C) . (F,C)^T -> (1,F)
        part = jax.lax.dot_general(
            e, onehot,
            dimension_numbers=(((1,), (1,)), ((), ())),
            preferred_element_type=jnp.float32)              # (1, F_PAD)
        return acc + part

    acc = jax.lax.fori_loop(
        0, n_chunks, chunk_body,
        jnp.zeros((1, F_PAD), jnp.float32), unroll=True)
    out_ref[...] += acc


def excluded_volume_energy(Rij, idx_i, n_atoms, *, sigma, exponent):
    """Pallas-backed forward pass (filter_key='complete').

    Rij    : (n_pairs, 3) float32
    idx_i  : (n_pairs,)   int32
    n_atoms: (n_frames,)  int32
    returns: (n_frames,)  float32
    """
    n_pairs = Rij.shape[0]
    n_frames = n_atoms.shape[0]
    assert n_frames <= F_PAD, "increase F_PAD for more frames"

    block = TILE * NUM_CORES
    n_pad = pl.cdiv(max(n_pairs, 1), block) * block
    tiles_per_core = n_pad // block
    n_chunks = n_pad // CHUNK
    chunks_per_tile = TILE // CHUNK

    # ---- glue: pad + pack (single pad, single small transpose) --------------
    # Padded pairs get unit components (finite energy) and a sentinel frame id
    # >= F_PAD so their one-hot column is all-zero -> zero contribution.
    rij_pad = jnp.pad(Rij.astype(jnp.float32),
                      ((0, n_pad - n_pairs), (0, 0)), constant_values=1.0)
    rij_c = jnp.transpose(rij_pad.reshape(n_chunks, CHUNK, 3), (0, 2, 1))

    cum = jnp.concatenate(
        [jnp.zeros((1,), jnp.int32), jnp.cumsum(n_atoms.astype(jnp.int32))])
    idx_frame = (jnp.searchsorted(cum, idx_i.astype(jnp.int32), side="right") - 1
                 ).astype(jnp.int32)
    idxf_c = jnp.pad(idx_frame, (0, n_pad - n_pairs),
                     constant_values=F_PAD).reshape(n_chunks, 1, CHUNK)

    # 0.5 double-counting factor and sigma**exponent folded into one constant.
    coeff = 0.5 * float(sigma) ** int(exponent)
    kernel = functools.partial(_ev_kernel, coeff=coeff, exponent=int(exponent))

    out = pl.pallas_call(
        kernel,
        out_shape=jax.ShapeDtypeStruct((NUM_CORES, 1, F_PAD), jnp.float32),
        grid_spec=pltpu.PrefetchScalarGridSpec(
            num_scalar_prefetch=0,
            grid=(NUM_CORES, tiles_per_core),
            in_specs=[
                pl.BlockSpec((chunks_per_tile, 3, CHUNK),
                             lambda c, t: (c * tiles_per_core + t, 0, 0)),
                pl.BlockSpec((chunks_per_tile, 1, CHUNK),
                             lambda c, t: (c * tiles_per_core + t, 0, 0)),
            ],
            out_specs=pl.BlockSpec((None, 1, F_PAD), lambda c, t: (c, 0, 0)),
        ),
        compiler_params=pltpu.CompilerParams(
            dimension_semantics=("parallel", "arbitrary")),
    )(rij_c, idxf_c)

    # Sum the per-core partial rows; valid frames are the first n_frames lanes.
    return jnp.sum(out[:, 0, :], axis=0)[:n_frames]


def _reference(Rij, idx_i, n_atoms, *, sigma, exponent):
    d = jnp.linalg.norm(Rij, axis=1)
    e = (sigma / d) ** exponent
    cum = jnp.concatenate([jnp.zeros((1,), jnp.int32), jnp.cumsum(n_atoms)])
    idx_frame = jnp.searchsorted(cum, idx_i, side="right") - 1
    return 0.5 * jax.ops.segment_sum(e, idx_frame, num_segments=n_atoms.shape[0])


if __name__ == "__main__":
    key = jax.random.PRNGKey(0)

    # small synthetic system: 2 frames, 5 and 6 atoms, all-pairs neighbor list
    n_atoms = jnp.array([5, 6], dtype=jnp.int32)
    n_total = int(jnp.sum(n_atoms))
    pos = 3.0 * jax.random.uniform(key, (n_total, 3), dtype=jnp.float32) + 0.5

    idx_i_list, idx_j_list = [], []
    offset = 0
    for na in [5, 6]:
        for a in range(na):
            for b in range(na):
                if a != b:
                    idx_i_list.append(offset + a)
                    idx_j_list.append(offset + b)
        offset += na
    idx_i = jnp.array(idx_i_list, dtype=jnp.int32)
    idx_j = jnp.array(idx_j_list, dtype=jnp.int32)
    Rij = pos[idx_j] - pos[idx_i]                      # (n_pairs, 3)

    sigma, exponent = 1.0, 12

    energy = excluded_volume_energy(Rij, idx_i, n_atoms, sigma=sigma, exponent=exponent)
    energy = jax.block_until_ready(energy)

    ref = _reference(Rij, idx_i, n_atoms, sigma=sigma, exponent=exponent)
    assert jnp.allclose(energy, ref, rtol=1e-4, atol=1e-4), (energy, ref)

    print("KERNEL_OK")
</pallas_src>

<mosaic_0001>
module attributes {stable_mosaic.version = 11 : i64} {
  func.func @_ev_kernel(%arg0: i32, %arg1: i32, %arg2: memref<64x3x128xf32, #tpu.memory_space<vmem>>, %arg3: memref<64x1x128xi32, #tpu.memory_space<vmem>>, %arg4: memref<1x1x128xf32, #tpu.memory_space<vmem>>) attributes {dimension_semantics = [#tpu.dimension_semantics<parallel>, #tpu.dimension_semantics<arbitrary>], iteration_bounds = array<i64: 2, 1>, scalar_prefetch = 0 : i64, scratch_operands = 0 : i64, tpu.core_type = #tpu.core_type<tc>, window_params = [{transform_indices = @transform_0, window_bounds = array<i64: 64, 3, 128>}, {transform_indices = @transform_1, window_bounds = array<i64: 64, 1, 128>}, {transform_indices = @transform_2, window_bounds = array<i64: 1, 1, 128>}]} {
    %c0_i32 = arith.constant 0 : i32
    %0 = arith.cmpi eq, %arg1, %c0_i32 : i32
    %1 = arith.extui %0 : i1 to i32
    %c0_i32_0 = arith.constant 0 : i32
    %2 = arith.cmpi ne, %1, %c0_i32_0 : i32
    scf.if %2 {
      %cst_519 = arith.constant 0.000000e+00 : f32
      %1419 = vector.broadcast %cst_519 : f32 to vector<1x128xf32>
      %c0_520 = arith.constant 0 : index
      %c0_521 = arith.constant 0 : index
      %c0_522 = arith.constant 0 : index
      %1420 = vector.load %arg4[%c0_520, %c0_521, %c0_522] : memref<1x1x128xf32, #tpu.memory_space<vmem>>, vector<1x1x128xf32>
      %1421 = vector.shape_cast %1420 : vector<1x1x128xf32> to vector<1x128xf32>
      %1422 = vector.shape_cast %1419 : vector<1x128xf32> to vector<1x1x128xf32>
      tpu.vector_store %arg4[%c0_520, %c0_521, %c0_522], %1422 {strides = array<i32>} : memref<1x1x128xf32, #tpu.memory_space<vmem>>, vector<1x1x128xf32>,
    } else {
    }
    %3 = tpu.iota {dimensions = array<i32: 0>} : vector<128x128xi32>
    %cst = arith.constant 0.000000e+00 : f32
    %4 = vector.broadcast %cst : f32 to vector<1x128xf32>
    %c0_i32_1 = arith.constant 0 : i32
    %5 = arith.index_cast %c0_i32_1 : i32 to index
    %c0 = arith.constant 0 : index
    %c0_2 = arith.constant 0 : index
    %6 = vector.load %arg2[%5, %c0, %c0_2] : memref<64x3x128xf32, #tpu.memory_space<vmem>>, vector<1x3x128xf32>
    %7 = vector.shape_cast %6 : vector<1x3x128xf32> to vector<3x128xf32>
    %8 = arith.index_cast %c0_i32_1 : i32 to index
    %c0_3 = arith.constant 0 : index
    %c0_4 = arith.constant 0 : index
    %9 = vector.load %arg3[%8, %c0_3, %c0_4] : memref<64x1x128xi32, #tpu.memory_space<vmem>>, vector<1x1x128xi32>
    %10 = vector.shape_cast %9 : vector<1x1x128xi32> to vector<1x128xi32>
    %11 = arith.mulf %7, %7 : vector<3x128xf32>
    %cst_5 = arith.constant dense<0.000000e+00> : vector<128xf32>
    %12 = vector.multi_reduction <add>, %11, %cst_5 [0] : vector<3x128xf32> to vector<128xf32>
    %13 = vector.shape_cast %12 : vector<128xf32> to vector<1x128xf32>
    %cst_6 = arith.constant 1.000000e+00 : f32
    %14 = vector.broadcast %cst_6 : f32 to vector<1x128xf32>
    %15 = arith.divf %14, %13 : vector<1x128xf32>
    %16 = arith.mulf %15, %15 : vector<1x128xf32>
    %17 = arith.mulf %16, %16 : vector<1x128xf32>
    %18 = arith.mulf %16, %17 : vector<1x128xf32>
    %cst_7 = arith.constant 5.000000e-01 : f32
    %19 = vector.broadcast %cst_7 : f32 to vector<1x128xf32>
    %20 = arith.mulf %19, %18 : vector<1x128xf32>
    %21 = vector.broadcast %10 : vector<1x128xi32> to vector<128x128xi32>
    %22 = arith.cmpi eq, %21, %3 : vector<128x128xi32>
    %23 = arith.extui %22 : vector<128x128xi1> to vector<128x128xi32>
    %24 = arith.sitofp %23 : vector<128x128xi32> to vector<128x128xf32>
    %cst_8 = arith.constant dense<0.000000e+00> : vector<1x128xf32>
    %25 = tpu.matmul %20, %24, %cst_8 {dimension_numbers = #tpu.dot_dimension_numbers<[1], [1], [0], [0], [0, 0, 1, 0], [], []>} : vector<1x128xf32>, vector<128x128xf32>, vector<1x128xf32> -> vector<1x128xf32>
    %26 = arith.addf %4, %25 : vector<1x128xf32>
    %c1_i32 = arith.constant 1 : i32
    %27 = arith.index_cast %c1_i32 : i32 to index
    %c0_9 = arith.constant 0 : index
    %c0_10 = arith.constant 0 : index
    %28 = vector.load %arg2[%27, %c0_9, %c0_10] : memref<64x3x128xf32, #tpu.memory_space<vmem>>, vector<1x3x128xf32>
    %29 = vector.shape_cast %28 : vector<1x3x128xf32> to vector<3x128xf32>
    %30 = arith.index_cast %c1_i32 : i32 to index
    %c0_11 = arith.constant 0 : index
    %c0_12 = arith.constant 0 : index
    %31 = vector.load %arg3[%30, %c0_11, %c0_12] : memref<64x1x128xi32, #tpu.memory_space<vmem>>, vector<1x1x128xi32>
    %32 = vector.shape_cast %31 : vector<1x1x128xi32> to vector<1x128xi32>
    %33 = arith.mulf %29, %29 : vector<3x128xf32>
    %cst_13 = arith.constant dense<0.000000e+00> : vector<128xf32>
    %34 = vector.multi_reduction <add>, %33, %cst_13 [0] : vector<3x128xf32> to vector<128xf32>
    %35 = vector.shape_cast %34 : vector<128xf32> to vector<1x128xf32>
    %cst_14 = arith.constant 1.000000e+00 : f32
    %36 = vector.broadcast %cst_14 : f32 to vector<1x128xf32>
    %37 = arith.divf %36, %35 : vector<1x128xf32>
    %38 = arith.mulf %37, %37 : vector<1x128xf32>
    %39 = arith.mulf %38, %38 : vector<1x128xf32>
    %40 = arith.mulf %38, %39 : vector<1x128xf32>
    %cst_15 = arith.constant 5.000000e-01 : f32
    %41 = vector.broadcast %cst_15 : f32 to vector<1x128xf32>
    %42 = arith.mulf %41, %40 : vector<1x128xf32>
    %43 = vector.broadcast %32 : vector<1x128xi32> to vector<128x128xi32>
    %44 = arith.cmpi eq, %43, %3 : vector<128x128xi32>
    %45 = arith.extui %44 : vector<128x128xi1> to vector<128x128xi32>
    %46 = arith.sitofp %45 : vector<128x128xi32> to vector<128x128xf32>
    %cst_16 = arith.constant dense<0.000000e+00> : vector<1x128xf32>
    %47 = tpu.matmul %42, %46, %cst_16 {dimension_numbers = #tpu.dot_dimension_numbers<[1], [1], [0], [0], [0, 0, 1, 0], [], []>} : vector<1x128xf32>, vector<128x128xf32>, vector<1x128xf32> -> vector<1x128xf32>
    %48 = arith.addf %26, %47 : vector<1x128xf32>
    %c2_i32 = arith.constant 2 : i32
    %49 = arith.index_cast %c2_i32 : i32 to index
    %c0_17 = arith.constant 0 : index
    %c0_18 = arith.constant 0 : index
    %50 = vector.load %arg2[%49, %c0_17, %c0_18] : memref<64x3x128xf32, #tpu.memory_space<vmem>>, vector<1x3x128xf32>
    %51 = vector.shape_cast %50 : vector<1x3x128xf32> to vector<3x128xf32>
    %52 = arith.index_cast %c2_i32 : i32 to index
    %c0_19 = arith.constant 0 : index
    %c0_20 = arith.constant 0 : index
    %53 = vector.load %arg3[%52, %c0_19, %c0_20] : memref<64x1x128xi32, #tpu.memory_space<vmem>>, vector<1x1x128xi32>
    %54 = vector.shape_cast %53 : vector<1x1x128xi32> to vector<1x128xi32>
    %55 = arith.mulf %51, %51 : vector<3x128xf32>
    %cst_21 = arith.constant dense<0.000000e+00> : vector<128xf32>
    %56 = vector.multi_reduction <add>, %55, %cst_21 [0] : vector<3x128xf32> to vector<128xf32>
    %57 = vector.shape_cast %56 : vector<128xf32> to vector<1x128xf32>
    %cst_22 = arith.constant 1.000000e+00 : f32
    %58 = vector.broadcast %cst_22 : f32 to vector<1x128xf32>
    %59 = arith.divf %58, %57 : vector<1x128xf32>
    %60 = arith.mulf %59, %59 : vector<1x128xf32>
    %61 = arith.mulf %60, %60 : vector<1x128xf32>
    %62 = arith.mulf %60, %61 : vector<1x128xf32>
    %cst_23 = arith.constant 5.000000e-01 : f32
    %63 = vector.broadcast %cst_23 : f32 to vector<1x128xf32>
    %64 = arith.mulf %63, %62 : vector<1x128xf32>
    %65 = vector.broadcast %54 : vector<1x128xi32> to vector<128x128xi32>
    %66 = arith.cmpi eq, %65, %3 : vector<128x128xi32>
    %67 = arith.extui %66 : vector<128x128xi1> to vector<128x128xi32>
    %68 = arith.sitofp %67 : vector<128x128xi32> to vector<128x128xf32>
    %cst_24 = arith.constant dense<0.000000e+00> : vector<1x128xf32>
    %69 = tpu.matmul %64, %68, %cst_24 {dimension_numbers = #tpu.dot_dimension_numbers<[1], [1], [0], [0], [0, 0, 1, 0], [], []>} : vector<1x128xf32>, vector<128x128xf32>, vector<1x128xf32> -> vector<1x128xf32>
    %70 = arith.addf %48, %69 : vector<1x128xf32>
    %c3_i32 = arith.constant 3 : i32
    %71 = arith.index_cast %c3_i32 : i32 to index
    %c0_25 = arith.constant 0 : index
    %c0_26 = arith.constant 0 : index
    %72 = vector.load %arg2[%71, %c0_25, %c0_26] : memref<64x3x128xf32, #tpu.memory_space<vmem>>, vector<1x3x128xf32>
    %73 = vector.shape_cast %72 : vector<1x3x128xf32> to vector<3x128xf32>
    %74 = arith.index_cast %c3_i32 : i32 to index
    %c0_27 = arith.constant 0 : index
    %c0_28 = arith.constant 0 : index
    %75 = vector.load %arg3[%74, %c0_27, %c0_28] : memref<64x1x128xi32, #tpu.memory_space<vmem>>, vector<1x1x128xi32>
    %76 = vector.shape_cast %75 : vector<1x1x128xi32> to vector<1x128xi32>
    %77 = arith.mulf %73, %73 : vector<3x128xf32>
    %cst_29 = arith.constant dense<0.000000e+00> : vector<128xf32>
    %78 = vector.multi_reduction <add>, %77, %cst_29 [0] : vector<3x128xf32> to vector<128xf32>
    %79 = vector.shape_cast %78 : vector<128xf32> to vector<1x128xf32>
    %cst_30 = arith.constant 1.000000e+00 : f32
    %80 = vector.broadcast %cst_30 : f32 to vector<1x128xf32>
    %81 = arith.divf %80, %79 : vector<1x128xf32>
    %82 = arith.mulf %81, %81 : vector<1x128xf32>
    %83 = arith.mulf %82, %82 : vector<1x128xf32>
    %84 = arith.mulf %82, %83 : vector<1x128xf32>
    %cst_31 = arith.constant 5.000000e-01 : f32
    %85 = vector.broadcast %cst_31 : f32 to vector<1x128xf32>
    %86 = arith.mulf %85, %84 : vector<1x128xf32>
    %87 = vector.broadcast %76 : vector<1x128xi32> to vector<128x128xi32>
    %88 = arith.cmpi eq, %87, %3 : vector<128x128xi32>
    %89 = arith.extui %88 : vector<128x128xi1> to vector<128x128xi32>
    %90 = arith.sitofp %89 : vector<128x128xi32> to vector<128x128xf32>
    %cst_32 = arith.constant dense<0.000000e+00> : vector<1x128xf32>
    %91 = tpu.matmul %86, %90, %cst_32 {dimension_numbers = #tpu.dot_dimension_numbers<[1], [1], [0], [0], [0, 0, 1, 0], [], []>} : vector<1x128xf32>, vector<128x128xf32>, vector<1x128xf32> -> vector<1x128xf32>
    %92 = arith.addf %70, %91 : vector<1x128xf32>
    %c4_i32 = arith.constant 4 : i32
    %93 = arith.index_cast %c4_i32 : i32 to index
    %c0_33 = arith.constant 0 : index
    %c0_34 = arith.constant 0 : index
    %94 = vector.load %arg2[%93, %c0_33, %c0_34] : memref<64x3x128xf32, #tpu.memory_space<vmem>>, vector<1x3x128xf32>
    %95 = vector.shape_cast %94 : vector<1x3x128xf32> to vector<3x128xf32>
    %96 = arith.index_cast %c4_i32 : i32 to index
    %c0_35 = arith.constant 0 : index
    %c0_36 = arith.constant 0 : index
    %97 = vector.load %arg3[%96, %c0_35, %c0_36] : memref<64x1x128xi32, #tpu.memory_space<vmem>>, vector<1x1x128xi32>
    %98 = vector.shape_cast %97 : vector<1x1x128xi32> to vector<1x128xi32>
    %99 = arith.mulf %95, %95 : vector<3x128xf32>
    %cst_37 = arith.constant dense<0.000000e+00> : vector<128xf32>
    %100 = vector.multi_reduction <add>, %99, %cst_37 [0] : vector<3x128xf32> to vector<128xf32>
    %101 = vector.shape_cast %100 : vector<128xf32> to vector<1x128xf32>
    %cst_38 = arith.constant 1.000000e+00 : f32
    %102 = vector.broadcast %cst_38 : f32 to vector<1x128xf32>
    %103 = arith.divf %102, %101 : vector<1x128xf32>
    %104 = arith.mulf %103, %103 : vector<1x128xf32>
    %105 = arith.mulf %104, %104 : vector<1x128xf32>
    %106 = arith.mulf %104, %105 : vector<1x128xf32>
    %cst_39 = arith.constant 5.000000e-01 : f32
    %107 = vector.broadcast %cst_39 : f32 to vector<1x128xf32>
    %108 = arith.mulf %107, %106 : vector<1x128xf32>
    %109 = vector.broadcast %98 : vector<1x128xi32> to vector<128x128xi32>
    %110 = arith.cmpi eq, %109, %3 : vector<128x128xi32>
    %111 = arith.extui %110 : vector<128x128xi1> to vector<128x128xi32>
    %112 = arith.sitofp %111 : vector<128x128xi32> to vector<128x128xf32>
    %cst_40 = arith.constant dense<0.000000e+00> : vector<1x128xf32>
    %113 = tpu.matmul %108, %112, %cst_40 {dimension_numbers = #tpu.dot_dimension_numbers<[1], [1], [0], [0], [0, 0, 1, 0], [], []>} : vector<1x128xf32>, vector<128x128xf32>, vector<1x128xf32> -> vector<1x128xf32>
    %114 = arith.addf %92, %113 : vector<1x128xf32>
    %c5_i32 = arith.constant 5 : i32
    %115 = arith.index_cast %c5_i32 : i32 to index
    %c0_41 = arith.constant 0 : index
    %c0_42 = arith.constant 0 : index
    %116 = vector.load %arg2[%115, %c0_41, %c0_42] : memref<64x3x128xf32, #tpu.memory_space<vmem>>, vector<1x3x128xf32>
    %117 = vector.shape_cast %116 : vector<1x3x128xf32> to vector<3x128xf32>
    %118 = arith.index_cast %c5_i32 : i32 to index
    %c0_43 = arith.constant 0 : index
    %c0_44 = arith.constant 0 : index
    %119 = vector.load %arg3[%118, %c0_43, %c0_44] : memref<64x1x128xi32, #tpu.memory_space<vmem>>, vector<1x1x128xi32>
    %120 = vector.shape_cast %119 : vector<1x1x128xi32> to vector<1x128xi32>
    %121 = arith.mulf %117, %117 : vector<3x128xf32>
    %cst_45 = arith.constant dense<0.000000e+00> : vector<128xf32>
    %122 = vector.multi_reduction <add>, %121, %cst_45 [0] : vector<3x128xf32> to vector<128xf32>
    %123 = vector.shape_cast %122 : vector<128xf32> to vector<1x128xf32>
    %cst_46 = arith.constant 1.000000e+00 : f32
    %124 = vector.broadcast %cst_46 : f32 to vector<1x128xf32>
    %125 = arith.divf %124, %123 : vector<1x128xf32>
    %126 = arith.mulf %125, %125 : vector<1x128xf32>
    %127 = arith.mulf %126, %126 : vector<1x128xf32>
    %128 = arith.mulf %126, %127 : vector<1x128xf32>
    %cst_47 = arith.constant 5.000000e-01 : f32
    %129 = vector.broadcast %cst_47 : f32 to vector<1x128xf32>
    %130 = arith.mulf %129, %128 : vector<1x128xf32>
    %131 = vector.broadcast %120 : vector<1x128xi32> to vector<128x128xi32>
    %132 = arith.cmpi eq, %131, %3 : vector<128x128xi32>
    %133 = arith.extui %132 : vector<128x128xi1> to vector<128x128xi32>
    %134 = arith.sitofp %133 : vector<128x128xi32> to vector<128x128xf32>
    %cst_48 = arith.constant dense<0.000000e+00> : vector<1x128xf32>
    %135 = tpu.matmul %130, %134, %cst_48 {dimension_numbers = #tpu.dot_dimension_numbers<[1], [1], [0], [0], [0, 0, 1, 0], [], []>} : vector<1x128xf32>, vector<128x128xf32>, vector<1x128xf32> -> vector<1x128xf32>
    %136 = arith.addf %114, %135 : vector<1x128xf32>
    %c6_i32 = arith.constant 6 : i32
    %137 = arith.index_cast %c6_i32 : i32 to index
    %c0_49 = arith.constant 0 : index
    %c0_50 = arith.constant 0 : index
    %138 = vector.load %arg2[%137, %c0_49, %c0_50] : memref<64x3x128xf32, #tpu.memory_space<vmem>>, vector<1x3x128xf32>
    %139 = vector.shape_cast %138 : vector<1x3x128xf32> to vector<3x128xf32>
    %140 = arith.index_cast %c6_i32 : i32 to index
    %c0_51 = arith.constant 0 : index
    %c0_52 = arith.constant 0 : index
    %141 = vector.load %arg3[%140, %c0_51, %c0_52] : memref<64x1x128xi32, #tpu.memory_space<vmem>>, vector<1x1x128xi32>
    %142 = vector.shape_cast %141 : vector<1x1x128xi32> to vector<1x128xi32>
    %143 = arith.mulf %139, %139 : vector<3x128xf32>
    %cst_53 = arith.constant dense<0.000000e+00> : vector<128xf32>
    %144 = vector.multi_reduction <add>, %143, %cst_53 [0] : vector<3x128xf32> to vector<128xf32>
    %145 = vector.shape_cast %144 : vector<128xf32> to vector<1x128xf32>
    %cst_54 = arith.constant 1.000000e+00 : f32
    %146 = vector.broadcast %cst_54 : f32 to vector<1x128xf32>
    %147 = arith.divf %146, %145 : vector<1x128xf32>
    %148 = arith.mulf %147, %147 : vector<1x128xf32>
    %149 = arith.mulf %148, %148 : vector<1x128xf32>
    %150 = arith.mulf %148, %149 : vector<1x128xf32>
    %cst_55 = arith.constant 5.000000e-01 : f32
    %151 = vector.broadcast %cst_55 : f32 to vector<1x128xf32>
    %152 = arith.mulf %151, %150 : vector<1x128xf32>
    %153 = vector.broadcast %142 : vector<1x128xi32> to vector<128x128xi32>
    %154 = arith.cmpi eq, %153, %3 : vector<128x128xi32>
    %155 = arith.extui %154 : vector<128x128xi1> to vector<128x128xi32>
    %156 = arith.sitofp %155 : vector<128x128xi32> to vector<128x128xf32>
    %cst_56 = arith.constant dense<0.000000e+00> : vector<1x128xf32>
    %157 = tpu.matmul %152, %156, %cst_56 {dimension_numbers = #tpu.dot_dimension_numbers<[1], [1], [0], [0], [0, 0, 1, 0], [], []>} : vector<1x128xf32>, vector<128x128xf32>, vector<1x128xf32> -> vector<1x128xf32>
    %158 = arith.addf %136, %157 : vector<1x128xf32>
    %c7_i32 = arith.constant 7 : i32
    %159 = arith.index_cast %c7_i32 : i32 to index
    %c0_57 = arith.constant 0 : index
    %c0_58 = arith.constant 0 : index
    %160 = vector.load %arg2[%159, %c0_57, %c0_58] : memref<64x3x128xf32, #tpu.memory_space<vmem>>, vector<1x3x128xf32>
    %161 = vector.shape_cast %160 : vector<1x3x128xf32> to vector<3x128xf32>
    %162 = arith.index_cast %c7_i32 : i32 to index
    %c0_59 = arith.constant 0 : index
    %c0_60 = arith.constant 0 : index
    %163 = vector.load %arg3[%162, %c0_59, %c0_60] : memref<64x1x128xi32, #tpu.memory_space<vmem>>, vector<1x1x128xi32>
    %164 = vector.shape_cast %163 : vector<1x1x128xi32> to vector<1x128xi32>
    %165 = arith.mulf %161, %161 : vector<3x128xf32>
    %cst_61 = arith.constant dense<0.000000e+00> : vector<128xf32>
    %166 = vector.multi_reduction <add>, %165, %cst_61 [0] : vector<3x128xf32> to vector<128xf32>
    %167 = vector.shape_cast %166 : vector<128xf32> to vector<1x128xf32>
    %cst_62 = arith.constant 1.000000e+00 : f32
    %168 = vector.broadcast %cst_62 : f32 to vector<1x128xf32>
    %169 = arith.divf %168, %167 : vector<1x128xf32>
    %170 = arith.mulf %169, %169 : vector<1x128xf32>
    %171 = arith.mulf %170, %170 : vector<1x128xf32>
    %172 = arith.mulf %170, %171 : vector<1x128xf32>
    %cst_63 = arith.constant 5.000000e-01 : f32
    %173 = vector.broadcast %cst_63 : f32 to vector<1x128xf32>
    %174 = arith.mulf %173, %172 : vector<1x128xf32>
    %175 = vector.broadcast %164 : vector<1x128xi32> to vector<128x128xi32>
    %176 = arith.cmpi eq, %175, %3 : vector<128x128xi32>
    %177 = arith.extui %176 : vector<128x128xi1> to vector<128x128xi32>
    %178 = arith.sitofp %177 : vector<128x128xi32> to vector<128x128xf32>
    %cst_64 = arith.constant dense<0.000000e+00> : vector<1x128xf32>
    %179 = tpu.matmul %174, %178, %cst_64 {dimension_numbers = #tpu.dot_dimension_numbers<[1], [1], [0], [0], [0, 0, 1, 0], [], []>} : vector<1x128xf32>, vector<128x128xf32>, vector<1x128xf32> -> vector<1x128xf32>
    %180 = arith.addf %158, %179 : vector<1x128xf32>
    %c8_i32 = arith.constant 8 : i32
    %181 = arith.index_cast %c8_i32 : i32 to index
    %c0_65 = arith.constant 0 : index
    %c0_66 = arith.constant 0 : index
    %182 = vector.load %arg2[%181, %c0_65, %c0_66] : memref<64x3x128xf32, #tpu.memory_space<vmem>>, vector<1x3x128xf32>
    %183 = vector.shape_cast %182 : vector<1x3x128xf32> to vector<3x128xf32>
    %184 = arith.index_cast %c8_i32 : i32 to index
    %c0_67 = arith.constant 0 : index
    %c0_68 = arith.constant 0 : index
    %185 = vector.load %arg3[%184, %c0_67, %c0_68] : memref<64x1x128xi32, #tpu.memory_space<vmem>>, vector<1x1x128xi32>
    %186 = vector.shape_cast %185 : vector<1x1x128xi32> to vector<1x128xi32>
    %187 = arith.mulf %183, %183 : vector<3x128xf32>
    %cst_69 = arith.constant dense<0.000000e+00> : vector<128xf32>
    %188 = vector.multi_reduction <add>, %187, %cst_69 [0] : vector<3x128xf32> to vector<128xf32>
    %189 = vector.shape_cast %188 : vector<128xf32> to vector<1x128xf32>
    %cst_70 = arith.constant 1.000000e+00 : f32
    %190 = vector.broadcast %cst_70 : f32 to vector<1x128xf32>
    %191 = arith.divf %190, %189 : vector<1x128xf32>
    %192 = arith.mulf %191, %191 : vector<1x128xf32>
    %193 = arith.mulf %192, %192 : vector<1x128xf32>
    %194 = arith.mulf %192, %193 : vector<1x128xf32>
    %cst_71 = arith.constant 5.000000e-01 : f32
    %195 = vector.broadcast %cst_71 : f32 to vector<1x128xf32>
    %196 = arith.mulf %195, %194 : vector<1x128xf32>
    %197 = vector.broadcast %186 : vector<1x128xi32> to vector<128x128xi32>
    %198 = arith.cmpi eq, %197, %3 : vector<128x128xi32>
    %199 = arith.extui %198 : vector<128x128xi1> to vector<128x128xi32>
    %200 = arith.sitofp %199 : vector<128x128xi32> to vector<128x128xf32>
    %cst_72 = arith.constant dense<0.000000e+00> : vector<1x128xf32>
    %201 = tpu.matmul %196, %200, %cst_72 {dimension_numbers = #tpu.dot_dimension_numbers<[1], [1], [0], [0], [0, 0, 1, 0], [], []>} : vector<1x128xf32>, vector<128x128xf32>, vector<1x128xf32> -> vector<1x128xf32>
    %202 = arith.addf %180, %201 : vector<1x128xf32>
    %c9_i32 = arith.constant 9 : i32
    %203 = arith.index_cast %c9_i32 : i32 to index
    %c0_73 = arith.constant 0 : index
    %c0_74 = arith.constant 0 : index
    %204 = vector.load %arg2[%203, %c0_73, %c0_74] : memref<64x3x128xf32, #tpu.memory_space<vmem>>, vector<1x3x128xf32>
    %205 = vector.shape_cast %204 : vector<1x3x128xf32> to vector<3x128xf32>
    %206 = arith.index_cast %c9_i32 : i32 to index
    %c0_75 = arith.constant 0 : index
    %c0_76 = arith.constant 0 : index
    %207 = vector.load %arg3[%206, %c0_75, %c0_76] : memref<64x1x128xi32, #tpu.memory_space<vmem>>, vector<1x1x128xi32>
    %208 = vector.shape_cast %207 : vector<1x1x128xi32> to vector<1x128xi32>
    %209 = arith.mulf %205, %205 : vector<3x128xf32>
    %cst_77 = arith.constant dense<0.000000e+00> : vector<128xf32>
    %210 = vector.multi_reduction <add>, %209, %cst_77 [0] : vector<3x128xf32> to vector<128xf32>
    %211 = vector.shape_cast %210 : vector<128xf32> to vector<1x128xf32>
    %cst_78 = arith.constant 1.000000e+00 : f32
    %212 = vector.broadcast %cst_78 : f32 to vector<1x128xf32>
    %213 = arith.divf %212, %211 : vector<1x128xf32>
    %214 = arith.mulf %213, %213 : vector<1x128xf32>
    %215 = arith.mulf %214, %214 : vector<1x128xf32>
    %216 = arith.mulf %214, %215 : vector<1x128xf32>
    %cst_79 = arith.constant 5.000000e-01 : f32
    %217 = vector.broadcast %cst_79 : f32 to vector<1x128xf32>
    %218 = arith.mulf %217, %216 : vector<1x128xf32>
    %219 = vector.broadcast %208 : vector<1x128xi32> to vector<128x128xi32>
    %220 = arith.cmpi eq, %219, %3 : vector<128x128xi32>
    %221 = arith.extui %220 : vector<128x128xi1> to vector<128x128xi32>
    %222 = arith.sitofp %221 : vector<128x128xi32> to vector<128x128xf32>
    %cst_80 = arith.constant dense<0.000000e+00> : vector<1x128xf32>
    %223 = tpu.matmul %218, %222, %cst_80 {dimension_numbers = #tpu.dot_dimension_numbers<[1], [1], [0], [0], [0, 0, 1, 0], [], []>} : vector<1x128xf32>, vector<128x128xf32>, vector<1x128xf32> -> vector<1x128xf32>
    %224 = arith.addf %202, %223 : vector<1x128xf32>
    %c10_i32 = arith.constant 10 : i32
    %225 = arith.index_cast %c10_i32 : i32 to index
    %c0_81 = arith.constant 0 : index
    %c0_82 = arith.constant 0 : index
    %226 = vector.load %arg2[%225, %c0_81, %c0_82] : memref<64x3x128xf32, #tpu.memory_space<vmem>>, vector<1x3x128xf32>
    %227 = vector.shape_cast %226 : vector<1x3x128xf32> to vector<3x128xf32>
    %228 = arith.index_cast %c10_i32 : i32 to index
    %c0_83 = arith.constant 0 : index
    %c0_84 = arith.constant 0 : index
    %229 = vector.load %arg3[%228, %c0_83, %c0_84] : memref<64x1x128xi32, #tpu.memory_space<vmem>>, vector<1x1x128xi32>
    %230 = vector.shape_cast %229 : vector<1x1x128xi32> to vector<1x128xi32>
    %231 = arith.mulf %227, %227 : vector<3x128xf32>
    %cst_85 = arith.constant dense<0.000000e+00> : vector<128xf32>
    %232 = vector.multi_reduction <add>, %231, %cst_85 [0] : vector<3x128xf32> to vector<128xf32>
    %233 = vector.shape_cast %232 : vector<128xf32> to vector<1x128xf32>
    %cst_86 = arith.constant 1.000000e+00 : f32
    %234 = vector.broadcast %cst_86 : f32 to vector<1x128xf32>
    %235 = arith.divf %234, %233 : vector<1x128xf32>
    %236 = arith.mulf %235, %235 : vector<1x128xf32>
    %237 = arith.mulf %236, %236 : vector<1x128xf32>
    %238 = arith.mulf %236, %237 : vector<1x128xf32>
    %cst_87 = arith.constant 5.000000e-01 : f32
    %239 = vector.broadcast %cst_87 : f32 to vector<1x128xf32>
    %240 = arith.mulf %239, %238 : vector<1x128xf32>
    %241 = vector.broadcast %230 : vector<1x128xi32> to vector<128x128xi32>
    %242 = arith.cmpi eq, %241, %3 : vector<128x128xi32>
    %243 = arith.extui %242 : vector<128x128xi1> to vector<128x128xi32>
    %244 = arith.sitofp %243 : vector<128x128xi32> to vector<128x128xf32>
    %cst_88 = arith.constant dense<0.000000e+00> : vector<1x128xf32>
    %245 = tpu.matmul %240, %244, %cst_88 {dimension_numbers = #tpu.dot_dimension_numbers<[1], [1], [0], [0], [0, 0, 1, 0], [], []>} : vector<1x128xf32>, vector<128x128xf32>, vector<1x128xf32> -> vector<1x128xf32>
    %246 = arith.addf %224, %245 : vector<1x128xf32>
    %c11_i32 = arith.constant 11 : i32
    %247 = arith.index_cast %c11_i32 : i32 to index
    %c0_89 = arith.constant 0 : index
    %c0_90 = arith.constant 0 : index
    %248 = vector.load %arg2[%247, %c0_89, %c0_90] : memref<64x3x128xf32, #tpu.memory_space<vmem>>, vector<1x3x128xf32>
    %249 = vector.shape_cast %248 : vector<1x3x128xf32> to vector<3x128xf32>
    %250 = arith.index_cast %c11_i32 : i32 to index
    %c0_91 = arith.constant 0 : index
    %c0_92 = arith.constant 0 : index
    %251 = vector.load %arg3[%250, %c0_91, %c0_92] : memref<64x1x128xi32, #tpu.memory_space<vmem>>, vector<1x1x128xi32>
    %252 = vector.shape_cast %251 : vector<1x1x128xi32> to vector<1x128xi32>
    %253 = arith.mulf %249, %249 : vector<3x128xf32>
    %cst_93 = arith.constant dense<0.000000e+00> : vector<128xf32>
    %254 = vector.multi_reduction <add>, %253, %cst_93 [0] : vector<3x128xf32> to vector<128xf32>
    %255 = vector.shape_cast %254 : vector<128xf32> to vector<1x128xf32>
    %cst_94 = arith.constant 1.000000e+00 : f32
    %256 = vector.broadcast %cst_94 : f32 to vector<1x128xf32>
    %257 = arith.divf %256, %255 : vector<1x128xf32>
    %258 = arith.mulf %257, %257 : vector<1x128xf32>
    %259 = arith.mulf %258, %258 : vector<1x128xf32>
    %260 = arith.mulf %258, %259 : vector<1x128xf32>
    %cst_95 = arith.constant 5.000000e-01 : f32
    %261 = vector.broadcast %cst_95 : f32 to vector<1x128xf32>
    %262 = arith.mulf %261, %260 : vector<1x128xf32>
    %263 = vector.broadcast %252 : vector<1x128xi32> to vector<128x128xi32>
    %264 = arith.cmpi eq, %263, %3 : vector<128x128xi32>
    %265 = arith.extui %264 : vector<128x128xi1> to vector<128x128xi32>
    %266 = arith.sitofp %265 : vector<128x128xi32> to vector<128x128xf32>
    %cst_96 = arith.constant dense<0.000000e+00> : vector<1x128xf32>
    %267 = tpu.matmul %262, %266, %cst_96 {dimension_numbers = #tpu.dot_dimension_numbers<[1], [1], [0], [0], [0, 0, 1, 0], [], []>} : vector<1x128xf32>, vector<128x128xf32>, vector<1x128xf32> -> vector<1x128xf32>
    %268 = arith.addf %246, %267 : vector<1x128xf32>
    %c12_i32 = arith.constant 12 : i32
    %269 = arith.index_cast %c12_i32 : i32 to index
    %c0_97 = arith.constant 0 : index
    %c0_98 = arith.constant 0 : index
    %270 = vector.load %arg2[%269, %c0_97, %c0_98] : memref<64x3x128xf32, #tpu.memory_space<vmem>>, vector<1x3x128xf32>
    %271 = vector.shape_cast %270 : vector<1x3x128xf32> to vector<3x128xf32>
    %272 = arith.index_cast %c12_i32 : i32 to index
    %c0_99 = arith.constant 0 : index
    %c0_100 = arith.constant 0 : index
    %273 = vector.load %arg3[%272, %c0_99, %c0_100] : memref<64x1x128xi32, #tpu.memory_space<vmem>>, vector<1x1x128xi32>
    %274 = vector.shape_cast %273 : vector<1x1x128xi32> to vector<1x128xi32>
    %275 = arith.mulf %271, %271 : vector<3x128xf32>
    %cst_101 = arith.constant dense<0.000000e+00> : vector<128xf32>
    %276 = vector.multi_reduction <add>, %275, %cst_101 [0] : vector<3x128xf32> to vector<128xf32>
    %277 = vector.shape_cast %276 : vector<128xf32> to vector<1x128xf32>
    %cst_102 = arith.constant 1.000000e+00 : f32
    %278 = vector.broadcast %cst_102 : f32 to vector<1x128xf32>
    %279 = arith.divf %278, %277 : vector<1x128xf32>
    %280 = arith.mulf %279, %279 : vector<1x128xf32>
    %281 = arith.mulf %280, %280 : vector<1x128xf32>
    %282 = arith.mulf %280, %281 : vector<1x128xf32>
    %cst_103 = arith.constant 5.000000e-01 : f32
    %283 = vector.broadcast %cst_103 : f32 to vector<1x128xf32>
    %284 = arith.mulf %283, %282 : vector<1x128xf32>
    %285 = vector.broadcast %274 : vector<1x128xi32> to vector<128x128xi32>
    %286 = arith.cmpi eq, %285, %3 : vector<128x128xi32>
    %287 = arith.extui %286 : vector<128x128xi1> to vector<128x128xi32>
    %288 = arith.sitofp %287 : vector<128x128xi32> to vector<128x128xf32>
    %cst_104 = arith.constant dense<0.000000e+00> : vector<1x128xf32>
    %289 = tpu.matmul %284, %288, %cst_104 {dimension_numbers = #tpu.dot_dimension_numbers<[1], [1], [0], [0], [0, 0, 1, 0], [], []>} : vector<1x128xf32>, vector<128x128xf32>, vector<1x128xf32> -> vector<1x128xf32>
    %290 = arith.addf %268, %289 : vector<1x128xf32>
    %c13_i32 = arith.constant 13 : i32
    %291 = arith.index_cast %c13_i32 : i32 to index
    %c0_105 = arith.constant 0 : index
    %c0_106 = arith.constant 0 : index
    %292 = vector.load %arg2[%291, %c0_105, %c0_106] : memref<64x3x128xf32, #tpu.memory_space<vmem>>, vector<1x3x128xf32>
    %293 = vector.shape_cast %292 : vector<1x3x128xf32> to vector<3x128xf32>
    %294 = arith.index_cast %c13_i32 : i32 to index
    %c0_107 = arith.constant 0 : index
    %c0_108 = arith.constant 0 : index
    %295 = vector.load %arg3[%294, %c0_107, %c0_108] : memref<64x1x128xi32, #tpu.memory_space<vmem>>, vector<1x1x128xi32>
    %296 = vector.shape_cast %295 : vector<1x1x128xi32> to vector<1x128xi32>
    %297 = arith.mulf %293, %293 : vector<3x128xf32>
    %cst_109 = arith.constant dense<0.000000e+00> : vector<128xf32>
    %298 = vector.multi_reduction <add>, %297, %cst_109 [0] : vector<3x128xf32> to vector<128xf32>
    %299 = vector.shape_cast %298 : vector<128xf32> to vector<1x128xf32>
    %cst_110 = arith.constant 1.000000e+00 : f32
    %300 = vector.broadcast %cst_110 : f32 to vector<1x128xf32>
    %301 = arith.divf %300, %299 : vector<1x128xf32>
    %302 = arith.mulf %301, %301 : vector<1x128xf32>
    %303 = arith.mulf %302, %302 : vector<1x128xf32>
    %304 = arith.mulf %302, %303 : vector<1x128xf32>
    %cst_111 = arith.constant 5.000000e-01 : f32
    %305 = vector.broadcast %cst_111 : f32 to vector<1x128xf32>
    %306 = arith.mulf %305, %304 : vector<1x128xf32>
    %307 = vector.broadcast %296 : vector<1x128xi32> to vector<128x128xi32>
    %308 = arith.cmpi eq, %307, %3 : vector<128x128xi32>
    %309 = arith.extui %308 : vector<128x128xi1> to vector<128x128xi32>
    %310 = arith.sitofp %309 : vector<128x128xi32> to vector<128x128xf32>
    %cst_112 = arith.constant dense<0.000000e+00> : vector<1x128xf32>
    %311 = tpu.matmul %306, %310, %cst_112 {dimension_numbers = #tpu.dot_dimension_numbers<[1], [1], [0], [0], [0, 0, 1, 0], [], []>} : vector<1x128xf32>, vector<128x128xf32>, vector<1x128xf32> -> vector<1x128xf32>
    %312 = arith.addf %290, %311 : vector<1x128xf32>
    %c14_i32 = arith.constant 14 : i32
    %313 = arith.index_cast %c14_i32 : i32 to index
    %c0_113 = arith.constant 0 : index
    %c0_114 = arith.constant 0 : index
    %314 = vector.load %arg2[%313, %c0_113, %c0_114] : memref<64x3x128xf32, #tpu.memory_space<vmem>>, vector<1x3x128xf32>
    %315 = vector.shape_cast %314 : vector<1x3x128xf32> to vector<3x128xf32>
    %316 = arith.index_cast %c14_i32 : i32 to index
    %c0_115 = arith.constant 0 : index
    %c0_116 = arith.constant 0 : index
    %317 = vector.load %arg3[%316, %c0_115, %c0_116] : memref<64x1x128xi32, #tpu.memory_space<vmem>>, vector<1x1x128xi32>
    %318 = vector.shape_cast %317 : vector<1x1x128xi32> to vector<1x128xi32>
    %319 = arith.mulf %315, %315 : vector<3x128xf32>
    %cst_117 = arith.constant dense<0.000000e+00> : vector<128xf32>
    %320 = vector.multi_reduction <add>, %319, %cst_117 [0] : vector<3x128xf32> to vector<128xf32>
    %321 = vector.shape_cast %320 : vector<128xf32> to vector<1x128xf32>
    %cst_118 = arith.constant 1.000000e+00 : f32
    %322 = vector.broadcast %cst_118 : f32 to vector<1x128xf32>
    %323 = arith.divf %322, %321 : vector<1x128xf32>
    %324 = arith.mulf %323, %323 : vector<1x128xf32>
    %325 = arith.mulf %324, %324 : vector<1x128xf32>
    %326 = arith.mulf %324, %325 : vector<1x128xf32>
    %cst_119 = arith.constant 5.000000e-01 : f32
    %327 = vector.broadcast %cst_119 : f32 to vector<1x128xf32>
    %328 = arith.mulf %327, %326 : vector<1x128xf32>
    %329 = vector.broadcast %318 : vector<1x128xi32> to vector<128x128xi32>
    %330 = arith.cmpi eq, %329, %3 : vector<128x128xi32>
    %331 = arith.extui %330 : vector<128x128xi1> to vector<128x128xi32>
    %332 = arith.sitofp %331 : vector<128x128xi32> to vector<128x128xf32>
    %cst_120 = arith.constant dense<0.000000e+00> : vector<1x128xf32>
    %333 = tpu.matmul %328, %332, %cst_120 {dimension_numbers = #tpu.dot_dimension_numbers<[1], [1], [0], [0], [0, 0, 1, 0], [], []>} : vector<1x128xf32>, vector<128x128xf32>, vector<1x128xf32> -> vector<1x128xf32>
    %334 = arith.addf %312, %333 : vector<1x128xf32>
    %c15_i32 = arith.constant 15 : i32
    %335 = arith.index_cast %c15_i32 : i32 to index
    %c0_121 = arith.constant 0 : index
    %c0_122 = arith.constant 0 : index
    %336 = vector.load %arg2[%335, %c0_121, %c0_122] : memref<64x3x128xf32, #tpu.memory_space<vmem>>, vector<1x3x128xf32>
    %337 = vector.shape_cast %336 : vector<1x3x128xf32> to vector<3x128xf32>
    %338 = arith.index_cast %c15_i32 : i32 to index
    %c0_123 = arith.constant 0 : index
    %c0_124 = arith.constant 0 : index
    %339 = vector.load %arg3[%338, %c0_123, %c0_124] : memref<64x1x128xi32, #tpu.memory_space<vmem>>, vector<1x1x128xi32>
    %340 = vector.shape_cast %339 : vector<1x1x128xi32> to vector<1x128xi32>
    %341 = arith.mulf %337, %337 : vector<3x128xf32>
    %cst_125 = arith.constant dense<0.000000e+00> : vector<128xf32>
    %342 = vector.multi_reduction <add>, %341, %cst_125 [0] : vector<3x128xf32> to vector<128xf32>
    %343 = vector.shape_cast %342 : vector<128xf32> to vector<1x128xf32>
    %cst_126 = arith.constant 1.000000e+00 : f32
    %344 = vector.broadcast %cst_126 : f32 to vector<1x128xf32>
    %345 = arith.divf %344, %343 : vector<1x128xf32>
    %346 = arith.mulf %345, %345 : vector<1x128xf32>
    %347 = arith.mulf %346, %346 : vector<1x128xf32>
    %348 = arith.mulf %346, %347 : vector<1x128xf32>
    %cst_127 = arith.constant 5.000000e-01 : f32
    %349 = vector.broadcast %cst_127 : f32 to vector<1x128xf32>
    %350 = arith.mulf %349, %348 : vector<1x128xf32>
    %351 = vector.broadcast %340 : vector<1x128xi32> to vector<128x128xi32>
    %352 = arith.cmpi eq, %351, %3 : vector<128x128xi32>
    %353 = arith.extui %352 : vector<128x128xi1> to vector<128x128xi32>
    %354 = arith.sitofp %353 : vector<128x128xi32> to vector<128x128xf32>
    %cst_128 = arith.constant dense<0.000000e+00> : vector<1x128xf32>
    %355 = tpu.matmul %350, %354, %cst_128 {dimension_numbers = #tpu.dot_dimension_numbers<[1], [1], [0], [0], [0, 0, 1, 0], [], []>} : vector<1x128xf32>, vector<128x128xf32>, vector<1x128xf32> -> vector<1x128xf32>
    %356 = arith.addf %334, %355 : vector<1x128xf32>
    %c16_i32 = arith.constant 16 : i32
    %357 = arith.index_cast %c16_i32 : i32 to index
    %c0_129 = arith.constant 0 : index
    %c0_130 = arith.constant 0 : index
    %358 = vector.load %arg2[%357, %c0_129, %c0_130] : memref<64x3x128xf32, #tpu.memory_space<vmem>>, vector<1x3x128xf32>
    %359 = vector.shape_cast %358 : vector<1x3x128xf32> to vector<3x128xf32>
    %360 = arith.index_cast %c16_i32 : i32 to index
    %c0_131 = arith.constant 0 : index
    %c0_132 = arith.constant 0 : index
    %361 = vector.load %arg3[%360, %c0_131, %c0_132] : memref<64x1x128xi32, #tpu.memory_space<vmem>>, vector<1x1x128xi32>
    %362 = vector.shape_cast %361 : vector<1x1x128xi32> to vector<1x128xi32>
    %363 = arith.mulf %359, %359 : vector<3x128xf32>
    %cst_133 = arith.constant dense<0.000000e+00> : vector<128xf32>
    %364 = vector.multi_reduction <add>, %363, %cst_133 [0] : vector<3x128xf32> to vector<128xf32>
    %365 = vector.shape_cast %364 : vector<128xf32> to vector<1x128xf32>
    %cst_134 = arith.constant 1.000000e+00 : f32
    %366 = vector.broadcast %cst_134 : f32 to vector<1x128xf32>
    %367 = arith.divf %366, %365 : vector<1x128xf32>
    %368 = arith.mulf %367, %367 : vector<1x128xf32>
    %369 = arith.mulf %368, %368 : vector<1x128xf32>
    %370 = arith.mulf %368, %369 : vector<1x128xf32>
    %cst_135 = arith.constant 5.000000e-01 : f32
    %371 = vector.broadcast %cst_135 : f32 to vector<1x128xf32>
    %372 = arith.mulf %371, %370 : vector<1x128xf32>
    %373 = vector.broadcast %362 : vector<1x128xi32> to vector<128x128xi32>
    %374 = arith.cmpi eq, %373, %3 : vector<128x128xi32>
    %375 = arith.extui %374 : vector<128x128xi1> to vector<128x128xi32>
    %376 = arith.sitofp %375 : vector<128x128xi32> to vector<128x128xf32>
    %cst_136 = arith.constant dense<0.000000e+00> : vector<1x128xf32>
    %377 = tpu.matmul %372, %376, %cst_136 {dimension_numbers = #tpu.dot_dimension_numbers<[1], [1], [0], [0], [0, 0, 1, 0], [], []>} : vector<1x128xf32>, vector<128x128xf32>, vector<1x128xf32> -> vector<1x128xf32>
    %378 = arith.addf %356, %377 : vector<1x128xf32>
    %c17_i32 = arith.constant 17 : i32
    %379 = arith.index_cast %c17_i32 : i32 to index
    %c0_137 = arith.constant 0 : index
    %c0_138 = arith.constant 0 : index
    %380 = vector.load %arg2[%379, %c0_137, %c0_138] : memref<64x3x128xf32, #tpu.memory_space<vmem>>, vector<1x3x128xf32>
    %381 = vector.shape_cast %380 : vector<1x3x128xf32> to vector<3x128xf32>
    %382 = arith.index_cast %c17_i32 : i32 to index
    %c0_139 = arith.constant 0 : index
    %c0_140 = arith.constant 0 : index
    %383 = vector.load %arg3[%382, %c0_139, %c0_140] : memref<64x1x128xi32, #tpu.memory_space<vmem>>, vector<1x1x128xi32>
    %384 = vector.shape_cast %383 : vector<1x1x128xi32> to vector<1x128xi32>
    %385 = arith.mulf %381, %381 : vector<3x128xf32>
    %cst_141 = arith.constant dense<0.000000e+00> : vector<128xf32>
    %386 = vector.multi_reduction <add>, %385, %cst_141 [0] : vector<3x128xf32> to vector<128xf32>
    %387 = vector.shape_cast %386 : vector<128xf32> to vector<1x128xf32>
    %cst_142 = arith.constant 1.000000e+00 : f32
    %388 = vector.broadcast %cst_142 : f32 to vector<1x128xf32>
    %389 = arith.divf %388, %387 : vector<1x128xf32>
    %390 = arith.mulf %389, %389 : vector<1x128xf32>
    %391 = arith.mulf %390, %390 : vector<1x128xf32>
    %392 = arith.mulf %390, %391 : vector<1x128xf32>
    %cst_143 = arith.constant 5.000000e-01 : f32
    %393 = vector.broadcast %cst_143 : f32 to vector<1x128xf32>
    %394 = arith.mulf %393, %392 : vector<1x128xf32>
    %395 = vector.broadcast %384 : vector<1x128xi32> to vector<128x128xi32>
    %396 = arith.cmpi eq, %395, %3 : vector<128x128xi32>
    %397 = arith.extui %396 : vector<128x128xi1> to vector<128x128xi32>
    %398 = arith.sitofp %397 : vector<128x128xi32> to vector<128x128xf32>
    %cst_144 = arith.constant dense<0.000000e+00> : vector<1x128xf32>
    %399 = tpu.matmul %394, %398, %cst_144 {dimension_numbers = #tpu.dot_dimension_numbers<[1], [1], [0], [0], [0, 0, 1, 0], [], []>} : vector<1x128xf32>, vector<128x128xf32>, vector<1x128xf32> -> vector<1x128xf32>
    %400 = arith.addf %378, %399 : vector<1x128xf32>
    %c18_i32 = arith.constant 18 : i32
    %401 = arith.index_cast %c18_i32 : i32 to index
    %c0_145 = arith.constant 0 : index
    %c0_146 = arith.constant 0 : index
    %402 = vector.load %arg2[%401, %c0_145, %c0_146] : memref<64x3x128xf32, #tpu.memory_space<vmem>>, vector<1x3x128xf32>
    %403 = vector.shape_cast %402 : vector<1x3x128xf32> to vector<3x128xf32>
    %404 = arith.index_cast %c18_i32 : i32 to index
    %c0_147 = arith.constant 0 : index
    %c0_148 = arith.constant 0 : index
    %405 = vector.load %arg3[%404, %c0_147, %c0_148] : memref<64x1x128xi32, #tpu.memory_space<vmem>>, vector<1x1x128xi32>
    %406 = vector.shape_cast %405 : vector<1x1x128xi32> to vector<1x128xi32>
    %407 = arith.mulf %403, %403 : vector<3x128xf32>
    %cst_149 = arith.constant dense<0.000000e+00> : vector<128xf32>
    %408 = vector.multi_reduction <add>, %407, %cst_149 [0] : vector<3x128xf32> to vector<128xf32>
    %409 = vector.shape_cast %408 : vector<128xf32> to vector<1x128xf32>
    %cst_150 = arith.constant 1.000000e+00 : f32
    %410 = vector.broadcast %cst_150 : f32 to vector<1x128xf32>
    %411 = arith.divf %410, %409 : vector<1x128xf32>
    %412 = arith.mulf %411, %411 : vector<1x128xf32>
    %413 = arith.mulf %412, %412 : vector<1x128xf32>
    %414 = arith.mulf %412, %413 : vector<1x128xf32>
    %cst_151 = arith.constant 5.000000e-01 : f32
    %415 = vector.broadcast %cst_151 : f32 to vector<1x128xf32>
    %416 = arith.mulf %415, %414 : vector<1x128xf32>
    %417 = vector.broadcast %406 : vector<1x128xi32> to vector<128x128xi32>
    %418 = arith.cmpi eq, %417, %3 : vector<128x128xi32>
    %419 = arith.extui %418 : vector<128x128xi1> to vector<128x128xi32>
    %420 = arith.sitofp %419 : vector<128x128xi32> to vector<128x128xf32>
    %cst_152 = arith.constant dense<0.000000e+00> : vector<1x128xf32>
    %421 = tpu.matmul %416, %420, %cst_152 {dimension_numbers = #tpu.dot_dimension_numbers<[1], [1], [0], [0], [0, 0, 1, 0], [], []>} : vector<1x128xf32>, vector<128x128xf32>, vector<1x128xf32> -> vector<1x128xf32>
    %422 = arith.addf %400, %421 : vector<1x128xf32>
    %c19_i32 = arith.constant 19 : i32
    %423 = arith.index_cast %c19_i32 : i32 to index
    %c0_153 = arith.constant 0 : index
    %c0_154 = arith.constant 0 : index
    %424 = vector.load %arg2[%423, %c0_153, %c0_154] : memref<64x3x128xf32, #tpu.memory_space<vmem>>, vector<1x3x128xf32>
    %425 = vector.shape_cast %424 : vector<1x3x128xf32> to vector<3x128xf32>
    %426 = arith.index_cast %c19_i32 : i32 to index
    %c0_155 = arith.constant 0 : index
    %c0_156 = arith.constant 0 : index
    %427 = vector.load %arg3[%426, %c0_155, %c0_156] : memref<64x1x128xi32, #tpu.memory_space<vmem>>, vector<1x1x128xi32>
    %428 = vector.shape_cast %427 : vector<1x1x128xi32> to vector<1x128xi32>
    %429 = arith.mulf %425, %425 : vector<3x128xf32>
    %cst_157 = arith.constant dense<0.000000e+00> : vector<128xf32>
    %430 = vector.multi_reduction <add>, %429, %cst_157 [0] : vector<3x128xf32> to vector<128xf32>
    %431 = vector.shape_cast %430 : vector<128xf32> to vector<1x128xf32>
    %cst_158 = arith.constant 1.000000e+00 : f32
    %432 = vector.broadcast %cst_158 : f32 to vector<1x128xf32>
    %433 = arith.divf %432, %431 : vector<1x128xf32>
    %434 = arith.mulf %433, %433 : vector<1x128xf32>
    %435 = arith.mulf %434, %434 : vector<1x128xf32>
    %436 = arith.mulf %434, %435 : vector<1x128xf32>
    %cst_159 = arith.constant 5.000000e-01 : f32
    %437 = vector.broadcast %cst_159 : f32 to vector<1x128xf32>
    %438 = arith.mulf %437, %436 : vector<1x128xf32>
    %439 = vector.broadcast %428 : vector<1x128xi32> to vector<128x128xi32>
    %440 = arith.cmpi eq, %439, %3 : vector<128x128xi32>
    %441 = arith.extui %440 : vector<128x128xi1> to vector<128x128xi32>
    %442 = arith.sitofp %441 : vector<128x128xi32> to vector<128x128xf32>
    %cst_160 = arith.constant dense<0.000000e+00> : vector<1x128xf32>
    %443 = tpu.matmul %438, %442, %cst_160 {dimension_numbers = #tpu.dot_dimension_numbers<[1], [1], [0], [0], [0, 0, 1, 0], [], []>} : vector<1x128xf32>, vector<128x128xf32>, vector<1x128xf32> -> vector<1x128xf32>
    %444 = arith.addf %422, %443 : vector<1x128xf32>
    %c20_i32 = arith.constant 20 : i32
    %445 = arith.index_cast %c20_i32 : i32 to index
    %c0_161 = arith.constant 0 : index
    %c0_162 = arith.constant 0 : index
    %446 = vector.load %arg2[%445, %c0_161, %c0_162] : memref<64x3x128xf32, #tpu.memory_space<vmem>>, vector<1x3x128xf32>
    %447 = vector.shape_cast %446 : vector<1x3x128xf32> to vector<3x128xf32>
    %448 = arith.index_cast %c20_i32 : i32 to index
    %c0_163 = arith.constant 0 : index
    %c0_164 = arith.constant 0 : index
    %449 = vector.load %arg3[%448, %c0_163, %c0_164] : memref<64x1x128xi32, #tpu.memory_space<vmem>>, vector<1x1x128xi32>
    %450 = vector.shape_cast %449 : vector<1x1x128xi32> to vector<1x128xi32>
    %451 = arith.mulf %447, %447 : vector<3x128xf32>
    %cst_165 = arith.constant dense<0.000000e+00> : vector<128xf32>
    %452 = vector.multi_reduction <add>, %451, %cst_165 [0] : vector<3x128xf32> to vector<128xf32>
    %453 = vector.shape_cast %452 : vector<128xf32> to vector<1x128xf32>
    %cst_166 = arith.constant 1.000000e+00 : f32
    %454 = vector.broadcast %cst_166 : f32 to vector<1x128xf32>
    %455 = arith.divf %454, %453 : vector<1x128xf32>
    %456 = arith.mulf %455, %455 : vector<1x128xf32>
    %457 = arith.mulf %456, %456 : vector<1x128xf32>
    %458 = arith.mulf %456, %457 : vector<1x128xf32>
    %cst_167 = arith.constant 5.000000e-01 : f32
    %459 = vector.broadcast %cst_167 : f32 to vector<1x128xf32>
    %460 = arith.mulf %459, %458 : vector<1x128xf32>
    %461 = vector.broadcast %450 : vector<1x128xi32> to vector<128x128xi32>
    %462 = arith.cmpi eq, %461, %3 : vector<128x128xi32>
    %463 = arith.extui %462 : vector<128x128xi1> to vector<128x128xi32>
    %464 = arith.sitofp %463 : vector<128x128xi32> to vector<128x128xf32>
    %cst_168 = arith.constant dense<0.000000e+00> : vector<1x128xf32>
    %465 = tpu.matmul %460, %464, %cst_168 {dimension_numbers = #tpu.dot_dimension_numbers<[1], [1], [0], [0], [0, 0, 1, 0], [], []>} : vector<1x128xf32>, vector<128x128xf32>, vector<1x128xf32> -> vector<1x128xf32>
    %466 = arith.addf %444, %465 : vector<1x128xf32>
    %c21_i32 = arith.constant 21 : i32
    %467 = arith.index_cast %c21_i32 : i32 to index
    %c0_169 = arith.constant 0 : index
    %c0_170 = arith.constant 0 : index
    %468 = vector.load %arg2[%467, %c0_169, %c0_170] : memref<64x3x128xf32, #tpu.memory_space<vmem>>, vector<1x3x128xf32>
    %469 = vector.shape_cast %468 : vector<1x3x128xf32> to vector<3x128xf32>
    %470 = arith.index_cast %c21_i32 : i32 to index
    %c0_171 = arith.constant 0 : index
    %c0_172 = arith.constant 0 : index
    %471 = vector.load %arg3[%470, %c0_171, %c0_172] : memref<64x1x128xi32, #tpu.memory_space<vmem>>, vector<1x1x128xi32>
    %472 = vector.shape_cast %471 : vector<1x1x128xi32> to vector<1x128xi32>
    %473 = arith.mulf %469, %469 : vector<3x128xf32>
    %cst_173 = arith.constant dense<0.000000e+00> : vector<128xf32>
    %474 = vector.multi_reduction <add>, %473, %cst_173 [0] : vector<3x128xf32> to vector<128xf32>
    %475 = vector.shape_cast %474 : vector<128xf32> to vector<1x128xf32>
    %cst_174 = arith.constant 1.000000e+00 : f32
    %476 = vector.broadcast %cst_174 : f32 to vector<1x128xf32>
    %477 = arith.divf %476, %475 : vector<1x128xf32>
    %478 = arith.mulf %477, %477 : vector<1x128xf32>
    %479 = arith.mulf %478, %478 : vector<1x128xf32>
    %480 = arith.mulf %478, %479 : vector<1x128xf32>
    %cst_175 = arith.constant 5.000000e-01 : f32
    %481 = vector.broadcast %cst_175 : f32 to vector<1x128xf32>
    %482 = arith.mulf %481, %480 : vector<1x128xf32>
    %483 = vector.broadcast %472 : vector<1x128xi32> to vector<128x128xi32>
    %484 = arith.cmpi eq, %483, %3 : vector<128x128xi32>
    %485 = arith.extui %484 : vector<128x128xi1> to vector<128x128xi32>
    %486 = arith.sitofp %485 : vector<128x128xi32> to vector<128x128xf32>
    %cst_176 = arith.constant dense<0.000000e+00> : vector<1x128xf32>
    %487 = tpu.matmul %482, %486, %cst_176 {dimension_numbers = #tpu.dot_dimension_numbers<[1], [1], [0], [0], [0, 0, 1, 0], [], []>} : vector<1x128xf32>, vector<128x128xf32>, vector<1x128xf32> -> vector<1x128xf32>
    %488 = arith.addf %466, %487 : vector<1x128xf32>
    %c22_i32 = arith.constant 22 : i32
    %489 = arith.index_cast %c22_i32 : i32 to index
    %c0_177 = arith.constant 0 : index
    %c0_178 = arith.constant 0 : index
    %490 = vector.load %arg2[%489, %c0_177, %c0_178] : memref<64x3x128xf32, #tpu.memory_space<vmem>>, vector<1x3x128xf32>
    %491 = vector.shape_cast %490 : vector<1x3x128xf32> to vector<3x128xf32>
    %492 = arith.index_cast %c22_i32 : i32 to index
    %c0_179 = arith.constant 0 : index
    %c0_180 = arith.constant 0 : index
    %493 = vector.load %arg3[%492, %c0_179, %c0_180] : memref<64x1x128xi32, #tpu.memory_space<vmem>>, vector<1x1x128xi32>
    %494 = vector.shape_cast %493 : vector<1x1x128xi32> to vector<1x128xi32>
    %495 = arith.mulf %491, %491 : vector<3x128xf32>
    %cst_181 = arith.constant dense<0.000000e+00> : vector<128xf32>
    %496 = vector.multi_reduction <add>, %495, %cst_181 [0] : vector<3x128xf32> to vector<128xf32>
    %497 = vector.shape_cast %496 : vector<128xf32> to vector<1x128xf32>
    %cst_182 = arith.constant 1.000000e+00 : f32
    %498 = vector.broadcast %cst_182 : f32 to vector<1x128xf32>
    %499 = arith.divf %498, %497 : vector<1x128xf32>
    %500 = arith.mulf %499, %499 : vector<1x128xf32>
    %501 = arith.mulf %500, %500 : vector<1x128xf32>
    %502 = arith.mulf %500, %501 : vector<1x128xf32>
    %cst_183 = arith.constant 5.000000e-01 : f32
    %503 = vector.broadcast %cst_183 : f32 to vector<1x128xf32>
    %504 = arith.mulf %503, %502 : vector<1x128xf32>
    %505 = vector.broadcast %494 : vector<1x128xi32> to vector<128x128xi32>
    %506 = arith.cmpi eq, %505, %3 : vector<128x128xi32>
    %507 = arith.extui %506 : vector<128x128xi1> to vector<128x128xi32>
    %508 = arith.sitofp %507 : vector<128x128xi32> to vector<128x128xf32>
    %cst_184 = arith.constant dense<0.000000e+00> : vector<1x128xf32>
    %509 = tpu.matmul %504, %508, %cst_184 {dimension_numbers = #tpu.dot_dimension_numbers<[1], [1], [0], [0], [0, 0, 1, 0], [], []>} : vector<1x128xf32>, vector<128x128xf32>, vector<1x128xf32> -> vector<1x128xf32>
    %510 = arith.addf %488, %509 : vector<1x128xf32>
    %c23_i32 = arith.constant 23 : i32
    %511 = arith.index_cast %c23_i32 : i32 to index
    %c0_185 = arith.constant 0 : index
    %c0_186 = arith.constant 0 : index
    %512 = vector.load %arg2[%511, %c0_185, %c0_186] : memref<64x3x128xf32, #tpu.memory_space<vmem>>, vector<1x3x128xf32>
    %513 = vector.shape_cast %512 : vector<1x3x128xf32> to vector<3x128xf32>
    %514 = arith.index_cast %c23_i32 : i32 to index
    %c0_187 = arith.constant 0 : index
    %c0_188 = arith.constant 0 : index
    %515 = vector.load %arg3[%514, %c0_187, %c0_188] : memref<64x1x128xi32, #tpu.memory_space<vmem>>, vector<1x1x128xi32>
    %516 = vector.shape_cast %515 : vector<1x1x128xi32> to vector<1x128xi32>
    %517 = arith.mulf %513, %513 : vector<3x128xf32>
    %cst_189 = arith.constant dense<0.000000e+00> : vector<128xf32>
    %518 = vector.multi_reduction <add>, %517, %cst_189 [0] : vector<3x128xf32> to vector<128xf32>
    %519 = vector.shape_cast %518 : vector<128xf32> to vector<1x128xf32>
    %cst_190 = arith.constant 1.000000e+00 : f32
    %520 = vector.broadcast %cst_190 : f32 to vector<1x128xf32>
    %521 = arith.divf %520, %519 : vector<1x128xf32>
    %522 = arith.mulf %521, %521 : vector<1x128xf32>
    %523 = arith.mulf %522, %522 : vector<1x128xf32>
    %524 = arith.mulf %522, %523 : vector<1x128xf32>
    %cst_191 = arith.constant 5.000000e-01 : f32
    %525 = vector.broadcast %cst_191 : f32 to vector<1x128xf32>
    %526 = arith.mulf %525, %524 : vector<1x128xf32>
    %527 = vector.broadcast %516 : vector<1x128xi32> to vector<128x128xi32>
    %528 = arith.cmpi eq, %527, %3 : vector<128x128xi32>
    %529 = arith.extui %528 : vector<128x128xi1> to vector<128x128xi32>
    %530 = arith.sitofp %529 : vector<128x128xi32> to vector<128x128xf32>
    %cst_192 = arith.constant dense<0.000000e+00> : vector<1x128xf32>
    %531 = tpu.matmul %526, %530, %cst_192 {dimension_numbers = #tpu.dot_dimension_numbers<[1], [1], [0], [0], [0, 0, 1, 0], [], []>} : vector<1x128xf32>, vector<128x128xf32>, vector<1x128xf32> -> vector<1x128xf32>
    %532 = arith.addf %510, %531 : vector<1x128xf32>
    %c24_i32 = arith.constant 24 : i32
    %533 = arith.index_cast %c24_i32 : i32 to index
    %c0_193 = arith.constant 0 : index
    %c0_194 = arith.constant 0 : index
    %534 = vector.load %arg2[%533, %c0_193, %c0_194] : memref<64x3x128xf32, #tpu.memory_space<vmem>>, vector<1x3x128xf32>
    %535 = vector.shape_cast %534 : vector<1x3x128xf32> to vector<3x128xf32>
    %536 = arith.index_cast %c24_i32 : i32 to index
    %c0_195 = arith.constant 0 : index
    %c0_196 = arith.constant 0 : index
    %537 = vector.load %arg3[%536, %c0_195, %c0_196] : memref<64x1x128xi32, #tpu.memory_space<vmem>>, vector<1x1x128xi32>
    %538 = vector.shape_cast %537 : vector<1x1x128xi32> to vector<1x128xi32>
    %539 = arith.mulf %535, %535 : vector<3x128xf32>
    %cst_197 = arith.constant dense<0.000000e+00> : vector<128xf32>
    %540 = vector.multi_reduction <add>, %539, %cst_197 [0] : vector<3x128xf32> to vector<128xf32>
    %541 = vector.shape_cast %540 : vector<128xf32> to vector<1x128xf32>
    %cst_198 = arith.constant 1.000000e+00 : f32
    %542 = vector.broadcast %cst_198 : f32 to vector<1x128xf32>
    %543 = arith.divf %542, %541 : vector<1x128xf32>
    %544 = arith.mulf %543, %543 : vector<1x128xf32>
    %545 = arith.mulf %544, %544 : vector<1x128xf32>
    %546 = arith.mulf %544, %545 : vector<1x128xf32>
    %cst_199 = arith.constant 5.000000e-01 : f32
    %547 = vector.broadcast %cst_199 : f32 to vector<1x128xf32>
    %548 = arith.mulf %547, %546 : vector<1x128xf32>
    %549 = vector.broadcast %538 : vector<1x128xi32> to vector<128x128xi32>
    %550 = arith.cmpi eq, %549, %3 : vector<128x128xi32>
    %551 = arith.extui %550 : vector<128x128xi1> to vector<128x128xi32>
    %552 = arith.sitofp %551 : vector<128x128xi32> to vector<128x128xf32>
    %cst_200 = arith.constant dense<0.000000e+00> : vector<1x128xf32>
    %553 = tpu.matmul %548, %552, %cst_200 {dimension_numbers = #tpu.dot_dimension_numbers<[1], [1], [0], [0], [0, 0, 1, 0], [], []>} : vector<1x128xf32>, vector<128x128xf32>, vector<1x128xf32> -> vector<1x128xf32>
    %554 = arith.addf %532, %553 : vector<1x128xf32>
    %c25_i32 = arith.constant 25 : i32
    %555 = arith.index_cast %c25_i32 : i32 to index
    %c0_201 = arith.constant 0 : index
    %c0_202 = arith.constant 0 : index
    %556 = vector.load %arg2[%555, %c0_201, %c0_202] : memref<64x3x128xf32, #tpu.memory_space<vmem>>, vector<1x3x128xf32>
    %557 = vector.shape_cast %556 : vector<1x3x128xf32> to vector<3x128xf32>
    %558 = arith.index_cast %c25_i32 : i32 to index
    %c0_203 = arith.constant 0 : index
    %c0_204 = arith.constant 0 : index
    %559 = vector.load %arg3[%558, %c0_203, %c0_204] : memref<64x1x128xi32, #tpu.memory_space<vmem>>, vector<1x1x128xi32>
    %560 = vector.shape_cast %559 : vector<1x1x128xi32> to vector<1x128xi32>
    %561 = arith.mulf %557, %557 : vector<3x128xf32>
    %cst_205 = arith.constant dense<0.000000e+00> : vector<128xf32>
    %562 = vector.multi_reduction <add>, %561, %cst_205 [0] : vector<3x128xf32> to vector<128xf32>
    %563 = vector.shape_cast %562 : vector<128xf32> to vector<1x128xf32>
    %cst_206 = arith.constant 1.000000e+00 : f32
    %564 = vector.broadcast %cst_206 : f32 to vector<1x128xf32>
    %565 = arith.divf %564, %563 : vector<1x128xf32>
    %566 = arith.mulf %565, %565 : vector<1x128xf32>
    %567 = arith.mulf %566, %566 : vector<1x128xf32>
    %568 = arith.mulf %566, %567 : vector<1x128xf32>
    %cst_207 = arith.constant 5.000000e-01 : f32
    %569 = vector.broadcast %cst_207 : f32 to vector<1x128xf32>
    %570 = arith.mulf %569, %568 : vector<1x128xf32>
    %571 = vector.broadcast %560 : vector<1x128xi32> to vector<128x128xi32>
    %572 = arith.cmpi eq, %571, %3 : vector<128x128xi32>
    %573 = arith.extui %572 : vector<128x128xi1> to vector<128x128xi32>
    %574 = arith.sitofp %573 : vector<128x128xi32> to vector<128x128xf32>
    %cst_208 = arith.constant dense<0.000000e+00> : vector<1x128xf32>
    %575 = tpu.matmul %570, %574, %cst_208 {dimension_numbers = #tpu.dot_dimension_numbers<[1], [1], [0], [0], [0, 0, 1, 0], [], []>} : vector<1x128xf32>, vector<128x128xf32>, vector<1x128xf32> -> vector<1x128xf32>
    %576 = arith.addf %554, %575 : vector<1x128xf32>
    %c26_i32 = arith.constant 26 : i32
    %577 = arith.index_cast %c26_i32 : i32 to index
    %c0_209 = arith.constant 0 : index
    %c0_210 = arith.constant 0 : index
    %578 = vector.load %arg2[%577, %c0_209, %c0_210] : memref<64x3x128xf32, #tpu.memory_space<vmem>>, vector<1x3x128xf32>
    %579 = vector.shape_cast %578 : vector<1x3x128xf32> to vector<3x128xf32>
    %580 = arith.index_cast %c26_i32 : i32 to index
    %c0_211 = arith.constant 0 : index
    %c0_212 = arith.constant 0 : index
    %581 = vector.load %arg3[%580, %c0_211, %c0_212] : memref<64x1x128xi32, #tpu.memory_space<vmem>>, vector<1x1x128xi32>
    %582 = vector.shape_cast %581 : vector<1x1x128xi32> to vector<1x128xi32>
    %583 = arith.mulf %579, %579 : vector<3x128xf32>
    %cst_213 = arith.constant dense<0.000000e+00> : vector<128xf32>
    %584 = vector.multi_reduction <add>, %583, %cst_213 [0] : vector<3x128xf32> to vector<128xf32>
    %585 = vector.shape_cast %584 : vector<128xf32> to vector<1x128xf32>
    %cst_214 = arith.constant 1.000000e+00 : f32
    %586 = vector.broadcast %cst_214 : f32 to vector<1x128xf32>
    %587 = arith.divf %586, %585 : vector<1x128xf32>
    %588 = arith.mulf %587, %587 : vector<1x128xf32>
    %589 = arith.mulf %588, %588 : vector<1x128xf32>
    %590 = arith.mulf %588, %589 : vector<1x128xf32>
    %cst_215 = arith.constant 5.000000e-01 : f32
    %591 = vector.broadcast %cst_215 : f32 to vector<1x128xf32>
    %592 = arith.mulf %591, %590 : vector<1x128xf32>
    %593 = vector.broadcast %582 : vector<1x128xi32> to vector<128x128xi32>
    %594 = arith.cmpi eq, %593, %3 : vector<128x128xi32>
    %595 = arith.extui %594 : vector<128x128xi1> to vector<128x128xi32>
    %596 = arith.sitofp %595 : vector<128x128xi32> to vector<128x128xf32>
    %cst_216 = arith.constant dense<0.000000e+00> : vector<1x128xf32>
    %597 = tpu.matmul %592, %596, %cst_216 {dimension_numbers = #tpu.dot_dimension_numbers<[1], [1], [0], [0], [0, 0, 1, 0], [], []>} : vector<1x128xf32>, vector<128x128xf32>, vector<1x128xf32> -> vector<1x128xf32>
    %598 = arith.addf %576, %597 : vector<1x128xf32>
    %c27_i32 = arith.constant 27 : i32
    %599 = arith.index_cast %c27_i32 : i32 to index
    %c0_217 = arith.constant 0 : index
    %c0_218 = arith.constant 0 : index
    %600 = vector.load %arg2[%599, %c0_217, %c0_218] : memref<64x3x128xf32, #tpu.memory_space<vmem>>, vector<1x3x128xf32>
    %601 = vector.shape_cast %600 : vector<1x3x128xf32> to vector<3x128xf32>
    %602 = arith.index_cast %c27_i32 : i32 to index
    %c0_219 = arith.constant 0 : index
    %c0_220 = arith.constant 0 : index
    %603 = vector.load %arg3[%602, %c0_219, %c0_220] : memref<64x1x128xi32, #tpu.memory_space<vmem>>, vector<1x1x128xi32>
    %604 = vector.shape_cast %603 : vector<1x1x128xi32> to vector<1x128xi32>
    %605 = arith.mulf %601, %601 : vector<3x128xf32>
    %cst_221 = arith.constant dense<0.000000e+00> : vector<128xf32>
    %606 = vector.multi_reduction <add>, %605, %cst_221 [0] : vector<3x128xf32> to vector<128xf32>
    %607 = vector.shape_cast %606 : vector<128xf32> to vector<1x128xf32>
    %cst_222 = arith.constant 1.000000e+00 : f32
    %608 = vector.broadcast %cst_222 : f32 to vector<1x128xf32>
    %609 = arith.divf %608, %607 : vector<1x128xf32>
    %610 = arith.mulf %609, %609 : vector<1x128xf32>
    %611 = arith.mulf %610, %610 : vector<1x128xf32>
    %612 = arith.mulf %610, %611 : vector<1x128xf32>
    %cst_223 = arith.constant 5.000000e-01 : f32
    %613 = vector.broadcast %cst_223 : f32 to vector<1x128xf32>
    %614 = arith.mulf %613, %612 : vector<1x128xf32>
    %615 = vector.broadcast %604 : vector<1x128xi32> to vector<128x128xi32>
    %616 = arith.cmpi eq, %615, %3 : vector<128x128xi32>
    %617 = arith.extui %616 : vector<128x128xi1> to vector<128x128xi32>
    %618 = arith.sitofp %617 : vector<128x128xi32> to vector<128x128xf32>
    %cst_224 = arith.constant dense<0.000000e+00> : vector<1x128xf32>
    %619 = tpu.matmul %614, %618, %cst_224 {dimension_numbers = #tpu.dot_dimension_numbers<[1], [1], [0], [0], [0, 0, 1, 0], [], []>} : vector<1x128xf32>, vector<128x128xf32>, vector<1x128xf32> -> vector<1x128xf32>
    %620 = arith.addf %598, %619 : vector<1x128xf32>
    %c28_i32 = arith.constant 28 : i32
    %621 = arith.index_cast %c28_i32 : i32 to index
    %c0_225 = arith.constant 0 : index
    %c0_226 = arith.constant 0 : index
    %622 = vector.load %arg2[%621, %c0_225, %c0_226] : memref<64x3x128xf32, #tpu.memory_space<vmem>>, vector<1x3x128xf32>
    %623 = vector.shape_cast %622 : vector<1x3x128xf32> to vector<3x128xf32>
    %624 = arith.index_cast %c28_i32 : i32 to index
    %c0_227 = arith.constant 0 : index
    %c0_228 = arith.constant 0 : index
    %625 = vector.load %arg3[%624, %c0_227, %c0_228] : memref<64x1x128xi32, #tpu.memory_space<vmem>>, vector<1x1x128xi32>
    %626 = vector.shape_cast %625 : vector<1x1x128xi32> to vector<1x128xi32>
    %627 = arith.mulf %623, %623 : vector<3x128xf32>
    %cst_229 = arith.constant dense<0.000000e+00> : vector<128xf32>
    %628 = vector.multi_reduction <add>, %627, %cst_229 [0] : vector<3x128xf32> to vector<128xf32>
    %629 = vector.shape_cast %628 : vector<128xf32> to vector<1x128xf32>
    %cst_230 = arith.constant 1.000000e+00 : f32
    %630 = vector.broadcast %cst_230 : f32 to vector<1x128xf32>
    %631 = arith.divf %630, %629 : vector<1x128xf32>
    %632 = arith.mulf %631, %631 : vector<1x128xf32>
    %633 = arith.mulf %632, %632 : vector<1x128xf32>
    %634 = arith.mulf %632, %633 : vector<1x128xf32>
    %cst_231 = arith.constant 5.000000e-01 : f32
    %635 = vector.broadcast %cst_231 : f32 to vector<1x128xf32>
    %636 = arith.mulf %635, %634 : vector<1x128xf32>
    %637 = vector.broadcast %626 : vector<1x128xi32> to vector<128x128xi32>
    %638 = arith.cmpi eq, %637, %3 : vector<128x128xi32>
    %639 = arith.extui %638 : vector<128x128xi1> to vector<128x128xi32>
    %640 = arith.sitofp %639 : vector<128x128xi32> to vector<128x128xf32>
    %cst_232 = arith.constant dense<0.000000e+00> : vector<1x128xf32>
    %641 = tpu.matmul %636, %640, %cst_232 {dimension_numbers = #tpu.dot_dimension_numbers<[1], [1], [0], [0], [0, 0, 1, 0], [], []>} : vector<1x128xf32>, vector<128x128xf32>, vector<1x128xf32> -> vector<1x128xf32>
    %642 = arith.addf %620, %641 : vector<1x128xf32>
    %c29_i32 = arith.constant 29 : i32
    %643 = arith.index_cast %c29_i32 : i32 to index
    %c0_233 = arith.constant 0 : index
    %c0_234 = arith.constant 0 : index
    %644 = vector.load %arg2[%643, %c0_233, %c0_234] : memref<64x3x128xf32, #tpu.memory_space<vmem>>, vector<1x3x128xf32>
    %645 = vector.shape_cast %644 : vector<1x3x128xf32> to vector<3x128xf32>
    %646 = arith.index_cast %c29_i32 : i32 to index
    %c0_235 = arith.constant 0 : index
    %c0_236 = arith.constant 0 : index
    %647 = vector.load %arg3[%646, %c0_235, %c0_236] : memref<64x1x128xi32, #tpu.memory_space<vmem>>, vector<1x1x128xi32>
    %648 = vector.shape_cast %647 : vector<1x1x128xi32> to vector<1x128xi32>
    %649 = arith.mulf %645, %645 : vector<3x128xf32>
    %cst_237 = arith.constant dense<0.000000e+00> : vector<128xf32>
    %650 = vector.multi_reduction <add>, %649, %cst_237 [0] : vector<3x128xf32> to vector<128xf32>
    %651 = vector.shape_cast %650 : vector<128xf32> to vector<1x128xf32>
    %cst_238 = arith.constant 1.000000e+00 : f32
    %652 = vector.broadcast %cst_238 : f32 to vector<1x128xf32>
    %653 = arith.divf %652, %651 : vector<1x128xf32>
    %654 = arith.mulf %653, %653 : vector<1x128xf32>
    %655 = arith.mulf %654, %654 : vector<1x128xf32>
    %656 = arith.mulf %654, %655 : vector<1x128xf32>
    %cst_239 = arith.constant 5.000000e-01 : f32
    %657 = vector.broadcast %cst_239 : f32 to vector<1x128xf32>
    %658 = arith.mulf %657, %656 : vector<1x128xf32>
    %659 = vector.broadcast %648 : vector<1x128xi32> to vector<128x128xi32>
    %660 = arith.cmpi eq, %659, %3 : vector<128x128xi32>
    %661 = arith.extui %660 : vector<128x128xi1> to vector<128x128xi32>
    %662 = arith.sitofp %661 : vector<128x128xi32> to vector<128x128xf32>
    %cst_240 = arith.constant dense<0.000000e+00> : vector<1x128xf32>
    %663 = tpu.matmul %658, %662, %cst_240 {dimension_numbers = #tpu.dot_dimension_numbers<[1], [1], [0], [0], [0, 0, 1, 0], [], []>} : vector<1x128xf32>, vector<128x128xf32>, vector<1x128xf32> -> vector<1x128xf32>
    %664 = arith.addf %642, %663 : vector<1x128xf32>
    %c30_i32 = arith.constant 30 : i32
    %665 = arith.index_cast %c30_i32 : i32 to index
    %c0_241 = arith.constant 0 : index
    %c0_242 = arith.constant 0 : index
    %666 = vector.load %arg2[%665, %c0_241, %c0_242] : memref<64x3x128xf32, #tpu.memory_space<vmem>>, vector<1x3x128xf32>
    %667 = vector.shape_cast %666 : vector<1x3x128xf32> to vector<3x128xf32>
    %668 = arith.index_cast %c30_i32 : i32 to index
    %c0_243 = arith.constant 0 : index
    %c0_244 = arith.constant 0 : index
    %669 = vector.load %arg3[%668, %c0_243, %c0_244] : memref<64x1x128xi32, #tpu.memory_space<vmem>>, vector<1x1x128xi32>
    %670 = vector.shape_cast %669 : vector<1x1x128xi32> to vector<1x128xi32>
    %671 = arith.mulf %667, %667 : vector<3x128xf32>
    %cst_245 = arith.constant dense<0.000000e+00> : vector<128xf32>
    %672 = vector.multi_reduction <add>, %671, %cst_245 [0] : vector<3x128xf32> to vector<128xf32>
    %673 = vector.shape_cast %672 : vector<128xf32> to vector<1x128xf32>
    %cst_246 = arith.constant 1.000000e+00 : f32
    %674 = vector.broadcast %cst_246 : f32 to vector<1x128xf32>
    %675 = arith.divf %674, %673 : vector<1x128xf32>
    %676 = arith.mulf %675, %675 : vector<1x128xf32>
    %677 = arith.mulf %676, %676 : vector<1x128xf32>
    %678 = arith.mulf %676, %677 : vector<1x128xf32>
    %cst_247 = arith.constant 5.000000e-01 : f32
    %679 = vector.broadcast %cst_247 : f32 to vector<1x128xf32>
    %680 = arith.mulf %679, %678 : vector<1x128xf32>
    %681 = vector.broadcast %670 : vector<1x128xi32> to vector<128x128xi32>
    %682 = arith.cmpi eq, %681, %3 : vector<128x128xi32>
    %683 = arith.extui %682 : vector<128x128xi1> to vector<128x128xi32>
    %684 = arith.sitofp %683 : vector<128x128xi32> to vector<128x128xf32>
    %cst_248 = arith.constant dense<0.000000e+00> : vector<1x128xf32>
    %685 = tpu.matmul %680, %684, %cst_248 {dimension_numbers = #tpu.dot_dimension_numbers<[1], [1], [0], [0], [0, 0, 1, 0], [], []>} : vector<1x128xf32>, vector<128x128xf32>, vector<1x128xf32> -> vector<1x128xf32>
    %686 = arith.addf %664, %685 : vector<1x128xf32>
    %c31_i32 = arith.constant 31 : i32
    %687 = arith.index_cast %c31_i32 : i32 to index
    %c0_249 = arith.constant 0 : index
    %c0_250 = arith.constant 0 : index
    %688 = vector.load %arg2[%687, %c0_249, %c0_250] : memref<64x3x128xf32, #tpu.memory_space<vmem>>, vector<1x3x128xf32>
    %689 = vector.shape_cast %688 : vector<1x3x128xf32> to vector<3x128xf32>
    %690 = arith.index_cast %c31_i32 : i32 to index
    %c0_251 = arith.constant 0 : index
    %c0_252 = arith.constant 0 : index
    %691 = vector.load %arg3[%690, %c0_251, %c0_252] : memref<64x1x128xi32, #tpu.memory_space<vmem>>, vector<1x1x128xi32>
    %692 = vector.shape_cast %691 : vector<1x1x128xi32> to vector<1x128xi32>
    %693 = arith.mulf %689, %689 : vector<3x128xf32>
    %cst_253 = arith.constant dense<0.000000e+00> : vector<128xf32>
    %694 = vector.multi_reduction <add>, %693, %cst_253 [0] : vector<3x128xf32> to vector<128xf32>
    %695 = vector.shape_cast %694 : vector<128xf32> to vector<1x128xf32>
    %cst_254 = arith.constant 1.000000e+00 : f32
    %696 = vector.broadcast %cst_254 : f32 to vector<1x128xf32>
    %697 = arith.divf %696, %695 : vector<1x128xf32>
    %698 = arith.mulf %697, %697 : vector<1x128xf32>
    %699 = arith.mulf %698, %698 : vector<1x128xf32>
    %700 = arith.mulf %698, %699 : vector<1x128xf32>
    %cst_255 = arith.constant 5.000000e-01 : f32
    %701 = vector.broadcast %cst_255 : f32 to vector<1x128xf32>
    %702 = arith.mulf %701, %700 : vector<1x128xf32>
    %703 = vector.broadcast %692 : vector<1x128xi32> to vector<128x128xi32>
    %704 = arith.cmpi eq, %703, %3 : vector<128x128xi32>
    %705 = arith.extui %704 : vector<128x128xi1> to vector<128x128xi32>
    %706 = arith.sitofp %705 : vector<128x128xi32> to vector<128x128xf32>
    %cst_256 = arith.constant dense<0.000000e+00> : vector<1x128xf32>
    %707 = tpu.matmul %702, %706, %cst_256 {dimension_numbers = #tpu.dot_dimension_numbers<[1], [1], [0], [0], [0, 0, 1, 0], [], []>} : vector<1x128xf32>, vector<128x128xf32>, vector<1x128xf32> -> vector<1x128xf32>
    %708 = arith.addf %686, %707 : vector<1x128xf32>
    %c32_i32 = arith.constant 32 : i32
    %709 = arith.index_cast %c32_i32 : i32 to index
    %c0_257 = arith.constant 0 : index
    %c0_258 = arith.constant 0 : index
    %710 = vector.load %arg2[%709, %c0_257, %c0_258] : memref<64x3x128xf32, #tpu.memory_space<vmem>>, vector<1x3x128xf32>
    %711 = vector.shape_cast %710 : vector<1x3x128xf32> to vector<3x128xf32>
    %712 = arith.index_cast %c32_i32 : i32 to index
    %c0_259 = arith.constant 0 : index
    %c0_260 = arith.constant 0 : index
    %713 = vector.load %arg3[%712, %c0_259, %c0_260] : memref<64x1x128xi32, #tpu.memory_space<vmem>>, vector<1x1x128xi32>
    %714 = vector.shape_cast %713 : vector<1x1x128xi32> to vector<1x128xi32>
    %715 = arith.mulf %711, %711 : vector<3x128xf32>
    %cst_261 = arith.constant dense<0.000000e+00> : vector<128xf32>
    %716 = vector.multi_reduction <add>, %715, %cst_261 [0] : vector<3x128xf32> to vector<128xf32>
    %717 = vector.shape_cast %716 : vector<128xf32> to vector<1x128xf32>
    %cst_262 = arith.constant 1.000000e+00 : f32
    %718 = vector.broadcast %cst_262 : f32 to vector<1x128xf32>
    %719 = arith.divf %718, %717 : vector<1x128xf32>
    %720 = arith.mulf %719, %719 : vector<1x128xf32>
    %721 = arith.mulf %720, %720 : vector<1x128xf32>
    %722 = arith.mulf %720, %721 : vector<1x128xf32>
    %cst_263 = arith.constant 5.000000e-01 : f32
    %723 = vector.broadcast %cst_263 : f32 to vector<1x128xf32>
    %724 = arith.mulf %723, %722 : vector<1x128xf32>
    %725 = vector.broadcast %714 : vector<1x128xi32> to vector<128x128xi32>
    %726 = arith.cmpi eq, %725, %3 : vector<128x128xi32>
    %727 = arith.extui %726 : vector<128x128xi1> to vector<128x128xi32>
    %728 = arith.sitofp %727 : vector<128x128xi32> to vector<128x128xf32>
    %cst_264 = arith.constant dense<0.000000e+00> : vector<1x128xf32>
    %729 = tpu.matmul %724, %728, %cst_264 {dimension_numbers = #tpu.dot_dimension_numbers<[1], [1], [0], [0], [0, 0, 1, 0], [], []>} : vector<1x128xf32>, vector<128x128xf32>, vector<1x128xf32> -> vector<1x128xf32>
    %730 = arith.addf %708, %729 : vector<1x128xf32>
    %c33_i32 = arith.constant 33 : i32
    %731 = arith.index_cast %c33_i32 : i32 to index
    %c0_265 = arith.constant 0 : index
    %c0_266 = arith.constant 0 : index
    %732 = vector.load %arg2[%731, %c0_265, %c0_266] : memref<64x3x128xf32, #tpu.memory_space<vmem>>, vector<1x3x128xf32>
    %733 = vector.shape_cast %732 : vector<1x3x128xf32> to vector<3x128xf32>
    %734 = arith.index_cast %c33_i32 : i32 to index
    %c0_267 = arith.constant 0 : index
    %c0_268 = arith.constant 0 : index
    %735 = vector.load %arg3[%734, %c0_267, %c0_268] : memref<64x1x128xi32, #tpu.memory_space<vmem>>, vector<1x1x128xi32>
    %736 = vector.shape_cast %735 : vector<1x1x128xi32> to vector<1x128xi32>
    %737 = arith.mulf %733, %733 : vector<3x128xf32>
    %cst_269 = arith.constant dense<0.000000e+00> : vector<128xf32>
    %738 = vector.multi_reduction <add>, %737, %cst_269 [0] : vector<3x128xf32> to vector<128xf32>
    %739 = vector.shape_cast %738 : vector<128xf32> to vector<1x128xf32>
    %cst_270 = arith.constant 1.000000e+00 : f32
    %740 = vector.broadcast %cst_270 : f32 to vector<1x128xf32>
    %741 = arith.divf %740, %739 : vector<1x128xf32>
    %742 = arith.mulf %741, %741 : vector<1x128xf32>
    %743 = arith.mulf %742, %742 : vector<1x128xf32>
    %744 = arith.mulf %742, %743 : vector<1x128xf32>
    %cst_271 = arith.constant 5.000000e-01 : f32
    %745 = vector.broadcast %cst_271 : f32 to vector<1x128xf32>
    %746 = arith.mulf %745, %744 : vector<1x128xf32>
    %747 = vector.broadcast %736 : vector<1x128xi32> to vector<128x128xi32>
    %748 = arith.cmpi eq, %747, %3 : vector<128x128xi32>
    %749 = arith.extui %748 : vector<128x128xi1> to vector<128x128xi32>
    %750 = arith.sitofp %749 : vector<128x128xi32> to vector<128x128xf32>
    %cst_272 = arith.constant dense<0.000000e+00> : vector<1x128xf32>
    %751 = tpu.matmul %746, %750, %cst_272 {dimension_numbers = #tpu.dot_dimension_numbers<[1], [1], [0], [0], [0, 0, 1, 0], [], []>} : vector<1x128xf32>, vector<128x128xf32>, vector<1x128xf32> -> vector<1x128xf32>
    %752 = arith.addf %730, %751 : vector<1x128xf32>
    %c34_i32 = arith.constant 34 : i32
    %753 = arith.index_cast %c34_i32 : i32 to index
    %c0_273 = arith.constant 0 : index
    %c0_274 = arith.constant 0 : index
    %754 = vector.load %arg2[%753, %c0_273, %c0_274] : memref<64x3x128xf32, #tpu.memory_space<vmem>>, vector<1x3x128xf32>
    %755 = vector.shape_cast %754 : vector<1x3x128xf32> to vector<3x128xf32>
    %756 = arith.index_cast %c34_i32 : i32 to index
    %c0_275 = arith.constant 0 : index
    %c0_276 = arith.constant 0 : index
    %757 = vector.load %arg3[%756, %c0_275, %c0_276] : memref<64x1x128xi32, #tpu.memory_space<vmem>>, vector<1x1x128xi32>
    %758 = vector.shape_cast %757 : vector<1x1x128xi32> to vector<1x128xi32>
    %759 = arith.mulf %755, %755 : vector<3x128xf32>
    %cst_277 = arith.constant dense<0.000000e+00> : vector<128xf32>
    %760 = vector.multi_reduction <add>, %759, %cst_277 [0] : vector<3x128xf32> to vector<128xf32>
    %761 = vector.shape_cast %760 : vector<128xf32> to vector<1x128xf32>
    %cst_278 = arith.constant 1.000000e+00 : f32
    %762 = vector.broadcast %cst_278 : f32 to vector<1x128xf32>
    %763 = arith.divf %762, %761 : vector<1x128xf32>
    %764 = arith.mulf %763, %763 : vector<1x128xf32>
    %765 = arith.mulf %764, %764 : vector<1x128xf32>
    %766 = arith.mulf %764, %765 : vector<1x128xf32>
    %cst_279 = arith.constant 5.000000e-01 : f32
    %767 = vector.broadcast %cst_279 : f32 to vector<1x128xf32>
    %768 = arith.mulf %767, %766 : vector<1x128xf32>
    %769 = vector.broadcast %758 : vector<1x128xi32> to vector<128x128xi32>
    %770 = arith.cmpi eq, %769, %3 : vector<128x128xi32>
    %771 = arith.extui %770 : vector<128x128xi1> to vector<128x128xi32>
    %772 = arith.sitofp %771 : vector<128x128xi32> to vector<128x128xf32>
    %cst_280 = arith.constant dense<0.000000e+00> : vector<1x128xf32>
    %773 = tpu.matmul %768, %772, %cst_280 {dimension_numbers = #tpu.dot_dimension_numbers<[1], [1], [0], [0], [0, 0, 1, 0], [], []>} : vector<1x128xf32>, vector<128x128xf32>, vector<1x128xf32> -> vector<1x128xf32>
    %774 = arith.addf %752, %773 : vector<1x128xf32>
    %c35_i32 = arith.constant 35 : i32
    %775 = arith.index_cast %c35_i32 : i32 to index
    %c0_281 = arith.constant 0 : index
    %c0_282 = arith.constant 0 : index
    %776 = vector.load %arg2[%775, %c0_281, %c0_282] : memref<64x3x128xf32, #tpu.memory_space<vmem>>, vector<1x3x128xf32>
    %777 = vector.shape_cast %776 : vector<1x3x128xf32> to vector<3x128xf32>
    %778 = arith.index_cast %c35_i32 : i32 to index
    %c0_283 = arith.constant 0 : index
    %c0_284 = arith.constant 0 : index
    %779 = vector.load %arg3[%778, %c0_283, %c0_284] : memref<64x1x128xi32, #tpu.memory_space<vmem>>, vector<1x1x128xi32>
    %780 = vector.shape_cast %779 : vector<1x1x128xi32> to vector<1x128xi32>
    %781 = arith.mulf %777, %777 : vector<3x128xf32>
    %cst_285 = arith.constant dense<0.000000e+00> : vector<128xf32>
    %782 = vector.multi_reduction <add>, %781, %cst_285 [0] : vector<3x128xf32> to vector<128xf32>
    %783 = vector.shape_cast %782 : vector<128xf32> to vector<1x128xf32>
    %cst_286 = arith.constant 1.000000e+00 : f32
    %784 = vector.broadcast %cst_286 : f32 to vector<1x128xf32>
    %785 = arith.divf %784, %783 : vector<1x128xf32>
    %786 = arith.mulf %785, %785 : vector<1x128xf32>
    %787 = arith.mulf %786, %786 : vector<1x128xf32>
    %788 = arith.mulf %786, %787 : vector<1x128xf32>
    %cst_287 = arith.constant 5.000000e-01 : f32
    %789 = vector.broadcast %cst_287 : f32 to vector<1x128xf32>
    %790 = arith.mulf %789, %788 : vector<1x128xf32>
    %791 = vector.broadcast %780 : vector<1x128xi32> to vector<128x128xi32>
    %792 = arith.cmpi eq, %791, %3 : vector<128x128xi32>
    %793 = arith.extui %792 : vector<128x128xi1> to vector<128x128xi32>
    %794 = arith.sitofp %793 : vector<128x128xi32> to vector<128x128xf32>
    %cst_288 = arith.constant dense<0.000000e+00> : vector<1x128xf32>
    %795 = tpu.matmul %790, %794, %cst_288 {dimension_numbers = #tpu.dot_dimension_numbers<[1], [1], [0], [0], [0, 0, 1, 0], [], []>} : vector<1x128xf32>, vector<128x128xf32>, vector<1x128xf32> -> vector<1x128xf32>
    %796 = arith.addf %774, %795 : vector<1x128xf32>
    %c36_i32 = arith.constant 36 : i32
    %797 = arith.index_cast %c36_i32 : i32 to index
    %c0_289 = arith.constant 0 : index
    %c0_290 = arith.constant 0 : index
    %798 = vector.load %arg2[%797, %c0_289, %c0_290] : memref<64x3x128xf32, #tpu.memory_space<vmem>>, vector<1x3x128xf32>
    %799 = vector.shape_cast %798 : vector<1x3x128xf32> to vector<3x128xf32>
    %800 = arith.index_cast %c36_i32 : i32 to index
    %c0_291 = arith.constant 0 : index
    %c0_292 = arith.constant 0 : index
    %801 = vector.load %arg3[%800, %c0_291, %c0_292] : memref<64x1x128xi32, #tpu.memory_space<vmem>>, vector<1x1x128xi32>
    %802 = vector.shape_cast %801 : vector<1x1x128xi32> to vector<1x128xi32>
    %803 = arith.mulf %799, %799 : vector<3x128xf32>
    %cst_293 = arith.constant dense<0.000000e+00> : vector<128xf32>
    %804 = vector.multi_reduction <add>, %803, %cst_293 [0] : vector<3x128xf32> to vector<128xf32>
    %805 = vector.shape_cast %804 : vector<128xf32> to vector<1x128xf32>
    %cst_294 = arith.constant 1.000000e+00 : f32
    %806 = vector.broadcast %cst_294 : f32 to vector<1x128xf32>
    %807 = arith.divf %806, %805 : vector<1x128xf32>
    %808 = arith.mulf %807, %807 : vector<1x128xf32>
    %809 = arith.mulf %808, %808 : vector<1x128xf32>
    %810 = arith.mulf %808, %809 : vector<1x128xf32>
    %cst_295 = arith.constant 5.000000e-01 : f32
    %811 = vector.broadcast %cst_295 : f32 to vector<1x128xf32>
    %812 = arith.mulf %811, %810 : vector<1x128xf32>
    %813 = vector.broadcast %802 : vector<1x128xi32> to vector<128x128xi32>
    %814 = arith.cmpi eq, %813, %3 : vector<128x128xi32>
    %815 = arith.extui %814 : vector<128x128xi1> to vector<128x128xi32>
    %816 = arith.sitofp %815 : vector<128x128xi32> to vector<128x128xf32>
    %cst_296 = arith.constant dense<0.000000e+00> : vector<1x128xf32>
    %817 = tpu.matmul %812, %816, %cst_296 {dimension_numbers = #tpu.dot_dimension_numbers<[1], [1], [0], [0], [0, 0, 1, 0], [], []>} : vector<1x128xf32>, vector<128x128xf32>, vector<1x128xf32> -> vector<1x128xf32>
    %818 = arith.addf %796, %817 : vector<1x128xf32>
    %c37_i32 = arith.constant 37 : i32
    %819 = arith.index_cast %c37_i32 : i32 to index
    %c0_297 = arith.constant 0 : index
    %c0_298 = arith.constant 0 : index
    %820 = vector.load %arg2[%819, %c0_297, %c0_298] : memref<64x3x128xf32, #tpu.memory_space<vmem>>, vector<1x3x128xf32>
    %821 = vector.shape_cast %820 : vector<1x3x128xf32> to vector<3x128xf32>
    %822 = arith.index_cast %c37_i32 : i32 to index
    %c0_299 = arith.constant 0 : index
    %c0_300 = arith.constant 0 : index
    %823 = vector.load %arg3[%822, %c0_299, %c0_300] : memref<64x1x128xi32, #tpu.memory_space<vmem>>, vector<1x1x128xi32>
    %824 = vector.shape_cast %823 : vector<1x1x128xi32> to vector<1x128xi32>
    %825 = arith.mulf %821, %821 : vector<3x128xf32>
    %cst_301 = arith.constant dense<0.000000e+00> : vector<128xf32>
    %826 = vector.multi_reduction <add>, %825, %cst_301 [0] : vector<3x128xf32> to vector<128xf32>
    %827 = vector.shape_cast %826 : vector<128xf32> to vector<1x128xf32>
    %cst_302 = arith.constant 1.000000e+00 : f32
    %828 = vector.broadcast %cst_302 : f32 to vector<1x128xf32>
    %829 = arith.divf %828, %827 : vector<1x128xf32>
    %830 = arith.mulf %829, %829 : vector<1x128xf32>
    %831 = arith.mulf %830, %830 : vector<1x128xf32>
    %832 = arith.mulf %830, %831 : vector<1x128xf32>
    %cst_303 = arith.constant 5.000000e-01 : f32
    %833 = vector.broadcast %cst_303 : f32 to vector<1x128xf32>
    %834 = arith.mulf %833, %832 : vector<1x128xf32>
    %835 = vector.broadcast %824 : vector<1x128xi32> to vector<128x128xi32>
    %836 = arith.cmpi eq, %835, %3 : vector<128x128xi32>
    %837 = arith.extui %836 : vector<128x128xi1> to vector<128x128xi32>
    %838 = arith.sitofp %837 : vector<128x128xi32> to vector<128x128xf32>
    %cst_304 = arith.constant dense<0.000000e+00> : vector<1x128xf32>
    %839 = tpu.matmul %834, %838, %cst_304 {dimension_numbers = #tpu.dot_dimension_numbers<[1], [1], [0], [0], [0, 0, 1, 0], [], []>} : vector<1x128xf32>, vector<128x128xf32>, vector<1x128xf32> -> vector<1x128xf32>
    %840 = arith.addf %818, %839 : vector<1x128xf32>
    %c38_i32 = arith.constant 38 : i32
    %841 = arith.index_cast %c38_i32 : i32 to index
    %c0_305 = arith.constant 0 : index
    %c0_306 = arith.constant 0 : index
    %842 = vector.load %arg2[%841, %c0_305, %c0_306] : memref<64x3x128xf32, #tpu.memory_space<vmem>>, vector<1x3x128xf32>
    %843 = vector.shape_cast %842 : vector<1x3x128xf32> to vector<3x128xf32>
    %844 = arith.index_cast %c38_i32 : i32 to index
    %c0_307 = arith.constant 0 : index
    %c0_308 = arith.constant 0 : index
    %845 = vector.load %arg3[%844, %c0_307, %c0_308] : memref<64x1x128xi32, #tpu.memory_space<vmem>>, vector<1x1x128xi32>
    %846 = vector.shape_cast %845 : vector<1x1x128xi32> to vector<1x128xi32>
    %847 = arith.mulf %843, %843 : vector<3x128xf32>
    %cst_309 = arith.constant dense<0.000000e+00> : vector<128xf32>
    %848 = vector.multi_reduction <add>, %847, %cst_309 [0] : vector<3x128xf32> to vector<128xf32>
    %849 = vector.shape_cast %848 : vector<128xf32> to vector<1x128xf32>
    %cst_310 = arith.constant 1.000000e+00 : f32
    %850 = vector.broadcast %cst_310 : f32 to vector<1x128xf32>
    %851 = arith.divf %850, %849 : vector<1x128xf32>
    %852 = arith.mulf %851, %851 : vector<1x128xf32>
    %853 = arith.mulf %852, %852 : vector<1x128xf32>
    %854 = arith.mulf %852, %853 : vector<1x128xf32>
    %cst_311 = arith.constant 5.000000e-01 : f32
    %855 = vector.broadcast %cst_311 : f32 to vector<1x128xf32>
    %856 = arith.mulf %855, %854 : vector<1x128xf32>
    %857 = vector.broadcast %846 : vector<1x128xi32> to vector<128x128xi32>
    %858 = arith.cmpi eq, %857, %3 : vector<128x128xi32>
    %859 = arith.extui %858 : vector<128x128xi1> to vector<128x128xi32>
    %860 = arith.sitofp %859 : vector<128x128xi32> to vector<128x128xf32>
    %cst_312 = arith.constant dense<0.000000e+00> : vector<1x128xf32>
    %861 = tpu.matmul %856, %860, %cst_312 {dimension_numbers = #tpu.dot_dimension_numbers<[1], [1], [0], [0], [0, 0, 1, 0], [], []>} : vector<1x128xf32>, vector<128x128xf32>, vector<1x128xf32> -> vector<1x128xf32>
    %862 = arith.addf %840, %861 : vector<1x128xf32>
    %c39_i32 = arith.constant 39 : i32
    %863 = arith.index_cast %c39_i32 : i32 to index
    %c0_313 = arith.constant 0 : index
    %c0_314 = arith.constant 0 : index
    %864 = vector.load %arg2[%863, %c0_313, %c0_314] : memref<64x3x128xf32, #tpu.memory_space<vmem>>, vector<1x3x128xf32>
    %865 = vector.shape_cast %864 : vector<1x3x128xf32> to vector<3x128xf32>
    %866 = arith.index_cast %c39_i32 : i32 to index
    %c0_315 = arith.constant 0 : index
    %c0_316 = arith.constant 0 : index
    %867 = vector.load %arg3[%866, %c0_315, %c0_316] : memref<64x1x128xi32, #tpu.memory_space<vmem>>, vector<1x1x128xi32>
    %868 = vector.shape_cast %867 : vector<1x1x128xi32> to vector<1x128xi32>
    %869 = arith.mulf %865, %865 : vector<3x128xf32>
    %cst_317 = arith.constant dense<0.000000e+00> : vector<128xf32>
    %870 = vector.multi_reduction <add>, %869, %cst_317 [0] : vector<3x128xf32> to vector<128xf32>
    %871 = vector.shape_cast %870 : vector<128xf32> to vector<1x128xf32>
    %cst_318 = arith.constant 1.000000e+00 : f32
    %872 = vector.broadcast %cst_318 : f32 to vector<1x128xf32>
    %873 = arith.divf %872, %871 : vector<1x128xf32>
    %874 = arith.mulf %873, %873 : vector<1x128xf32>
    %875 = arith.mulf %874, %874 : vector<1x128xf32>
    %876 = arith.mulf %874, %875 : vector<1x128xf32>
    %cst_319 = arith.constant 5.000000e-01 : f32
    %877 = vector.broadcast %cst_319 : f32 to vector<1x128xf32>
    %878 = arith.mulf %877, %876 : vector<1x128xf32>
    %879 = vector.broadcast %868 : vector<1x128xi32> to vector<128x128xi32>
    %880 = arith.cmpi eq, %879, %3 : vector<128x128xi32>
    %881 = arith.extui %880 : vector<128x128xi1> to vector<128x128xi32>
    %882 = arith.sitofp %881 : vector<128x128xi32> to vector<128x128xf32>
    %cst_320 = arith.constant dense<0.000000e+00> : vector<1x128xf32>
    %883 = tpu.matmul %878, %882, %cst_320 {dimension_numbers = #tpu.dot_dimension_numbers<[1], [1], [0], [0], [0, 0, 1, 0], [], []>} : vector<1x128xf32>, vector<128x128xf32>, vector<1x128xf32> -> vector<1x128xf32>
    %884 = arith.addf %862, %883 : vector<1x128xf32>
    %c40_i32 = arith.constant 40 : i32
    %885 = arith.index_cast %c40_i32 : i32 to index
    %c0_321 = arith.constant 0 : index
    %c0_322 = arith.constant 0 : index
    %886 = vector.load %arg2[%885, %c0_321, %c0_322] : memref<64x3x128xf32, #tpu.memory_space<vmem>>, vector<1x3x128xf32>
    %887 = vector.shape_cast %886 : vector<1x3x128xf32> to vector<3x128xf32>
    %888 = arith.index_cast %c40_i32 : i32 to index
    %c0_323 = arith.constant 0 : index
    %c0_324 = arith.constant 0 : index
    %889 = vector.load %arg3[%888, %c0_323, %c0_324] : memref<64x1x128xi32, #tpu.memory_space<vmem>>, vector<1x1x128xi32>
    %890 = vector.shape_cast %889 : vector<1x1x128xi32> to vector<1x128xi32>
    %891 = arith.mulf %887, %887 : vector<3x128xf32>
    %cst_325 = arith.constant dense<0.000000e+00> : vector<128xf32>
    %892 = vector.multi_reduction <add>, %891, %cst_325 [0] : vector<3x128xf32> to vector<128xf32>
    %893 = vector.shape_cast %892 : vector<128xf32> to vector<1x128xf32>
    %cst_326 = arith.constant 1.000000e+00 : f32
    %894 = vector.broadcast %cst_326 : f32 to vector<1x128xf32>
    %895 = arith.divf %894, %893 : vector<1x128xf32>
    %896 = arith.mulf %895, %895 : vector<1x128xf32>
    %897 = arith.mulf %896, %896 : vector<1x128xf32>
    %898 = arith.mulf %896, %897 : vector<1x128xf32>
    %cst_327 = arith.constant 5.000000e-01 : f32
    %899 = vector.broadcast %cst_327 : f32 to vector<1x128xf32>
    %900 = arith.mulf %899, %898 : vector<1x128xf32>
    %901 = vector.broadcast %890 : vector<1x128xi32> to vector<128x128xi32>
    %902 = arith.cmpi eq, %901, %3 : vector<128x128xi32>
    %903 = arith.extui %902 : vector<128x128xi1> to vector<128x128xi32>
    %904 = arith.sitofp %903 : vector<128x128xi32> to vector<128x128xf32>
    %cst_328 = arith.constant dense<0.000000e+00> : vector<1x128xf32>
    %905 = tpu.matmul %900, %904, %cst_328 {dimension_numbers = #tpu.dot_dimension_numbers<[1], [1], [0], [0], [0, 0, 1, 0], [], []>} : vector<1x128xf32>, vector<128x128xf32>, vector<1x128xf32> -> vector<1x128xf32>
    %906 = arith.addf %884, %905 : vector<1x128xf32>
    %c41_i32 = arith.constant 41 : i32
    %907 = arith.index_cast %c41_i32 : i32 to index
    %c0_329 = arith.constant 0 : index
    %c0_330 = arith.constant 0 : index
    %908 = vector.load %arg2[%907, %c0_329, %c0_330] : memref<64x3x128xf32, #tpu.memory_space<vmem>>, vector<1x3x128xf32>
    %909 = vector.shape_cast %908 : vector<1x3x128xf32> to vector<3x128xf32>
    %910 = arith.index_cast %c41_i32 : i32 to index
    %c0_331 = arith.constant 0 : index
    %c0_332 = arith.constant 0 : index
    %911 = vector.load %arg3[%910, %c0_331, %c0_332] : memref<64x1x128xi32, #tpu.memory_space<vmem>>, vector<1x1x128xi32>
    %912 = vector.shape_cast %911 : vector<1x1x128xi32> to vector<1x128xi32>
    %913 = arith.mulf %909, %909 : vector<3x128xf32>
    %cst_333 = arith.constant dense<0.000000e+00> : vector<128xf32>
    %914 = vector.multi_reduction <add>, %913, %cst_333 [0] : vector<3x128xf32> to vector<128xf32>
    %915 = vector.shape_cast %914 : vector<128xf32> to vector<1x128xf32>
    %cst_334 = arith.constant 1.000000e+00 : f32
    %916 = vector.broadcast %cst_334 : f32 to vector<1x128xf32>
    %917 = arith.divf %916, %915 : vector<1x128xf32>
    %918 = arith.mulf %917, %917 : vector<1x128xf32>
    %919 = arith.mulf %918, %918 : vector<1x128xf32>
    %920 = arith.mulf %918, %919 : vector<1x128xf32>
    %cst_335 = arith.constant 5.000000e-01 : f32
    %921 = vector.broadcast %cst_335 : f32 to vector<1x128xf32>
    %922 = arith.mulf %921, %920 : vector<1x128xf32>
    %923 = vector.broadcast %912 : vector<1x128xi32> to vector<128x128xi32>
    %924 = arith.cmpi eq, %923, %3 : vector<128x128xi32>
    %925 = arith.extui %924 : vector<128x128xi1> to vector<128x128xi32>
    %926 = arith.sitofp %925 : vector<128x128xi32> to vector<128x128xf32>
    %cst_336 = arith.constant dense<0.000000e+00> : vector<1x128xf32>
    %927 = tpu.matmul %922, %926, %cst_336 {dimension_numbers = #tpu.dot_dimension_numbers<[1], [1], [0], [0], [0, 0, 1, 0], [], []>} : vector<1x128xf32>, vector<128x128xf32>, vector<1x128xf32> -> vector<1x128xf32>
    %928 = arith.addf %906, %927 : vector<1x128xf32>
    %c42_i32 = arith.constant 42 : i32
    %929 = arith.index_cast %c42_i32 : i32 to index
    %c0_337 = arith.constant 0 : index
    %c0_338 = arith.constant 0 : index
    %930 = vector.load %arg2[%929, %c0_337, %c0_338] : memref<64x3x128xf32, #tpu.memory_space<vmem>>, vector<1x3x128xf32>
    %931 = vector.shape_cast %930 : vector<1x3x128xf32> to vector<3x128xf32>
    %932 = arith.index_cast %c42_i32 : i32 to index
    %c0_339 = arith.constant 0 : index
    %c0_340 = arith.constant 0 : index
    %933 = vector.load %arg3[%932, %c0_339, %c0_340] : memref<64x1x128xi32, #tpu.memory_space<vmem>>, vector<1x1x128xi32>
    %934 = vector.shape_cast %933 : vector<1x1x128xi32> to vector<1x128xi32>
    %935 = arith.mulf %931, %931 : vector<3x128xf32>
    %cst_341 = arith.constant dense<0.000000e+00> : vector<128xf32>
    %936 = vector.multi_reduction <add>, %935, %cst_341 [0] : vector<3x128xf32> to vector<128xf32>
    %937 = vector.shape_cast %936 : vector<128xf32> to vector<1x128xf32>
    %cst_342 = arith.constant 1.000000e+00 : f32
    %938 = vector.broadcast %cst_342 : f32 to vector<1x128xf32>
    %939 = arith.divf %938, %937 : vector<1x128xf32>
    %940 = arith.mulf %939, %939 : vector<1x128xf32>
    %941 = arith.mulf %940, %940 : vector<1x128xf32>
    %942 = arith.mulf %940, %941 : vector<1x128xf32>
    %cst_343 = arith.constant 5.000000e-01 : f32
    %943 = vector.broadcast %cst_343 : f32 to vector<1x128xf32>
    %944 = arith.mulf %943, %942 : vector<1x128xf32>
    %945 = vector.broadcast %934 : vector<1x128xi32> to vector<128x128xi32>
    %946 = arith.cmpi eq, %945, %3 : vector<128x128xi32>
    %947 = arith.extui %946 : vector<128x128xi1> to vector<128x128xi32>
    %948 = arith.sitofp %947 : vector<128x128xi32> to vector<128x128xf32>
    %cst_344 = arith.constant dense<0.000000e+00> : vector<1x128xf32>
    %949 = tpu.matmul %944, %948, %cst_344 {dimension_numbers = #tpu.dot_dimension_numbers<[1], [1], [0], [0], [0, 0, 1, 0], [], []>} : vector<1x128xf32>, vector<128x128xf32>, vector<1x128xf32> -> vector<1x128xf32>
    %950 = arith.addf %928, %949 : vector<1x128xf32>
    %c43_i32 = arith.constant 43 : i32
    %951 = arith.index_cast %c43_i32 : i32 to index
    %c0_345 = arith.constant 0 : index
    %c0_346 = arith.constant 0 : index
    %952 = vector.load %arg2[%951, %c0_345, %c0_346] : memref<64x3x128xf32, #tpu.memory_space<vmem>>, vector<1x3x128xf32>
    %953 = vector.shape_cast %952 : vector<1x3x128xf32> to vector<3x128xf32>
    %954 = arith.index_cast %c43_i32 : i32 to index
    %c0_347 = arith.constant 0 : index
    %c0_348 = arith.constant 0 : index
    %955 = vector.load %arg3[%954, %c0_347, %c0_348] : memref<64x1x128xi32, #tpu.memory_space<vmem>>, vector<1x1x128xi32>
    %956 = vector.shape_cast %955 : vector<1x1x128xi32> to vector<1x128xi32>
    %957 = arith.mulf %953, %953 : vector<3x128xf32>
    %cst_349 = arith.constant dense<0.000000e+00> : vector<128xf32>
    %958 = vector.multi_reduction <add>, %957, %cst_349 [0] : vector<3x128xf32> to vector<128xf32>
    %959 = vector.shape_cast %958 : vector<128xf32> to vector<1x128xf32>
    %cst_350 = arith.constant 1.000000e+00 : f32
    %960 = vector.broadcast %cst_350 : f32 to vector<1x128xf32>
    %961 = arith.divf %960, %959 : vector<1x128xf32>
    %962 = arith.mulf %961, %961 : vector<1x128xf32>
    %963 = arith.mulf %962, %962 : vector<1x128xf32>
    %964 = arith.mulf %962, %963 : vector<1x128xf32>
    %cst_351 = arith.constant 5.000000e-01 : f32
    %965 = vector.broadcast %cst_351 : f32 to vector<1x128xf32>
    %966 = arith.mulf %965, %964 : vector<1x128xf32>
    %967 = vector.broadcast %956 : vector<1x128xi32> to vector<128x128xi32>
    %968 = arith.cmpi eq, %967, %3 : vector<128x128xi32>
    %969 = arith.extui %968 : vector<128x128xi1> to vector<128x128xi32>
    %970 = arith.sitofp %969 : vector<128x128xi32> to vector<128x128xf32>
    %cst_352 = arith.constant dense<0.000000e+00> : vector<1x128xf32>
    %971 = tpu.matmul %966, %970, %cst_352 {dimension_numbers = #tpu.dot_dimension_numbers<[1], [1], [0], [0], [0, 0, 1, 0], [], []>} : vector<1x128xf32>, vector<128x128xf32>, vector<1x128xf32> -> vector<1x128xf32>
    %972 = arith.addf %950, %971 : vector<1x128xf32>
    %c44_i32 = arith.constant 44 : i32
    %973 = arith.index_cast %c44_i32 : i32 to index
    %c0_353 = arith.constant 0 : index
    %c0_354 = arith.constant 0 : index
    %974 = vector.load %arg2[%973, %c0_353, %c0_354] : memref<64x3x128xf32, #tpu.memory_space<vmem>>, vector<1x3x128xf32>
    %975 = vector.shape_cast %974 : vector<1x3x128xf32> to vector<3x128xf32>
    %976 = arith.index_cast %c44_i32 : i32 to index
    %c0_355 = arith.constant 0 : index
    %c0_356 = arith.constant 0 : index
    %977 = vector.load %arg3[%976, %c0_355, %c0_356] : memref<64x1x128xi32, #tpu.memory_space<vmem>>, vector<1x1x128xi32>
    %978 = vector.shape_cast %977 : vector<1x1x128xi32> to vector<1x128xi32>
    %979 = arith.mulf %975, %975 : vector<3x128xf32>
    %cst_357 = arith.constant dense<0.000000e+00> : vector<128xf32>
    %980 = vector.multi_reduction <add>, %979, %cst_357 [0] : vector<3x128xf32> to vector<128xf32>
    %981 = vector.shape_cast %980 : vector<128xf32> to vector<1x128xf32>
    %cst_358 = arith.constant 1.000000e+00 : f32
    %982 = vector.broadcast %cst_358 : f32 to vector<1x128xf32>
    %983 = arith.divf %982, %981 : vector<1x128xf32>
    %984 = arith.mulf %983, %983 : vector<1x128xf32>
    %985 = arith.mulf %984, %984 : vector<1x128xf32>
    %986 = arith.mulf %984, %985 : vector<1x128xf32>
    %cst_359 = arith.constant 5.000000e-01 : f32
    %987 = vector.broadcast %cst_359 : f32 to vector<1x128xf32>
    %988 = arith.mulf %987, %986 : vector<1x128xf32>
    %989 = vector.broadcast %978 : vector<1x128xi32> to vector<128x128xi32>
    %990 = arith.cmpi eq, %989, %3 : vector<128x128xi32>
    %991 = arith.extui %990 : vector<128x128xi1> to vector<128x128xi32>
    %992 = arith.sitofp %991 : vector<128x128xi32> to vector<128x128xf32>
    %cst_360 = arith.constant dense<0.000000e+00> : vector<1x128xf32>
    %993 = tpu.matmul %988, %992, %cst_360 {dimension_numbers = #tpu.dot_dimension_numbers<[1], [1], [0], [0], [0, 0, 1, 0], [], []>} : vector<1x128xf32>, vector<128x128xf32>, vector<1x128xf32> -> vector<1x128xf32>
    %994 = arith.addf %972, %993 : vector<1x128xf32>
    %c45_i32 = arith.constant 45 : i32
    %995 = arith.index_cast %c45_i32 : i32 to index
    %c0_361 = arith.constant 0 : index
    %c0_362 = arith.constant 0 : index
    %996 = vector.load %arg2[%995, %c0_361, %c0_362] : memref<64x3x128xf32, #tpu.memory_space<vmem>>, vector<1x3x128xf32>
    %997 = vector.shape_cast %996 : vector<1x3x128xf32> to vector<3x128xf32>
    %998 = arith.index_cast %c45_i32 : i32 to index
    %c0_363 = arith.constant 0 : index
    %c0_364 = arith.constant 0 : index
    %999 = vector.load %arg3[%998, %c0_363, %c0_364] : memref<64x1x128xi32, #tpu.memory_space<vmem>>, vector<1x1x128xi32>
    %1000 = vector.shape_cast %999 : vector<1x1x128xi32> to vector<1x128xi32>
    %1001 = arith.mulf %997, %997 : vector<3x128xf32>
    %cst_365 = arith.constant dense<0.000000e+00> : vector<128xf32>
    %1002 = vector.multi_reduction <add>, %1001, %cst_365 [0] : vector<3x128xf32> to vector<128xf32>
    %1003 = vector.shape_cast %1002 : vector<128xf32> to vector<1x128xf32>
    %cst_366 = arith.constant 1.000000e+00 : f32
    %1004 = vector.broadcast %cst_366 : f32 to vector<1x128xf32>
    %1005 = arith.divf %1004, %1003 : vector<1x128xf32>
    %1006 = arith.mulf %1005, %1005 : vector<1x128xf32>
    %1007 = arith.mulf %1006, %1006 : vector<1x128xf32>
    %1008 = arith.mulf %1006, %1007 : vector<1x128xf32>
    %cst_367 = arith.constant 5.000000e-01 : f32
    %1009 = vector.broadcast %cst_367 : f32 to vector<1x128xf32>
    %1010 = arith.mulf %1009, %1008 : vector<1x128xf32>
    %1011 = vector.broadcast %1000 : vector<1x128xi32> to vector<128x128xi32>
    %1012 = arith.cmpi eq, %1011, %3 : vector<128x128xi32>
    %1013 = arith.extui %1012 : vector<128x128xi1> to vector<128x128xi32>
    %1014 = arith.sitofp %1013 : vector<128x128xi32> to vector<128x128xf32>
    %cst_368 = arith.constant dense<0.000000e+00> : vector<1x128xf32>
    %1015 = tpu.matmul %1010, %1014, %cst_368 {dimension_numbers = #tpu.dot_dimension_numbers<[1], [1], [0], [0], [0, 0, 1, 0], [], []>} : vector<1x128xf32>, vector<128x128xf32>, vector<1x128xf32> -> vector<1x128xf32>
    %1016 = arith.addf %994, %1015 : vector<1x128xf32>
    %c46_i32 = arith.constant 46 : i32
    %1017 = arith.index_cast %c46_i32 : i32 to index
    %c0_369 = arith.constant 0 : index
    %c0_370 = arith.constant 0 : index
    %1018 = vector.load %arg2[%1017, %c0_369, %c0_370] : memref<64x3x128xf32, #tpu.memory_space<vmem>>, vector<1x3x128xf32>
    %1019 = vector.shape_cast %1018 : vector<1x3x128xf32> to vector<3x128xf32>
    %1020 = arith.index_cast %c46_i32 : i32 to index
    %c0_371 = arith.constant 0 : index
    %c0_372 = arith.constant 0 : index
    %1021 = vector.load %arg3[%1020, %c0_371, %c0_372] : memref<64x1x128xi32, #tpu.memory_space<vmem>>, vector<1x1x128xi32>
    %1022 = vector.shape_cast %1021 : vector<1x1x128xi32> to vector<1x128xi32>
    %1023 = arith.mulf %1019, %1019 : vector<3x128xf32>
    %cst_373 = arith.constant dense<0.000000e+00> : vector<128xf32>
    %1024 = vector.multi_reduction <add>, %1023, %cst_373 [0] : vector<3x128xf32> to vector<128xf32>
    %1025 = vector.shape_cast %1024 : vector<128xf32> to vector<1x128xf32>
    %cst_374 = arith.constant 1.000000e+00 : f32
    %1026 = vector.broadcast %cst_374 : f32 to vector<1x128xf32>
    %1027 = arith.divf %1026, %1025 : vector<1x128xf32>
    %1028 = arith.mulf %1027, %1027 : vector<1x128xf32>
    %1029 = arith.mulf %1028, %1028 : vector<1x128xf32>
    %1030 = arith.mulf %1028, %1029 : vector<1x128xf32>
    %cst_375 = arith.constant 5.000000e-01 : f32
    %1031 = vector.broadcast %cst_375 : f32 to vector<1x128xf32>
    %1032 = arith.mulf %1031, %1030 : vector<1x128xf32>
    %1033 = vector.broadcast %1022 : vector<1x128xi32> to vector<128x128xi32>
    %1034 = arith.cmpi eq, %1033, %3 : vector<128x128xi32>
    %1035 = arith.extui %1034 : vector<128x128xi1> to vector<128x128xi32>
    %1036 = arith.sitofp %1035 : vector<128x128xi32> to vector<128x128xf32>
    %cst_376 = arith.constant dense<0.000000e+00> : vector<1x128xf32>
    %1037 = tpu.matmul %1032, %1036, %cst_376 {dimension_numbers = #tpu.dot_dimension_numbers<[1], [1], [0], [0], [0, 0, 1, 0], [], []>} : vector<1x128xf32>, vector<128x128xf32>, vector<1x128xf32> -> vector<1x128xf32>
    %1038 = arith.addf %1016, %1037 : vector<1x128xf32>
    %c47_i32 = arith.constant 47 : i32
    %1039 = arith.index_cast %c47_i32 : i32 to index
    %c0_377 = arith.constant 0 : index
    %c0_378 = arith.constant 0 : index
    %1040 = vector.load %arg2[%1039, %c0_377, %c0_378] : memref<64x3x128xf32, #tpu.memory_space<vmem>>, vector<1x3x128xf32>
    %1041 = vector.shape_cast %1040 : vector<1x3x128xf32> to vector<3x128xf32>
    %1042 = arith.index_cast %c47_i32 : i32 to index
    %c0_379 = arith.constant 0 : index
    %c0_380 = arith.constant 0 : index
    %1043 = vector.load %arg3[%1042, %c0_379, %c0_380] : memref<64x1x128xi32, #tpu.memory_space<vmem>>, vector<1x1x128xi32>
    %1044 = vector.shape_cast %1043 : vector<1x1x128xi32> to vector<1x128xi32>
    %1045 = arith.mulf %1041, %1041 : vector<3x128xf32>
    %cst_381 = arith.constant dense<0.000000e+00> : vector<128xf32>
    %1046 = vector.multi_reduction <add>, %1045, %cst_381 [0] : vector<3x128xf32> to vector<128xf32>
    %1047 = vector.shape_cast %1046 : vector<128xf32> to vector<1x128xf32>
    %cst_382 = arith.constant 1.000000e+00 : f32
    %1048 = vector.broadcast %cst_382 : f32 to vector<1x128xf32>
    %1049 = arith.divf %1048, %1047 : vector<1x128xf32>
    %1050 = arith.mulf %1049, %1049 : vector<1x128xf32>
    %1051 = arith.mulf %1050, %1050 : vector<1x128xf32>
    %1052 = arith.mulf %1050, %1051 : vector<1x128xf32>
    %cst_383 = arith.constant 5.000000e-01 : f32
    %1053 = vector.broadcast %cst_383 : f32 to vector<1x128xf32>
    %1054 = arith.mulf %1053, %1052 : vector<1x128xf32>
    %1055 = vector.broadcast %1044 : vector<1x128xi32> to vector<128x128xi32>
    %1056 = arith.cmpi eq, %1055, %3 : vector<128x128xi32>
    %1057 = arith.extui %1056 : vector<128x128xi1> to vector<128x128xi32>
    %1058 = arith.sitofp %1057 : vector<128x128xi32> to vector<128x128xf32>
    %cst_384 = arith.constant dense<0.000000e+00> : vector<1x128xf32>
    %1059 = tpu.matmul %1054, %1058, %cst_384 {dimension_numbers = #tpu.dot_dimension_numbers<[1], [1], [0], [0], [0, 0, 1, 0], [], []>} : vector<1x128xf32>, vector<128x128xf32>, vector<1x128xf32> -> vector<1x128xf32>
    %1060 = arith.addf %1038, %1059 : vector<1x128xf32>
    %c48_i32 = arith.constant 48 : i32
    %1061 = arith.index_cast %c48_i32 : i32 to index
    %c0_385 = arith.constant 0 : index
    %c0_386 = arith.constant 0 : index
    %1062 = vector.load %arg2[%1061, %c0_385, %c0_386] : memref<64x3x128xf32, #tpu.memory_space<vmem>>, vector<1x3x128xf32>
    %1063 = vector.shape_cast %1062 : vector<1x3x128xf32> to vector<3x128xf32>
    %1064 = arith.index_cast %c48_i32 : i32 to index
    %c0_387 = arith.constant 0 : index
    %c0_388 = arith.constant 0 : index
    %1065 = vector.load %arg3[%1064, %c0_387, %c0_388] : memref<64x1x128xi32, #tpu.memory_space<vmem>>, vector<1x1x128xi32>
    %1066 = vector.shape_cast %1065 : vector<1x1x128xi32> to vector<1x128xi32>
    %1067 = arith.mulf %1063, %1063 : vector<3x128xf32>
    %cst_389 = arith.constant dense<0.000000e+00> : vector<128xf32>
    %1068 = vector.multi_reduction <add>, %1067, %cst_389 [0] : vector<3x128xf32> to vector<128xf32>
    %1069 = vector.shape_cast %1068 : vector<128xf32> to vector<1x128xf32>
    %cst_390 = arith.constant 1.000000e+00 : f32
    %1070 = vector.broadcast %cst_390 : f32 to vector<1x128xf32>
    %1071 = arith.divf %1070, %1069 : vector<1x128xf32>
    %1072 = arith.mulf %1071, %1071 : vector<1x128xf32>
    %1073 = arith.mulf %1072, %1072 : vector<1x128xf32>
    %1074 = arith.mulf %1072, %1073 : vector<1x128xf32>
    %cst_391 = arith.constant 5.000000e-01 : f32
    %1075 = vector.broadcast %cst_391 : f32 to vector<1x128xf32>
    %1076 = arith.mulf %1075, %1074 : vector<1x128xf32>
    %1077 = vector.broadcast %1066 : vector<1x128xi32> to vector<128x128xi32>
    %1078 = arith.cmpi eq, %1077, %3 : vector<128x128xi32>
    %1079 = arith.extui %1078 : vector<128x128xi1> to vector<128x128xi32>
    %1080 = arith.sitofp %1079 : vector<128x128xi32> to vector<128x128xf32>
    %cst_392 = arith.constant dense<0.000000e+00> : vector<1x128xf32>
    %1081 = tpu.matmul %1076, %1080, %cst_392 {dimension_numbers = #tpu.dot_dimension_numbers<[1], [1], [0], [0], [0, 0, 1, 0], [], []>} : vector<1x128xf32>, vector<128x128xf32>, vector<1x128xf32> -> vector<1x128xf32>
    %1082 = arith.addf %1060, %1081 : vector<1x128xf32>
    %c49_i32 = arith.constant 49 : i32
    %1083 = arith.index_cast %c49_i32 : i32 to index
    %c0_393 = arith.constant 0 : index
    %c0_394 = arith.constant 0 : index
    %1084 = vector.load %arg2[%1083, %c0_393, %c0_394] : memref<64x3x128xf32, #tpu.memory_space<vmem>>, vector<1x3x128xf32>
    %1085 = vector.shape_cast %1084 : vector<1x3x128xf32> to vector<3x128xf32>
    %1086 = arith.index_cast %c49_i32 : i32 to index
    %c0_395 = arith.constant 0 : index
    %c0_396 = arith.constant 0 : index
    %1087 = vector.load %arg3[%1086, %c0_395, %c0_396] : memref<64x1x128xi32, #tpu.memory_space<vmem>>, vector<1x1x128xi32>
    %1088 = vector.shape_cast %1087 : vector<1x1x128xi32> to vector<1x128xi32>
    %1089 = arith.mulf %1085, %1085 : vector<3x128xf32>
    %cst_397 = arith.constant dense<0.000000e+00> : vector<128xf32>
    %1090 = vector.multi_reduction <add>, %1089, %cst_397 [0] : vector<3x128xf32> to vector<128xf32>
    %1091 = vector.shape_cast %1090 : vector<128xf32> to vector<1x128xf32>
    %cst_398 = arith.constant 1.000000e+00 : f32
    %1092 = vector.broadcast %cst_398 : f32 to vector<1x128xf32>
    %1093 = arith.divf %1092, %1091 : vector<1x128xf32>
    %1094 = arith.mulf %1093, %1093 : vector<1x128xf32>
    %1095 = arith.mulf %1094, %1094 : vector<1x128xf32>
    %1096 = arith.mulf %1094, %1095 : vector<1x128xf32>
    %cst_399 = arith.constant 5.000000e-01 : f32
    %1097 = vector.broadcast %cst_399 : f32 to vector<1x128xf32>
    %1098 = arith.mulf %1097, %1096 : vector<1x128xf32>
    %1099 = vector.broadcast %1088 : vector<1x128xi32> to vector<128x128xi32>
    %1100 = arith.cmpi eq, %1099, %3 : vector<128x128xi32>
    %1101 = arith.extui %1100 : vector<128x128xi1> to vector<128x128xi32>
    %1102 = arith.sitofp %1101 : vector<128x128xi32> to vector<128x128xf32>
    %cst_400 = arith.constant dense<0.000000e+00> : vector<1x128xf32>
    %1103 = tpu.matmul %1098, %1102, %cst_400 {dimension_numbers = #tpu.dot_dimension_numbers<[1], [1], [0], [0], [0, 0, 1, 0], [], []>} : vector<1x128xf32>, vector<128x128xf32>, vector<1x128xf32> -> vector<1x128xf32>
    %1104 = arith.addf %1082, %1103 : vector<1x128xf32>
    %c50_i32 = arith.constant 50 : i32
    %1105 = arith.index_cast %c50_i32 : i32 to index
    %c0_401 = arith.constant 0 : index
    %c0_402 = arith.constant 0 : index
    %1106 = vector.load %arg2[%1105, %c0_401, %c0_402] : memref<64x3x128xf32, #tpu.memory_space<vmem>>, vector<1x3x128xf32>
    %1107 = vector.shape_cast %1106 : vector<1x3x128xf32> to vector<3x128xf32>
    %1108 = arith.index_cast %c50_i32 : i32 to index
    %c0_403 = arith.constant 0 : index
    %c0_404 = arith.constant 0 : index
    %1109 = vector.load %arg3[%1108, %c0_403, %c0_404] : memref<64x1x128xi32, #tpu.memory_space<vmem>>, vector<1x1x128xi32>
    %1110 = vector.shape_cast %1109 : vector<1x1x128xi32> to vector<1x128xi32>
    %1111 = arith.mulf %1107, %1107 : vector<3x128xf32>
    %cst_405 = arith.constant dense<0.000000e+00> : vector<128xf32>
    %1112 = vector.multi_reduction <add>, %1111, %cst_405 [0] : vector<3x128xf32> to vector<128xf32>
    %1113 = vector.shape_cast %1112 : vector<128xf32> to vector<1x128xf32>
    %cst_406 = arith.constant 1.000000e+00 : f32
    %1114 = vector.broadcast %cst_406 : f32 to vector<1x128xf32>
    %1115 = arith.divf %1114, %1113 : vector<1x128xf32>
    %1116 = arith.mulf %1115, %1115 : vector<1x128xf32>
    %1117 = arith.mulf %1116, %1116 : vector<1x128xf32>
    %1118 = arith.mulf %1116, %1117 : vector<1x128xf32>
    %cst_407 = arith.constant 5.000000e-01 : f32
    %1119 = vector.broadcast %cst_407 : f32 to vector<1x128xf32>
    %1120 = arith.mulf %1119, %1118 : vector<1x128xf32>
    %1121 = vector.broadcast %1110 : vector<1x128xi32> to vector<128x128xi32>
    %1122 = arith.cmpi eq, %1121, %3 : vector<128x128xi32>
    %1123 = arith.extui %1122 : vector<128x128xi1> to vector<128x128xi32>
    %1124 = arith.sitofp %1123 : vector<128x128xi32> to vector<128x128xf32>
    %cst_408 = arith.constant dense<0.000000e+00> : vector<1x128xf32>
    %1125 = tpu.matmul %1120, %1124, %cst_408 {dimension_numbers = #tpu.dot_dimension_numbers<[1], [1], [0], [0], [0, 0, 1, 0], [], []>} : vector<1x128xf32>, vector<128x128xf32>, vector<1x128xf32> -> vector<1x128xf32>
    %1126 = arith.addf %1104, %1125 : vector<1x128xf32>
    %c51_i32 = arith.constant 51 : i32
    %1127 = arith.index_cast %c51_i32 : i32 to index
    %c0_409 = arith.constant 0 : index
    %c0_410 = arith.constant 0 : index
    %1128 = vector.load %arg2[%1127, %c0_409, %c0_410] : memref<64x3x128xf32, #tpu.memory_space<vmem>>, vector<1x3x128xf32>
    %1129 = vector.shape_cast %1128 : vector<1x3x128xf32> to vector<3x128xf32>
    %1130 = arith.index_cast %c51_i32 : i32 to index
    %c0_411 = arith.constant 0 : index
    %c0_412 = arith.constant 0 : index
    %1131 = vector.load %arg3[%1130, %c0_411, %c0_412] : memref<64x1x128xi32, #tpu.memory_space<vmem>>, vector<1x1x128xi32>
    %1132 = vector.shape_cast %1131 : vector<1x1x128xi32> to vector<1x128xi32>
    %1133 = arith.mulf %1129, %1129 : vector<3x128xf32>
    %cst_413 = arith.constant dense<0.000000e+00> : vector<128xf32>
    %1134 = vector.multi_reduction <add>, %1133, %cst_413 [0] : vector<3x128xf32> to vector<128xf32>
    %1135 = vector.shape_cast %1134 : vector<128xf32> to vector<1x128xf32>
    %cst_414 = arith.constant 1.000000e+00 : f32
    %1136 = vector.broadcast %cst_414 : f32 to vector<1x128xf32>
    %1137 = arith.divf %1136, %1135 : vector<1x128xf32>
    %1138 = arith.mulf %1137, %1137 : vector<1x128xf32>
    %1139 = arith.mulf %1138, %1138 : vector<1x128xf32>
    %1140 = arith.mulf %1138, %1139 : vector<1x128xf32>
    %cst_415 = arith.constant 5.000000e-01 : f32
    %1141 = vector.broadcast %cst_415 : f32 to vector<1x128xf32>
    %1142 = arith.mulf %1141, %1140 : vector<1x128xf32>
    %1143 = vector.broadcast %1132 : vector<1x128xi32> to vector<128x128xi32>
    %1144 = arith.cmpi eq, %1143, %3 : vector<128x128xi32>
    %1145 = arith.extui %1144 : vector<128x128xi1> to vector<128x128xi32>
    %1146 = arith.sitofp %1145 : vector<128x128xi32> to vector<128x128xf32>
    %cst_416 = arith.constant dense<0.000000e+00> : vector<1x128xf32>
    %1147 = tpu.matmul %1142, %1146, %cst_416 {dimension_numbers = #tpu.dot_dimension_numbers<[1], [1], [0], [0], [0, 0, 1, 0], [], []>} : vector<1x128xf32>, vector<128x128xf32>, vector<1x128xf32> -> vector<1x128xf32>
    %1148 = arith.addf %1126, %1147 : vector<1x128xf32>
    %c52_i32 = arith.constant 52 : i32
    %1149 = arith.index_cast %c52_i32 : i32 to index
    %c0_417 = arith.constant 0 : index
    %c0_418 = arith.constant 0 : index
    %1150 = vector.load %arg2[%1149, %c0_417, %c0_418] : memref<64x3x128xf32, #tpu.memory_space<vmem>>, vector<1x3x128xf32>
    %1151 = vector.shape_cast %1150 : vector<1x3x128xf32> to vector<3x128xf32>
    %1152 = arith.index_cast %c52_i32 : i32 to index
    %c0_419 = arith.constant 0 : index
    %c0_420 = arith.constant 0 : index
    %1153 = vector.load %arg3[%1152, %c0_419, %c0_420] : memref<64x1x128xi32, #tpu.memory_space<vmem>>, vector<1x1x128xi32>
    %1154 = vector.shape_cast %1153 : vector<1x1x128xi32> to vector<1x128xi32>
    %1155 = arith.mulf %1151, %1151 : vector<3x128xf32>
    %cst_421 = arith.constant dense<0.000000e+00> : vector<128xf32>
    %1156 = vector.multi_reduction <add>, %1155, %cst_421 [0] : vector<3x128xf32> to vector<128xf32>
    %1157 = vector.shape_cast %1156 : vector<128xf32> to vector<1x128xf32>
    %cst_422 = arith.constant 1.000000e+00 : f32
    %1158 = vector.broadcast %cst_422 : f32 to vector<1x128xf32>
    %1159 = arith.divf %1158, %1157 : vector<1x128xf32>
    %1160 = arith.mulf %1159, %1159 : vector<1x128xf32>
    %1161 = arith.mulf %1160, %1160 : vector<1x128xf32>
    %1162 = arith.mulf %1160, %1161 : vector<1x128xf32>
    %cst_423 = arith.constant 5.000000e-01 : f32
    %1163 = vector.broadcast %cst_423 : f32 to vector<1x128xf32>
    %1164 = arith.mulf %1163, %1162 : vector<1x128xf32>
    %1165 = vector.broadcast %1154 : vector<1x128xi32> to vector<128x128xi32>
    %1166 = arith.cmpi eq, %1165, %3 : vector<128x128xi32>
    %1167 = arith.extui %1166 : vector<128x128xi1> to vector<128x128xi32>
    %1168 = arith.sitofp %1167 : vector<128x128xi32> to vector<128x128xf32>
    %cst_424 = arith.constant dense<0.000000e+00> : vector<1x128xf32>
    %1169 = tpu.matmul %1164, %1168, %cst_424 {dimension_numbers = #tpu.dot_dimension_numbers<[1], [1], [0], [0], [0, 0, 1, 0], [], []>} : vector<1x128xf32>, vector<128x128xf32>, vector<1x128xf32> -> vector<1x128xf32>
    %1170 = arith.addf %1148, %1169 : vector<1x128xf32>
    %c53_i32 = arith.constant 53 : i32
    %1171 = arith.index_cast %c53_i32 : i32 to index
    %c0_425 = arith.constant 0 : index
    %c0_426 = arith.constant 0 : index
    %1172 = vector.load %arg2[%1171, %c0_425, %c0_426] : memref<64x3x128xf32, #tpu.memory_space<vmem>>, vector<1x3x128xf32>
    %1173 = vector.shape_cast %1172 : vector<1x3x128xf32> to vector<3x128xf32>
    %1174 = arith.index_cast %c53_i32 : i32 to index
    %c0_427 = arith.constant 0 : index
    %c0_428 = arith.constant 0 : index
    %1175 = vector.load %arg3[%1174, %c0_427, %c0_428] : memref<64x1x128xi32, #tpu.memory_space<vmem>>, vector<1x1x128xi32>
    %1176 = vector.shape_cast %1175 : vector<1x1x128xi32> to vector<1x128xi32>
    %1177 = arith.mulf %1173, %1173 : vector<3x128xf32>
    %cst_429 = arith.constant dense<0.000000e+00> : vector<128xf32>
    %1178 = vector.multi_reduction <add>, %1177, %cst_429 [0] : vector<3x128xf32> to vector<128xf32>
    %1179 = vector.shape_cast %1178 : vector<128xf32> to vector<1x128xf32>
    %cst_430 = arith.constant 1.000000e+00 : f32
    %1180 = vector.broadcast %cst_430 : f32 to vector<1x128xf32>
    %1181 = arith.divf %1180, %1179 : vector<1x128xf32>
    %1182 = arith.mulf %1181, %1181 : vector<1x128xf32>
    %1183 = arith.mulf %1182, %1182 : vector<1x128xf32>
    %1184 = arith.mulf %1182, %1183 : vector<1x128xf32>
    %cst_431 = arith.constant 5.000000e-01 : f32
    %1185 = vector.broadcast %cst_431 : f32 to vector<1x128xf32>
    %1186 = arith.mulf %1185, %1184 : vector<1x128xf32>
    %1187 = vector.broadcast %1176 : vector<1x128xi32> to vector<128x128xi32>
    %1188 = arith.cmpi eq, %1187, %3 : vector<128x128xi32>
    %1189 = arith.extui %1188 : vector<128x128xi1> to vector<128x128xi32>
    %1190 = arith.sitofp %1189 : vector<128x128xi32> to vector<128x128xf32>
    %cst_432 = arith.constant dense<0.000000e+00> : vector<1x128xf32>
    %1191 = tpu.matmul %1186, %1190, %cst_432 {dimension_numbers = #tpu.dot_dimension_numbers<[1], [1], [0], [0], [0, 0, 1, 0], [], []>} : vector<1x128xf32>, vector<128x128xf32>, vector<1x128xf32> -> vector<1x128xf32>
    %1192 = arith.addf %1170, %1191 : vector<1x128xf32>
    %c54_i32 = arith.constant 54 : i32
    %1193 = arith.index_cast %c54_i32 : i32 to index
    %c0_433 = arith.constant 0 : index
    %c0_434 = arith.constant 0 : index
    %1194 = vector.load %arg2[%1193, %c0_433, %c0_434] : memref<64x3x128xf32, #tpu.memory_space<vmem>>, vector<1x3x128xf32>
    %1195 = vector.shape_cast %1194 : vector<1x3x128xf32> to vector<3x128xf32>
    %1196 = arith.index_cast %c54_i32 : i32 to index
    %c0_435 = arith.constant 0 : index
    %c0_436 = arith.constant 0 : index
    %1197 = vector.load %arg3[%1196, %c0_435, %c0_436] : memref<64x1x128xi32, #tpu.memory_space<vmem>>, vector<1x1x128xi32>
    %1198 = vector.shape_cast %1197 : vector<1x1x128xi32> to vector<1x128xi32>
    %1199 = arith.mulf %1195, %1195 : vector<3x128xf32>
    %cst_437 = arith.constant dense<0.000000e+00> : vector<128xf32>
    %1200 = vector.multi_reduction <add>, %1199, %cst_437 [0] : vector<3x128xf32> to vector<128xf32>
    %1201 = vector.shape_cast %1200 : vector<128xf32> to vector<1x128xf32>
    %cst_438 = arith.constant 1.000000e+00 : f32
    %1202 = vector.broadcast %cst_438 : f32 to vector<1x128xf32>
    %1203 = arith.divf %1202, %1201 : vector<1x128xf32>
    %1204 = arith.mulf %1203, %1203 : vector<1x128xf32>
    %1205 = arith.mulf %1204, %1204 : vector<1x128xf32>
    %1206 = arith.mulf %1204, %1205 : vector<1x128xf32>
    %cst_439 = arith.constant 5.000000e-01 : f32
    %1207 = vector.broadcast %cst_439 : f32 to vector<1x128xf32>
    %1208 = arith.mulf %1207, %1206 : vector<1x128xf32>
    %1209 = vector.broadcast %1198 : vector<1x128xi32> to vector<128x128xi32>
    %1210 = arith.cmpi eq, %1209, %3 : vector<128x128xi32>
    %1211 = arith.extui %1210 : vector<128x128xi1> to vector<128x128xi32>
    %1212 = arith.sitofp %1211 : vector<128x128xi32> to vector<128x128xf32>
    %cst_440 = arith.constant dense<0.000000e+00> : vector<1x128xf32>
    %1213 = tpu.matmul %1208, %1212, %cst_440 {dimension_numbers = #tpu.dot_dimension_numbers<[1], [1], [0], [0], [0, 0, 1, 0], [], []>} : vector<1x128xf32>, vector<128x128xf32>, vector<1x128xf32> -> vector<1x128xf32>
    %1214 = arith.addf %1192, %1213 : vector<1x128xf32>
    %c55_i32 = arith.constant 55 : i32
    %1215 = arith.index_cast %c55_i32 : i32 to index
    %c0_441 = arith.constant 0 : index
    %c0_442 = arith.constant 0 : index
    %1216 = vector.load %arg2[%1215, %c0_441, %c0_442] : memref<64x3x128xf32, #tpu.memory_space<vmem>>, vector<1x3x128xf32>
    %1217 = vector.shape_cast %1216 : vector<1x3x128xf32> to vector<3x128xf32>
    %1218 = arith.index_cast %c55_i32 : i32 to index
    %c0_443 = arith.constant 0 : index
    %c0_444 = arith.constant 0 : index
    %1219 = vector.load %arg3[%1218, %c0_443, %c0_444] : memref<64x1x128xi32, #tpu.memory_space<vmem>>, vector<1x1x128xi32>
    %1220 = vector.shape_cast %1219 : vector<1x1x128xi32> to vector<1x128xi32>
    %1221 = arith.mulf %1217, %1217 : vector<3x128xf32>
    %cst_445 = arith.constant dense<0.000000e+00> : vector<128xf32>
    %1222 = vector.multi_reduction <add>, %1221, %cst_445 [0] : vector<3x128xf32> to vector<128xf32>
    %1223 = vector.shape_cast %1222 : vector<128xf32> to vector<1x128xf32>
    %cst_446 = arith.constant 1.000000e+00 : f32
    %1224 = vector.broadcast %cst_446 : f32 to vector<1x128xf32>
    %1225 = arith.divf %1224, %1223 : vector<1x128xf32>
    %1226 = arith.mulf %1225, %1225 : vector<1x128xf32>
    %1227 = arith.mulf %1226, %1226 : vector<1x128xf32>
    %1228 = arith.mulf %1226, %1227 : vector<1x128xf32>
    %cst_447 = arith.constant 5.000000e-01 : f32
    %1229 = vector.broadcast %cst_447 : f32 to vector<1x128xf32>
    %1230 = arith.mulf %1229, %1228 : vector<1x128xf32>
    %1231 = vector.broadcast %1220 : vector<1x128xi32> to vector<128x128xi32>
    %1232 = arith.cmpi eq, %1231, %3 : vector<128x128xi32>
    %1233 = arith.extui %1232 : vector<128x128xi1> to vector<128x128xi32>
    %1234 = arith.sitofp %1233 : vector<128x128xi32> to vector<128x128xf32>
    %cst_448 = arith.constant dense<0.000000e+00> : vector<1x128xf32>
    %1235 = tpu.matmul %1230, %1234, %cst_448 {dimension_numbers = #tpu.dot_dimension_numbers<[1], [1], [0], [0], [0, 0, 1, 0], [], []>} : vector<1x128xf32>, vector<128x128xf32>, vector<1x128xf32> -> vector<1x128xf32>
    %1236 = arith.addf %1214, %1235 : vector<1x128xf32>
    %c56_i32 = arith.constant 56 : i32
    %1237 = arith.index_cast %c56_i32 : i32 to index
    %c0_449 = arith.constant 0 : index
    %c0_450 = arith.constant 0 : index
    %1238 = vector.load %arg2[%1237, %c0_449, %c0_450] : memref<64x3x128xf32, #tpu.memory_space<vmem>>, vector<1x3x128xf32>
    %1239 = vector.shape_cast %1238 : vector<1x3x128xf32> to vector<3x128xf32>
    %1240 = arith.index_cast %c56_i32 : i32 to index
    %c0_451 = arith.constant 0 : index
    %c0_452 = arith.constant 0 : index
    %1241 = vector.load %arg3[%1240, %c0_451, %c0_452] : memref<64x1x128xi32, #tpu.memory_space<vmem>>, vector<1x1x128xi32>
    %1242 = vector.shape_cast %1241 : vector<1x1x128xi32> to vector<1x128xi32>
    %1243 = arith.mulf %1239, %1239 : vector<3x128xf32>
    %cst_453 = arith.constant dense<0.000000e+00> : vector<128xf32>
    %1244 = vector.multi_reduction <add>, %1243, %cst_453 [0] : vector<3x128xf32> to vector<128xf32>
    %1245 = vector.shape_cast %1244 : vector<128xf32> to vector<1x128xf32>
    %cst_454 = arith.constant 1.000000e+00 : f32
    %1246 = vector.broadcast %cst_454 : f32 to vector<1x128xf32>
    %1247 = arith.divf %1246, %1245 : vector<1x128xf32>
    %1248 = arith.mulf %1247, %1247 : vector<1x128xf32>
    %1249 = arith.mulf %1248, %1248 : vector<1x128xf32>
    %1250 = arith.mulf %1248, %1249 : vector<1x128xf32>
    %cst_455 = arith.constant 5.000000e-01 : f32
    %1251 = vector.broadcast %cst_455 : f32 to vector<1x128xf32>
    %1252 = arith.mulf %1251, %1250 : vector<1x128xf32>
    %1253 = vector.broadcast %1242 : vector<1x128xi32> to vector<128x128xi32>
    %1254 = arith.cmpi eq, %1253, %3 : vector<128x128xi32>
    %1255 = arith.extui %1254 : vector<128x128xi1> to vector<128x128xi32>
    %1256 = arith.sitofp %1255 : vector<128x128xi32> to vector<128x128xf32>
    %cst_456 = arith.constant dense<0.000000e+00> : vector<1x128xf32>
    %1257 = tpu.matmul %1252, %1256, %cst_456 {dimension_numbers = #tpu.dot_dimension_numbers<[1], [1], [0], [0], [0, 0, 1, 0], [], []>} : vector<1x128xf32>, vector<128x128xf32>, vector<1x128xf32> -> vector<1x128xf32>
    %1258 = arith.addf %1236, %1257 : vector<1x128xf32>
    %c57_i32 = arith.constant 57 : i32
    %1259 = arith.index_cast %c57_i32 : i32 to index
    %c0_457 = arith.constant 0 : index
    %c0_458 = arith.constant 0 : index
    %1260 = vector.load %arg2[%1259, %c0_457, %c0_458] : memref<64x3x128xf32, #tpu.memory_space<vmem>>, vector<1x3x128xf32>
    %1261 = vector.shape_cast %1260 : vector<1x3x128xf32> to vector<3x128xf32>
    %1262 = arith.index_cast %c57_i32 : i32 to index
    %c0_459 = arith.constant 0 : index
    %c0_460 = arith.constant 0 : index
    %1263 = vector.load %arg3[%1262, %c0_459, %c0_460] : memref<64x1x128xi32, #tpu.memory_space<vmem>>, vector<1x1x128xi32>
    %1264 = vector.shape_cast %1263 : vector<1x1x128xi32> to vector<1x128xi32>
    %1265 = arith.mulf %1261, %1261 : vector<3x128xf32>
    %cst_461 = arith.constant dense<0.000000e+00> : vector<128xf32>
    %1266 = vector.multi_reduction <add>, %1265, %cst_461 [0] : vector<3x128xf32> to vector<128xf32>
    %1267 = vector.shape_cast %1266 : vector<128xf32> to vector<1x128xf32>
    %cst_462 = arith.constant 1.000000e+00 : f32
    %1268 = vector.broadcast %cst_462 : f32 to vector<1x128xf32>
    %1269 = arith.divf %1268, %1267 : vector<1x128xf32>
    %1270 = arith.mulf %1269, %1269 : vector<1x128xf32>
    %1271 = arith.mulf %1270, %1270 : vector<1x128xf32>
    %1272 = arith.mulf %1270, %1271 : vector<1x128xf32>
    %cst_463 = arith.constant 5.000000e-01 : f32
    %1273 = vector.broadcast %cst_463 : f32 to vector<1x128xf32>
    %1274 = arith.mulf %1273, %1272 : vector<1x128xf32>
    %1275 = vector.broadcast %1264 : vector<1x128xi32> to vector<128x128xi32>
    %1276 = arith.cmpi eq, %1275, %3 : vector<128x128xi32>
    %1277 = arith.extui %1276 : vector<128x128xi1> to vector<128x128xi32>
    %1278 = arith.sitofp %1277 : vector<128x128xi32> to vector<128x128xf32>
    %cst_464 = arith.constant dense<0.000000e+00> : vector<1x128xf32>
    %1279 = tpu.matmul %1274, %1278, %cst_464 {dimension_numbers = #tpu.dot_dimension_numbers<[1], [1], [0], [0], [0, 0, 1, 0], [], []>} : vector<1x128xf32>, vector<128x128xf32>, vector<1x128xf32> -> vector<1x128xf32>
    %1280 = arith.addf %1258, %1279 : vector<1x128xf32>
    %c58_i32 = arith.constant 58 : i32
    %1281 = arith.index_cast %c58_i32 : i32 to index
    %c0_465 = arith.constant 0 : index
    %c0_466 = arith.constant 0 : index
    %1282 = vector.load %arg2[%1281, %c0_465, %c0_466] : memref<64x3x128xf32, #tpu.memory_space<vmem>>, vector<1x3x128xf32>
    %1283 = vector.shape_cast %1282 : vector<1x3x128xf32> to vector<3x128xf32>
    %1284 = arith.index_cast %c58_i32 : i32 to index
    %c0_467 = arith.constant 0 : index
    %c0_468 = arith.constant 0 : index
    %1285 = vector.load %arg3[%1284, %c0_467, %c0_468] : memref<64x1x128xi32, #tpu.memory_space<vmem>>, vector<1x1x128xi32>
    %1286 = vector.shape_cast %1285 : vector<1x1x128xi32> to vector<1x128xi32>
    %1287 = arith.mulf %1283, %1283 : vector<3x128xf32>
    %cst_469 = arith.constant dense<0.000000e+00> : vector<128xf32>
    %1288 = vector.multi_reduction <add>, %1287, %cst_469 [0] : vector<3x128xf32> to vector<128xf32>
    %1289 = vector.shape_cast %1288 : vector<128xf32> to vector<1x128xf32>
    %cst_470 = arith.constant 1.000000e+00 : f32
    %1290 = vector.broadcast %cst_470 : f32 to vector<1x128xf32>
    %1291 = arith.divf %1290, %1289 : vector<1x128xf32>
    %1292 = arith.mulf %1291, %1291 : vector<1x128xf32>
    %1293 = arith.mulf %1292, %1292 : vector<1x128xf32>
    %1294 = arith.mulf %1292, %1293 : vector<1x128xf32>
    %cst_471 = arith.constant 5.000000e-01 : f32
    %1295 = vector.broadcast %cst_471 : f32 to vector<1x128xf32>
    %1296 = arith.mulf %1295, %1294 : vector<1x128xf32>
    %1297 = vector.broadcast %1286 : vector<1x128xi32> to vector<128x128xi32>
    %1298 = arith.cmpi eq, %1297, %3 : vector<128x128xi32>
    %1299 = arith.extui %1298 : vector<128x128xi1> to vector<128x128xi32>
    %1300 = arith.sitofp %1299 : vector<128x128xi32> to vector<128x128xf32>
    %cst_472 = arith.constant dense<0.000000e+00> : vector<1x128xf32>
    %1301 = tpu.matmul %1296, %1300, %cst_472 {dimension_numbers = #tpu.dot_dimension_numbers<[1], [1], [0], [0], [0, 0, 1, 0], [], []>} : vector<1x128xf32>, vector<128x128xf32>, vector<1x128xf32> -> vector<1x128xf32>
    %1302 = arith.addf %1280, %1301 : vector<1x128xf32>
    %c59_i32 = arith.constant 59 : i32
    %1303 = arith.index_cast %c59_i32 : i32 to index
    %c0_473 = arith.constant 0 : index
    %c0_474 = arith.constant 0 : index
    %1304 = vector.load %arg2[%1303, %c0_473, %c0_474] : memref<64x3x128xf32, #tpu.memory_space<vmem>>, vector<1x3x128xf32>
    %1305 = vector.shape_cast %1304 : vector<1x3x128xf32> to vector<3x128xf32>
    %1306 = arith.index_cast %c59_i32 : i32 to index
    %c0_475 = arith.constant 0 : index
    %c0_476 = arith.constant 0 : index
    %1307 = vector.load %arg3[%1306, %c0_475, %c0_476] : memref<64x1x128xi32, #tpu.memory_space<vmem>>, vector<1x1x128xi32>
    %1308 = vector.shape_cast %1307 : vector<1x1x128xi32> to vector<1x128xi32>
    %1309 = arith.mulf %1305, %1305 : vector<3x128xf32>
    %cst_477 = arith.constant dense<0.000000e+00> : vector<128xf32>
    %1310 = vector.multi_reduction <add>, %1309, %cst_477 [0] : vector<3x128xf32> to vector<128xf32>
    %1311 = vector.shape_cast %1310 : vector<128xf32> to vector<1x128xf32>
    %cst_478 = arith.constant 1.000000e+00 : f32
    %1312 = vector.broadcast %cst_478 : f32 to vector<1x128xf32>
    %1313 = arith.divf %1312, %1311 : vector<1x128xf32>
    %1314 = arith.mulf %1313, %1313 : vector<1x128xf32>
    %1315 = arith.mulf %1314, %1314 : vector<1x128xf32>
    %1316 = arith.mulf %1314, %1315 : vector<1x128xf32>
    %cst_479 = arith.constant 5.000000e-01 : f32
    %1317 = vector.broadcast %cst_479 : f32 to vector<1x128xf32>
    %1318 = arith.mulf %1317, %1316 : vector<1x128xf32>
    %1319 = vector.broadcast %1308 : vector<1x128xi32> to vector<128x128xi32>
    %1320 = arith.cmpi eq, %1319, %3 : vector<128x128xi32>
    %1321 = arith.extui %1320 : vector<128x128xi1> to vector<128x128xi32>
    %1322 = arith.sitofp %1321 : vector<128x128xi32> to vector<128x128xf32>
    %cst_480 = arith.constant dense<0.000000e+00> : vector<1x128xf32>
    %1323 = tpu.matmul %1318, %1322, %cst_480 {dimension_numbers = #tpu.dot_dimension_numbers<[1], [1], [0], [0], [0, 0, 1, 0], [], []>} : vector<1x128xf32>, vector<128x128xf32>, vector<1x128xf32> -> vector<1x128xf32>
    %1324 = arith.addf %1302, %1323 : vector<1x128xf32>
    %c60_i32 = arith.constant 60 : i32
    %1325 = arith.index_cast %c60_i32 : i32 to index
    %c0_481 = arith.constant 0 : index
    %c0_482 = arith.constant 0 : index
    %1326 = vector.load %arg2[%1325, %c0_481, %c0_482] : memref<64x3x128xf32, #tpu.memory_space<vmem>>, vector<1x3x128xf32>
    %1327 = vector.shape_cast %1326 : vector<1x3x128xf32> to vector<3x128xf32>
    %1328 = arith.index_cast %c60_i32 : i32 to index
    %c0_483 = arith.constant 0 : index
    %c0_484 = arith.constant 0 : index
    %1329 = vector.load %arg3[%1328, %c0_483, %c0_484] : memref<64x1x128xi32, #tpu.memory_space<vmem>>, vector<1x1x128xi32>
    %1330 = vector.shape_cast %1329 : vector<1x1x128xi32> to vector<1x128xi32>
    %1331 = arith.mulf %1327, %1327 : vector<3x128xf32>
    %cst_485 = arith.constant dense<0.000000e+00> : vector<128xf32>
    %1332 = vector.multi_reduction <add>, %1331, %cst_485 [0] : vector<3x128xf32> to vector<128xf32>
    %1333 = vector.shape_cast %1332 : vector<128xf32> to vector<1x128xf32>
    %cst_486 = arith.constant 1.000000e+00 : f32
    %1334 = vector.broadcast %cst_486 : f32 to vector<1x128xf32>
    %1335 = arith.divf %1334, %1333 : vector<1x128xf32>
    %1336 = arith.mulf %1335, %1335 : vector<1x128xf32>
    %1337 = arith.mulf %1336, %1336 : vector<1x128xf32>
    %1338 = arith.mulf %1336, %1337 : vector<1x128xf32>
    %cst_487 = arith.constant 5.000000e-01 : f32
    %1339 = vector.broadcast %cst_487 : f32 to vector<1x128xf32>
    %1340 = arith.mulf %1339, %1338 : vector<1x128xf32>
    %1341 = vector.broadcast %1330 : vector<1x128xi32> to vector<128x128xi32>
    %1342 = arith.cmpi eq, %1341, %3 : vector<128x128xi32>
    %1343 = arith.extui %1342 : vector<128x128xi1> to vector<128x128xi32>
    %1344 = arith.sitofp %1343 : vector<128x128xi32> to vector<128x128xf32>
    %cst_488 = arith.constant dense<0.000000e+00> : vector<1x128xf32>
    %1345 = tpu.matmul %1340, %1344, %cst_488 {dimension_numbers = #tpu.dot_dimension_numbers<[1], [1], [0], [0], [0, 0, 1, 0], [], []>} : vector<1x128xf32>, vector<128x128xf32>, vector<1x128xf32> -> vector<1x128xf32>
    %1346 = arith.addf %1324, %1345 : vector<1x128xf32>
    %c61_i32 = arith.constant 61 : i32
    %1347 = arith.index_cast %c61_i32 : i32 to index
    %c0_489 = arith.constant 0 : index
    %c0_490 = arith.constant 0 : index
    %1348 = vector.load %arg2[%1347, %c0_489, %c0_490] : memref<64x3x128xf32, #tpu.memory_space<vmem>>, vector<1x3x128xf32>
    %1349 = vector.shape_cast %1348 : vector<1x3x128xf32> to vector<3x128xf32>
    %1350 = arith.index_cast %c61_i32 : i32 to index
    %c0_491 = arith.constant 0 : index
    %c0_492 = arith.constant 0 : index
    %1351 = vector.load %arg3[%1350, %c0_491, %c0_492] : memref<64x1x128xi32, #tpu.memory_space<vmem>>, vector<1x1x128xi32>
    %1352 = vector.shape_cast %1351 : vector<1x1x128xi32> to vector<1x128xi32>
    %1353 = arith.mulf %1349, %1349 : vector<3x128xf32>
    %cst_493 = arith.constant dense<0.000000e+00> : vector<128xf32>
    %1354 = vector.multi_reduction <add>, %1353, %cst_493 [0] : vector<3x128xf32> to vector<128xf32>
    %1355 = vector.shape_cast %1354 : vector<128xf32> to vector<1x128xf32>
    %cst_494 = arith.constant 1.000000e+00 : f32
    %1356 = vector.broadcast %cst_494 : f32 to vector<1x128xf32>
    %1357 = arith.divf %1356, %1355 : vector<1x128xf32>
    %1358 = arith.mulf %1357, %1357 : vector<1x128xf32>
    %1359 = arith.mulf %1358, %1358 : vector<1x128xf32>
    %1360 = arith.mulf %1358, %1359 : vector<1x128xf32>
    %cst_495 = arith.constant 5.000000e-01 : f32
    %1361 = vector.broadcast %cst_495 : f32 to vector<1x128xf32>
    %1362 = arith.mulf %1361, %1360 : vector<1x128xf32>
    %1363 = vector.broadcast %1352 : vector<1x128xi32> to vector<128x128xi32>
    %1364 = arith.cmpi eq, %1363, %3 : vector<128x128xi32>
    %1365 = arith.extui %1364 : vector<128x128xi1> to vector<128x128xi32>
    %1366 = arith.sitofp %1365 : vector<128x128xi32> to vector<128x128xf32>
    %cst_496 = arith.constant dense<0.000000e+00> : vector<1x128xf32>
    %1367 = tpu.matmul %1362, %1366, %cst_496 {dimension_numbers = #tpu.dot_dimension_numbers<[1], [1], [0], [0], [0, 0, 1, 0], [], []>} : vector<1x128xf32>, vector<128x128xf32>, vector<1x128xf32> -> vector<1x128xf32>
    %1368 = arith.addf %1346, %1367 : vector<1x128xf32>
    %c62_i32 = arith.constant 62 : i32
    %1369 = arith.index_cast %c62_i32 : i32 to index
    %c0_497 = arith.constant 0 : index
    %c0_498 = arith.constant 0 : index
    %1370 = vector.load %arg2[%1369, %c0_497, %c0_498] : memref<64x3x128xf32, #tpu.memory_space<vmem>>, vector<1x3x128xf32>
    %1371 = vector.shape_cast %1370 : vector<1x3x128xf32> to vector<3x128xf32>
    %1372 = arith.index_cast %c62_i32 : i32 to index
    %c0_499 = arith.constant 0 : index
    %c0_500 = arith.constant 0 : index
    %1373 = vector.load %arg3[%1372, %c0_499, %c0_500] : memref<64x1x128xi32, #tpu.memory_space<vmem>>, vector<1x1x128xi32>
    %1374 = vector.shape_cast %1373 : vector<1x1x128xi32> to vector<1x128xi32>
    %1375 = arith.mulf %1371, %1371 : vector<3x128xf32>
    %cst_501 = arith.constant dense<0.000000e+00> : vector<128xf32>
    %1376 = vector.multi_reduction <add>, %1375, %cst_501 [0] : vector<3x128xf32> to vector<128xf32>
    %1377 = vector.shape_cast %1376 : vector<128xf32> to vector<1x128xf32>
    %cst_502 = arith.constant 1.000000e+00 : f32
    %1378 = vector.broadcast %cst_502 : f32 to vector<1x128xf32>
    %1379 = arith.divf %1378, %1377 : vector<1x128xf32>
    %1380 = arith.mulf %1379, %1379 : vector<1x128xf32>
    %1381 = arith.mulf %1380, %1380 : vector<1x128xf32>
    %1382 = arith.mulf %1380, %1381 : vector<1x128xf32>
    %cst_503 = arith.constant 5.000000e-01 : f32
    %1383 = vector.broadcast %cst_503 : f32 to vector<1x128xf32>
    %1384 = arith.mulf %1383, %1382 : vector<1x128xf32>
    %1385 = vector.broadcast %1374 : vector<1x128xi32> to vector<128x128xi32>
    %1386 = arith.cmpi eq, %1385, %3 : vector<128x128xi32>
    %1387 = arith.extui %1386 : vector<128x128xi1> to vector<128x128xi32>
    %1388 = arith.sitofp %1387 : vector<128x128xi32> to vector<128x128xf32>
    %cst_504 = arith.constant dense<0.000000e+00> : vector<1x128xf32>
    %1389 = tpu.matmul %1384, %1388, %cst_504 {dimension_numbers = #tpu.dot_dimension_numbers<[1], [1], [0], [0], [0, 0, 1, 0], [], []>} : vector<1x128xf32>, vector<128x128xf32>, vector<1x128xf32> -> vector<1x128xf32>
    %1390 = arith.addf %1368, %1389 : vector<1x128xf32>
    %c63_i32 = arith.constant 63 : i32
    %1391 = arith.index_cast %c63_i32 : i32 to index
    %c0_505 = arith.constant 0 : index
    %c0_506 = arith.constant 0 : index
    %1392 = vector.load %arg2[%1391, %c0_505, %c0_506] : memref<64x3x128xf32, #tpu.memory_space<vmem>>, vector<1x3x128xf32>
    %1393 = vector.shape_cast %1392 : vector<1x3x128xf32> to vector<3x128xf32>
    %1394 = arith.index_cast %c63_i32 : i32 to index
    %c0_507 = arith.constant 0 : index
    %c0_508 = arith.constant 0 : index
    %1395 = vector.load %arg3[%1394, %c0_507, %c0_508] : memref<64x1x128xi32, #tpu.memory_space<vmem>>, vector<1x1x128xi32>
    %1396 = vector.shape_cast %1395 : vector<1x1x128xi32> to vector<1x128xi32>
    %1397 = arith.mulf %1393, %1393 : vector<3x128xf32>
    %cst_509 = arith.constant dense<0.000000e+00> : vector<128xf32>
    %1398 = vector.multi_reduction <add>, %1397, %cst_509 [0] : vector<3x128xf32> to vector<128xf32>
    %1399 = vector.shape_cast %1398 : vector<128xf32> to vector<1x128xf32>
    %cst_510 = arith.constant 1.000000e+00 : f32
    %1400 = vector.broadcast %cst_510 : f32 to vector<1x128xf32>
    %1401 = arith.divf %1400, %1399 : vector<1x128xf32>
    %1402 = arith.mulf %1401, %1401 : vector<1x128xf32>
    %1403 = arith.mulf %1402, %1402 : vector<1x128xf32>
    %1404 = arith.mulf %1402, %1403 : vector<1x128xf32>
    %cst_511 = arith.constant 5.000000e-01 : f32
    %1405 = vector.broadcast %cst_511 : f32 to vector<1x128xf32>
    %1406 = arith.mulf %1405, %1404 : vector<1x128xf32>
    %1407 = vector.broadcast %1396 : vector<1x128xi32> to vector<128x128xi32>
    %1408 = arith.cmpi eq, %1407, %3 : vector<128x128xi32>
    %1409 = arith.extui %1408 : vector<128x128xi1> to vector<128x128xi32>
    %1410 = arith.sitofp %1409 : vector<128x128xi32> to vector<128x128xf32>
    %cst_512 = arith.constant dense<0.000000e+00> : vector<1x128xf32>
    %1411 = tpu.matmul %1406, %1410, %cst_512 {dimension_numbers = #tpu.dot_dimension_numbers<[1], [1], [0], [0], [0, 0, 1, 0], [], []>} : vector<1x128xf32>, vector<128x128xf32>, vector<1x128xf32> -> vector<1x128xf32>
    %1412 = arith.addf %1390, %1411 : vector<1x128xf32>
    %c64_i32 = arith.constant 64 : i32
    %c0_513 = arith.constant 0 : index
    %c0_514 = arith.constant 0 : index
    %c0_515 = arith.constant 0 : index
    %1413 = vector.load %arg4[%c0_513, %c0_514, %c0_515] : memref<1x1x128xf32, #tpu.memory_space<vmem>>, vector<1x1x128xf32>
    %1414 = vector.shape_cast %1413 : vector<1x1x128xf32> to vector<1x128xf32>
    %1415 = arith.addf %1414, %1412 : vector<1x128xf32>
    %c0_516 = arith.constant 0 : index
    %c0_517 = arith.constant 0 : index
    %c0_518 = arith.constant 0 : index
    %1416 = vector.load %arg4[%c0_516, %c0_517, %c0_518] : memref<1x1x128xf32, #tpu.memory_space<vmem>>, vector<1x1x128xf32>
    %1417 = vector.shape_cast %1416 : vector<1x1x128xf32> to vector<1x128xf32>
    %1418 = vector.shape_cast %1415 : vector<1x128xf32> to vector<1x1x128xf32>
    tpu.vector_store %arg4[%c0_516, %c0_517, %c0_518], %1418 {strides = array<i32>} : memref<1x1x128xf32, #tpu.memory_space<vmem>>, vector<1x1x128xf32>,
    return
  }
  func.func @transform_0(%arg0: i32, %arg1: i32) -> (i32, i32, i32) {
    %c1_i32 = arith.constant 1 : i32
    %0 = arith.muli %arg0, %c1_i32 : i32
    %1 = arith.addi %0, %arg1 : i32
    %c0_i32 = arith.constant 0 : i32
    %c0_i32_0 = arith.constant 0 : i32
    %c0_i32_1 = arith.constant 0 : i32
    return %1, %c0_i32, %c0_i32_0 : i32, i32, i32
  }
  func.func @transform_1(%arg0: i32, %arg1: i32) -> (i32, i32, i32) {
    %c1_i32 = arith.constant 1 : i32
    %0 = arith.muli %arg0, %c1_i32 : i32
    %1 = arith.addi %0, %arg1 : i32
    %c0_i32 = arith.constant 0 : i32
    %c0_i32_0 = arith.constant 0 : i32
    %c0_i32_1 = arith.constant 0 : i32
    return %1, %c0_i32, %c0_i32_0 : i32, i32, i32
  }
  func.func @transform_2(%arg0: i32, %arg1: i32) -> (i32, i32, i32) {
    %c0_i32 = arith.constant 0 : i32
    %c0_i32_0 = arith.constant 0 : i32
    %c0_i32_1 = arith.constant 0 : i32
    return %arg0, %c0_i32, %c0_i32_0 : i32, i32, i32
  }
}

</mosaic_0001>

<bundles_post_ra>
// kernel: tpu_custom_call.1
= control target key start
LH: loop header
LB: loop body
LE: loop exit
PB: predicated region body
PF: predicated region fallthrough
CT: control target
= control target key end

     0   :  { %7 = vsyncpa [#allocation3], 0  ;;  %s20489_s0 = inlined_call_operand.vmem [shape: f32[128,3,128], index: 0, kind: input, shape index: {}]   ;;  %s20490_s1 = inlined_call_operand.vmem [shape: s32[128,1,128], index: 1, kind: input, shape index: {}]   ;;  %s20491_s2 = inlined_call_operand.hbm [shape: f32[2,1,128], index: 2, kind: output, shape index: {}]  }
   0x1   :  { %9 = vsyncpa [#allocation3 + $0x1], 0  ;;  %s16719_s9 = smov 0   ;;  %s16721_s10 = smov 0  }
   0x2   :  { %s16723_s11 = smov 0   ;;  %s16725_s12 = smov 0  }
   0x3   :  { %s16727_s13 = smov 0   ;;  %s16729_s14 = smov 0  }
   0x4 LB: > { %s9319_s15 = sadd.s32 4294967295, %s16697_s14   ;;  %s9320_s16 = sadd.s32 4294967294, %s16697_s14   ;;  %s16697_s14 = sphi %s16729_s14, %s15_s14   ;;  %s16693_s13 = sphi %s16727_s13, %s20498_s13   ;;  %s16689_s12 = sphi %s16725_s12, %s20497_s12   ;;  %s16685_s11 = sphi %s16723_s11, %s20496_s11   ;;  %s16681_s10 = sphi %s16721_s10, %s20495_s10   ;;  %s16677_s9 = sphi %s16719_s9, %s20494_s9  }
   0x5   : > { %s27_s17 = sadd.s32 1, %s16693_s13  ;;  %s90_s18 = sadd.s32 1, %s16685_s11 }
   0x6   : > { %p29_p0 = scmp.ge.s32.totalorder %s27_s17, 2  ;;  %p100_p1 = scmp.ne.s32.totalorder %s16685_s11, %s16681_s10 }
   0x7   : > { %p101_p2 = scmp.eq.s32.totalorder %s9319_s15, 1  ;;  %p106_p3 = scmp.ne.s32.totalorder %s16681_s10, %s16677_s9 }
   0x8   : > { %s20500_s17 = smov (%p29_p0, %s27_s17), 0  ;;  %p107_p5 = scmp.eq.s32.totalorder %s9320_s16, 1 }
   0x9   : > { %p16759_p4 = por %p101_p2, %p100_p1  ;;  %s87_s20 = ssub.s32 %s16693_s13, %s20500_s17 }
   0xa   : > { %p9323_p6 = scmp.ge.s32.totalorder %s16697_s14, 1  ;;  %p88_p7 = scmp.eq.s32.totalorder %s87_s20, 0 }
   0xb   : > { %p16766_p8 = por %p107_p5, %p106_p3  ;;  %p146_p9 = scmp.lt.s32.totalorder %s16697_s14, 3 }
   0xc   : > { %s16772_s22 = scalar_select %p88_p7, %s16685_s11, %s90_s18  }
   0xd   : > { %p147_p10 = pnand %p9323_p6, %p146_p9 }
   0xe   : > { %s9324_s23 = sshll.u32 (!%p147_p10), %s16689_s12, 6  ;;  %v193_v0 = vlaneseq (!%p147_p10)  ;;  %v16699_v1 = vmov (!%p147_p10), 0.0|0.0   ;;  %vm16700_vm0 = vmmov (!%p147_p10), 0   ;;  %v16701_v3 = vmov (!%p147_p10), 0.0   ;;  %s171_s3 = sand.u32 (!%p147_p10), 1, %s16681_s10  }
   0xf   : > { %150 = sbr.rel (%p147_p10) target bundleno = 2306 (0x902), region = 28  ;;  %14896 = vmatprep.subr.bf16.mxu0 (!%p147_p10), %v16699_v1  ;;  %p175_p11 = scmp.lt.s32.totalorder (!%p147_p10), %s9324_s23, 127  ;;  %14920 = vmatprep.subr.bf16.mxu1 (!%p147_p10), %v16699_v1  ;;  %v16702_v9 = vmov (!%p147_p10), 1.0|1.0   ;;  %vm213_vm12 = vcmask (!%p147_p10), 1042432  }
  0x10   : > { %v16777_v2 = vshrl.u32 (!%p147_p10), %v193_v0, 7  ;;  %12688 = vmatprep.mubr.msk.f32.mxu0 (!%p147_p10), %vm16700_vm0, %v16701_v3  ;;  %12723 = vmatprep.mubr.msk.f32.mxu1 (!%p147_p10), %vm16700_vm0, %v16701_v3  ;;  %s172_s4 = scalar_lea.vmem (!%p147_p10), [#allocation2], %s171_s3  ;;  %s11565_s5 = sshll.u32 (!%p147_p10), %s16689_s12, 4 }
  0x11   : > { %192 = vst [vmem:[%s172_s4] sm:$0x1] (!%p147_p10), %v16701_v3  ;;  %s9247_s6 = sshll.u32 (!%p147_p10), %s172_s4, 4  ;;  %s20442_s15 = scalar_lea.hbm (!%p147_p10), %s20491_s2, %s11565_s5  ;;  %s20444_s6 = int_to_ptr.vmem [resolvable:$true] %s9247_s6 }
  0x12   : > { %v16784_v4 = vadd.s32 (!%p147_p10), 8, %v16777_v2  ;;  %v16798_v7 = vadd.s32 (!%p147_p10), 16, %v16777_v2  ;;  %v16801_v8 = vadd.s32 (!%p147_p10), 24, %v16777_v2  ;;  %v16831_v14 = vadd.s32 (!%p147_p10), 32, %v16777_v2  ;;  %s9235_s16 = scalar_lea.sflag (!%p147_p10), [#allocation3], %s171_s3  ;;  %s16619_s18 = scalar_lea.vmem (!%p147_p10), %s20444_s6, 16 }
  0x13   : > { %v16834_v15 = vadd.s32 (!%p147_p10), 40, %v16777_v2  ;;  %v16851_v20 = vadd.s32 (!%p147_p10), 48, %v16777_v2  ;;  %v16854_v21 = vadd.s32 (!%p147_p10), 56, %v16777_v2  ;;  %v16869_v26 = vadd.s32 (!%p147_p10), 64, %v16777_v2  ;;  %p16620_p12 = scmp.ne.s32.totalorder (!%p147_p10), %s20444_s6, %s16619_s18  ;;  %s16703_s12 = smov (!%p147_p10), [#allocation2]  }
  0x14   : > { %v16872_v27 = vadd.s32 (!%p147_p10), 72, %v16777_v2  ;;  %v16887_v32 = vadd.s32 (!%p147_p10), 80, %v16777_v2  ;;  %v16890_v33 = vadd.s32 (!%p147_p10), 88, %v16777_v2  ;;  %v16905_v36 = vadd.s32 (!%p147_p10), 96, %v16777_v2  ;;  %s16623_s20 = sshll.u32 (!%p147_p10), %s16703_s12, 4  ;;  %s16624_s20 = int_to_ptr.vmem [resolvable:$false] %s16623_s20 }
  0x15   : > { %v16908_v37 = vadd.s32 (!%p147_p10), 104, %v16777_v2  ;;  %v16923_v40 = vadd.s32 (!%p147_p10), 112, %v16777_v2  ;;  %v16926_v41 = vadd.s32 (!%p147_p10), 120, %v16777_v2  ;;  %p16621_p13 = pnand (!%p147_p10), %p16620_p12, %p16759_p4  ;;  %p16626_p1 = scmp.lt.s32.totalorder (!%p147_p10), %s20444_s6, %s16624_s20 }
  0x16   : > { %s20502_s23 = smov (!%p175_p11, %s9324_s23), 127 }
  0x17   : > { %s16789_s26 = scalar_lea.vmem %s20490_s1, %s20502_s23  ;;  %s9325_s27 = sshll.u32 %s20502_s23, 2 }
  0x18   : > { %v16792_v5 = vld [vmem:[%s16789_s26 + $0x1] ss:$0 sm:$0xff]  ;;  %v16795_v6 = vld [vmem:[%s16789_s26] ss:$0 sm:$0xff]  ;;  %s16814_s30 = scalar_lea.vmem %s20489_s0, %s9325_s27  ;;  %v16941_v47 = vld [vmem:[%s16789_s26 + $0x2] ss:$0 sm:$0xff]  ;;  %p16622_p0 = pneg %p16621_p13 }
  0x19   : > { %vm301_vm1 = vcmp.eq.s32.totalorder %v16792_v5, %v16777_v2  ;;  %vm302_vm2 = vcmp.eq.s32.totalorder %v16792_v5, %v16784_v4  ;;  %vm231_vm3 = vcmp.eq.s32.totalorder %v16795_v6, %v16777_v2  ;;  %vm232_vm4 = vcmp.eq.s32.totalorder %v16795_v6, %v16784_v4  ;;  %v9344_v10 = vld [vmem:[%s16814_s30 + $0x4] sm:$0x7]  ;;  %v210_v11 = vld [vmem:[%s16814_s30] sm:$0x7]  ;;  %v16945_v49 = vld [vmem:[%s16789_s26 + $0x3] ss:$0 sm:$0xff] }
  0x1a   : > { %vm14897_vm5 = vmpackc.low %vm302_vm2, %vm301_vm1  ;;  %vm303_vm7 = vcmp.eq.s32.totalorder %v16792_v5, %v16798_v7  ;;  %vm304_vm8 = vcmp.eq.s32.totalorder %v16792_v5, %v16801_v8  ;;  %vm233_vm9 = vcmp.eq.s32.totalorder %v16795_v6, %v16798_v7  ;;  %vm234_vm10 = vcmp.eq.s32.totalorder %v16795_v6, %v16801_v8  ;;  %v9395_v52 = vld [vmem:[%s16814_s30 + $0x8] sm:$0x7]  ;;  %v9430_v53 = vld [vmem:[%s16814_s30 + $0xc] sm:$0x7]  ;;  %s16625_s23 = scalar_lea.vmem %s16624_s20, 32 }
  0x1b   : > { %14898 = vmatpush3.bf16.xpose.msk.msra.mxu0 %vm14897_vm5, %v16702_v9  ;;  %vm14921_vm6 = vmpackc.low %vm232_vm4, %vm231_vm3  ;;  %v283_v12 = vmul.f32 %v9344_v10, %v9344_v10  ;;  %v212_v13 = vmul.f32 %v210_v11, %v210_v11  ;;  %vm305_vm14 = vcmp.eq.s32.totalorder %v16792_v5, %v16831_v14  ;;  %vm306_vm15 = vcmp.eq.s32.totalorder %v16792_v5, %v16834_v15  ;;  %p16627_p2 = scmp.lt.s32.totalorder %s16625_s23, %s16619_s18 }
  0x1c   : > { %14922 = vmatpush3.bf16.xpose.msk.msra.mxu1 %vm14921_vm6, %v16702_v9  ;;  %14899 = vmatprep.subr.bf16.mxu0 %v16699_v1  ;;  %vm14900_vm11 = vmpackc.low %vm304_vm8, %vm303_vm7  ;;  %vm235_vm1 = vcmp.eq.s32.totalorder %v16795_v6, %v16831_v14  ;;  %vm236_vm2 = vcmp.eq.s32.totalorder %v16795_v6, %v16834_v15  ;;  %vm307_vm5 = vcmp.eq.s32.totalorder %v16792_v5, %v16851_v20 }
  0x1d   : > { %14923 = vmatprep.subr.bf16.mxu1 %v16699_v1  ;;  %vm14924_vm13 = vmpackc.low %vm234_vm10, %vm233_vm9  ;;  %v284_v16 = vsel %vm213_vm12, %v283_v12, 0.0  ;;  %v214_v17 = vsel %vm213_vm12, %v212_v13, 0.0  ;;  %vm308_vm6 = vcmp.eq.s32.totalorder %v16792_v5, %v16854_v21  ;;  %vm237_vm7 = vcmp.eq.s32.totalorder %v16795_v6, %v16851_v20  ;;  %p16628_p3 = por %p16627_p2, %p16626_p1 }
  0x1e   : > { %v285_v18 = vrot.slane %v284_v16, 4  ;;  %v215_v19 = vrot.slane %v214_v17, 4  ;;  %vm14903_vm3 = vmpackc.low %vm306_vm15, %vm305_vm14  ;;  %vm238_vm8 = vcmp.eq.s32.totalorder %v16795_v6, %v16854_v21  ;;  %vm239_vm14 = vcmp.eq.s32.totalorder %v16795_v6, %v16869_v26 }
  0x1f   : > { %vm14927_vm4 = vmpackc.low %vm236_vm2, %vm235_vm1  ;;  %vm240_vm15 = vcmp.eq.s32.totalorder %v16795_v6, %v16872_v27  ;;  %v493_v54 = vmul.f32 %v9395_v52, %v9395_v52  ;;  %v634_v55 = vmul.f32 %v9430_v53, %v9430_v53  ;;  %p16629_p5 = pnand %p16628_p3, %p16622_p0 }
  0x20   : > { %v286_v22 = vadd.f32 %v285_v18, %v284_v16  ;;  %v216_v23 = vadd.f32 %v215_v19, %v214_v17  ;;  %vm14906_vm9 = vmpackc.low %vm308_vm6, %vm307_vm5  ;;  %vm241_vm5 = vcmp.eq.s32.totalorder %v16795_v6, %v16887_v32  ;;  %vm242_vm6 = vcmp.eq.s32.totalorder %v16795_v6, %v16890_v33 }
  0x21   : > { %vm14930_vm10 = vmpackc.low %vm238_vm8, %vm237_vm7  ;;  %v494_v56 = vsel %vm213_vm12, %v493_v54, 0.0  ;;  %v635_v57 = vsel %vm213_vm12, %v634_v55, 0.0 }
  0x22   : > { %v287_v24 = vrot.slane %v286_v22, 2  ;;  %v217_v25 = vrot.slane %v216_v23, 2  ;;  %vm14933_vm2 = vmpackc.low %vm240_vm15, %vm239_vm14  ;;  %v495_v58 = vrot.slane %v494_v56, 4  ;;  %v636_v59 = vrot.slane %v635_v57, 4 }
  0x23   : > { %14901 = vmatpush3.bf16.xpose.msk.msra.mxu0 %vm14900_vm11, %v16702_v9  ;;  %vm309_vm11 = vcmp.eq.s32.totalorder %v16792_v5, %v16869_v26  ;;  %vm14936_vm8 = vmpackc.low %vm242_vm6, %vm241_vm5 }
  0x24   : > { %14925 = vmatpush3.bf16.xpose.msk.msra.mxu1 %vm14924_vm13, %v16702_v9  ;;  %14902 = vmatprep.subr.bf16.mxu0 %v16699_v1  ;;  %v288_v28 = vadd.f32 %v287_v24, %v286_v22  ;;  %v218_v29 = vadd.f32 %v217_v25, %v216_v23  ;;  %vm310_vm13 = vcmp.eq.s32.totalorder %v16792_v5, %v16872_v27  ;;  %v17051_v24 = vld [vmem:[%s16789_s26 + $0x4] ss:$0 sm:$0xff] }
  0x25   : > { %14926 = vmatprep.subr.bf16.mxu1 %v16699_v1  ;;  %vm14909_vm1 = vmpackc.low %vm310_vm13, %vm309_vm11  ;;  %vm243_vm11 = vcmp.eq.s32.totalorder %v16795_v6, %v16905_v36  ;;  %vm244_vm13 = vcmp.eq.s32.totalorder %v16795_v6, %v16908_v37  ;;  %v496_v60 = vadd.f32 %v495_v58, %v494_v56  ;;  %v637_v61 = vadd.f32 %v636_v59, %v635_v57 }
  0x26   : > { %v289_v30 = vrot.slane %v288_v28, 1  ;;  %v219_v31 = vrot.slane %v218_v29, 1  ;;  %vm14939_vm15 = vmpackc.low %vm244_vm13, %vm243_vm11 }
  0x27   : > { %v497_v62 = vrot.slane %v496_v60, 2  ;;  %v638_v63 = vrot.slane %v637_v61, 2 }
  0x28   : > { %v290_v34 = vadd.f32 %v289_v30, %v288_v28  ;;  %v220_v35 = vadd.f32 %v219_v31, %v218_v29  ;;  %v17055_v28 = vld [vmem:[%s16789_s26 + $0x5] ss:$0 sm:$0xff]  ;;  %v9465_v31 = vld [vmem:[%s16814_s30 + $0x10] sm:$0x7] }
  0x29   : > { %v498_v0 = vadd.f32 %v497_v62, %v496_v60  ;;  %v17161_v62 = vld [vmem:[%s16789_s26 + $0x6] ss:$0 sm:$0xff] }
  0x2a   : > { %16491 = vrcp.f32 %v290_v34  ;;  %v9500_v34 = vld [vmem:[%s16814_s30 + $0x14] sm:$0x7] }
  0x2b   : > { %14904 = vmatpush3.bf16.xpose.msk.msra.mxu0 %vm14903_vm3, %v16702_v9  ;;  %vm311_vm3 = vcmp.eq.s32.totalorder %v16792_v5, %v16887_v32  ;;  %16493 = vrcp.f32 %v220_v35  ;;  %v775_v35 = vmul.f32 %v9465_v31, %v9465_v31 }
  0x2c   : > { %14928 = vmatpush3.bf16.xpose.msk.msra.mxu1 %vm14927_vm4, %v16702_v9  ;;  %14905 = vmatprep.subr.bf16.mxu0 %v16699_v1  ;;  %vm312_vm4 = vcmp.eq.s32.totalorder %v16792_v5, %v16890_v33 }
  0x2d   : > { %14929 = vmatprep.subr.bf16.mxu1 %v16699_v1  ;;  %vm14912_vm7 = vmpackc.low %vm312_vm4, %vm311_vm3  ;;  %vm245_vm3 = vcmp.eq.s32.totalorder %v16795_v6, %v16923_v40  ;;  %vm246_vm4 = vcmp.eq.s32.totalorder %v16795_v6, %v16926_v41  ;;  %v499_v6 = vrot.slane %v498_v0, 1 }
  0x2e   : > { %vm14942_vm6 = vmpackc.low %vm246_vm4, %vm245_vm3 }
  0x2f   : > { %v500_v11 = vadd.f32 %v499_v6, %v498_v0  ;;  %v17165_v0 = vld [vmem:[%s16789_s26 + $0x7] ss:$0 sm:$0xff] }
  0x31   : > { %16495 = vrcp.f32 %v500_v11  ;;  %v9570_v11 = vld [vmem:[%s16814_s30 + $0x1c] sm:$0x7] }
  0x33   : > { %14907 = vmatpush3.bf16.xpose.msk.msra.mxu0 %vm14906_vm9, %v16702_v9  ;;  %vm313_vm9 = vcmp.eq.s32.totalorder %v16792_v5, %v16905_v36 }
  0x34   : > { %14931 = vmatpush3.bf16.xpose.msk.msra.mxu1 %vm14930_vm10, %v16702_v9  ;;  %14908 = vmatprep.subr.bf16.mxu0 %v16699_v1  ;;  %vm314_vm10 = vcmp.eq.s32.totalorder %v16792_v5, %v16908_v37  ;;  %v16492_v38 = vpop.eup %16491 }
  0x35   : > { %14932 = vmatprep.subr.bf16.mxu1 %v16699_v1  ;;  %v16494_v39 = vpop.eup %16493  ;;  %vm14915_vm14 = vmpackc.low %vm314_vm10, %vm313_vm9  ;;  %v293_v42 = vmul.f32 %v16492_v38, %v16492_v38  ;;  %vm652_vm9 = vcmp.eq.s32.totalorder %v16945_v49, %v16777_v2  ;;  %vm653_vm10 = vcmp.eq.s32.totalorder %v16945_v49, %v16784_v4  ;;  %v916_v38 = vmul.f32 %v9500_v34, %v9500_v34 }
  0x36   : > { %v223_v43 = vmul.f32 %v16494_v39, %v16494_v39  ;;  %vm14969_vm13 = vmpackc.low %vm653_vm10, %vm652_vm9  ;;  %v776_v39 = vsel %vm213_vm12, %v775_v35, 0.0 }
  0x37   : > { %v294_v44 = vmul.f32 %v293_v42, %v293_v42 }
  0x38   : > { %v224_v45 = vmul.f32 %v223_v43, %v223_v43 }
  0x39   : > { %v295_v46 = vmul.f32 %v294_v44, %v293_v42  ;;  %v917_v42 = vsel %vm213_vm12, %v916_v38, 0.0 }
  0x3a   : > { %v225_v48 = vmul.f32 %v224_v45, %v223_v43  ;;  %v777_v43 = vrot.slane %v776_v39, 4  ;;  %v918_v44 = vrot.slane %v917_v42, 4 }
  0x3b   : > { %14910 = vmatpush3.bf16.xpose.msk.msra.mxu0 %vm14909_vm1, %v16702_v9  ;;  %vm315_vm1 = vcmp.eq.s32.totalorder %v16792_v5, %v16923_v40  ;;  %v296_v50 = vmul.f32 0.5, %v295_v46  ;;  %v16496_v13 = vpop.eup %16495 }
  0x3c   : > { %14934 = vmatpush3.bf16.xpose.msk.msra.mxu1 %vm14933_vm2, %v16702_v9  ;;  %14911 = vmatprep.subr.bf16.mxu0 %v16699_v1  ;;  %vm316_vm2 = vcmp.eq.s32.totalorder %v16792_v5, %v16926_v41  ;;  %v226_v51 = vmul.f32 0.5, %v225_v48  ;;  %v639_v5 = vadd.f32 %v638_v63, %v637_v61  ;;  %v503_v17 = vmul.f32 %v16496_v13, %v16496_v13 }
  0x3d   : > { %14935 = vmatprep.subr.bf16.mxu1 %v16699_v1  ;;  %vm14918_vm5 = vmpackc.low %vm316_vm2, %vm315_vm1  ;;  %vm654_vm1 = vcmp.eq.s32.totalorder %v16945_v49, %v16798_v7  ;;  %vm655_vm2 = vcmp.eq.s32.totalorder %v16945_v49, %v16801_v8  ;;  %v778_v45 = vadd.f32 %v777_v43, %v776_v39  ;;  %v919_v46 = vadd.f32 %v918_v44, %v917_v42 }
  0x3e   : > { %vm14972_vm4 = vmpackc.low %vm655_vm2, %vm654_vm1  ;;  %v640_v10 = vrot.slane %v639_v5, 1  ;;  %v504_v19 = vmul.f32 %v503_v17, %v503_v17  ;;  %v1198_v13 = vmul.f32 %v9570_v11, %v9570_v11 }
  0x3f   : > { %v920_v48 = vrot.slane %v919_v46, 2 }
  0x40   : > { %v641_v12 = vadd.f32 %v640_v10, %v639_v5  ;;  %v505_v23 = vmul.f32 %v504_v19, %v503_v17  ;;  %v9535_v10 = vld [vmem:[%s16814_s30 + $0x18] sm:$0x7]  ;;  %v1199_v17 = vsel %vm213_vm12, %v1198_v13, 0.0 }
  0x41   : > { %v1200_v19 = vrot.slane %v1199_v17, 4 }
  0x42   : > { %16497 = vrcp.f32 %v641_v12  ;;  %v506_v29 = vmul.f32 0.5, %v505_v23  ;;  %v1057_v12 = vmul.f32 %v9535_v10, %v9535_v10 }
  0x43   : > { %14913 = vmatpush3.bf16.xpose.msk.msra.mxu0 %vm14912_vm7, %v16702_v9  ;;  %vm511_vm7 = vcmp.eq.s32.totalorder %v16941_v47, %v16777_v2  ;;  %v1201_v23 = vadd.f32 %v1200_v19, %v1199_v17 }
  0x44   : > { %14937 = vmatpush3.bf16.xpose.msk.msra.mxu1 %vm14936_vm8, %v16702_v9  ;;  %14914 = vmatprep.subr.bf16.mxu0 %v16699_v1  ;;  %vm512_vm8 = vcmp.eq.s32.totalorder %v16941_v47, %v16784_v4 }
  0x45   : > { %14938 = vmatprep.subr.bf16.mxu1 %v16699_v1  ;;  %vm14945_vm11 = vmpackc.low %vm512_vm8, %vm511_vm7  ;;  %vm656_vm7 = vcmp.eq.s32.totalorder %v16945_v49, %v16831_v14  ;;  %vm657_vm8 = vcmp.eq.s32.totalorder %v16945_v49, %v16834_v15 }
  0x46   : > { %vm14975_vm10 = vmpackc.low %vm657_vm8, %vm656_vm7 }
  0x4b   : > { %14916 = vmatpush3.bf16.xpose.msk.msra.mxu0 %vm14915_vm14, %v16702_v9  ;;  %vm513_vm14 = vcmp.eq.s32.totalorder %v16941_v47, %v16798_v7 }
  0x4c   : > { %14940 = vmatpush3.bf16.xpose.msk.msra.mxu1 %vm14939_vm15, %v16702_v9  ;;  %14917 = vmatprep.subr.bf16.mxu0 %v16699_v1  ;;  %vm514_vm15 = vcmp.eq.s32.totalorder %v16941_v47, %v16801_v8  ;;  %v16498_v16 = vpop.eup %16497 }
  0x4d   : > { %14941 = vmatprep.subr.bf16.mxu1 %v16699_v1  ;;  %vm14948_vm3 = vmpackc.low %vm514_vm15, %vm513_vm14  ;;  %vm658_vm14 = vcmp.eq.s32.totalorder %v16945_v49, %v16851_v20  ;;  %vm659_vm15 = vcmp.eq.s32.totalorder %v16945_v49, %v16854_v21  ;;  %v644_v18 = vmul.f32 %v16498_v16, %v16498_v16  ;;  %v1058_v16 = vsel %vm213_vm12, %v1057_v12, 0.0 }
  0x4e   : > { %vm14978_vm2 = vmpackc.low %vm659_vm15, %vm658_vm14 }
  0x4f   : > { %v645_v22 = vmul.f32 %v644_v18, %v644_v18 }
  0x51   : > { %v646_v25 = vmul.f32 %v645_v22, %v644_v18  ;;  %v1059_v18 = vrot.slane %v1058_v16, 4 }
  0x53   : > { %14919 = vmatpush3.bf16.xpose.msk.msra.mxu0 %vm14918_vm5, %v16702_v9  ;;  %vm515_vm5 = vcmp.eq.s32.totalorder %v16941_v47, %v16831_v14  ;;  %v647_v30 = vmul.f32 0.5, %v646_v25  ;;  %v1060_v22 = vadd.f32 %v1059_v18, %v1058_v16  ;;  %v1202_v25 = vrot.slane %v1201_v23, 2 }
  0x54   : > { %14943 = vmatpush3.bf16.xpose.msk.msra.mxu1 %vm14942_vm6, %v16702_v9  ;;  %14944 = vmatprep.subr.bf16.mxu0 %v16699_v1  ;;  %vm516_vm6 = vcmp.eq.s32.totalorder %v16941_v47, %v16834_v15 }
  0x55   : > { %14968 = vmatprep.subr.bf16.mxu1 %v16699_v1  ;;  %vm14951_vm9 = vmpackc.low %vm516_vm6, %vm515_vm5  ;;  %vm660_vm5 = vcmp.eq.s32.totalorder %v16945_v49, %v16869_v26  ;;  %vm661_vm6 = vcmp.eq.s32.totalorder %v16945_v49, %v16872_v27 }
  0x56   : > { %vm14981_vm8 = vmpackc.low %vm661_vm6, %vm660_vm5 }
  0x5a   : > { %12689 = vmatmul.mubr.f32.vlgmr.msra.gmra.mrb[0].mxu0 %v296_v50  ;;  %v921_v50 = vadd.f32 %v920_v48, %v919_v46 }
  0x5b   : > { %12724 = vmatmul.mubr.f32.vlgmr.msra.gmra.mrb[0].mxu1 %v226_v51  ;;  %14946 = vmatpush3.bf16.xpose.msk.msra.mxu0 %vm14945_vm11, %v16702_v9  ;;  %vm517_vm11 = vcmp.eq.s32.totalorder %v16941_v47, %v16851_v20 }
  0x5c   : > { %14970 = vmatpush3.bf16.xpose.msk.msra.mxu1 %vm14969_vm13, %v16702_v9  ;;  %14947 = vmatprep.subr.bf16.mxu0 %v16699_v1  ;;  %vm518_vm13 = vcmp.eq.s32.totalorder %v16941_v47, %v16854_v21  ;;  %v922_v52 = vrot.slane %v921_v50, 1 }
  0x5d   : > { %14971 = vmatprep.subr.bf16.mxu1 %v16699_v1  ;;  %12758 = vmatprep.mubr.msk.f32.mxu0 %vm16700_vm0, %v16701_v3  ;;  %vm14954_vm1 = vmpackc.low %vm518_vm13, %vm517_vm11  ;;  %vm662_vm11 = vcmp.eq.s32.totalorder %v16945_v49, %v16887_v32  ;;  %vm663_vm13 = vcmp.eq.s32.totalorder %v16945_v49, %v16890_v33 }
  0x5e   : > { %12793 = vmatprep.mubr.msk.f32.mxu1 %vm16700_vm0, %v16701_v3  ;;  %vm14984_vm15 = vmpackc.low %vm663_vm13, %vm662_vm11  ;;  %v923_v54 = vadd.f32 %v922_v52, %v921_v50  ;;  %v9605_v52 = vld [vmem:[%s16814_s30 + $0x20] sm:$0x7] }
  0x63   : > { %14949 = vmatpush3.bf16.xpose.msk.msra.mxu0 %vm14948_vm3, %v16702_v9  ;;  %vm519_vm3 = vcmp.eq.s32.totalorder %v16941_v47, %v16869_v26 }
  0x64   : > { %14973 = vmatpush3.bf16.xpose.msk.msra.mxu1 %vm14972_vm4, %v16702_v9  ;;  %14950 = vmatprep.subr.bf16.mxu0 %v16699_v1  ;;  %vm520_vm4 = vcmp.eq.s32.totalorder %v16941_v47, %v16872_v27 }
  0x65   : > { %14974 = vmatprep.subr.bf16.mxu1 %v16699_v1  ;;  %vm14957_vm7 = vmpackc.low %vm520_vm4, %vm519_vm3  ;;  %vm664_vm3 = vcmp.eq.s32.totalorder %v16945_v49, %v16905_v36  ;;  %vm665_vm4 = vcmp.eq.s32.totalorder %v16945_v49, %v16908_v37 }
  0x66   : > { %vm14987_vm6 = vmpackc.low %vm665_vm4, %vm664_vm3 }
  0x6b   : > { %14952 = vmatpush3.bf16.xpose.msk.msra.mxu0 %vm14951_vm9, %v16702_v9  ;;  %vm521_vm9 = vcmp.eq.s32.totalorder %v16941_v47, %v16887_v32 }
  0x6c   : > { %14976 = vmatpush3.bf16.xpose.msk.msra.mxu1 %vm14975_vm10, %v16702_v9  ;;  %14953 = vmatprep.subr.bf16.mxu0 %v16699_v1  ;;  %vm522_vm10 = vcmp.eq.s32.totalorder %v16941_v47, %v16890_v33 }
  0x6d   : > { %14977 = vmatprep.subr.bf16.mxu1 %v16699_v1  ;;  %vm14960_vm14 = vmpackc.low %vm522_vm10, %vm521_vm9  ;;  %vm666_vm9 = vcmp.eq.s32.totalorder %v16945_v49, %v16923_v40  ;;  %vm667_vm10 = vcmp.eq.s32.totalorder %v16945_v49, %v16926_v41 }
  0x6e   : > { %vm14990_vm13 = vmpackc.low %vm667_vm10, %vm666_vm9 }
  0x73   : > { %14955 = vmatpush3.bf16.xpose.msk.msra.mxu0 %vm14954_vm1, %v16702_v9  ;;  %vm523_vm1 = vcmp.eq.s32.totalorder %v16941_v47, %v16905_v36 }
  0x74   : > { %14979 = vmatpush3.bf16.xpose.msk.msra.mxu1 %vm14978_vm2, %v16702_v9  ;;  %14956 = vmatprep.subr.bf16.mxu0 %v16699_v1  ;;  %vm524_vm2 = vcmp.eq.s32.totalorder %v16941_v47, %v16908_v37 }
  0x75   : > { %14980 = vmatprep.subr.bf16.mxu1 %v16699_v1  ;;  %vm14963_vm5 = vmpackc.low %vm524_vm2, %vm523_vm1  ;;  %vm934_vm1 = vcmp.eq.s32.totalorder %v17055_v28, %v16777_v2  ;;  %vm935_vm2 = vcmp.eq.s32.totalorder %v17055_v28, %v16784_v4 }
  0x76   : > { %vm15017_vm4 = vmpackc.low %vm935_vm2, %vm934_vm1 }
  0x7b   : > { %14958 = vmatpush3.bf16.xpose.msk.msra.mxu0 %vm14957_vm7, %v16702_v9  ;;  %vm525_vm7 = vcmp.eq.s32.totalorder %v16941_v47, %v16923_v40 }
  0x7c   : > { %14982 = vmatpush3.bf16.xpose.msk.msra.mxu1 %vm14981_vm8, %v16702_v9  ;;  %14959 = vmatprep.subr.bf16.mxu0 %v16699_v1  ;;  %vm526_vm8 = vcmp.eq.s32.totalorder %v16941_v47, %v16926_v41  ;;  %v779_v47 = vrot.slane %v778_v45, 2 }
  0x7d   : > { %14983 = vmatprep.subr.bf16.mxu1 %v16699_v1  ;;  %vm14966_vm11 = vmpackc.low %vm526_vm8, %vm525_vm7  ;;  %vm936_vm7 = vcmp.eq.s32.totalorder %v17055_v28, %v16798_v7  ;;  %vm937_vm8 = vcmp.eq.s32.totalorder %v17055_v28, %v16801_v8 }
  0x7e   : > { %vm15020_vm10 = vmpackc.low %vm937_vm8, %vm936_vm7  ;;  %v780_v49 = vadd.f32 %v779_v47, %v778_v45  ;;  %v17271_v47 = vld [vmem:[%s16789_s26 + $0x8] ss:$0 sm:$0xff] }
  0x80   : > { %v781_v51 = vrot.slane %v780_v49, 1 }
  0x82   : > { %v782_v53 = vadd.f32 %v781_v51, %v780_v49  ;;  %v17275_v49 = vld [vmem:[%s16789_s26 + $0x9] ss:$0 sm:$0xff] }
  0x83   : > { %14961 = vmatpush3.bf16.xpose.msk.msra.mxu0 %vm14960_vm14, %v16702_v9  ;;  %vm793_vm14 = vcmp.eq.s32.totalorder %v17051_v24, %v16777_v2 }
  0x84   : > { %14985 = vmatpush3.bf16.xpose.msk.msra.mxu1 %vm14984_vm15, %v16702_v9  ;;  %14962 = vmatprep.subr.bf16.mxu0 %v16699_v1  ;;  %vm794_vm15 = vcmp.eq.s32.totalorder %v17051_v24, %v16784_v4  ;;  %16499 = vrcp.f32 %v782_v53  ;;  %v9640_v53 = vld [vmem:[%s16814_s30 + $0x24] sm:$0x7] }
  0x85   : > { %14986 = vmatprep.subr.bf16.mxu1 %v16699_v1  ;;  %vm14993_vm3 = vmpackc.low %vm794_vm15, %vm793_vm14  ;;  %vm938_vm14 = vcmp.eq.s32.totalorder %v17055_v28, %v16831_v14  ;;  %vm939_vm15 = vcmp.eq.s32.totalorder %v17055_v28, %v16834_v15  ;;  %16501 = vrcp.f32 %v923_v54  ;;  %v1339_v54 = vmul.f32 %v9605_v52, %v9605_v52 }
  0x86   : > { %vm15023_vm2 = vmpackc.low %vm939_vm15, %vm938_vm14 }
  0x8b   : > { %14964 = vmatpush3.bf16.xpose.msk.msra.mxu0 %vm14963_vm5, %v16702_v9  ;;  %vm795_vm5 = vcmp.eq.s32.totalorder %v17051_v24, %v16798_v7 }
  0x8c   : > { %14988 = vmatpush3.bf16.xpose.msk.msra.mxu1 %vm14987_vm6, %v16702_v9  ;;  %14965 = vmatprep.subr.bf16.mxu0 %v16699_v1  ;;  %vm796_vm6 = vcmp.eq.s32.totalorder %v17051_v24, %v16801_v8 }
  0x8d   : > { %14989 = vmatprep.subr.bf16.mxu1 %v16699_v1  ;;  %vm14996_vm9 = vmpackc.low %vm796_vm6, %vm795_vm5  ;;  %vm940_vm5 = vcmp.eq.s32.totalorder %v17055_v28, %v16851_v20  ;;  %vm941_vm6 = vcmp.eq.s32.totalorder %v17055_v28, %v16854_v21 }
  0x8e   : > { %vm15026_vm8 = vmpackc.low %vm941_vm6, %vm940_vm5  ;;  %v16500_v55 = vpop.eup %16499 }
  0x8f   : > { %v16502_v56 = vpop.eup %16501  ;;  %v785_v57 = vmul.f32 %v16500_v55, %v16500_v55  ;;  %v1480_v55 = vmul.f32 %v9640_v53, %v9640_v53 }
  0x90   : > { %v926_v58 = vmul.f32 %v16502_v56, %v16502_v56  ;;  %v1340_v56 = vsel %vm213_vm12, %v1339_v54, 0.0 }
  0x91   : > { %v786_v59 = vmul.f32 %v785_v57, %v785_v57 }
  0x92   : > { %v927_v60 = vmul.f32 %v926_v58, %v926_v58 }
  0x93   : > { %14967 = vmatpush3.bf16.xpose.msk.msra.mxu0 %vm14966_vm11, %v16702_v9  ;;  %vm797_vm11 = vcmp.eq.s32.totalorder %v17051_v24, %v16831_v14  ;;  %v787_v61 = vmul.f32 %v786_v59, %v785_v57  ;;  %v1481_v57 = vsel %vm213_vm12, %v1480_v55, 0.0 }
  0x94   : > { %14991 = vmatpush3.bf16.xpose.msk.msra.mxu1 %vm14990_vm13, %v16702_v9  ;;  %14992 = vmatprep.subr.bf16.mxu0 %v16699_v1  ;;  %vm798_vm13 = vcmp.eq.s32.totalorder %v17051_v24, %v16834_v15  ;;  %v928_v63 = vmul.f32 %v927_v60, %v926_v58  ;;  %v1341_v58 = vrot.slane %v1340_v56, 4  ;;  %v1482_v59 = vrot.slane %v1481_v57, 4 }
  0x95   : > { %15016 = vmatprep.subr.bf16.mxu1 %v16699_v1  ;;  %vm14999_vm1 = vmpackc.low %vm798_vm13, %vm797_vm11  ;;  %vm942_vm11 = vcmp.eq.s32.totalorder %v17055_v28, %v16869_v26  ;;  %vm943_vm13 = vcmp.eq.s32.totalorder %v17055_v28, %v16872_v27  ;;  %v788_v5 = vmul.f32 0.5, %v787_v61 }
  0x96   : > { %vm15029_vm15 = vmpackc.low %vm943_vm13, %vm942_vm11  ;;  %v929_v6 = vmul.f32 0.5, %v928_v63  ;;  %v1342_v60 = vadd.f32 %v1341_v58, %v1340_v56  ;;  %v1483_v61 = vadd.f32 %v1482_v59, %v1481_v57 }
  0x98   : > { %v1343_v63 = vrot.slane %v1342_v60, 2 }
  0x9a   : > { %12759 = vmatmul.mubr.f32.vlgmr.msra.gmra.mrb[2].mxu0 %v506_v29  ;;  %v1203_v29 = vadd.f32 %v1202_v25, %v1201_v23  ;;  %v1344_v12 = vadd.f32 %v1343_v63, %v1342_v60 }
  0x9b   : > { %14994 = vmatpush3.bf16.xpose.msk.msra.mxu0 %vm14993_vm3, %v16702_v9  ;;  %12794 = vmatmul.mubr.f32.vlgmr.msra.gmra.mrb[2].mxu1 %v647_v30  ;;  %vm799_vm3 = vcmp.eq.s32.totalorder %v17051_v24, %v16851_v20 }
  0x9c   : > { %15018 = vmatpush3.bf16.xpose.msk.msra.mxu1 %vm15017_vm4, %v16702_v9  ;;  %14995 = vmatprep.subr.bf16.mxu0 %v16699_v1  ;;  %vm800_vm4 = vcmp.eq.s32.totalorder %v17051_v24, %v16854_v21  ;;  %v1204_v31 = vrot.slane %v1203_v29, 1  ;;  %v1345_v16 = vrot.slane %v1344_v12, 1 }
  0x9d   : > { %15019 = vmatprep.subr.bf16.mxu1 %v16699_v1  ;;  %12828 = vmatprep.mubr.msk.f32.mxu0 %vm16700_vm0, %v16701_v3  ;;  %vm15002_vm7 = vmpackc.low %vm800_vm4, %vm799_vm3  ;;  %vm944_vm3 = vcmp.eq.s32.totalorder %v17055_v28, %v16887_v32  ;;  %vm945_vm4 = vcmp.eq.s32.totalorder %v17055_v28, %v16890_v33 }
  0x9e   : > { %12863 = vmatprep.mubr.msk.f32.mxu1 %vm16700_vm0, %v16701_v3  ;;  %vm15032_vm6 = vmpackc.low %vm945_vm4, %vm944_vm3  ;;  %v1205_v35 = vadd.f32 %v1204_v31, %v1203_v29  ;;  %v1346_v18 = vadd.f32 %v1345_v16, %v1344_v12  ;;  %v17383_v31 = vld [vmem:[%s16789_s26 + $0xa] ss:$0 sm:$0xff] }
  0xa3   : > { %14997 = vmatpush3.bf16.xpose.msk.msra.mxu0 %vm14996_vm9, %v16702_v9  ;;  %vm801_vm9 = vcmp.eq.s32.totalorder %v17051_v24, %v16869_v26 }
  0xa4   : > { %15021 = vmatpush3.bf16.xpose.msk.msra.mxu1 %vm15020_vm10, %v16702_v9  ;;  %14998 = vmatprep.subr.bf16.mxu0 %v16699_v1  ;;  %vm802_vm10 = vcmp.eq.s32.totalorder %v17051_v24, %v16872_v27 }
  0xa5   : > { %15022 = vmatprep.subr.bf16.mxu1 %v16699_v1  ;;  %vm15005_vm14 = vmpackc.low %vm802_vm10, %vm801_vm9  ;;  %vm946_vm9 = vcmp.eq.s32.totalorder %v17055_v28, %v16905_v36  ;;  %vm947_vm10 = vcmp.eq.s32.totalorder %v17055_v28, %v16908_v37 }
  0xa6   : > { %vm15035_vm13 = vmpackc.low %vm947_vm10, %vm946_vm9 }
  0xab   : > { %15000 = vmatpush3.bf16.xpose.msk.msra.mxu0 %vm14999_vm1, %v16702_v9  ;;  %vm803_vm1 = vcmp.eq.s32.totalorder %v17051_v24, %v16887_v32 }
  0xac   : > { %15024 = vmatpush3.bf16.xpose.msk.msra.mxu1 %vm15023_vm2, %v16702_v9  ;;  %15001 = vmatprep.subr.bf16.mxu0 %v16699_v1  ;;  %vm804_vm2 = vcmp.eq.s32.totalorder %v17051_v24, %v16890_v33 }
  0xad   : > { %15025 = vmatprep.subr.bf16.mxu1 %v16699_v1  ;;  %vm15008_vm5 = vmpackc.low %vm804_vm2, %vm803_vm1  ;;  %vm948_vm1 = vcmp.eq.s32.totalorder %v17055_v28, %v16923_v40  ;;  %vm949_vm2 = vcmp.eq.s32.totalorder %v17055_v28, %v16926_v41 }
  0xae   : > { %vm15038_vm4 = vmpackc.low %vm949_vm2, %vm948_vm1 }
  0xb3   : > { %15003 = vmatpush3.bf16.xpose.msk.msra.mxu0 %vm15002_vm7, %v16702_v9  ;;  %vm805_vm7 = vcmp.eq.s32.totalorder %v17051_v24, %v16905_v36 }
  0xb4   : > { %15027 = vmatpush3.bf16.xpose.msk.msra.mxu1 %vm15026_vm8, %v16702_v9  ;;  %15004 = vmatprep.subr.bf16.mxu0 %v16699_v1  ;;  %vm806_vm8 = vcmp.eq.s32.totalorder %v17051_v24, %v16908_v37 }
  0xb5   : > { %15028 = vmatprep.subr.bf16.mxu1 %v16699_v1  ;;  %vm15011_vm11 = vmpackc.low %vm806_vm8, %vm805_vm7  ;;  %vm1216_vm7 = vcmp.eq.s32.totalorder %v17165_v0, %v16777_v2  ;;  %vm1217_vm8 = vcmp.eq.s32.totalorder %v17165_v0, %v16784_v4 }
  0xb6   : > { %vm15065_vm10 = vmpackc.low %vm1217_vm8, %vm1216_vm7 }
  0xbb   : > { %15006 = vmatpush3.bf16.xpose.msk.msra.mxu0 %vm15005_vm14, %v16702_v9  ;;  %vm807_vm14 = vcmp.eq.s32.totalorder %v17051_v24, %v16923_v40 }
  0xbc   : > { %15030 = vmatpush3.bf16.xpose.msk.msra.mxu1 %vm15029_vm15, %v16702_v9  ;;  %15007 = vmatprep.subr.bf16.mxu0 %v16699_v1  ;;  %vm808_vm15 = vcmp.eq.s32.totalorder %v17051_v24, %v16926_v41  ;;  %v1061_v24 = vrot.slane %v1060_v22, 2 }
  0xbd   : > { %15031 = vmatprep.subr.bf16.mxu1 %v16699_v1  ;;  %vm15014_vm3 = vmpackc.low %vm808_vm15, %vm807_vm14  ;;  %vm1218_vm14 = vcmp.eq.s32.totalorder %v17165_v0, %v16798_v7  ;;  %vm1219_vm15 = vcmp.eq.s32.totalorder %v17165_v0, %v16801_v8 }
  0xbe   : > { %vm15068_vm2 = vmpackc.low %vm1219_vm15, %vm1218_vm14  ;;  %v1062_v28 = vadd.f32 %v1061_v24, %v1060_v22 }
  0xc0   : > { %v1063_v30 = vrot.slane %v1062_v28, 1 }
  0xc2   : > { %v1064_v34 = vadd.f32 %v1063_v30, %v1062_v28 }
  0xc3   : > { %15009 = vmatpush3.bf16.xpose.msk.msra.mxu0 %vm15008_vm5, %v16702_v9  ;;  %vm1075_vm5 = vcmp.eq.s32.totalorder %v17161_v62, %v16777_v2 }
  0xc4   : > { %15033 = vmatpush3.bf16.xpose.msk.msra.mxu1 %vm15032_vm6, %v16702_v9  ;;  %15010 = vmatprep.subr.bf16.mxu0 %v16699_v1  ;;  %vm1076_vm6 = vcmp.eq.s32.totalorder %v17161_v62, %v16784_v4  ;;  %16503 = vrcp.f32 %v1064_v34 }
  0xc5   : > { %15034 = vmatprep.subr.bf16.mxu1 %v16699_v1  ;;  %vm15041_vm9 = vmpackc.low %vm1076_vm6, %vm1075_vm5  ;;  %vm1220_vm5 = vcmp.eq.s32.totalorder %v17165_v0, %v16831_v14  ;;  %vm1221_vm6 = vcmp.eq.s32.totalorder %v17165_v0, %v16834_v15  ;;  %16505 = vrcp.f32 %v1205_v35  ;;  %v17387_v35 = vld [vmem:[%s16789_s26 + $0xb] ss:$0 sm:$0xff] }
  0xc6   : > { %vm15071_vm8 = vmpackc.low %vm1221_vm6, %vm1220_vm5  ;;  %16507 = vrcp.f32 %v1346_v18  ;;  %v17496_v18 = vld [vmem:[%s16789_s26 + $0xc] ss:$0 sm:$0xff] }
  0xcb   : > { %15012 = vmatpush3.bf16.xpose.msk.msra.mxu0 %vm15011_vm11, %v16702_v9  ;;  %vm1077_vm11 = vcmp.eq.s32.totalorder %v17161_v62, %v16798_v7 }
  0xcc   : > { %15036 = vmatpush3.bf16.xpose.msk.msra.mxu1 %vm15035_vm13, %v16702_v9  ;;  %15013 = vmatprep.subr.bf16.mxu0 %v16699_v1  ;;  %vm1078_vm13 = vcmp.eq.s32.totalorder %v17161_v62, %v16801_v8 }
  0xcd   : > { %15037 = vmatprep.subr.bf16.mxu1 %v16699_v1  ;;  %vm15044_vm1 = vmpackc.low %vm1078_vm13, %vm1077_vm11  ;;  %vm1222_vm11 = vcmp.eq.s32.totalorder %v17165_v0, %v16851_v20  ;;  %vm1223_vm13 = vcmp.eq.s32.totalorder %v17165_v0, %v16854_v21 }
  0xce   : > { %vm15074_vm15 = vmpackc.low %vm1223_vm13, %vm1222_vm11  ;;  %v16504_v38 = vpop.eup %16503 }
  0xcf   : > { %v16506_v39 = vpop.eup %16505  ;;  %v1067_v42 = vmul.f32 %v16504_v38, %v16504_v38 }
  0xd0   : > { %v1208_v43 = vmul.f32 %v16506_v39, %v16506_v39  ;;  %v16508_v22 = vpop.eup %16507 }
  0xd1   : > { %v1068_v44 = vmul.f32 %v1067_v42, %v1067_v42  ;;  %v1349_v24 = vmul.f32 %v16508_v22, %v16508_v22  ;;  %v17500_v22 = vld [vmem:[%s16789_s26 + $0xd] ss:$0 sm:$0xff] }
  0xd2   : > { %v1209_v45 = vmul.f32 %v1208_v43, %v1208_v43 }
  0xd3   : > { %15015 = vmatpush3.bf16.xpose.msk.msra.mxu0 %vm15014_vm3, %v16702_v9  ;;  %vm1079_vm3 = vcmp.eq.s32.totalorder %v17161_v62, %v16831_v14  ;;  %v1069_v46 = vmul.f32 %v1068_v44, %v1067_v42  ;;  %v1350_v28 = vmul.f32 %v1349_v24, %v1349_v24  ;;  %v9675_v42 = vld [vmem:[%s16814_s30 + $0x28] sm:$0x7] }
  0xd4   : > { %15039 = vmatpush3.bf16.xpose.msk.msra.mxu1 %vm15038_vm4, %v16702_v9  ;;  %15040 = vmatprep.subr.bf16.mxu0 %v16699_v1  ;;  %vm1080_vm4 = vcmp.eq.s32.totalorder %v17161_v62, %v16834_v15  ;;  %v1210_v48 = vmul.f32 %v1209_v45, %v1208_v43  ;;  %v9710_v43 = vld [vmem:[%s16814_s30 + $0x2c] sm:$0x7]  ;;  %v1621_v44 = vmul.f32 %v9675_v42, %v9675_v42 }
  0xd5   : > { %15064 = vmatprep.subr.bf16.mxu1 %v16699_v1  ;;  %vm15047_vm7 = vmpackc.low %vm1080_vm4, %vm1079_vm3  ;;  %vm1224_vm3 = vcmp.eq.s32.totalorder %v17165_v0, %v16869_v26  ;;  %vm1225_vm4 = vcmp.eq.s32.totalorder %v17165_v0, %v16872_v27  ;;  %v1070_v50 = vmul.f32 0.5, %v1069_v46  ;;  %v1351_v30 = vmul.f32 %v1350_v28, %v1349_v24  ;;  %v9780_v28 = vld [vmem:[%s16814_s30 + $0x34] sm:$0x7] }
  0xd6   : > { %vm15077_vm6 = vmpackc.low %vm1225_vm4, %vm1224_vm3  ;;  %v1211_v51 = vmul.f32 0.5, %v1210_v48  ;;  %v1762_v45 = vmul.f32 %v9710_v43, %v9710_v43  ;;  %v1622_v46 = vsel %vm213_vm12, %v1621_v44, 0.0 }
  0xd7   : > { %v1352_v38 = vmul.f32 0.5, %v1351_v30  ;;  %v1623_v48 = vrot.slane %v1622_v46, 4  ;;  %v2044_v30 = vmul.f32 %v9780_v28, %v9780_v28 }
  0xda   : > { %12829 = vmatmul.mubr.f32.vlgmr.msra.gmra.mrb[4].mxu0 %v788_v5 }
  0xdb   : > { %15042 = vmatpush3.bf16.xpose.msk.msra.mxu0 %vm15041_vm9, %v16702_v9  ;;  %12864 = vmatmul.mubr.f32.vlgmr.msra.gmra.mrb[4].mxu1 %v929_v6  ;;  %vm1081_vm9 = vcmp.eq.s32.totalorder %v17161_v62, %v16851_v20  ;;  %v1484_v6 = vrot.slane %v1483_v61, 2 }
  0xdc   : > { %15066 = vmatpush3.bf16.xpose.msk.msra.mxu1 %vm15065_vm10, %v16702_v9  ;;  %15043 = vmatprep.subr.bf16.mxu0 %v16699_v1  ;;  %vm1082_vm10 = vcmp.eq.s32.totalorder %v17161_v62, %v16854_v21 }
  0xdd   : > { %15067 = vmatprep.subr.bf16.mxu1 %v16699_v1  ;;  %12898 = vmatprep.mubr.msk.f32.mxu0 %vm16700_vm0, %v16701_v3  ;;  %vm15050_vm14 = vmpackc.low %vm1082_vm10, %vm1081_vm9  ;;  %vm1226_vm9 = vcmp.eq.s32.totalorder %v17165_v0, %v16887_v32  ;;  %vm1227_vm10 = vcmp.eq.s32.totalorder %v17165_v0, %v16890_v33  ;;  %v1485_v13 = vadd.f32 %v1484_v6, %v1483_v61 }
  0xde   : > { %12933 = vmatprep.mubr.msk.f32.mxu1 %vm16700_vm0, %v16701_v3  ;;  %vm15080_vm13 = vmpackc.low %vm1227_vm10, %vm1226_vm9 }
  0xdf   : > { %v1486_v17 = vrot.slane %v1485_v13, 1 }
  0xe1   : > { %v1487_v19 = vadd.f32 %v1486_v17, %v1485_v13 }
  0xe3   : > { %15045 = vmatpush3.bf16.xpose.msk.msra.mxu0 %vm15044_vm1, %v16702_v9  ;;  %vm1083_vm1 = vcmp.eq.s32.totalorder %v17161_v62, %v16869_v26  ;;  %16509 = vrcp.f32 %v1487_v19 }
  0xe4   : > { %15069 = vmatpush3.bf16.xpose.msk.msra.mxu1 %vm15068_vm2, %v16702_v9  ;;  %15046 = vmatprep.subr.bf16.mxu0 %v16699_v1  ;;  %vm1084_vm2 = vcmp.eq.s32.totalorder %v17161_v62, %v16872_v27 }
  0xe5   : > { %15070 = vmatprep.subr.bf16.mxu1 %v16699_v1  ;;  %vm15053_vm5 = vmpackc.low %vm1084_vm2, %vm1083_vm1  ;;  %vm1228_vm1 = vcmp.eq.s32.totalorder %v17165_v0, %v16905_v36  ;;  %vm1229_vm2 = vcmp.eq.s32.totalorder %v17165_v0, %v16908_v37 }
  0xe6   : > { %vm15083_vm4 = vmpackc.low %vm1229_vm2, %vm1228_vm1 }
  0xeb   : > { %15048 = vmatpush3.bf16.xpose.msk.msra.mxu0 %vm15047_vm7, %v16702_v9  ;;  %vm1085_vm7 = vcmp.eq.s32.totalorder %v17161_v62, %v16887_v32 }
  0xec   : > { %15072 = vmatpush3.bf16.xpose.msk.msra.mxu1 %vm15071_vm8, %v16702_v9  ;;  %15049 = vmatprep.subr.bf16.mxu0 %v16699_v1  ;;  %vm1086_vm8 = vcmp.eq.s32.totalorder %v17161_v62, %v16890_v33 }
  0xed   : > { %15073 = vmatprep.subr.bf16.mxu1 %v16699_v1  ;;  %vm15056_vm11 = vmpackc.low %vm1086_vm8, %vm1085_vm7  ;;  %vm1230_vm7 = vcmp.eq.s32.totalorder %v17165_v0, %v16923_v40  ;;  %vm1231_vm8 = vcmp.eq.s32.totalorder %v17165_v0, %v16926_v41  ;;  %v16510_v23 = vpop.eup %16509 }
  0xee   : > { %vm15086_vm10 = vmpackc.low %vm1231_vm8, %vm1230_vm7  ;;  %v1490_v25 = vmul.f32 %v16510_v23, %v16510_v23 }
  0xf0   : > { %v1491_v29 = vmul.f32 %v1490_v25, %v1490_v25 }
  0xf2   : > { %v1492_v34 = vmul.f32 %v1491_v29, %v1490_v25  ;;  %v9745_v25 = vld [vmem:[%s16814_s30 + $0x30] sm:$0x7] }
  0xf3   : > { %15051 = vmatpush3.bf16.xpose.msk.msra.mxu0 %vm15050_vm14, %v16702_v9  ;;  %vm1087_vm14 = vcmp.eq.s32.totalorder %v17161_v62, %v16905_v36  ;;  %v1903_v29 = vmul.f32 %v9745_v25, %v9745_v25 }
  0xf4   : > { %15075 = vmatpush3.bf16.xpose.msk.msra.mxu1 %vm15074_vm15, %v16702_v9  ;;  %15052 = vmatprep.subr.bf16.mxu0 %v16699_v1  ;;  %vm1088_vm15 = vcmp.eq.s32.totalorder %v17161_v62, %v16908_v37  ;;  %v1493_v39 = vmul.f32 0.5, %v1492_v34  ;;  %v2045_v34 = vsel %vm213_vm12, %v2044_v30, 0.0 }
  0xf5   : > { %15076 = vmatprep.subr.bf16.mxu1 %v16699_v1  ;;  %vm15059_vm3 = vmpackc.low %vm1088_vm15, %vm1087_vm14  ;;  %vm1498_vm14 = vcmp.eq.s32.totalorder %v17275_v49, %v16777_v2  ;;  %vm1499_vm15 = vcmp.eq.s32.totalorder %v17275_v49, %v16784_v4 }
  0xf6   : > { %vm15113_vm2 = vmpackc.low %vm1499_vm15, %vm1498_vm14 }
  0xfb   : > { %15054 = vmatpush3.bf16.xpose.msk.msra.mxu0 %vm15053_vm5, %v16702_v9  ;;  %vm1089_vm5 = vcmp.eq.s32.totalorder %v17161_v62, %v16923_v40 }
  0xfc   : > { %15078 = vmatpush3.bf16.xpose.msk.msra.mxu1 %vm15077_vm6, %v16702_v9  ;;  %15055 = vmatprep.subr.bf16.mxu0 %v16699_v1  ;;  %vm1090_vm6 = vcmp.eq.s32.totalorder %v17161_v62, %v16926_v41 }
  0xfd   : > { %15079 = vmatprep.subr.bf16.mxu1 %v16699_v1  ;;  %vm15062_vm9 = vmpackc.low %vm1090_vm6, %vm1089_vm5  ;;  %vm1500_vm5 = vcmp.eq.s32.totalorder %v17275_v49, %v16798_v7  ;;  %vm1501_vm6 = vcmp.eq.s32.totalorder %v17275_v49, %v16801_v8 }
  0xfe   : > { %vm15116_vm8 = vmpackc.low %vm1501_vm6, %vm1500_vm5 }
 0x103   : > { %15057 = vmatpush3.bf16.xpose.msk.msra.mxu0 %vm15056_vm11, %v16702_v9  ;;  %vm1357_vm11 = vcmp.eq.s32.totalorder %v17271_v47, %v16777_v2 }
 0x104   : > { %15081 = vmatpush3.bf16.xpose.msk.msra.mxu1 %vm15080_vm13, %v16702_v9  ;;  %15058 = vmatprep.subr.bf16.mxu0 %v16699_v1  ;;  %vm1358_vm13 = vcmp.eq.s32.totalorder %v17271_v47, %v16784_v4 }
 0x105   : > { %15082 = vmatprep.subr.bf16.mxu1 %v16699_v1  ;;  %vm15089_vm1 = vmpackc.low %vm1358_vm13, %vm1357_vm11  ;;  %vm1502_vm11 = vcmp.eq.s32.totalorder %v17275_v49, %v16831_v14  ;;  %vm1503_vm13 = vcmp.eq.s32.totalorder %v17275_v49, %v16834_v15 }
 0x106   : > { %vm15119_vm15 = vmpackc.low %vm1503_vm13, %vm1502_vm11 }
 0x10b   : > { %15060 = vmatpush3.bf16.xpose.msk.msra.mxu0 %vm15059_vm3, %v16702_v9  ;;  %vm1359_vm3 = vcmp.eq.s32.totalorder %v17271_v47, %v16798_v7 }
 0x10c   : > { %15084 = vmatpush3.bf16.xpose.msk.msra.mxu1 %vm15083_vm4, %v16702_v9  ;;  %15061 = vmatprep.subr.bf16.mxu0 %v16699_v1  ;;  %vm1360_vm4 = vcmp.eq.s32.totalorder %v17271_v47, %v16801_v8 }
 0x10d   : > { %15085 = vmatprep.subr.bf16.mxu1 %v16699_v1  ;;  %vm15092_vm7 = vmpackc.low %vm1360_vm4, %vm1359_vm3  ;;  %vm1504_vm3 = vcmp.eq.s32.totalorder %v17275_v49, %v16851_v20  ;;  %vm1505_vm4 = vcmp.eq.s32.totalorder %v17275_v49, %v16854_v21 }
 0x10e   : > { %vm15122_vm6 = vmpackc.low %vm1505_vm4, %vm1504_vm3 }
 0x113   : > { %15063 = vmatpush3.bf16.xpose.msk.msra.mxu0 %vm15062_vm9, %v16702_v9  ;;  %vm1361_vm9 = vcmp.eq.s32.totalorder %v17271_v47, %v16831_v14 }
 0x114   : > { %15087 = vmatpush3.bf16.xpose.msk.msra.mxu1 %vm15086_vm10, %v16702_v9  ;;  %15088 = vmatprep.subr.bf16.mxu0 %v16699_v1  ;;  %vm1362_vm10 = vcmp.eq.s32.totalorder %v17271_v47, %v16834_v15 }
 0x115   : > { %15112 = vmatprep.subr.bf16.mxu1 %v16699_v1  ;;  %vm15095_vm14 = vmpackc.low %vm1362_vm10, %vm1361_vm9  ;;  %vm1506_vm9 = vcmp.eq.s32.totalorder %v17275_v49, %v16869_v26  ;;  %vm1507_vm10 = vcmp.eq.s32.totalorder %v17275_v49, %v16872_v27 }
 0x116   : > { %vm15125_vm13 = vmpackc.low %vm1507_vm10, %vm1506_vm9 }
 0x11a   : > { %12899 = vmatmul.mubr.f32.vlgmr.msra.gmra.mrb[6].mxu0 %v1070_v50  ;;  %v1624_v50 = vadd.f32 %v1623_v48, %v1622_v46 }
 0x11b   : > { %15090 = vmatpush3.bf16.xpose.msk.msra.mxu0 %vm15089_vm1, %v16702_v9  ;;  %12934 = vmatmul.mubr.f32.vlgmr.msra.gmra.mrb[6].mxu1 %v1211_v51  ;;  %vm1363_vm1 = vcmp.eq.s32.totalorder %v17271_v47, %v16851_v20 }
 0x11c   : > { %15114 = vmatpush3.bf16.xpose.msk.msra.mxu1 %vm15113_vm2, %v16702_v9  ;;  %15091 = vmatprep.subr.bf16.mxu0 %v16699_v1  ;;  %vm1364_vm2 = vcmp.eq.s32.totalorder %v17271_v47, %v16854_v21  ;;  %v1625_v53 = vrot.slane %v1624_v50, 2 }
 0x11d   : > { %15115 = vmatprep.subr.bf16.mxu1 %v16699_v1  ;;  %12968 = vmatprep.mubr.msk.f32.mxu0 %vm16700_vm0, %v16701_v3  ;;  %vm15098_vm5 = vmpackc.low %vm1364_vm2, %vm1363_vm1  ;;  %vm1508_vm1 = vcmp.eq.s32.totalorder %v17275_v49, %v16887_v32  ;;  %vm1509_vm2 = vcmp.eq.s32.totalorder %v17275_v49, %v16890_v33 }
 0x11e   : > { %13003 = vmatprep.mubr.msk.f32.mxu1 %vm16700_vm0, %v16701_v3  ;;  %vm15128_vm4 = vmpackc.low %vm1509_vm2, %vm1508_vm1  ;;  %v1626_v60 = vadd.f32 %v1625_v53, %v1624_v50 }
 0x123   : > { %15093 = vmatpush3.bf16.xpose.msk.msra.mxu0 %vm15092_vm7, %v16702_v9  ;;  %vm1365_vm7 = vcmp.eq.s32.totalorder %v17271_v47, %v16869_v26 }
 0x124   : > { %15117 = vmatpush3.bf16.xpose.msk.msra.mxu1 %vm15116_vm8, %v16702_v9  ;;  %15094 = vmatprep.subr.bf16.mxu0 %v16699_v1  ;;  %vm1366_vm8 = vcmp.eq.s32.totalorder %v17271_v47, %v16872_v27 }
 0x125   : > { %15118 = vmatprep.subr.bf16.mxu1 %v16699_v1  ;;  %vm15101_vm11 = vmpackc.low %vm1366_vm8, %vm1365_vm7  ;;  %vm1510_vm7 = vcmp.eq.s32.totalorder %v17275_v49, %v16905_v36  ;;  %vm1511_vm8 = vcmp.eq.s32.totalorder %v17275_v49, %v16908_v37 }
 0x126   : > { %vm15131_vm10 = vmpackc.low %vm1511_vm8, %vm1510_vm7 }
 0x12b   : > { %15096 = vmatpush3.bf16.xpose.msk.msra.mxu0 %vm15095_vm14, %v16702_v9  ;;  %vm1367_vm14 = vcmp.eq.s32.totalorder %v17271_v47, %v16887_v32 }
 0x12c   : > { %15120 = vmatpush3.bf16.xpose.msk.msra.mxu1 %vm15119_vm15, %v16702_v9  ;;  %15097 = vmatprep.subr.bf16.mxu0 %v16699_v1  ;;  %vm1368_vm15 = vcmp.eq.s32.totalorder %v17271_v47, %v16890_v33 }
 0x12d   : > { %v415_v62 = vpop.f32.mrb[0].mxu0  ;;  %15121 = vmatprep.subr.bf16.mxu1 %v16699_v1  ;;  %vm15104_vm3 = vmpackc.low %vm1368_vm15, %vm1367_vm14  ;;  %vm1512_vm14 = vcmp.eq.s32.totalorder %v17275_v49, %v16923_v40  ;;  %vm1513_vm15 = vcmp.eq.s32.totalorder %v17275_v49, %v16926_v41 }
 0x12e   : > { %v12690_v0 = vpop.f32.mrb[1].mxu0  ;;  %v485_v5 = vpop.f32.mrb[0].mxu1  ;;  %vm15134_vm2 = vmpackc.low %vm1513_vm15, %vm1512_vm14 }
 0x12f   : > { %v17332_v10 = vadd.f32 %v485_v5, %v415_v62  ;;  %v12725_v11 = vpop.f32.mrb[1].mxu1  ;;  %v1627_v62 = vrot.slane %v1626_v60, 1 }
 0x131   : > { %v1628_v0 = vadd.f32 %v1627_v62, %v1626_v60 }
 0x133   : > { %15099 = vmatpush3.bf16.xpose.msk.msra.mxu0 %vm15098_vm5, %v16702_v9  ;;  %vm1369_vm5 = vcmp.eq.s32.totalorder %v17271_v47, %v16905_v36  ;;  %16511 = vrcp.f32 %v1628_v0  ;;  %v17609_v0 = vld [vmem:[%s16789_s26 + $0xe] ss:$0 sm:$0xff] }
 0x134   : > { %15123 = vmatpush3.bf16.xpose.msk.msra.mxu1 %vm15122_vm6, %v16702_v9  ;;  %15100 = vmatprep.subr.bf16.mxu0 %v16699_v1  ;;  %vm1370_vm6 = vcmp.eq.s32.totalorder %v17271_v47, %v16908_v37 }
 0x135   : > { %15124 = vmatprep.subr.bf16.mxu1 %v16699_v1  ;;  %vm15107_vm9 = vmpackc.low %vm1370_vm6, %vm1369_vm5  ;;  %vm1780_vm5 = vcmp.eq.s32.totalorder %v17387_v35, %v16777_v2  ;;  %vm1781_vm6 = vcmp.eq.s32.totalorder %v17387_v35, %v16784_v4 }
 0x136   : > { %vm15161_vm8 = vmpackc.low %vm1781_vm6, %vm1780_vm5 }
 0x13b   : > { %15102 = vmatpush3.bf16.xpose.msk.msra.mxu0 %vm15101_vm11, %v16702_v9  ;;  %vm1371_vm11 = vcmp.eq.s32.totalorder %v17271_v47, %v16923_v40 }
 0x13c   : > { %15126 = vmatpush3.bf16.xpose.msk.msra.mxu1 %vm15125_vm13, %v16702_v9  ;;  %15103 = vmatprep.subr.bf16.mxu0 %v16699_v1  ;;  %vm1372_vm13 = vcmp.eq.s32.totalorder %v17271_v47, %v16926_v41  ;;  %v1763_v47 = vsel %vm213_vm12, %v1762_v45, 0.0 }
 0x13d   : > { %15127 = vmatprep.subr.bf16.mxu1 %v16699_v1  ;;  %vm15110_vm1 = vmpackc.low %vm1372_vm13, %vm1371_vm11  ;;  %vm1782_vm11 = vcmp.eq.s32.totalorder %v17387_v35, %v16798_v7  ;;  %vm1783_vm13 = vcmp.eq.s32.totalorder %v17387_v35, %v16801_v8  ;;  %v1764_v49 = vrot.slane %v1763_v47, 4  ;;  %v16512_v6 = vpop.eup %16511 }
 0x13e   : > { %vm15164_vm15 = vmpackc.low %vm1783_vm13, %vm1782_vm11  ;;  %v1631_v11 = vmul.f32 %v16512_v6, %v16512_v6  ;;  %v17613_v6 = vld [vmem:[%s16789_s26 + $0xf] ss:$0 sm:$0xff] }
 0x13f   : > { %v1765_v51 = vadd.f32 %v1764_v49, %v1763_v47 }
 0x140   : > { %v1632_v13 = vmul.f32 %v1631_v11, %v1631_v11 }
 0x141   : > { %v1766_v57 = vrot.slane %v1765_v51, 2 }
 0x142   : > { %v1633_v17 = vmul.f32 %v1632_v13, %v1631_v11  ;;  %v9850_v13 = vld [vmem:[%s16814_s30 + $0x3c] sm:$0x7] }
 0x143   : > { %15105 = vmatpush3.bf16.xpose.msk.msra.mxu0 %vm15104_vm3, %v16702_v9  ;;  %vm1639_vm3 = vcmp.eq.s32.totalorder %v17383_v31, %v16777_v2  ;;  %v1767_v61 = vadd.f32 %v1766_v57, %v1765_v51 }
 0x144   : > { %15129 = vmatpush3.bf16.xpose.msk.msra.mxu1 %vm15128_vm4, %v16702_v9  ;;  %15106 = vmatprep.subr.bf16.mxu0 %v16699_v1  ;;  %vm1640_vm4 = vcmp.eq.s32.totalorder %v17383_v31, %v16784_v4  ;;  %v1634_v23 = vmul.f32 0.5, %v1633_v17  ;;  %v2326_v17 = vmul.f32 %v9850_v13, %v9850_v13 }
 0x145   : > { %15130 = vmatprep.subr.bf16.mxu1 %v16699_v1  ;;  %vm15137_vm7 = vmpackc.low %vm1640_vm4, %vm1639_vm3  ;;  %vm1784_vm3 = vcmp.eq.s32.totalorder %v17387_v35, %v16831_v14  ;;  %vm1785_vm4 = vcmp.eq.s32.totalorder %v17387_v35, %v16834_v15  ;;  %v1768_v63 = vrot.slane %v1767_v61, 1 }
 0x146   : > { %vm15167_vm6 = vmpackc.low %vm1785_vm4, %vm1784_vm3 }
 0x147   : > { %v1769_v5 = vadd.f32 %v1768_v63, %v1767_v61 }
 0x149   : > { %16513 = vrcp.f32 %v1769_v5 }
 0x14b   : > { %15108 = vmatpush3.bf16.xpose.msk.msra.mxu0 %vm15107_vm9, %v16702_v9  ;;  %vm1641_vm9 = vcmp.eq.s32.totalorder %v17383_v31, %v16798_v7 }
 0x14c   : > { %15132 = vmatpush3.bf16.xpose.msk.msra.mxu1 %vm15131_vm10, %v16702_v9  ;;  %15109 = vmatprep.subr.bf16.mxu0 %v16699_v1  ;;  %vm1642_vm10 = vcmp.eq.s32.totalorder %v17383_v31, %v16801_v8 }
 0x14d   : > { %15133 = vmatprep.subr.bf16.mxu1 %v16699_v1  ;;  %vm15140_vm14 = vmpackc.low %vm1642_vm10, %vm1641_vm9  ;;  %vm1786_vm9 = vcmp.eq.s32.totalorder %v17387_v35, %v16851_v20  ;;  %vm1787_vm10 = vcmp.eq.s32.totalorder %v17387_v35, %v16854_v21 }
 0x14e   : > { %vm15170_vm13 = vmpackc.low %vm1787_vm10, %vm1786_vm9 }
 0x153   : > { %15111 = vmatpush3.bf16.xpose.msk.msra.mxu0 %vm15110_vm1, %v16702_v9  ;;  %vm1643_vm1 = vcmp.eq.s32.totalorder %v17383_v31, %v16831_v14 }
 0x154   : > { %15135 = vmatpush3.bf16.xpose.msk.msra.mxu1 %vm15134_vm2, %v16702_v9  ;;  %15136 = vmatprep.subr.bf16.mxu0 %v16699_v1  ;;  %vm1644_vm2 = vcmp.eq.s32.totalorder %v17383_v31, %v16834_v15 }
 0x155   : > { %15160 = vmatprep.subr.bf16.mxu1 %v16699_v1  ;;  %vm15143_vm5 = vmpackc.low %vm1644_vm2, %vm1643_vm1  ;;  %vm1788_vm1 = vcmp.eq.s32.totalorder %v17387_v35, %v16869_v26  ;;  %vm1789_vm2 = vcmp.eq.s32.totalorder %v17387_v35, %v16872_v27 }
 0x156   : > { %vm15173_vm4 = vmpackc.low %vm1789_vm2, %vm1788_vm1 }
 0x15a   : > { %12969 = vmatmul.mubr.f32.vlgmr.msra.gmra.mrb[8].mxu0 %v1352_v38  ;;  %v2046_v38 = vrot.slane %v2045_v34, 4 }
 0x15b   : > { %15138 = vmatpush3.bf16.xpose.msk.msra.mxu0 %vm15137_vm7, %v16702_v9  ;;  %13004 = vmatmul.mubr.f32.vlgmr.msra.gmra.mrb[8].mxu1 %v1493_v39  ;;  %vm1645_vm7 = vcmp.eq.s32.totalorder %v17383_v31, %v16851_v20 }
 0x15c   : > { %15162 = vmatpush3.bf16.xpose.msk.msra.mxu1 %vm15161_vm8, %v16702_v9  ;;  %15139 = vmatprep.subr.bf16.mxu0 %v16699_v1  ;;  %vm1646_vm8 = vcmp.eq.s32.totalorder %v17383_v31, %v16854_v21  ;;  %v2047_v42 = vadd.f32 %v2046_v38, %v2045_v34 }
 0x15d   : > { %15163 = vmatprep.subr.bf16.mxu1 %v16699_v1  ;;  %13038 = vmatprep.mubr.msk.f32.mxu0 %vm16700_vm0, %v16701_v3  ;;  %vm15146_vm11 = vmpackc.low %vm1646_vm8, %vm1645_vm7  ;;  %vm1790_vm7 = vcmp.eq.s32.totalorder %v17387_v35, %v16887_v32  ;;  %vm1791_vm8 = vcmp.eq.s32.totalorder %v17387_v35, %v16890_v33 }
 0x15e   : > { %13073 = vmatprep.mubr.msk.f32.mxu1 %vm16700_vm0, %v16701_v3  ;;  %vm15176_vm10 = vmpackc.low %vm1791_vm8, %vm1790_vm7  ;;  %v2048_v48 = vrot.slane %v2047_v42, 2 }
 0x163   : > { %15141 = vmatpush3.bf16.xpose.msk.msra.mxu0 %vm15140_vm14, %v16702_v9  ;;  %vm1647_vm14 = vcmp.eq.s32.totalorder %v17383_v31, %v16869_v26 }
 0x164   : > { %15165 = vmatpush3.bf16.xpose.msk.msra.mxu1 %vm15164_vm15, %v16702_v9  ;;  %15142 = vmatprep.subr.bf16.mxu0 %v16699_v1  ;;  %vm1648_vm15 = vcmp.eq.s32.totalorder %v17383_v31, %v16872_v27 }
 0x165   : > { %15166 = vmatprep.subr.bf16.mxu1 %v16699_v1  ;;  %vm15149_vm3 = vmpackc.low %vm1648_vm15, %vm1647_vm14  ;;  %vm1792_vm14 = vcmp.eq.s32.totalorder %v17387_v35, %v16905_v36  ;;  %vm1793_vm15 = vcmp.eq.s32.totalorder %v17387_v35, %v16908_v37 }
 0x166   : > { %vm15179_vm2 = vmpackc.low %vm1793_vm15, %vm1792_vm14 }
 0x16b   : > { %15144 = vmatpush3.bf16.xpose.msk.msra.mxu0 %vm15143_vm5, %v16702_v9  ;;  %vm1649_vm5 = vcmp.eq.s32.totalorder %v17383_v31, %v16887_v32 }
 0x16c   : > { %15168 = vmatpush3.bf16.xpose.msk.msra.mxu1 %vm15167_vm6, %v16702_v9  ;;  %15145 = vmatprep.subr.bf16.mxu0 %v16699_v1  ;;  %vm1650_vm6 = vcmp.eq.s32.totalorder %v17383_v31, %v16890_v33 }
 0x16d   : > { %v625_v52 = vpop.f32.mrb[2].mxu0  ;;  %15169 = vmatprep.subr.bf16.mxu1 %v16699_v1  ;;  %vm15152_vm9 = vmpackc.low %vm1650_vm6, %vm1649_vm5  ;;  %vm1794_vm5 = vcmp.eq.s32.totalorder %v17387_v35, %v16923_v40  ;;  %vm1795_vm6 = vcmp.eq.s32.totalorder %v17387_v35, %v16926_v41 }
 0x16e   : > { %v629_v54 = vadd.f32 %v625_v52, %v17332_v10  ;;  %v12760_v55 = vpop.f32.mrb[3].mxu0  ;;  %v766_v56 = vpop.f32.mrb[2].mxu1  ;;  %vm15182_vm8 = vmpackc.low %vm1795_vm6, %vm1794_vm5  ;;  %v2049_v52 = vadd.f32 %v2048_v48, %v2047_v42 }
 0x16f   : > { %v12795_v58 = vpop.f32.mrb[3].mxu1  ;;  %v16514_v10 = vpop.eup %16513 }
 0x170   : > { %v17445_v59 = vadd.f32 %v766_v56, %v629_v54  ;;  %v1772_v12 = vmul.f32 %v16514_v10, %v16514_v10  ;;  %v2050_v54 = vrot.slane %v2049_v52, 1 }
 0x172   : > { %v1773_v16 = vmul.f32 %v1772_v12, %v1772_v12  ;;  %v2051_v56 = vadd.f32 %v2050_v54, %v2049_v52 }
 0x173   : > { %15147 = vmatpush3.bf16.xpose.msk.msra.mxu0 %vm15146_vm11, %v16702_v9  ;;  %vm1651_vm11 = vcmp.eq.s32.totalorder %v17383_v31, %v16905_v36 }
 0x174   : > { %15171 = vmatpush3.bf16.xpose.msk.msra.mxu1 %vm15170_vm13, %v16702_v9  ;;  %15148 = vmatprep.subr.bf16.mxu0 %v16699_v1  ;;  %vm1652_vm13 = vcmp.eq.s32.totalorder %v17383_v31, %v16908_v37  ;;  %v1774_v19 = vmul.f32 %v1773_v16, %v1772_v12  ;;  %v9815_v12 = vld [vmem:[%s16814_s30 + $0x38] sm:$0x7] }
 0x175   : > { %15172 = vmatprep.subr.bf16.mxu1 %v16699_v1  ;;  %vm15155_vm1 = vmpackc.low %vm1652_vm13, %vm1651_vm11  ;;  %vm2062_vm11 = vcmp.eq.s32.totalorder %v17500_v22, %v16777_v2  ;;  %vm2063_vm13 = vcmp.eq.s32.totalorder %v17500_v22, %v16784_v4  ;;  %v2185_v16 = vmul.f32 %v9815_v12, %v9815_v12 }
 0x176   : > { %v1775_v24 = vmul.f32 0.5, %v1774_v19  ;;  %vm15209_vm15 = vmpackc.low %vm2063_vm13, %vm2062_vm11  ;;  %v2327_v19 = vsel %vm213_vm12, %v2326_v17, 0.0 }
 0x17b   : > { %15150 = vmatpush3.bf16.xpose.msk.msra.mxu0 %vm15149_vm3, %v16702_v9  ;;  %vm1653_vm3 = vcmp.eq.s32.totalorder %v17383_v31, %v16923_v40 }
 0x17c   : > { %15174 = vmatpush3.bf16.xpose.msk.msra.mxu1 %vm15173_vm4, %v16702_v9  ;;  %15151 = vmatprep.subr.bf16.mxu0 %v16699_v1  ;;  %vm1654_vm4 = vcmp.eq.s32.totalorder %v17383_v31, %v16926_v41  ;;  %v1904_v31 = vsel %vm213_vm12, %v1903_v29, 0.0 }
 0x17d   : > { %15175 = vmatprep.subr.bf16.mxu1 %v16699_v1  ;;  %vm15158_vm7 = vmpackc.low %vm1654_vm4, %vm1653_vm3  ;;  %vm2064_vm3 = vcmp.eq.s32.totalorder %v17500_v22, %v16798_v7  ;;  %vm2065_vm4 = vcmp.eq.s32.totalorder %v17500_v22, %v16801_v8  ;;  %v1905_v35 = vrot.slane %v1904_v31, 4 }
 0x17e   : > { %vm15212_vm6 = vmpackc.low %vm2065_vm4, %vm2064_vm3 }
 0x17f   : > { %v1906_v39 = vadd.f32 %v1905_v35, %v1904_v31 }
 0x181   : > { %v1907_v44 = vrot.slane %v1906_v39, 2 }
 0x183   : > { %15153 = vmatpush3.bf16.xpose.msk.msra.mxu0 %vm15152_vm9, %v16702_v9  ;;  %vm1921_vm9 = vcmp.eq.s32.totalorder %v17496_v18, %v16777_v2  ;;  %v1908_v51 = vadd.f32 %v1907_v44, %v1906_v39 }
 0x184   : > { %15177 = vmatpush3.bf16.xpose.msk.msra.mxu1 %vm15176_vm10, %v16702_v9  ;;  %15154 = vmatprep.subr.bf16.mxu0 %v16699_v1  ;;  %vm1922_vm10 = vcmp.eq.s32.totalorder %v17496_v18, %v16784_v4 }
 0x185   : > { %15178 = vmatprep.subr.bf16.mxu1 %v16699_v1  ;;  %vm15185_vm14 = vmpackc.low %vm1922_vm10, %vm1921_vm9  ;;  %vm2066_vm9 = vcmp.eq.s32.totalorder %v17500_v22, %v16831_v14  ;;  %vm2067_vm10 = vcmp.eq.s32.totalorder %v17500_v22, %v16834_v15  ;;  %v1909_v53 = vrot.slane %v1908_v51, 1 }
 0x186   : > { %vm15215_vm13 = vmpackc.low %vm2067_vm10, %vm2066_vm9 }
 0x187   : > { %v1910_v55 = vadd.f32 %v1909_v53, %v1908_v51 }
 0x189   : > { %16515 = vrcp.f32 %v1910_v55  ;;  %v17722_v55 = vld [vmem:[%s16789_s26 + $0x10] ss:$0 sm:$0xff] }
 0x18a   : > { %16517 = vrcp.f32 %v2051_v56 }
 0x18b   : > { %15156 = vmatpush3.bf16.xpose.msk.msra.mxu0 %vm15155_vm1, %v16702_v9  ;;  %vm1923_vm1 = vcmp.eq.s32.totalorder %v17496_v18, %v16798_v7 }
 0x18c   : > { %15180 = vmatpush3.bf16.xpose.msk.msra.mxu1 %vm15179_vm2, %v16702_v9  ;;  %15157 = vmatprep.subr.bf16.mxu0 %v16699_v1  ;;  %vm1924_vm2 = vcmp.eq.s32.totalorder %v17496_v18, %v16801_v8 }
 0x18d   : > { %15181 = vmatprep.subr.bf16.mxu1 %v16699_v1  ;;  %vm15188_vm5 = vmpackc.low %vm1924_vm2, %vm1923_vm1  ;;  %vm2068_vm1 = vcmp.eq.s32.totalorder %v17500_v22, %v16851_v20  ;;  %vm2069_vm2 = vcmp.eq.s32.totalorder %v17500_v22, %v16854_v21 }
 0x18e   : > { %vm15218_vm4 = vmpackc.low %vm2069_vm2, %vm2068_vm1 }
 0x193   : > { %15159 = vmatpush3.bf16.xpose.msk.msra.mxu0 %vm15158_vm7, %v16702_v9  ;;  %vm1925_vm7 = vcmp.eq.s32.totalorder %v17496_v18, %v16831_v14  ;;  %v16516_v57 = vpop.eup %16515 }
 0x194   : > { %15183 = vmatpush3.bf16.xpose.msk.msra.mxu1 %vm15182_vm8, %v16702_v9  ;;  %15184 = vmatprep.subr.bf16.mxu0 %v16699_v1  ;;  %vm1926_vm8 = vcmp.eq.s32.totalorder %v17496_v18, %v16834_v15  ;;  %v16518_v58 = vpop.eup %16517 }
 0x195   : > { %15208 = vmatprep.subr.bf16.mxu1 %v16699_v1  ;;  %vm15191_vm11 = vmpackc.low %vm1926_vm8, %vm1925_vm7  ;;  %vm2070_vm7 = vcmp.eq.s32.totalorder %v17500_v22, %v16869_v26  ;;  %vm2071_vm8 = vcmp.eq.s32.totalorder %v17500_v22, %v16872_v27  ;;  %v2054_v60 = vmul.f32 %v16518_v58, %v16518_v58 }
 0x196   : > { %vm15221_vm10 = vmpackc.low %vm2071_vm8, %vm2070_vm7 }
 0x197   : > { %v2055_v62 = vmul.f32 %v2054_v60, %v2054_v60 }
 0x199   : > { %v2056_v5 = vmul.f32 %v2055_v62, %v2054_v60  ;;  %v9885_v60 = vld [vmem:[%s16814_s30 + $0x40] sm:$0x7] }
 0x19a   : > { %13039 = vmatmul.mubr.f32.vlgmr.msra.gmra.mrb[10].mxu0 %v1634_v23  ;;  %v2328_v23 = vrot.slane %v2327_v19, 4  ;;  %v2467_v62 = vmul.f32 %v9885_v60, %v9885_v60 }
 0x19b   : > { %15186 = vmatpush3.bf16.xpose.msk.msra.mxu0 %vm15185_vm14, %v16702_v9  ;;  %13074 = vmatmul.mubr.f32.vlgmr.msra.gmra.mrb[10].mxu1 %v1775_v24  ;;  %vm1927_vm14 = vcmp.eq.s32.totalorder %v17496_v18, %v16851_v20  ;;  %v2057_v11 = vmul.f32 0.5, %v2056_v5 }
 0x19c   : > { %15210 = vmatpush3.bf16.xpose.msk.msra.mxu1 %vm15209_vm15, %v16702_v9  ;;  %15187 = vmatprep.subr.bf16.mxu0 %v16699_v1  ;;  %vm1928_vm15 = vcmp.eq.s32.totalorder %v17496_v18, %v16854_v21  ;;  %v2329_v25 = vadd.f32 %v2328_v23, %v2327_v19 }
 0x19d   : > { %15211 = vmatprep.subr.bf16.mxu1 %v16699_v1  ;;  %13108 = vmatprep.mubr.msk.f32.mxu0 %vm16700_vm0, %v16701_v3  ;;  %vm15194_vm3 = vmpackc.low %vm1928_vm15, %vm1927_vm14  ;;  %vm2072_vm14 = vcmp.eq.s32.totalorder %v17500_v22, %v16887_v32  ;;  %vm2073_vm15 = vcmp.eq.s32.totalorder %v17500_v22, %v16890_v33 }
 0x19e   : > { %13143 = vmatprep.mubr.msk.f32.mxu1 %vm16700_vm0, %v16701_v3  ;;  %vm15224_vm2 = vmpackc.low %vm2073_vm15, %vm2072_vm14  ;;  %v2330_v35 = vrot.slane %v2329_v25, 2 }
 0x1a3   : > { %15189 = vmatpush3.bf16.xpose.msk.msra.mxu0 %vm15188_vm5, %v16702_v9  ;;  %vm1929_vm5 = vcmp.eq.s32.totalorder %v17496_v18, %v16869_v26 }
 0x1a4   : > { %15213 = vmatpush3.bf16.xpose.msk.msra.mxu1 %vm15212_vm6, %v16702_v9  ;;  %15190 = vmatprep.subr.bf16.mxu0 %v16699_v1  ;;  %vm1930_vm6 = vcmp.eq.s32.totalorder %v17496_v18, %v16872_v27 }
 0x1a5   : > { %15214 = vmatprep.subr.bf16.mxu1 %v16699_v1  ;;  %vm15197_vm9 = vmpackc.low %vm1930_vm6, %vm1929_vm5  ;;  %vm2074_vm5 = vcmp.eq.s32.totalorder %v17500_v22, %v16905_v36  ;;  %vm2075_vm6 = vcmp.eq.s32.totalorder %v17500_v22, %v16908_v37 }
 0x1a6   : > { %vm15227_vm8 = vmpackc.low %vm2075_vm6, %vm2074_vm5 }
 0x1ab   : > { %15192 = vmatpush3.bf16.xpose.msk.msra.mxu0 %vm15191_vm11, %v16702_v9  ;;  %vm1931_vm11 = vcmp.eq.s32.totalorder %v17496_v18, %v16887_v32 }
 0x1ac   : > { %15216 = vmatpush3.bf16.xpose.msk.msra.mxu1 %vm15215_vm13, %v16702_v9  ;;  %15193 = vmatprep.subr.bf16.mxu0 %v16699_v1  ;;  %vm1932_vm13 = vcmp.eq.s32.totalorder %v17496_v18, %v16890_v33 }
 0x1ad   : > { %v907_v43 = vpop.f32.mrb[4].mxu0  ;;  %15217 = vmatprep.subr.bf16.mxu1 %v16699_v1  ;;  %vm15200_vm1 = vmpackc.low %vm1932_vm13, %vm1931_vm11  ;;  %vm2076_vm11 = vcmp.eq.s32.totalorder %v17500_v22, %v16923_v40  ;;  %vm2077_vm13 = vcmp.eq.s32.totalorder %v17500_v22, %v16926_v41 }
 0x1ae   : > { %v911_v45 = vadd.f32 %v907_v43, %v17445_v59  ;;  %v12830_v46 = vpop.f32.mrb[5].mxu0  ;;  %v1048_v47 = vpop.f32.mrb[4].mxu1  ;;  %v1913_v59 = vmul.f32 %v16516_v57, %v16516_v57  ;;  %vm15230_vm15 = vmpackc.low %vm2077_vm13, %vm2076_vm11  ;;  %v2331_v43 = vadd.f32 %v2330_v35, %v2329_v25  ;;  %v17726_v57 = vld [vmem:[%s16789_s26 + $0x11] ss:$0 sm:$0xff] }
 0x1af   : > { %v12865_v49 = vpop.f32.mrb[5].mxu1 }
 0x1b0   : > { %v17558_v50 = vadd.f32 %v1048_v47, %v911_v45  ;;  %v1914_v61 = vmul.f32 %v1913_v59, %v1913_v59  ;;  %v2332_v45 = vrot.slane %v2331_v43, 1 }
 0x1b2   : > { %v1915_v63 = vmul.f32 %v1914_v61, %v1913_v59  ;;  %v2333_v47 = vadd.f32 %v2332_v45, %v2331_v43  ;;  %v9920_v61 = vld [vmem:[%s16814_s30 + $0x44] sm:$0x7] }
 0x1b3   : > { %15195 = vmatpush3.bf16.xpose.msk.msra.mxu0 %vm15194_vm3, %v16702_v9  ;;  %vm1933_vm3 = vcmp.eq.s32.totalorder %v17496_v18, %v16905_v36 }
 0x1b4   : > { %15219 = vmatpush3.bf16.xpose.msk.msra.mxu1 %vm15218_vm4, %v16702_v9  ;;  %15196 = vmatprep.subr.bf16.mxu0 %v16699_v1  ;;  %vm1934_vm4 = vcmp.eq.s32.totalorder %v17496_v18, %v16908_v37  ;;  %v1916_v10 = vmul.f32 0.5, %v1915_v63  ;;  %v2608_v63 = vmul.f32 %v9920_v61, %v9920_v61 }
 0x1b5   : > { %15220 = vmatprep.subr.bf16.mxu1 %v16699_v1  ;;  %vm15203_vm7 = vmpackc.low %vm1934_vm4, %vm1933_vm3  ;;  %vm2344_vm3 = vcmp.eq.s32.totalorder %v17613_v6, %v16777_v2  ;;  %vm2345_vm4 = vcmp.eq.s32.totalorder %v17613_v6, %v16784_v4 }
 0x1b6   : > { %vm15257_vm6 = vmpackc.low %vm2345_vm4, %vm2344_vm3  ;;  %v2609_v5 = vsel %vm213_vm12, %v2608_v63, 0.0 }
 0x1bb   : > { %15198 = vmatpush3.bf16.xpose.msk.msra.mxu0 %vm15197_vm9, %v16702_v9  ;;  %vm1935_vm9 = vcmp.eq.s32.totalorder %v17496_v18, %v16923_v40 }
 0x1bc   : > { %15222 = vmatpush3.bf16.xpose.msk.msra.mxu1 %vm15221_vm10, %v16702_v9  ;;  %15199 = vmatprep.subr.bf16.mxu0 %v16699_v1  ;;  %vm1936_vm10 = vcmp.eq.s32.totalorder %v17496_v18, %v16926_v41  ;;  %v2186_v18 = vsel %vm213_vm12, %v2185_v16, 0.0 }
 0x1bd   : > { %15223 = vmatprep.subr.bf16.mxu1 %v16699_v1  ;;  %vm15206_vm14 = vmpackc.low %vm1936_vm10, %vm1935_vm9  ;;  %vm2346_vm9 = vcmp.eq.s32.totalorder %v17613_v6, %v16798_v7  ;;  %vm2347_vm10 = vcmp.eq.s32.totalorder %v17613_v6, %v16801_v8  ;;  %v2187_v22 = vrot.slane %v2186_v18, 4 }
 0x1be   : > { %vm15260_vm13 = vmpackc.low %vm2347_vm10, %vm2346_vm9 }
 0x1bf   : > { %v2188_v24 = vadd.f32 %v2187_v22, %v2186_v18 }
 0x1c1   : > { %v2189_v29 = vrot.slane %v2188_v24, 2 }
 0x1c3   : > { %15201 = vmatpush3.bf16.xpose.msk.msra.mxu0 %vm15200_vm1, %v16702_v9  ;;  %vm2203_vm1 = vcmp.eq.s32.totalorder %v17609_v0, %v16777_v2  ;;  %v2190_v42 = vadd.f32 %v2189_v29, %v2188_v24 }
 0x1c4   : > { %15225 = vmatpush3.bf16.xpose.msk.msra.mxu1 %vm15224_vm2, %v16702_v9  ;;  %15202 = vmatprep.subr.bf16.mxu0 %v16699_v1  ;;  %vm2204_vm2 = vcmp.eq.s32.totalorder %v17609_v0, %v16784_v4 }
 0x1c5   : > { %15226 = vmatprep.subr.bf16.mxu1 %v16699_v1  ;;  %vm15233_vm5 = vmpackc.low %vm2204_vm2, %vm2203_vm1  ;;  %vm2348_vm1 = vcmp.eq.s32.totalorder %v17613_v6, %v16831_v14  ;;  %vm2349_vm2 = vcmp.eq.s32.totalorder %v17613_v6, %v16834_v15  ;;  %v2191_v44 = vrot.slane %v2190_v42, 1 }
 0x1c6   : > { %vm15263_vm4 = vmpackc.low %vm2349_vm2, %vm2348_vm1 }
 0x1c7   : > { %v2192_v46 = vadd.f32 %v2191_v44, %v2190_v42 }
 0x1c9   : > { %16519 = vrcp.f32 %v2192_v46  ;;  %v17835_v46 = vld [vmem:[%s16789_s26 + $0x12] ss:$0 sm:$0xff] }
 0x1ca   : > { %16521 = vrcp.f32 %v2333_v47 }
 0x1cb   : > { %15204 = vmatpush3.bf16.xpose.msk.msra.mxu0 %vm15203_vm7, %v16702_v9  ;;  %vm2205_vm7 = vcmp.eq.s32.totalorder %v17609_v0, %v16798_v7 }
 0x1cc   : > { %15228 = vmatpush3.bf16.xpose.msk.msra.mxu1 %vm15227_vm8, %v16702_v9  ;;  %15205 = vmatprep.subr.bf16.mxu0 %v16699_v1  ;;  %vm2206_vm8 = vcmp.eq.s32.totalorder %v17609_v0, %v16801_v8 }
 0x1cd   : > { %15229 = vmatprep.subr.bf16.mxu1 %v16699_v1  ;;  %vm15236_vm11 = vmpackc.low %vm2206_vm8, %vm2205_vm7  ;;  %vm2350_vm7 = vcmp.eq.s32.totalorder %v17613_v6, %v16851_v20  ;;  %vm2351_vm8 = vcmp.eq.s32.totalorder %v17613_v6, %v16854_v21 }
 0x1ce   : > { %vm15266_vm10 = vmpackc.low %vm2351_vm8, %vm2350_vm7 }
 0x1d3   : > { %15207 = vmatpush3.bf16.xpose.msk.msra.mxu0 %vm15206_vm14, %v16702_v9  ;;  %vm2207_vm14 = vcmp.eq.s32.totalorder %v17609_v0, %v16831_v14  ;;  %v16520_v48 = vpop.eup %16519 }
 0x1d4   : > { %15231 = vmatpush3.bf16.xpose.msk.msra.mxu1 %vm15230_vm15, %v16702_v9  ;;  %15232 = vmatprep.subr.bf16.mxu0 %v16699_v1  ;;  %vm2208_vm15 = vcmp.eq.s32.totalorder %v17609_v0, %v16834_v15  ;;  %v16522_v49 = vpop.eup %16521 }
 0x1d5   : > { %15256 = vmatprep.subr.bf16.mxu1 %v16699_v1  ;;  %vm15239_vm3 = vmpackc.low %vm2208_vm15, %vm2207_vm14  ;;  %vm2352_vm14 = vcmp.eq.s32.totalorder %v17613_v6, %v16869_v26  ;;  %vm2353_vm15 = vcmp.eq.s32.totalorder %v17613_v6, %v16872_v27  ;;  %v2336_v51 = vmul.f32 %v16522_v49, %v16522_v49 }
 0x1d6   : > { %vm15269_vm2 = vmpackc.low %vm2353_vm15, %vm2352_vm14 }
 0x1d7   : > { %v2337_v53 = vmul.f32 %v2336_v51, %v2336_v51 }
 0x1d9   : > { %v2338_v56 = vmul.f32 %v2337_v53, %v2336_v51  ;;  %v9955_v51 = vld [vmem:[%s16814_s30 + $0x48] sm:$0x7] }
 0x1da   : > { %13109 = vmatmul.mubr.f32.vlgmr.msra.gmra.mrb[12].mxu0 %v1916_v10  ;;  %v2610_v10 = vrot.slane %v2609_v5, 4  ;;  %v2749_v53 = vmul.f32 %v9955_v51, %v9955_v51 }
 0x1db   : > { %15234 = vmatpush3.bf16.xpose.msk.msra.mxu0 %vm15233_vm5, %v16702_v9  ;;  %13144 = vmatmul.mubr.f32.vlgmr.msra.gmra.mrb[12].mxu1 %v2057_v11  ;;  %vm2209_vm5 = vcmp.eq.s32.totalorder %v17609_v0, %v16851_v20  ;;  %v2339_v59 = vmul.f32 0.5, %v2338_v56 }
 0x1dc   : > { %15258 = vmatpush3.bf16.xpose.msk.msra.mxu1 %vm15257_vm6, %v16702_v9  ;;  %15235 = vmatprep.subr.bf16.mxu0 %v16699_v1  ;;  %vm2210_vm6 = vcmp.eq.s32.totalorder %v17609_v0, %v16854_v21  ;;  %v2611_v12 = vadd.f32 %v2610_v10, %v2609_v5 }
 0x1dd   : > { %15259 = vmatprep.subr.bf16.mxu1 %v16699_v1  ;;  %13178 = vmatprep.mubr.msk.f32.mxu0 %vm16700_vm0, %v16701_v3  ;;  %vm15242_vm9 = vmpackc.low %vm2210_vm6, %vm2209_vm5  ;;  %vm2354_vm5 = vcmp.eq.s32.totalorder %v17613_v6, %v16887_v32  ;;  %vm2355_vm6 = vcmp.eq.s32.totalorder %v17613_v6, %v16890_v33 }
 0x1de   : > { %13213 = vmatprep.mubr.msk.f32.mxu1 %vm16700_vm0, %v16701_v3  ;;  %vm15272_vm8 = vmpackc.low %vm2355_vm6, %vm2354_vm5  ;;  %v2612_v22 = vrot.slane %v2611_v12, 2 }
 0x1e3   : > { %15237 = vmatpush3.bf16.xpose.msk.msra.mxu0 %vm15236_vm11, %v16702_v9  ;;  %vm2211_vm11 = vcmp.eq.s32.totalorder %v17609_v0, %v16869_v26 }
 0x1e4   : > { %15261 = vmatpush3.bf16.xpose.msk.msra.mxu1 %vm15260_vm13, %v16702_v9  ;;  %15238 = vmatprep.subr.bf16.mxu0 %v16699_v1  ;;  %vm2212_vm13 = vcmp.eq.s32.totalorder %v17609_v0, %v16872_v27 }
 0x1e5   : > { %15262 = vmatprep.subr.bf16.mxu1 %v16699_v1  ;;  %vm15245_vm1 = vmpackc.low %vm2212_vm13, %vm2211_vm11  ;;  %vm2356_vm11 = vcmp.eq.s32.totalorder %v17613_v6, %v16905_v36  ;;  %vm2357_vm13 = vcmp.eq.s32.totalorder %v17613_v6, %v16908_v37 }
 0x1e6   : > { %vm15275_vm15 = vmpackc.low %vm2357_vm13, %vm2356_vm11 }
 0x1eb   : > { %15240 = vmatpush3.bf16.xpose.msk.msra.mxu0 %vm15239_vm3, %v16702_v9  ;;  %vm2213_vm3 = vcmp.eq.s32.totalorder %v17609_v0, %v16887_v32 }
 0x1ec   : > { %15264 = vmatpush3.bf16.xpose.msk.msra.mxu1 %vm15263_vm4, %v16702_v9  ;;  %15241 = vmatprep.subr.bf16.mxu0 %v16699_v1  ;;  %vm2214_vm4 = vcmp.eq.s32.totalorder %v17609_v0, %v16890_v33 }
 0x1ed   : > { %v1189_v28 = vpop.f32.mrb[6].mxu0  ;;  %15265 = vmatprep.subr.bf16.mxu1 %v16699_v1  ;;  %vm15248_vm7 = vmpackc.low %vm2214_vm4, %vm2213_vm3  ;;  %vm2358_vm3 = vcmp.eq.s32.totalorder %v17613_v6, %v16923_v40  ;;  %vm2359_vm4 = vcmp.eq.s32.totalorder %v17613_v6, %v16926_v41 }
 0x1ee   : > { %v1193_v30 = vadd.f32 %v1189_v28, %v17558_v50  ;;  %v12900_v31 = vpop.f32.mrb[7].mxu0  ;;  %v1330_v34 = vpop.f32.mrb[6].mxu1  ;;  %v2195_v50 = vmul.f32 %v16520_v48, %v16520_v48  ;;  %vm15278_vm6 = vmpackc.low %vm2359_vm4, %vm2358_vm3  ;;  %v2613_v28 = vadd.f32 %v2612_v22, %v2611_v12  ;;  %v17839_v48 = vld [vmem:[%s16789_s26 + $0x13] ss:$0 sm:$0xff] }
 0x1ef   : > { %v12935_v38 = vpop.f32.mrb[7].mxu1 }
 0x1f0   : > { %v17671_v39 = vadd.f32 %v1330_v34, %v1193_v30  ;;  %v2196_v52 = vmul.f32 %v2195_v50, %v2195_v50  ;;  %v2614_v30 = vrot.slane %v2613_v28, 1 }
 0x1f2   : > { %v2197_v54 = vmul.f32 %v2196_v52, %v2195_v50  ;;  %v2615_v34 = vadd.f32 %v2614_v30, %v2613_v28  ;;  %v9990_v52 = vld [vmem:[%s16814_s30 + $0x4c] sm:$0x7] }
 0x1f3   : > { %15243 = vmatpush3.bf16.xpose.msk.msra.mxu0 %vm15242_vm9, %v16702_v9  ;;  %vm2215_vm9 = vcmp.eq.s32.totalorder %v17609_v0, %v16905_v36 }
 0x1f4   : > { %15267 = vmatpush3.bf16.xpose.msk.msra.mxu1 %vm15266_vm10, %v16702_v9  ;;  %15244 = vmatprep.subr.bf16.mxu0 %v16699_v1  ;;  %vm2216_vm10 = vcmp.eq.s32.totalorder %v17609_v0, %v16908_v37  ;;  %v2198_v58 = vmul.f32 0.5, %v2197_v54  ;;  %v2890_v54 = vmul.f32 %v9990_v52, %v9990_v52 }
 0x1f5   : > { %15268 = vmatprep.subr.bf16.mxu1 %v16699_v1  ;;  %vm15251_vm14 = vmpackc.low %vm2216_vm10, %vm2215_vm9  ;;  %vm2626_vm9 = vcmp.eq.s32.totalorder %v17726_v57, %v16777_v2  ;;  %vm2627_vm10 = vcmp.eq.s32.totalorder %v17726_v57, %v16784_v4 }
 0x1f6   : > { %vm15305_vm13 = vmpackc.low %vm2627_vm10, %vm2626_vm9  ;;  %v2891_v56 = vsel %vm213_vm12, %v2890_v54, 0.0 }
 0x1fb   : > { %15246 = vmatpush3.bf16.xpose.msk.msra.mxu0 %vm15245_vm1, %v16702_v9  ;;  %vm2217_vm1 = vcmp.eq.s32.totalorder %v17609_v0, %v16923_v40 }
 0x1fc   : > { %15270 = vmatpush3.bf16.xpose.msk.msra.mxu1 %vm15269_vm2, %v16702_v9  ;;  %15247 = vmatprep.subr.bf16.mxu0 %v16699_v1  ;;  %vm2218_vm2 = vcmp.eq.s32.totalorder %v17609_v0, %v16926_v41  ;;  %v2468_v0 = vsel %vm213_vm12, %v2467_v62, 0.0 }
 0x1fd   : > { %15271 = vmatprep.subr.bf16.mxu1 %v16699_v1  ;;  %vm15254_vm5 = vmpackc.low %vm2218_vm2, %vm2217_vm1  ;;  %vm2628_vm1 = vcmp.eq.s32.totalorder %v17726_v57, %v16798_v7  ;;  %vm2629_vm2 = vcmp.eq.s32.totalorder %v17726_v57, %v16801_v8  ;;  %v2469_v6 = vrot.slane %v2468_v0, 4 }
 0x1fe   : > { %vm15308_vm4 = vmpackc.low %vm2629_vm2, %vm2628_vm1 }
 0x1ff   : > { %v2470_v11 = vadd.f32 %v2469_v6, %v2468_v0 }
 0x201   : > { %v2471_v16 = vrot.slane %v2470_v11, 2 }
 0x203   : > { %15249 = vmatpush3.bf16.xpose.msk.msra.mxu0 %vm15248_vm7, %v16702_v9  ;;  %vm2485_vm7 = vcmp.eq.s32.totalorder %v17722_v55, %v16777_v2  ;;  %v2472_v25 = vadd.f32 %v2471_v16, %v2470_v11 }
 0x204   : > { %15273 = vmatpush3.bf16.xpose.msk.msra.mxu1 %vm15272_vm8, %v16702_v9  ;;  %15250 = vmatprep.subr.bf16.mxu0 %v16699_v1  ;;  %vm2486_vm8 = vcmp.eq.s32.totalorder %v17722_v55, %v16784_v4 }
 0x205   : > { %15274 = vmatprep.subr.bf16.mxu1 %v16699_v1  ;;  %vm15281_vm11 = vmpackc.low %vm2486_vm8, %vm2485_vm7  ;;  %vm2630_vm7 = vcmp.eq.s32.totalorder %v17726_v57, %v16831_v14  ;;  %vm2631_vm8 = vcmp.eq.s32.totalorder %v17726_v57, %v16834_v15  ;;  %v2473_v29 = vrot.slane %v2472_v25, 1 }
 0x206   : > { %vm15311_vm10 = vmpackc.low %vm2631_vm8, %vm2630_vm7 }
 0x207   : > { %v2474_v31 = vadd.f32 %v2473_v29, %v2472_v25 }
 0x209   : > { %16523 = vrcp.f32 %v2474_v31  ;;  %v17948_v31 = vld [vmem:[%s16789_s26 + $0x14] ss:$0 sm:$0xff] }
 0x20a   : > { %16525 = vrcp.f32 %v2615_v34 }
 0x20b   : > { %15252 = vmatpush3.bf16.xpose.msk.msra.mxu0 %vm15251_vm14, %v16702_v9  ;;  %vm2487_vm14 = vcmp.eq.s32.totalorder %v17722_v55, %v16798_v7 }
 0x20c   : > { %15276 = vmatpush3.bf16.xpose.msk.msra.mxu1 %vm15275_vm15, %v16702_v9  ;;  %15253 = vmatprep.subr.bf16.mxu0 %v16699_v1  ;;  %vm2488_vm15 = vcmp.eq.s32.totalorder %v17722_v55, %v16801_v8 }
 0x20d   : > { %15277 = vmatprep.subr.bf16.mxu1 %v16699_v1  ;;  %vm15284_vm3 = vmpackc.low %vm2488_vm15, %vm2487_vm14  ;;  %vm2632_vm14 = vcmp.eq.s32.totalorder %v17726_v57, %v16851_v20  ;;  %vm2633_vm15 = vcmp.eq.s32.totalorder %v17726_v57, %v16854_v21 }
 0x20e   : > { %vm15314_vm2 = vmpackc.low %vm2633_vm15, %vm2632_vm14 }
 0x213   : > { %15255 = vmatpush3.bf16.xpose.msk.msra.mxu0 %vm15254_vm5, %v16702_v9  ;;  %vm2489_vm5 = vcmp.eq.s32.totalorder %v17722_v55, %v16831_v14  ;;  %v16524_v35 = vpop.eup %16523 }
 0x214   : > { %15279 = vmatpush3.bf16.xpose.msk.msra.mxu1 %vm15278_vm6, %v16702_v9  ;;  %15280 = vmatprep.subr.bf16.mxu0 %v16699_v1  ;;  %vm2490_vm6 = vcmp.eq.s32.totalorder %v17722_v55, %v16834_v15  ;;  %v16526_v38 = vpop.eup %16525 }
 0x215   : > { %15304 = vmatprep.subr.bf16.mxu1 %v16699_v1  ;;  %vm15287_vm9 = vmpackc.low %vm2490_vm6, %vm2489_vm5  ;;  %vm2634_vm5 = vcmp.eq.s32.totalorder %v17726_v57, %v16869_v26  ;;  %vm2635_vm6 = vcmp.eq.s32.totalorder %v17726_v57, %v16872_v27  ;;  %v2618_v42 = vmul.f32 %v16526_v38, %v16526_v38 }
 0x216   : > { %vm15317_vm8 = vmpackc.low %vm2635_vm6, %vm2634_vm5 }
 0x217   : > { %v2619_v44 = vmul.f32 %v2618_v42, %v2618_v42 }
 0x219   : > { %v2620_v47 = vmul.f32 %v2619_v44, %v2618_v42  ;;  %v10025_v42 = vld [vmem:[%s16814_s30 + $0x50] sm:$0x7] }
 0x21a   : > { %13179 = vmatmul.mubr.f32.vlgmr.msra.gmra.mrb[14].mxu0 %v2198_v58  ;;  %v2892_v58 = vrot.slane %v2891_v56, 4  ;;  %v3031_v44 = vmul.f32 %v10025_v42, %v10025_v42 }
 0x21b   : > { %15282 = vmatpush3.bf16.xpose.msk.msra.mxu0 %vm15281_vm11, %v16702_v9  ;;  %13214 = vmatmul.mubr.f32.vlgmr.msra.gmra.mrb[14].mxu1 %v2339_v59  ;;  %vm2491_vm11 = vcmp.eq.s32.totalorder %v17722_v55, %v16851_v20  ;;  %v2621_v50 = vmul.f32 0.5, %v2620_v47 }
 0x21c   : > { %15306 = vmatpush3.bf16.xpose.msk.msra.mxu1 %vm15305_vm13, %v16702_v9  ;;  %15283 = vmatprep.subr.bf16.mxu0 %v16699_v1  ;;  %vm2492_vm13 = vcmp.eq.s32.totalorder %v17722_v55, %v16854_v21  ;;  %v2893_v60 = vadd.f32 %v2892_v58, %v2891_v56 }
 0x21d   : > { %15307 = vmatprep.subr.bf16.mxu1 %v16699_v1  ;;  %13248 = vmatprep.mubr.msk.f32.mxu0 %vm16700_vm0, %v16701_v3  ;;  %vm15290_vm1 = vmpackc.low %vm2492_vm13, %vm2491_vm11  ;;  %vm2636_vm11 = vcmp.eq.s32.totalorder %v17726_v57, %v16887_v32  ;;  %vm2637_vm13 = vcmp.eq.s32.totalorder %v17726_v57, %v16890_v33 }
 0x21e   : > { %13283 = vmatprep.mubr.msk.f32.mxu1 %vm16700_vm0, %v16701_v3  ;;  %vm15320_vm15 = vmpackc.low %vm2637_vm13, %vm2636_vm11  ;;  %v2894_v6 = vrot.slane %v2893_v60, 2 }
 0x223   : > { %15285 = vmatpush3.bf16.xpose.msk.msra.mxu0 %vm15284_vm3, %v16702_v9  ;;  %vm2493_vm3 = vcmp.eq.s32.totalorder %v17722_v55, %v16869_v26 }
 0x224   : > { %15309 = vmatpush3.bf16.xpose.msk.msra.mxu1 %vm15308_vm4, %v16702_v9  ;;  %15286 = vmatprep.subr.bf16.mxu0 %v16699_v1  ;;  %vm2494_vm4 = vcmp.eq.s32.totalorder %v17722_v55, %v16872_v27 }
 0x225   : > { %15310 = vmatprep.subr.bf16.mxu1 %v16699_v1  ;;  %vm15293_vm7 = vmpackc.low %vm2494_vm4, %vm2493_vm3  ;;  %vm2638_vm3 = vcmp.eq.s32.totalorder %v17726_v57, %v16905_v36  ;;  %vm2639_vm4 = vcmp.eq.s32.totalorder %v17726_v57, %v16908_v37 }
 0x226   : > { %vm15323_vm6 = vmpackc.low %vm2639_vm4, %vm2638_vm3 }
 0x22b   : > { %15288 = vmatpush3.bf16.xpose.msk.msra.mxu0 %vm15287_vm9, %v16702_v9  ;;  %vm2495_vm9 = vcmp.eq.s32.totalorder %v17722_v55, %v16887_v32 }
 0x22c   : > { %15312 = vmatpush3.bf16.xpose.msk.msra.mxu1 %vm15311_vm10, %v16702_v9  ;;  %15289 = vmatprep.subr.bf16.mxu0 %v16699_v1  ;;  %vm2496_vm10 = vcmp.eq.s32.totalorder %v17722_v55, %v16890_v33 }
 0x22d   : > { %v1471_v13 = vpop.f32.mrb[8].mxu0  ;;  %15313 = vmatprep.subr.bf16.mxu1 %v16699_v1  ;;  %vm15296_vm14 = vmpackc.low %vm2496_vm10, %vm2495_vm9  ;;  %vm2640_vm9 = vcmp.eq.s32.totalorder %v17726_v57, %v16923_v40  ;;  %vm2641_vm10 = vcmp.eq.s32.totalorder %v17726_v57, %v16926_v41 }
 0x22e   : > { %v1475_v17 = vadd.f32 %v1471_v13, %v17671_v39  ;;  %v12970_v18 = vpop.f32.mrb[9].mxu0  ;;  %v1612_v19 = vpop.f32.mrb[8].mxu1  ;;  %v2477_v39 = vmul.f32 %v16524_v35, %v16524_v35  ;;  %vm15326_vm13 = vmpackc.low %vm2641_vm10, %vm2640_vm9  ;;  %v2895_v13 = vadd.f32 %v2894_v6, %v2893_v60  ;;  %v17952_v35 = vld [vmem:[%s16789_s26 + $0x15] ss:$0 sm:$0xff] }
 0x22f   : > { %v13005_v23 = vpop.f32.mrb[9].mxu1 }
 0x230   : > { %v17784_v24 = vadd.f32 %v1612_v19, %v1475_v17  ;;  %v2478_v43 = vmul.f32 %v2477_v39, %v2477_v39  ;;  %v2896_v17 = vrot.slane %v2895_v13, 1 }
 0x232   : > { %v2479_v45 = vmul.f32 %v2478_v43, %v2477_v39  ;;  %v2897_v19 = vadd.f32 %v2896_v17, %v2895_v13  ;;  %v10060_v43 = vld [vmem:[%s16814_s30 + $0x54] sm:$0x7] }
 0x233   : > { %15291 = vmatpush3.bf16.xpose.msk.msra.mxu0 %vm15290_vm1, %v16702_v9  ;;  %vm2497_vm1 = vcmp.eq.s32.totalorder %v17722_v55, %v16905_v36 }
 0x234   : > { %15315 = vmatpush3.bf16.xpose.msk.msra.mxu1 %vm15314_vm2, %v16702_v9  ;;  %15292 = vmatprep.subr.bf16.mxu0 %v16699_v1  ;;  %vm2498_vm2 = vcmp.eq.s32.totalorder %v17722_v55, %v16908_v37  ;;  %v2480_v49 = vmul.f32 0.5, %v2479_v45  ;;  %v3172_v45 = vmul.f32 %v10060_v43, %v10060_v43 }
 0x235   : > { %15316 = vmatprep.subr.bf16.mxu1 %v16699_v1  ;;  %vm15299_vm5 = vmpackc.low %vm2498_vm2, %vm2497_vm1  ;;  %vm2908_vm1 = vcmp.eq.s32.totalorder %v17839_v48, %v16777_v2  ;;  %vm2909_vm2 = vcmp.eq.s32.totalorder %v17839_v48, %v16784_v4 }
 0x236   : > { %vm15353_vm4 = vmpackc.low %vm2909_vm2, %vm2908_vm1  ;;  %v3173_v47 = vsel %vm213_vm12, %v3172_v45, 0.0 }
 0x23b   : > { %15294 = vmatpush3.bf16.xpose.msk.msra.mxu0 %vm15293_vm7, %v16702_v9  ;;  %vm2499_vm7 = vcmp.eq.s32.totalorder %v17722_v55, %v16923_v40 }
 0x23c   : > { %15318 = vmatpush3.bf16.xpose.msk.msra.mxu1 %vm15317_vm8, %v16702_v9  ;;  %15295 = vmatprep.subr.bf16.mxu0 %v16699_v1  ;;  %vm2500_vm8 = vcmp.eq.s32.totalorder %v17722_v55, %v16926_v41  ;;  %v2750_v55 = vsel %vm213_vm12, %v2749_v53, 0.0 }
 0x23d   : > { %15319 = vmatprep.subr.bf16.mxu1 %v16699_v1  ;;  %vm15302_vm11 = vmpackc.low %vm2500_vm8, %vm2499_vm7  ;;  %vm2910_vm7 = vcmp.eq.s32.totalorder %v17839_v48, %v16798_v7  ;;  %vm2911_vm8 = vcmp.eq.s32.totalorder %v17839_v48, %v16801_v8  ;;  %v2751_v57 = vrot.slane %v2750_v55, 4 }
 0x23e   : > { %vm15356_vm10 = vmpackc.low %vm2911_vm8, %vm2910_vm7 }
 0x23f   : > { %v2752_v59 = vadd.f32 %v2751_v57, %v2750_v55 }
 0x241   : > { %v2753_v62 = vrot.slane %v2752_v59, 2 }
 0x243   : > { %15297 = vmatpush3.bf16.xpose.msk.msra.mxu0 %vm15296_vm14, %v16702_v9  ;;  %vm2767_vm14 = vcmp.eq.s32.totalorder %v17835_v46, %v16777_v2  ;;  %v2754_v12 = vadd.f32 %v2753_v62, %v2752_v59 }
 0x244   : > { %15321 = vmatpush3.bf16.xpose.msk.msra.mxu1 %vm15320_vm15, %v16702_v9  ;;  %15298 = vmatprep.subr.bf16.mxu0 %v16699_v1  ;;  %vm2768_vm15 = vcmp.eq.s32.totalorder %v17835_v46, %v16784_v4 }
 0x245   : > { %15322 = vmatprep.subr.bf16.mxu1 %v16699_v1  ;;  %vm15329_vm3 = vmpackc.low %vm2768_vm15, %vm2767_vm14  ;;  %vm2912_vm14 = vcmp.eq.s32.totalorder %v17839_v48, %v16831_v14  ;;  %vm2913_vm15 = vcmp.eq.s32.totalorder %v17839_v48, %v16834_v15  ;;  %v2755_v16 = vrot.slane %v2754_v12, 1 }
 0x246   : > { %vm15359_vm2 = vmpackc.low %vm2913_vm15, %vm2912_vm14 }
 0x247   : > { %v2756_v18 = vadd.f32 %v2755_v16, %v2754_v12 }
 0x249   : > { %16527 = vrcp.f32 %v2756_v18  ;;  %v18061_v18 = vld [vmem:[%s16789_s26 + $0x16] ss:$0 sm:$0xff] }
 0x24a   : > { %16529 = vrcp.f32 %v2897_v19 }
 0x24b   : > { %15300 = vmatpush3.bf16.xpose.msk.msra.mxu0 %vm15299_vm5, %v16702_v9  ;;  %vm2769_vm5 = vcmp.eq.s32.totalorder %v17835_v46, %v16798_v7 }
 0x24c   : > { %15324 = vmatpush3.bf16.xpose.msk.msra.mxu1 %vm15323_vm6, %v16702_v9  ;;  %15301 = vmatprep.subr.bf16.mxu0 %v16699_v1  ;;  %vm2770_vm6 = vcmp.eq.s32.totalorder %v17835_v46, %v16801_v8 }
 0x24d   : > { %15325 = vmatprep.subr.bf16.mxu1 %v16699_v1  ;;  %vm15332_vm9 = vmpackc.low %vm2770_vm6, %vm2769_vm5  ;;  %vm2914_vm5 = vcmp.eq.s32.totalorder %v17839_v48, %v16851_v20  ;;  %vm2915_vm6 = vcmp.eq.s32.totalorder %v17839_v48, %v16854_v21 }
 0x24e   : > { %vm15362_vm8 = vmpackc.low %vm2915_vm6, %vm2914_vm5 }
 0x253   : > { %15303 = vmatpush3.bf16.xpose.msk.msra.mxu0 %vm15302_vm11, %v16702_v9  ;;  %vm2771_vm11 = vcmp.eq.s32.totalorder %v17835_v46, %v16831_v14  ;;  %v16528_v22 = vpop.eup %16527 }
 0x254   : > { %15327 = vmatpush3.bf16.xpose.msk.msra.mxu1 %vm15326_vm13, %v16702_v9  ;;  %15328 = vmatprep.subr.bf16.mxu0 %v16699_v1  ;;  %vm2772_vm13 = vcmp.eq.s32.totalorder %v17835_v46, %v16834_v15  ;;  %v16530_v23 = vpop.eup %16529 }
 0x255   : > { %15352 = vmatprep.subr.bf16.mxu1 %v16699_v1  ;;  %vm15335_vm1 = vmpackc.low %vm2772_vm13, %vm2771_vm11  ;;  %vm2916_vm11 = vcmp.eq.s32.totalorder %v17839_v48, %v16869_v26  ;;  %vm2917_vm13 = vcmp.eq.s32.totalorder %v17839_v48, %v16872_v27  ;;  %v2900_v25 = vmul.f32 %v16530_v23, %v16530_v23 }
 0x256   : > { %vm15365_vm15 = vmpackc.low %vm2917_vm13, %vm2916_vm11 }
 0x257   : > { %v2901_v29 = vmul.f32 %v2900_v25, %v2900_v25 }
 0x259   : > { %v2902_v34 = vmul.f32 %v2901_v29, %v2900_v25  ;;  %v10095_v25 = vld [vmem:[%s16814_s30 + $0x58] sm:$0x7] }
 0x25a   : > { %13249 = vmatmul.mubr.f32.vlgmr.msra.gmra.mrb[16].mxu0 %v2480_v49  ;;  %v3174_v49 = vrot.slane %v3173_v47, 4  ;;  %v3313_v29 = vmul.f32 %v10095_v25, %v10095_v25 }
 0x25b   : > { %15330 = vmatpush3.bf16.xpose.msk.msra.mxu0 %vm15329_vm3, %v16702_v9  ;;  %13284 = vmatmul.mubr.f32.vlgmr.msra.gmra.mrb[16].mxu1 %v2621_v50  ;;  %vm2773_vm3 = vcmp.eq.s32.totalorder %v17835_v46, %v16851_v20  ;;  %v2903_v39 = vmul.f32 0.5, %v2902_v34 }
 0x25c   : > { %15354 = vmatpush3.bf16.xpose.msk.msra.mxu1 %vm15353_vm4, %v16702_v9  ;;  %15331 = vmatprep.subr.bf16.mxu0 %v16699_v1  ;;  %vm2774_vm4 = vcmp.eq.s32.totalorder %v17835_v46, %v16854_v21  ;;  %v3175_v51 = vadd.f32 %v3174_v49, %v3173_v47 }
 0x25d   : > { %15355 = vmatprep.subr.bf16.mxu1 %v16699_v1  ;;  %13318 = vmatprep.mubr.msk.f32.mxu0 %vm16700_vm0, %v16701_v3  ;;  %vm15338_vm7 = vmpackc.low %vm2774_vm4, %vm2773_vm3  ;;  %vm2918_vm3 = vcmp.eq.s32.totalorder %v17839_v48, %v16887_v32  ;;  %vm2919_vm4 = vcmp.eq.s32.totalorder %v17839_v48, %v16890_v33 }
 0x25e   : > { %13353 = vmatprep.mubr.msk.f32.mxu1 %vm16700_vm0, %v16701_v3  ;;  %vm15368_vm6 = vmpackc.low %vm2919_vm4, %vm2918_vm3  ;;  %v3176_v57 = vrot.slane %v3175_v51, 2 }
 0x263   : > { %15333 = vmatpush3.bf16.xpose.msk.msra.mxu0 %vm15332_vm9, %v16702_v9  ;;  %vm2775_vm9 = vcmp.eq.s32.totalorder %v17835_v46, %v16869_v26 }
 0x264   : > { %15357 = vmatpush3.bf16.xpose.msk.msra.mxu1 %vm15356_vm10, %v16702_v9  ;;  %15334 = vmatprep.subr.bf16.mxu0 %v16699_v1  ;;  %vm2776_vm10 = vcmp.eq.s32.totalorder %v17835_v46, %v16872_v27 }
 0x265   : > { %15358 = vmatprep.subr.bf16.mxu1 %v16699_v1  ;;  %vm15341_vm14 = vmpackc.low %vm2776_vm10, %vm2775_vm9  ;;  %vm2920_vm9 = vcmp.eq.s32.totalorder %v17839_v48, %v16905_v36  ;;  %vm2921_vm10 = vcmp.eq.s32.totalorder %v17839_v48, %v16908_v37 }
 0x266   : > { %vm15371_vm13 = vmpackc.low %vm2921_vm10, %vm2920_vm9 }
 0x26b   : > { %15336 = vmatpush3.bf16.xpose.msk.msra.mxu0 %vm15335_vm1, %v16702_v9  ;;  %vm2777_vm1 = vcmp.eq.s32.totalorder %v17835_v46, %v16887_v32 }
 0x26c   : > { %15360 = vmatpush3.bf16.xpose.msk.msra.mxu1 %vm15359_vm2, %v16702_v9  ;;  %15337 = vmatprep.subr.bf16.mxu0 %v16699_v1  ;;  %vm2778_vm2 = vcmp.eq.s32.totalorder %v17835_v46, %v16890_v33 }
 0x26d   : > { %v1753_v61 = vpop.f32.mrb[10].mxu0  ;;  %15361 = vmatprep.subr.bf16.mxu1 %v16699_v1  ;;  %vm15344_vm5 = vmpackc.low %vm2778_vm2, %vm2777_vm1  ;;  %vm2922_vm1 = vcmp.eq.s32.totalorder %v17839_v48, %v16923_v40  ;;  %vm2923_vm2 = vcmp.eq.s32.totalorder %v17839_v48, %v16926_v41 }
 0x26e   : > { %v1757_v63 = vadd.f32 %v1753_v61, %v17784_v24  ;;  %v13040_v0 = vpop.f32.mrb[11].mxu0  ;;  %v1894_v5 = vpop.f32.mrb[10].mxu1  ;;  %v2759_v24 = vmul.f32 %v16528_v22, %v16528_v22  ;;  %vm15374_vm4 = vmpackc.low %vm2923_vm2, %vm2922_vm1  ;;  %v3177_v61 = vadd.f32 %v3176_v57, %v3175_v51  ;;  %v18065_v22 = vld [vmem:[%s16789_s26 + $0x17] ss:$0 sm:$0xff] }
 0x26f   : > { %v13075_v10 = vpop.f32.mrb[11].mxu1 }
 0x270   : > { %v17897_v11 = vadd.f32 %v1894_v5, %v1757_v63  ;;  %v2760_v28 = vmul.f32 %v2759_v24, %v2759_v24  ;;  %v3178_v63 = vrot.slane %v3177_v61, 1 }
 0x272   : > { %v2761_v30 = vmul.f32 %v2760_v28, %v2759_v24  ;;  %v3179_v5 = vadd.f32 %v3178_v63, %v3177_v61  ;;  %v10130_v28 = vld [vmem:[%s16814_s30 + $0x5c] sm:$0x7] }
 0x273   : > { %15339 = vmatpush3.bf16.xpose.msk.msra.mxu0 %vm15338_vm7, %v16702_v9  ;;  %vm2779_vm7 = vcmp.eq.s32.totalorder %v17835_v46, %v16905_v36 }
 0x274   : > { %15363 = vmatpush3.bf16.xpose.msk.msra.mxu1 %vm15362_vm8, %v16702_v9  ;;  %15340 = vmatprep.subr.bf16.mxu0 %v16699_v1  ;;  %vm2780_vm8 = vcmp.eq.s32.totalorder %v17835_v46, %v16908_v37  ;;  %v2762_v38 = vmul.f32 0.5, %v2761_v30  ;;  %v3454_v30 = vmul.f32 %v10130_v28, %v10130_v28 }
 0x275   : > { %15364 = vmatprep.subr.bf16.mxu1 %v16699_v1  ;;  %vm15347_vm11 = vmpackc.low %vm2780_vm8, %vm2779_vm7  ;;  %vm3190_vm7 = vcmp.eq.s32.totalorder %v17952_v35, %v16777_v2  ;;  %vm3191_vm8 = vcmp.eq.s32.totalorder %v17952_v35, %v16784_v4 }
 0x276   : > { %vm15401_vm10 = vmpackc.low %vm3191_vm8, %vm3190_vm7  ;;  %v3455_v34 = vsel %vm213_vm12, %v3454_v30, 0.0 }
 0x27b   : > { %15342 = vmatpush3.bf16.xpose.msk.msra.mxu0 %vm15341_vm14, %v16702_v9  ;;  %vm2781_vm14 = vcmp.eq.s32.totalorder %v17835_v46, %v16923_v40 }
 0x27c   : > { %15366 = vmatpush3.bf16.xpose.msk.msra.mxu1 %vm15365_vm15, %v16702_v9  ;;  %15343 = vmatprep.subr.bf16.mxu0 %v16699_v1  ;;  %vm2782_vm15 = vcmp.eq.s32.totalorder %v17835_v46, %v16926_v41  ;;  %v3032_v46 = vsel %vm213_vm12, %v3031_v44, 0.0 }
 0x27d   : > { %15367 = vmatprep.subr.bf16.mxu1 %v16699_v1  ;;  %vm15350_vm3 = vmpackc.low %vm2782_vm15, %vm2781_vm14  ;;  %vm3192_vm14 = vcmp.eq.s32.totalorder %v17952_v35, %v16798_v7  ;;  %vm3193_vm15 = vcmp.eq.s32.totalorder %v17952_v35, %v16801_v8  ;;  %v3033_v48 = vrot.slane %v3032_v46, 4 }
 0x27e   : > { %vm15404_vm2 = vmpackc.low %vm3193_vm15, %vm3192_vm14 }
 0x27f   : > { %v3034_v50 = vadd.f32 %v3033_v48, %v3032_v46 }
 0x281   : > { %v3035_v53 = vrot.slane %v3034_v50, 2 }
 0x283   : > { %15345 = vmatpush3.bf16.xpose.msk.msra.mxu0 %vm15344_vm5, %v16702_v9  ;;  %vm3049_vm5 = vcmp.eq.s32.totalorder %v17948_v31, %v16777_v2  ;;  %v3036_v60 = vadd.f32 %v3035_v53, %v3034_v50 }
 0x284   : > { %15369 = vmatpush3.bf16.xpose.msk.msra.mxu1 %vm15368_vm6, %v16702_v9  ;;  %15346 = vmatprep.subr.bf16.mxu0 %v16699_v1  ;;  %vm3050_vm6 = vcmp.eq.s32.totalorder %v17948_v31, %v16784_v4 }
 0x285   : > { %15370 = vmatprep.subr.bf16.mxu1 %v16699_v1  ;;  %vm15377_vm9 = vmpackc.low %vm3050_vm6, %vm3049_vm5  ;;  %vm3194_vm5 = vcmp.eq.s32.totalorder %v17952_v35, %v16831_v14  ;;  %vm3195_vm6 = vcmp.eq.s32.totalorder %v17952_v35, %v16834_v15  ;;  %v3037_v62 = vrot.slane %v3036_v60, 1 }
 0x286   : > { %vm15407_vm8 = vmpackc.low %vm3195_vm6, %vm3194_vm5 }
 0x287   : > { %v3038_v0 = vadd.f32 %v3037_v62, %v3036_v60 }
 0x289   : > { %16531 = vrcp.f32 %v3038_v0  ;;  %v18174_v0 = vld [vmem:[%s16789_s26 + $0x18] ss:$0 sm:$0xff] }
 0x28a   : > { %16533 = vrcp.f32 %v3179_v5 }
 0x28b   : > { %15348 = vmatpush3.bf16.xpose.msk.msra.mxu0 %vm15347_vm11, %v16702_v9  ;;  %vm3051_vm11 = vcmp.eq.s32.totalorder %v17948_v31, %v16798_v7 }
 0x28c   : > { %15372 = vmatpush3.bf16.xpose.msk.msra.mxu1 %vm15371_vm13, %v16702_v9  ;;  %15349 = vmatprep.subr.bf16.mxu0 %v16699_v1  ;;  %vm3052_vm13 = vcmp.eq.s32.totalorder %v17948_v31, %v16801_v8 }
 0x28d   : > { %15373 = vmatprep.subr.bf16.mxu1 %v16699_v1  ;;  %vm15380_vm1 = vmpackc.low %vm3052_vm13, %vm3051_vm11  ;;  %vm3196_vm11 = vcmp.eq.s32.totalorder %v17952_v35, %v16851_v20  ;;  %vm3197_vm13 = vcmp.eq.s32.totalorder %v17952_v35, %v16854_v21 }
 0x28e   : > { %vm15410_vm15 = vmpackc.low %vm3197_vm13, %vm3196_vm11 }
 0x293   : > { %15351 = vmatpush3.bf16.xpose.msk.msra.mxu0 %vm15350_vm3, %v16702_v9  ;;  %vm3053_vm3 = vcmp.eq.s32.totalorder %v17948_v31, %v16831_v14  ;;  %v16532_v6 = vpop.eup %16531 }
 0x294   : > { %15375 = vmatpush3.bf16.xpose.msk.msra.mxu1 %vm15374_vm4, %v16702_v9  ;;  %15376 = vmatprep.subr.bf16.mxu0 %v16699_v1  ;;  %vm3054_vm4 = vcmp.eq.s32.totalorder %v17948_v31, %v16834_v15  ;;  %v16534_v10 = vpop.eup %16533 }
 0x295   : > { %15400 = vmatprep.subr.bf16.mxu1 %v16699_v1  ;;  %vm15383_vm7 = vmpackc.low %vm3054_vm4, %vm3053_vm3  ;;  %vm3198_vm3 = vcmp.eq.s32.totalorder %v17952_v35, %v16869_v26  ;;  %vm3199_vm4 = vcmp.eq.s32.totalorder %v17952_v35, %v16872_v27  ;;  %v3182_v12 = vmul.f32 %v16534_v10, %v16534_v10 }
 0x296   : > { %vm15413_vm6 = vmpackc.low %vm3199_vm4, %vm3198_vm3 }
 0x297   : > { %v3183_v16 = vmul.f32 %v3182_v12, %v3182_v12 }
 0x299   : > { %v3184_v19 = vmul.f32 %v3183_v16, %v3182_v12  ;;  %v10165_v12 = vld [vmem:[%s16814_s30 + $0x60] sm:$0x7] }
 0x29a   : > { %13319 = vmatmul.mubr.f32.vlgmr.msra.gmra.mrb[18].mxu0 %v2762_v38  ;;  %v3456_v38 = vrot.slane %v3455_v34, 4  ;;  %v3595_v16 = vmul.f32 %v10165_v12, %v10165_v12 }
 0x29b   : > { %15378 = vmatpush3.bf16.xpose.msk.msra.mxu0 %vm15377_vm9, %v16702_v9  ;;  %13354 = vmatmul.mubr.f32.vlgmr.msra.gmra.mrb[18].mxu1 %v2903_v39  ;;  %vm3055_vm9 = vcmp.eq.s32.totalorder %v17948_v31, %v16851_v20  ;;  %v3185_v24 = vmul.f32 0.5, %v3184_v19 }
 0x29c   : > { %15402 = vmatpush3.bf16.xpose.msk.msra.mxu1 %vm15401_vm10, %v16702_v9  ;;  %15379 = vmatprep.subr.bf16.mxu0 %v16699_v1  ;;  %vm3056_vm10 = vcmp.eq.s32.totalorder %v17948_v31, %v16854_v21  ;;  %v3457_v42 = vadd.f32 %v3456_v38, %v3455_v34 }
 0x29d   : > { %15403 = vmatprep.subr.bf16.mxu1 %v16699_v1  ;;  %13388 = vmatprep.mubr.msk.f32.mxu0 %vm16700_vm0, %v16701_v3  ;;  %vm15386_vm14 = vmpackc.low %vm3056_vm10, %vm3055_vm9  ;;  %vm3200_vm9 = vcmp.eq.s32.totalorder %v17952_v35, %v16887_v32  ;;  %vm3201_vm10 = vcmp.eq.s32.totalorder %v17952_v35, %v16890_v33 }
 0x29e   : > { %13423 = vmatprep.mubr.msk.f32.mxu1 %vm16700_vm0, %v16701_v3  ;;  %vm15416_vm13 = vmpackc.low %vm3201_vm10, %vm3200_vm9  ;;  %v3458_v48 = vrot.slane %v3457_v42, 2 }
 0x2a3   : > { %15381 = vmatpush3.bf16.xpose.msk.msra.mxu0 %vm15380_vm1, %v16702_v9  ;;  %vm3057_vm1 = vcmp.eq.s32.totalorder %v17948_v31, %v16869_v26 }
 0x2a4   : > { %15405 = vmatpush3.bf16.xpose.msk.msra.mxu1 %vm15404_vm2, %v16702_v9  ;;  %15382 = vmatprep.subr.bf16.mxu0 %v16699_v1  ;;  %vm3058_vm2 = vcmp.eq.s32.totalorder %v17948_v31, %v16872_v27 }
 0x2a5   : > { %15406 = vmatprep.subr.bf16.mxu1 %v16699_v1  ;;  %vm15389_vm5 = vmpackc.low %vm3058_vm2, %vm3057_vm1  ;;  %vm3202_vm1 = vcmp.eq.s32.totalorder %v17952_v35, %v16905_v36  ;;  %vm3203_vm2 = vcmp.eq.s32.totalorder %v17952_v35, %v16908_v37 }
 0x2a6   : > { %vm15419_vm4 = vmpackc.low %vm3203_vm2, %vm3202_vm1 }
 0x2ab   : > { %15384 = vmatpush3.bf16.xpose.msk.msra.mxu0 %vm15383_vm7, %v16702_v9  ;;  %vm3059_vm7 = vcmp.eq.s32.totalorder %v17948_v31, %v16887_v32 }
 0x2ac   : > { %15408 = vmatpush3.bf16.xpose.msk.msra.mxu1 %vm15407_vm8, %v16702_v9  ;;  %15385 = vmatprep.subr.bf16.mxu0 %v16699_v1  ;;  %vm3060_vm8 = vcmp.eq.s32.totalorder %v17948_v31, %v16890_v33 }
 0x2ad   : > { %v2035_v52 = vpop.f32.mrb[12].mxu0  ;;  %15409 = vmatprep.subr.bf16.mxu1 %v16699_v1  ;;  %vm15392_vm11 = vmpackc.low %vm3060_vm8, %vm3059_vm7  ;;  %vm3204_vm7 = vcmp.eq.s32.totalorder %v17952_v35, %v16923_v40  ;;  %vm3205_vm8 = vcmp.eq.s32.totalorder %v17952_v35, %v16926_v41 }
 0x2ae   : > { %v2039_v54 = vadd.f32 %v2035_v52, %v17897_v11  ;;  %v13110_v55 = vpop.f32.mrb[13].mxu0  ;;  %v2176_v56 = vpop.f32.mrb[12].mxu1  ;;  %v3041_v11 = vmul.f32 %v16532_v6, %v16532_v6  ;;  %vm15422_vm10 = vmpackc.low %vm3205_vm8, %vm3204_vm7  ;;  %v3459_v52 = vadd.f32 %v3458_v48, %v3457_v42  ;;  %v18178_v6 = vld [vmem:[%s16789_s26 + $0x19] ss:$0 sm:$0xff] }
 0x2af   : > { %v13145_v58 = vpop.f32.mrb[13].mxu1 }
 0x2b0   : > { %v18010_v59 = vadd.f32 %v2176_v56, %v2039_v54  ;;  %v3042_v13 = vmul.f32 %v3041_v11, %v3041_v11  ;;  %v3460_v54 = vrot.slane %v3459_v52, 1 }
 0x2b2   : > { %v3043_v17 = vmul.f32 %v3042_v13, %v3041_v11  ;;  %v3461_v56 = vadd.f32 %v3460_v54, %v3459_v52  ;;  %v10200_v13 = vld [vmem:[%s16814_s30 + $0x64] sm:$0x7] }
 0x2b3   : > { %15387 = vmatpush3.bf16.xpose.msk.msra.mxu0 %vm15386_vm14, %v16702_v9  ;;  %vm3061_vm14 = vcmp.eq.s32.totalorder %v17948_v31, %v16905_v36 }
 0x2b4   : > { %15411 = vmatpush3.bf16.xpose.msk.msra.mxu1 %vm15410_vm15, %v16702_v9  ;;  %15388 = vmatprep.subr.bf16.mxu0 %v16699_v1  ;;  %vm3062_vm15 = vcmp.eq.s32.totalorder %v17948_v31, %v16908_v37  ;;  %v3044_v23 = vmul.f32 0.5, %v3043_v17  ;;  %v3736_v17 = vmul.f32 %v10200_v13, %v10200_v13 }
 0x2b5   : > { %15412 = vmatprep.subr.bf16.mxu1 %v16699_v1  ;;  %vm15395_vm3 = vmpackc.low %vm3062_vm15, %vm3061_vm14  ;;  %vm3472_vm14 = vcmp.eq.s32.totalorder %v18065_v22, %v16777_v2  ;;  %vm3473_vm15 = vcmp.eq.s32.totalorder %v18065_v22, %v16784_v4 }
 0x2b6   : > { %vm15449_vm2 = vmpackc.low %vm3473_vm15, %vm3472_vm14  ;;  %v3737_v19 = vsel %vm213_vm12, %v3736_v17, 0.0 }
 0x2bb   : > { %15390 = vmatpush3.bf16.xpose.msk.msra.mxu0 %vm15389_vm5, %v16702_v9  ;;  %vm3063_vm5 = vcmp.eq.s32.totalorder %v17948_v31, %v16923_v40 }
 0x2bc   : > { %15414 = vmatpush3.bf16.xpose.msk.msra.mxu1 %vm15413_vm6, %v16702_v9  ;;  %15391 = vmatprep.subr.bf16.mxu0 %v16699_v1  ;;  %vm3064_vm6 = vcmp.eq.s32.totalorder %v17948_v31, %v16926_v41  ;;  %v3314_v31 = vsel %vm213_vm12, %v3313_v29, 0.0 }
 0x2bd   : > { %15415 = vmatprep.subr.bf16.mxu1 %v16699_v1  ;;  %vm15398_vm9 = vmpackc.low %vm3064_vm6, %vm3063_vm5  ;;  %vm3474_vm5 = vcmp.eq.s32.totalorder %v18065_v22, %v16798_v7  ;;  %vm3475_vm6 = vcmp.eq.s32.totalorder %v18065_v22, %v16801_v8  ;;  %v3315_v35 = vrot.slane %v3314_v31, 4 }
 0x2be   : > { %vm15452_vm8 = vmpackc.low %vm3475_vm6, %vm3474_vm5 }
 0x2bf   : > { %v3316_v39 = vadd.f32 %v3315_v35, %v3314_v31 }
 0x2c1   : > { %v3317_v44 = vrot.slane %v3316_v39, 2 }
 0x2c3   : > { %15393 = vmatpush3.bf16.xpose.msk.msra.mxu0 %vm15392_vm11, %v16702_v9  ;;  %vm3331_vm11 = vcmp.eq.s32.totalorder %v18061_v18, %v16777_v2  ;;  %v3318_v51 = vadd.f32 %v3317_v44, %v3316_v39 }
 0x2c4   : > { %15417 = vmatpush3.bf16.xpose.msk.msra.mxu1 %vm15416_vm13, %v16702_v9  ;;  %15394 = vmatprep.subr.bf16.mxu0 %v16699_v1  ;;  %vm3332_vm13 = vcmp.eq.s32.totalorder %v18061_v18, %v16784_v4 }
 0x2c5   : > { %15418 = vmatprep.subr.bf16.mxu1 %v16699_v1  ;;  %vm15425_vm1 = vmpackc.low %vm3332_vm13, %vm3331_vm11  ;;  %vm3476_vm11 = vcmp.eq.s32.totalorder %v18065_v22, %v16831_v14  ;;  %vm3477_vm13 = vcmp.eq.s32.totalorder %v18065_v22, %v16834_v15  ;;  %v3319_v53 = vrot.slane %v3318_v51, 1 }
 0x2c6   : > { %vm15455_vm15 = vmpackc.low %vm3477_vm13, %vm3476_vm11 }
 0x2c7   : > { %v3320_v55 = vadd.f32 %v3319_v53, %v3318_v51 }
 0x2c9   : > { %16535 = vrcp.f32 %v3320_v55  ;;  %v18287_v55 = vld [vmem:[%s16789_s26 + $0x1a] ss:$0 sm:$0xff] }
 0x2ca   : > { %16537 = vrcp.f32 %v3461_v56 }
 0x2cb   : > { %15396 = vmatpush3.bf16.xpose.msk.msra.mxu0 %vm15395_vm3, %v16702_v9  ;;  %vm3333_vm3 = vcmp.eq.s32.totalorder %v18061_v18, %v16798_v7 }
 0x2cc   : > { %15420 = vmatpush3.bf16.xpose.msk.msra.mxu1 %vm15419_vm4, %v16702_v9  ;;  %15397 = vmatprep.subr.bf16.mxu0 %v16699_v1  ;;  %vm3334_vm4 = vcmp.eq.s32.totalorder %v18061_v18, %v16801_v8 }
 0x2cd   : > { %15421 = vmatprep.subr.bf16.mxu1 %v16699_v1  ;;  %vm15428_vm7 = vmpackc.low %vm3334_vm4, %vm3333_vm3  ;;  %vm3478_vm3 = vcmp.eq.s32.totalorder %v18065_v22, %v16851_v20  ;;  %vm3479_vm4 = vcmp.eq.s32.totalorder %v18065_v22, %v16854_v21 }
 0x2ce   : > { %vm15458_vm6 = vmpackc.low %vm3479_vm4, %vm3478_vm3 }
 0x2d3   : > { %15399 = vmatpush3.bf16.xpose.msk.msra.mxu0 %vm15398_vm9, %v16702_v9  ;;  %vm3335_vm9 = vcmp.eq.s32.totalorder %v18061_v18, %v16831_v14  ;;  %v16536_v57 = vpop.eup %16535 }
 0x2d4   : > { %15423 = vmatpush3.bf16.xpose.msk.msra.mxu1 %vm15422_vm10, %v16702_v9  ;;  %15424 = vmatprep.subr.bf16.mxu0 %v16699_v1  ;;  %vm3336_vm10 = vcmp.eq.s32.totalorder %v18061_v18, %v16834_v15  ;;  %v16538_v58 = vpop.eup %16537 }
 0x2d5   : > { %15448 = vmatprep.subr.bf16.mxu1 %v16699_v1  ;;  %vm15431_vm14 = vmpackc.low %vm3336_vm10, %vm3335_vm9  ;;  %vm3480_vm9 = vcmp.eq.s32.totalorder %v18065_v22, %v16869_v26  ;;  %vm3481_vm10 = vcmp.eq.s32.totalorder %v18065_v22, %v16872_v27  ;;  %v3464_v60 = vmul.f32 %v16538_v58, %v16538_v58 }
 0x2d6   : > { %vm15461_vm13 = vmpackc.low %vm3481_vm10, %vm3480_vm9 }
 0x2d7   : > { %v3465_v62 = vmul.f32 %v3464_v60, %v3464_v60 }
 0x2d9   : > { %v3466_v5 = vmul.f32 %v3465_v62, %v3464_v60  ;;  %v10235_v60 = vld [vmem:[%s16814_s30 + $0x68] sm:$0x7] }
 0x2da   : > { %13389 = vmatmul.mubr.f32.vlgmr.msra.gmra.mrb[20].mxu0 %v3044_v23  ;;  %v3738_v23 = vrot.slane %v3737_v19, 4  ;;  %v3877_v62 = vmul.f32 %v10235_v60, %v10235_v60 }
 0x2db   : > { %15426 = vmatpush3.bf16.xpose.msk.msra.mxu0 %vm15425_vm1, %v16702_v9  ;;  %13424 = vmatmul.mubr.f32.vlgmr.msra.gmra.mrb[20].mxu1 %v3185_v24  ;;  %vm3337_vm1 = vcmp.eq.s32.totalorder %v18061_v18, %v16851_v20  ;;  %v3467_v11 = vmul.f32 0.5, %v3466_v5 }
 0x2dc   : > { %15450 = vmatpush3.bf16.xpose.msk.msra.mxu1 %vm15449_vm2, %v16702_v9  ;;  %15427 = vmatprep.subr.bf16.mxu0 %v16699_v1  ;;  %vm3338_vm2 = vcmp.eq.s32.totalorder %v18061_v18, %v16854_v21  ;;  %v3739_v25 = vadd.f32 %v3738_v23, %v3737_v19 }
 0x2dd   : > { %15451 = vmatprep.subr.bf16.mxu1 %v16699_v1  ;;  %13458 = vmatprep.mubr.msk.f32.mxu0 %vm16700_vm0, %v16701_v3  ;;  %vm15434_vm5 = vmpackc.low %vm3338_vm2, %vm3337_vm1  ;;  %vm3482_vm1 = vcmp.eq.s32.totalorder %v18065_v22, %v16887_v32  ;;  %vm3483_vm2 = vcmp.eq.s32.totalorder %v18065_v22, %v16890_v33 }
 0x2de   : > { %13493 = vmatprep.mubr.msk.f32.mxu1 %vm16700_vm0, %v16701_v3  ;;  %vm15464_vm4 = vmpackc.low %vm3483_vm2, %vm3482_vm1  ;;  %v3740_v35 = vrot.slane %v3739_v25, 2 }
 0x2e3   : > { %15429 = vmatpush3.bf16.xpose.msk.msra.mxu0 %vm15428_vm7, %v16702_v9  ;;  %vm3339_vm7 = vcmp.eq.s32.totalorder %v18061_v18, %v16869_v26 }
 0x2e4   : > { %15453 = vmatpush3.bf16.xpose.msk.msra.mxu1 %vm15452_vm8, %v16702_v9  ;;  %15430 = vmatprep.subr.bf16.mxu0 %v16699_v1  ;;  %vm3340_vm8 = vcmp.eq.s32.totalorder %v18061_v18, %v16872_v27 }
 0x2e5   : > { %15454 = vmatprep.subr.bf16.mxu1 %v16699_v1  ;;  %vm15437_vm11 = vmpackc.low %vm3340_vm8, %vm3339_vm7  ;;  %vm3484_vm7 = vcmp.eq.s32.totalorder %v18065_v22, %v16905_v36  ;;  %vm3485_vm8 = vcmp.eq.s32.totalorder %v18065_v22, %v16908_v37 }
 0x2e6   : > { %vm15467_vm10 = vmpackc.low %vm3485_vm8, %vm3484_vm7 }
 0x2eb   : > { %15432 = vmatpush3.bf16.xpose.msk.msra.mxu0 %vm15431_vm14, %v16702_v9  ;;  %vm3341_vm14 = vcmp.eq.s32.totalorder %v18061_v18, %v16887_v32 }
 0x2ec   : > { %15456 = vmatpush3.bf16.xpose.msk.msra.mxu1 %vm15455_vm15, %v16702_v9  ;;  %15433 = vmatprep.subr.bf16.mxu0 %v16699_v1  ;;  %vm3342_vm15 = vcmp.eq.s32.totalorder %v18061_v18, %v16890_v33 }
 0x2ed   : > { %v2317_v43 = vpop.f32.mrb[14].mxu0  ;;  %15457 = vmatprep.subr.bf16.mxu1 %v16699_v1  ;;  %vm15440_vm3 = vmpackc.low %vm3342_vm15, %vm3341_vm14  ;;  %vm3486_vm14 = vcmp.eq.s32.totalorder %v18065_v22, %v16923_v40  ;;  %vm3487_vm15 = vcmp.eq.s32.totalorder %v18065_v22, %v16926_v41 }
 0x2ee   : > { %v2321_v45 = vadd.f32 %v2317_v43, %v18010_v59  ;;  %v13180_v46 = vpop.f32.mrb[15].mxu0  ;;  %v2458_v47 = vpop.f32.mrb[14].mxu1  ;;  %v3323_v59 = vmul.f32 %v16536_v57, %v16536_v57  ;;  %vm15470_vm2 = vmpackc.low %vm3487_vm15, %vm3486_vm14  ;;  %v3741_v43 = vadd.f32 %v3740_v35, %v3739_v25  ;;  %v18291_v57 = vld [vmem:[%s16789_s26 + $0x1b] ss:$0 sm:$0xff] }
 0x2ef   : > { %v13215_v49 = vpop.f32.mrb[15].mxu1 }
 0x2f0   : > { %v18123_v50 = vadd.f32 %v2458_v47, %v2321_v45  ;;  %v3324_v61 = vmul.f32 %v3323_v59, %v3323_v59  ;;  %v3742_v45 = vrot.slane %v3741_v43, 1 }
 0x2f2   : > { %v3325_v63 = vmul.f32 %v3324_v61, %v3323_v59  ;;  %v3743_v47 = vadd.f32 %v3742_v45, %v3741_v43  ;;  %v10270_v61 = vld [vmem:[%s16814_s30 + $0x6c] sm:$0x7] }
 0x2f3   : > { %15435 = vmatpush3.bf16.xpose.msk.msra.mxu0 %vm15434_vm5, %v16702_v9  ;;  %vm3343_vm5 = vcmp.eq.s32.totalorder %v18061_v18, %v16905_v36 }
 0x2f4   : > { %15459 = vmatpush3.bf16.xpose.msk.msra.mxu1 %vm15458_vm6, %v16702_v9  ;;  %15436 = vmatprep.subr.bf16.mxu0 %v16699_v1  ;;  %vm3344_vm6 = vcmp.eq.s32.totalorder %v18061_v18, %v16908_v37  ;;  %v3326_v10 = vmul.f32 0.5, %v3325_v63  ;;  %v4018_v63 = vmul.f32 %v10270_v61, %v10270_v61 }
 0x2f5   : > { %15460 = vmatprep.subr.bf16.mxu1 %v16699_v1  ;;  %vm15443_vm9 = vmpackc.low %vm3344_vm6, %vm3343_vm5  ;;  %vm3754_vm5 = vcmp.eq.s32.totalorder %v18178_v6, %v16777_v2  ;;  %vm3755_vm6 = vcmp.eq.s32.totalorder %v18178_v6, %v16784_v4 }
 0x2f6   : > { %vm15497_vm8 = vmpackc.low %vm3755_vm6, %vm3754_vm5  ;;  %v4019_v5 = vsel %vm213_vm12, %v4018_v63, 0.0 }
 0x2fb   : > { %15438 = vmatpush3.bf16.xpose.msk.msra.mxu0 %vm15437_vm11, %v16702_v9  ;;  %vm3345_vm11 = vcmp.eq.s32.totalorder %v18061_v18, %v16923_v40 }
 0x2fc   : > { %15462 = vmatpush3.bf16.xpose.msk.msra.mxu1 %vm15461_vm13, %v16702_v9  ;;  %15439 = vmatprep.subr.bf16.mxu0 %v16699_v1  ;;  %vm3346_vm13 = vcmp.eq.s32.totalorder %v18061_v18, %v16926_v41  ;;  %v3596_v18 = vsel %vm213_vm12, %v3595_v16, 0.0 }
 0x2fd   : > { %15463 = vmatprep.subr.bf16.mxu1 %v16699_v1  ;;  %vm15446_vm1 = vmpackc.low %vm3346_vm13, %vm3345_vm11  ;;  %vm3756_vm11 = vcmp.eq.s32.totalorder %v18178_v6, %v16798_v7  ;;  %vm3757_vm13 = vcmp.eq.s32.totalorder %v18178_v6, %v16801_v8  ;;  %v3597_v22 = vrot.slane %v3596_v18, 4 }
 0x2fe   : > { %vm15500_vm15 = vmpackc.low %vm3757_vm13, %vm3756_vm11 }
 0x2ff   : > { %v3598_v24 = vadd.f32 %v3597_v22, %v3596_v18 }
 0x301   : > { %v3599_v29 = vrot.slane %v3598_v24, 2 }
 0x303   : > { %15441 = vmatpush3.bf16.xpose.msk.msra.mxu0 %vm15440_vm3, %v16702_v9  ;;  %vm3613_vm3 = vcmp.eq.s32.totalorder %v18174_v0, %v16777_v2  ;;  %v3600_v42 = vadd.f32 %v3599_v29, %v3598_v24 }
 0x304   : > { %15465 = vmatpush3.bf16.xpose.msk.msra.mxu1 %vm15464_vm4, %v16702_v9  ;;  %15442 = vmatprep.subr.bf16.mxu0 %v16699_v1  ;;  %vm3614_vm4 = vcmp.eq.s32.totalorder %v18174_v0, %v16784_v4 }
 0x305   : > { %15466 = vmatprep.subr.bf16.mxu1 %v16699_v1  ;;  %vm15473_vm7 = vmpackc.low %vm3614_vm4, %vm3613_vm3  ;;  %vm3758_vm3 = vcmp.eq.s32.totalorder %v18178_v6, %v16831_v14  ;;  %vm3759_vm4 = vcmp.eq.s32.totalorder %v18178_v6, %v16834_v15  ;;  %v3601_v44 = vrot.slane %v3600_v42, 1 }
 0x306   : > { %vm15503_vm6 = vmpackc.low %vm3759_vm4, %vm3758_vm3 }
 0x307   : > { %v3602_v46 = vadd.f32 %v3601_v44, %v3600_v42 }
 0x309   : > { %16539 = vrcp.f32 %v3602_v46  ;;  %v18400_v46 = vld [vmem:[%s16789_s26 + $0x1c] ss:$0 sm:$0xff] }
 0x30a   : > { %16541 = vrcp.f32 %v3743_v47 }
 0x30b   : > { %15444 = vmatpush3.bf16.xpose.msk.msra.mxu0 %vm15443_vm9, %v16702_v9  ;;  %vm3615_vm9 = vcmp.eq.s32.totalorder %v18174_v0, %v16798_v7 }
 0x30c   : > { %15468 = vmatpush3.bf16.xpose.msk.msra.mxu1 %vm15467_vm10, %v16702_v9  ;;  %15445 = vmatprep.subr.bf16.mxu0 %v16699_v1  ;;  %vm3616_vm10 = vcmp.eq.s32.totalorder %v18174_v0, %v16801_v8 }
 0x30d   : > { %15469 = vmatprep.subr.bf16.mxu1 %v16699_v1  ;;  %vm15476_vm14 = vmpackc.low %vm3616_vm10, %vm3615_vm9  ;;  %vm3760_vm9 = vcmp.eq.s32.totalorder %v18178_v6, %v16851_v20  ;;  %vm3761_vm10 = vcmp.eq.s32.totalorder %v18178_v6, %v16854_v21 }
 0x30e   : > { %vm15506_vm13 = vmpackc.low %vm3761_vm10, %vm3760_vm9 }
 0x313   : > { %15447 = vmatpush3.bf16.xpose.msk.msra.mxu0 %vm15446_vm1, %v16702_v9  ;;  %vm3617_vm1 = vcmp.eq.s32.totalorder %v18174_v0, %v16831_v14  ;;  %v16540_v48 = vpop.eup %16539 }
 0x314   : > { %15471 = vmatpush3.bf16.xpose.msk.msra.mxu1 %vm15470_vm2, %v16702_v9  ;;  %15472 = vmatprep.subr.bf16.mxu0 %v16699_v1  ;;  %vm3618_vm2 = vcmp.eq.s32.totalorder %v18174_v0, %v16834_v15  ;;  %v16542_v49 = vpop.eup %16541 }
 0x315   : > { %15496 = vmatprep.subr.bf16.mxu1 %v16699_v1  ;;  %vm15479_vm5 = vmpackc.low %vm3618_vm2, %vm3617_vm1  ;;  %vm3762_vm1 = vcmp.eq.s32.totalorder %v18178_v6, %v16869_v26  ;;  %vm3763_vm2 = vcmp.eq.s32.totalorder %v18178_v6, %v16872_v27  ;;  %v3746_v51 = vmul.f32 %v16542_v49, %v16542_v49 }
 0x316   : > { %vm15509_vm4 = vmpackc.low %vm3763_vm2, %vm3762_vm1 }
 0x317   : > { %v3747_v53 = vmul.f32 %v3746_v51, %v3746_v51 }
 0x319   : > { %v3748_v56 = vmul.f32 %v3747_v53, %v3746_v51  ;;  %v10305_v51 = vld [vmem:[%s16814_s30 + $0x70] sm:$0x7] }
 0x31a   : > { %13459 = vmatmul.mubr.f32.vlgmr.msra.gmra.mrb[22].mxu0 %v3326_v10  ;;  %v4020_v10 = vrot.slane %v4019_v5, 4  ;;  %v4159_v53 = vmul.f32 %v10305_v51, %v10305_v51 }
 0x31b   : > { %15474 = vmatpush3.bf16.xpose.msk.msra.mxu0 %vm15473_vm7, %v16702_v9  ;;  %13494 = vmatmul.mubr.f32.vlgmr.msra.gmra.mrb[22].mxu1 %v3467_v11  ;;  %vm3619_vm7 = vcmp.eq.s32.totalorder %v18174_v0, %v16851_v20  ;;  %v3749_v59 = vmul.f32 0.5, %v3748_v56 }
 0x31c   : > { %15498 = vmatpush3.bf16.xpose.msk.msra.mxu1 %vm15497_vm8, %v16702_v9  ;;  %15475 = vmatprep.subr.bf16.mxu0 %v16699_v1  ;;  %vm3620_vm8 = vcmp.eq.s32.totalorder %v18174_v0, %v16854_v21  ;;  %v4021_v12 = vadd.f32 %v4020_v10, %v4019_v5 }
 0x31d   : > { %15499 = vmatprep.subr.bf16.mxu1 %v16699_v1  ;;  %13528 = vmatprep.mubr.msk.f32.mxu0 %vm16700_vm0, %v16701_v3  ;;  %vm15482_vm11 = vmpackc.low %vm3620_vm8, %vm3619_vm7  ;;  %vm3764_vm7 = vcmp.eq.s32.totalorder %v18178_v6, %v16887_v32  ;;  %vm3765_vm8 = vcmp.eq.s32.totalorder %v18178_v6, %v16890_v33 }
 0x31e   : > { %13563 = vmatprep.mubr.msk.f32.mxu1 %vm16700_vm0, %v16701_v3  ;;  %vm15512_vm10 = vmpackc.low %vm3765_vm8, %vm3764_vm7  ;;  %v4022_v22 = vrot.slane %v4021_v12, 2 }
 0x323   : > { %15477 = vmatpush3.bf16.xpose.msk.msra.mxu0 %vm15476_vm14, %v16702_v9  ;;  %vm3621_vm14 = vcmp.eq.s32.totalorder %v18174_v0, %v16869_v26 }
 0x324   : > { %15501 = vmatpush3.bf16.xpose.msk.msra.mxu1 %vm15500_vm15, %v16702_v9  ;;  %15478 = vmatprep.subr.bf16.mxu0 %v16699_v1  ;;  %vm3622_vm15 = vcmp.eq.s32.totalorder %v18174_v0, %v16872_v27 }
 0x325   : > { %15502 = vmatprep.subr.bf16.mxu1 %v16699_v1  ;;  %vm15485_vm3 = vmpackc.low %vm3622_vm15, %vm3621_vm14  ;;  %vm3766_vm14 = vcmp.eq.s32.totalorder %v18178_v6, %v16905_v36  ;;  %vm3767_vm15 = vcmp.eq.s32.totalorder %v18178_v6, %v16908_v37 }
 0x326   : > { %vm15515_vm2 = vmpackc.low %vm3767_vm15, %vm3766_vm14 }
 0x32b   : > { %15480 = vmatpush3.bf16.xpose.msk.msra.mxu0 %vm15479_vm5, %v16702_v9  ;;  %vm3623_vm5 = vcmp.eq.s32.totalorder %v18174_v0, %v16887_v32 }
 0x32c   : > { %15504 = vmatpush3.bf16.xpose.msk.msra.mxu1 %vm15503_vm6, %v16702_v9  ;;  %15481 = vmatprep.subr.bf16.mxu0 %v16699_v1  ;;  %vm3624_vm6 = vcmp.eq.s32.totalorder %v18174_v0, %v16890_v33 }
 0x32d   : > { %v2599_v28 = vpop.f32.mrb[16].mxu0  ;;  %15505 = vmatprep.subr.bf16.mxu1 %v16699_v1  ;;  %vm15488_vm9 = vmpackc.low %vm3624_vm6, %vm3623_vm5  ;;  %vm3768_vm5 = vcmp.eq.s32.totalorder %v18178_v6, %v16923_v40  ;;  %vm3769_vm6 = vcmp.eq.s32.totalorder %v18178_v6, %v16926_v41 }
 0x32e   : > { %v2603_v30 = vadd.f32 %v2599_v28, %v18123_v50  ;;  %v13250_v31 = vpop.f32.mrb[17].mxu0  ;;  %v2740_v34 = vpop.f32.mrb[16].mxu1  ;;  %v3605_v50 = vmul.f32 %v16540_v48, %v16540_v48  ;;  %vm15518_vm8 = vmpackc.low %vm3769_vm6, %vm3768_vm5  ;;  %v4023_v28 = vadd.f32 %v4022_v22, %v4021_v12  ;;  %v18404_v48 = vld [vmem:[%s16789_s26 + $0x1d] ss:$0 sm:$0xff] }
 0x32f   : > { %v13285_v38 = vpop.f32.mrb[17].mxu1 }
 0x330   : > { %v18236_v39 = vadd.f32 %v2740_v34, %v2603_v30  ;;  %v3606_v52 = vmul.f32 %v3605_v50, %v3605_v50  ;;  %v4024_v30 = vrot.slane %v4023_v28, 1 }
 0x332   : > { %v3607_v54 = vmul.f32 %v3606_v52, %v3605_v50  ;;  %v4025_v34 = vadd.f32 %v4024_v30, %v4023_v28  ;;  %v10340_v52 = vld [vmem:[%s16814_s30 + $0x74] sm:$0x7] }
 0x333   : > { %15483 = vmatpush3.bf16.xpose.msk.msra.mxu0 %vm15482_vm11, %v16702_v9  ;;  %vm3625_vm11 = vcmp.eq.s32.totalorder %v18174_v0, %v16905_v36 }
 0x334   : > { %15507 = vmatpush3.bf16.xpose.msk.msra.mxu1 %vm15506_vm13, %v16702_v9  ;;  %15484 = vmatprep.subr.bf16.mxu0 %v16699_v1  ;;  %vm3626_vm13 = vcmp.eq.s32.totalorder %v18174_v0, %v16908_v37  ;;  %v3608_v58 = vmul.f32 0.5, %v3607_v54  ;;  %v4300_v54 = vmul.f32 %v10340_v52, %v10340_v52 }
 0x335   : > { %15508 = vmatprep.subr.bf16.mxu1 %v16699_v1  ;;  %vm15491_vm1 = vmpackc.low %vm3626_vm13, %vm3625_vm11  ;;  %vm4036_vm11 = vcmp.eq.s32.totalorder %v18291_v57, %v16777_v2  ;;  %vm4037_vm13 = vcmp.eq.s32.totalorder %v18291_v57, %v16784_v4 }
 0x336   : > { %vm15545_vm15 = vmpackc.low %vm4037_vm13, %vm4036_vm11  ;;  %v4301_v56 = vsel %vm213_vm12, %v4300_v54, 0.0 }
 0x33b   : > { %15486 = vmatpush3.bf16.xpose.msk.msra.mxu0 %vm15485_vm3, %v16702_v9  ;;  %vm3627_vm3 = vcmp.eq.s32.totalorder %v18174_v0, %v16923_v40 }
 0x33c   : > { %15510 = vmatpush3.bf16.xpose.msk.msra.mxu1 %vm15509_vm4, %v16702_v9  ;;  %15487 = vmatprep.subr.bf16.mxu0 %v16699_v1  ;;  %vm3628_vm4 = vcmp.eq.s32.totalorder %v18174_v0, %v16926_v41  ;;  %v3878_v0 = vsel %vm213_vm12, %v3877_v62, 0.0 }
 0x33d   : > { %15511 = vmatprep.subr.bf16.mxu1 %v16699_v1  ;;  %vm15494_vm7 = vmpackc.low %vm3628_vm4, %vm3627_vm3  ;;  %vm4038_vm3 = vcmp.eq.s32.totalorder %v18291_v57, %v16798_v7  ;;  %vm4039_vm4 = vcmp.eq.s32.totalorder %v18291_v57, %v16801_v8  ;;  %v3879_v6 = vrot.slane %v3878_v0, 4 }
 0x33e   : > { %vm15548_vm6 = vmpackc.low %vm4039_vm4, %vm4038_vm3 }
 0x33f   : > { %v3880_v11 = vadd.f32 %v3879_v6, %v3878_v0 }
 0x341   : > { %v3881_v16 = vrot.slane %v3880_v11, 2 }
 0x343   : > { %15489 = vmatpush3.bf16.xpose.msk.msra.mxu0 %vm15488_vm9, %v16702_v9  ;;  %vm3895_vm9 = vcmp.eq.s32.totalorder %v18287_v55, %v16777_v2  ;;  %v3882_v25 = vadd.f32 %v3881_v16, %v3880_v11 }
 0x344   : > { %15513 = vmatpush3.bf16.xpose.msk.msra.mxu1 %vm15512_vm10, %v16702_v9  ;;  %15490 = vmatprep.subr.bf16.mxu0 %v16699_v1  ;;  %vm3896_vm10 = vcmp.eq.s32.totalorder %v18287_v55, %v16784_v4 }
 0x345   : > { %15514 = vmatprep.subr.bf16.mxu1 %v16699_v1  ;;  %vm15521_vm14 = vmpackc.low %vm3896_vm10, %vm3895_vm9  ;;  %vm4040_vm9 = vcmp.eq.s32.totalorder %v18291_v57, %v16831_v14  ;;  %vm4041_vm10 = vcmp.eq.s32.totalorder %v18291_v57, %v16834_v15  ;;  %v3883_v29 = vrot.slane %v3882_v25, 1 }
 0x346   : > { %vm15551_vm13 = vmpackc.low %vm4041_vm10, %vm4040_vm9 }
 0x347   : > { %v3884_v31 = vadd.f32 %v3883_v29, %v3882_v25 }
 0x349   : > { %16543 = vrcp.f32 %v3884_v31  ;;  %v18513_v31 = vld [vmem:[%s16789_s26 + $0x1e] ss:$0 sm:$0xff] }
 0x34a   : > { %16545 = vrcp.f32 %v4025_v34 }
 0x34b   : > { %15492 = vmatpush3.bf16.xpose.msk.msra.mxu0 %vm15491_vm1, %v16702_v9  ;;  %vm3897_vm1 = vcmp.eq.s32.totalorder %v18287_v55, %v16798_v7 }
 0x34c   : > { %15516 = vmatpush3.bf16.xpose.msk.msra.mxu1 %vm15515_vm2, %v16702_v9  ;;  %15493 = vmatprep.subr.bf16.mxu0 %v16699_v1  ;;  %vm3898_vm2 = vcmp.eq.s32.totalorder %v18287_v55, %v16801_v8 }
 0x34d   : > { %15517 = vmatprep.subr.bf16.mxu1 %v16699_v1  ;;  %vm15524_vm5 = vmpackc.low %vm3898_vm2, %vm3897_vm1  ;;  %vm4042_vm1 = vcmp.eq.s32.totalorder %v18291_v57, %v16851_v20  ;;  %vm4043_vm2 = vcmp.eq.s32.totalorder %v18291_v57, %v16854_v21 }
 0x34e   : > { %vm15554_vm4 = vmpackc.low %vm4043_vm2, %vm4042_vm1 }
 0x353   : > { %15495 = vmatpush3.bf16.xpose.msk.msra.mxu0 %vm15494_vm7, %v16702_v9  ;;  %vm3899_vm7 = vcmp.eq.s32.totalorder %v18287_v55, %v16831_v14  ;;  %v16544_v35 = vpop.eup %16543 }
 0x354   : > { %15519 = vmatpush3.bf16.xpose.msk.msra.mxu1 %vm15518_vm8, %v16702_v9  ;;  %15520 = vmatprep.subr.bf16.mxu0 %v16699_v1  ;;  %vm3900_vm8 = vcmp.eq.s32.totalorder %v18287_v55, %v16834_v15  ;;  %v16546_v38 = vpop.eup %16545 }
 0x355   : > { %15544 = vmatprep.subr.bf16.mxu1 %v16699_v1  ;;  %vm15527_vm11 = vmpackc.low %vm3900_vm8, %vm3899_vm7  ;;  %vm4044_vm7 = vcmp.eq.s32.totalorder %v18291_v57, %v16869_v26  ;;  %vm4045_vm8 = vcmp.eq.s32.totalorder %v18291_v57, %v16872_v27  ;;  %v4028_v42 = vmul.f32 %v16546_v38, %v16546_v38 }
 0x356   : > { %vm15557_vm10 = vmpackc.low %vm4045_vm8, %vm4044_vm7 }
 0x357   : > { %v4029_v44 = vmul.f32 %v4028_v42, %v4028_v42 }
 0x359   : > { %v4030_v47 = vmul.f32 %v4029_v44, %v4028_v42  ;;  %v10375_v42 = vld [vmem:[%s16814_s30 + $0x78] sm:$0x7] }
 0x35a   : > { %13529 = vmatmul.mubr.f32.vlgmr.msra.gmra.mrb[24].mxu0 %v3608_v58  ;;  %v4302_v58 = vrot.slane %v4301_v56, 4  ;;  %v4441_v44 = vmul.f32 %v10375_v42, %v10375_v42 }
 0x35b   : > { %15522 = vmatpush3.bf16.xpose.msk.msra.mxu0 %vm15521_vm14, %v16702_v9  ;;  %13564 = vmatmul.mubr.f32.vlgmr.msra.gmra.mrb[24].mxu1 %v3749_v59  ;;  %vm3901_vm14 = vcmp.eq.s32.totalorder %v18287_v55, %v16851_v20  ;;  %v4031_v50 = vmul.f32 0.5, %v4030_v47 }
 0x35c   : > { %15546 = vmatpush3.bf16.xpose.msk.msra.mxu1 %vm15545_vm15, %v16702_v9  ;;  %15523 = vmatprep.subr.bf16.mxu0 %v16699_v1  ;;  %vm3902_vm15 = vcmp.eq.s32.totalorder %v18287_v55, %v16854_v21  ;;  %v4303_v60 = vadd.f32 %v4302_v58, %v4301_v56 }
 0x35d   : > { %15547 = vmatprep.subr.bf16.mxu1 %v16699_v1  ;;  %13598 = vmatprep.mubr.msk.f32.mxu0 %vm16700_vm0, %v16701_v3  ;;  %vm15530_vm3 = vmpackc.low %vm3902_vm15, %vm3901_vm14  ;;  %vm4046_vm14 = vcmp.eq.s32.totalorder %v18291_v57, %v16887_v32  ;;  %vm4047_vm15 = vcmp.eq.s32.totalorder %v18291_v57, %v16890_v33 }
 0x35e   : > { %13633 = vmatprep.mubr.msk.f32.mxu1 %vm16700_vm0, %v16701_v3  ;;  %vm15560_vm2 = vmpackc.low %vm4047_vm15, %vm4046_vm14  ;;  %v4304_v6 = vrot.slane %v4303_v60, 2 }
 0x363   : > { %15525 = vmatpush3.bf16.xpose.msk.msra.mxu0 %vm15524_vm5, %v16702_v9  ;;  %vm3903_vm5 = vcmp.eq.s32.totalorder %v18287_v55, %v16869_v26 }
 0x364   : > { %15549 = vmatpush3.bf16.xpose.msk.msra.mxu1 %vm15548_vm6, %v16702_v9  ;;  %15526 = vmatprep.subr.bf16.mxu0 %v16699_v1  ;;  %vm3904_vm6 = vcmp.eq.s32.totalorder %v18287_v55, %v16872_v27 }
 0x365   : > { %15550 = vmatprep.subr.bf16.mxu1 %v16699_v1  ;;  %vm15533_vm9 = vmpackc.low %vm3904_vm6, %vm3903_vm5  ;;  %vm4048_vm5 = vcmp.eq.s32.totalorder %v18291_v57, %v16905_v36  ;;  %vm4049_vm6 = vcmp.eq.s32.totalorder %v18291_v57, %v16908_v37 }
 0x366   : > { %vm15563_vm8 = vmpackc.low %vm4049_vm6, %vm4048_vm5 }
 0x36b   : > { %15528 = vmatpush3.bf16.xpose.msk.msra.mxu0 %vm15527_vm11, %v16702_v9  ;;  %vm3905_vm11 = vcmp.eq.s32.totalorder %v18287_v55, %v16887_v32 }
 0x36c   : > { %15552 = vmatpush3.bf16.xpose.msk.msra.mxu1 %vm15551_vm13, %v16702_v9  ;;  %15529 = vmatprep.subr.bf16.mxu0 %v16699_v1  ;;  %vm3906_vm13 = vcmp.eq.s32.totalorder %v18287_v55, %v16890_v33 }
 0x36d   : > { %v2881_v13 = vpop.f32.mrb[18].mxu0  ;;  %15553 = vmatprep.subr.bf16.mxu1 %v16699_v1  ;;  %vm15536_vm1 = vmpackc.low %vm3906_vm13, %vm3905_vm11  ;;  %vm4050_vm11 = vcmp.eq.s32.totalorder %v18291_v57, %v16923_v40  ;;  %vm4051_vm13 = vcmp.eq.s32.totalorder %v18291_v57, %v16926_v41 }
 0x36e   : > { %v2885_v17 = vadd.f32 %v2881_v13, %v18236_v39  ;;  %v13320_v18 = vpop.f32.mrb[19].mxu0  ;;  %v3022_v19 = vpop.f32.mrb[18].mxu1  ;;  %v3887_v39 = vmul.f32 %v16544_v35, %v16544_v35  ;;  %vm15566_vm15 = vmpackc.low %vm4051_vm13, %vm4050_vm11  ;;  %v4305_v13 = vadd.f32 %v4304_v6, %v4303_v60  ;;  %v18517_v35 = vld [vmem:[%s16789_s26 + $0x1f] ss:$0 sm:$0xff] }
 0x36f   : > { %v13355_v23 = vpop.f32.mrb[19].mxu1 }
 0x370   : > { %v18349_v24 = vadd.f32 %v3022_v19, %v2885_v17  ;;  %v3888_v43 = vmul.f32 %v3887_v39, %v3887_v39  ;;  %v4306_v17 = vrot.slane %v4305_v13, 1 }
 0x372   : > { %v3889_v45 = vmul.f32 %v3888_v43, %v3887_v39  ;;  %v4307_v19 = vadd.f32 %v4306_v17, %v4305_v13  ;;  %v10410_v43 = vld [vmem:[%s16814_s30 + $0x7c] sm:$0x7] }
 0x373   : > { %15531 = vmatpush3.bf16.xpose.msk.msra.mxu0 %vm15530_vm3, %v16702_v9  ;;  %vm3907_vm3 = vcmp.eq.s32.totalorder %v18287_v55, %v16905_v36 }
 0x374   : > { %15555 = vmatpush3.bf16.xpose.msk.msra.mxu1 %vm15554_vm4, %v16702_v9  ;;  %15532 = vmatprep.subr.bf16.mxu0 %v16699_v1  ;;  %vm3908_vm4 = vcmp.eq.s32.totalorder %v18287_v55, %v16908_v37  ;;  %v3890_v49 = vmul.f32 0.5, %v3889_v45  ;;  %v4582_v45 = vmul.f32 %v10410_v43, %v10410_v43 }
 0x375   : > { %15556 = vmatprep.subr.bf16.mxu1 %v16699_v1  ;;  %vm15539_vm7 = vmpackc.low %vm3908_vm4, %vm3907_vm3  ;;  %vm4318_vm3 = vcmp.eq.s32.totalorder %v18404_v48, %v16777_v2  ;;  %vm4319_vm4 = vcmp.eq.s32.totalorder %v18404_v48, %v16784_v4 }
 0x376   : > { %vm15593_vm6 = vmpackc.low %vm4319_vm4, %vm4318_vm3  ;;  %v4583_v47 = vsel %vm213_vm12, %v4582_v45, 0.0 }
 0x37b   : > { %15534 = vmatpush3.bf16.xpose.msk.msra.mxu0 %vm15533_vm9, %v16702_v9  ;;  %vm3909_vm9 = vcmp.eq.s32.totalorder %v18287_v55, %v16923_v40 }
 0x37c   : > { %15558 = vmatpush3.bf16.xpose.msk.msra.mxu1 %vm15557_vm10, %v16702_v9  ;;  %15535 = vmatprep.subr.bf16.mxu0 %v16699_v1  ;;  %vm3910_vm10 = vcmp.eq.s32.totalorder %v18287_v55, %v16926_v41  ;;  %v4160_v55 = vsel %vm213_vm12, %v4159_v53, 0.0 }
 0x37d   : > { %15559 = vmatprep.subr.bf16.mxu1 %v16699_v1  ;;  %vm15542_vm14 = vmpackc.low %vm3910_vm10, %vm3909_vm9  ;;  %vm4320_vm9 = vcmp.eq.s32.totalorder %v18404_v48, %v16798_v7  ;;  %vm4321_vm10 = vcmp.eq.s32.totalorder %v18404_v48, %v16801_v8  ;;  %v4161_v57 = vrot.slane %v4160_v55, 4 }
 0x37e   : > { %vm15596_vm13 = vmpackc.low %vm4321_vm10, %vm4320_vm9 }
 0x37f   : > { %v4162_v59 = vadd.f32 %v4161_v57, %v4160_v55 }
 0x381   : > { %v4163_v62 = vrot.slane %v4162_v59, 2 }
 0x383   : > { %15537 = vmatpush3.bf16.xpose.msk.msra.mxu0 %vm15536_vm1, %v16702_v9  ;;  %vm4177_vm1 = vcmp.eq.s32.totalorder %v18400_v46, %v16777_v2  ;;  %v4164_v12 = vadd.f32 %v4163_v62, %v4162_v59 }
 0x384   : > { %15561 = vmatpush3.bf16.xpose.msk.msra.mxu1 %vm15560_vm2, %v16702_v9  ;;  %15538 = vmatprep.subr.bf16.mxu0 %v16699_v1  ;;  %vm4178_vm2 = vcmp.eq.s32.totalorder %v18400_v46, %v16784_v4 }
 0x385   : > { %15562 = vmatprep.subr.bf16.mxu1 %v16699_v1  ;;  %vm15569_vm5 = vmpackc.low %vm4178_vm2, %vm4177_vm1  ;;  %vm4322_vm1 = vcmp.eq.s32.totalorder %v18404_v48, %v16831_v14  ;;  %vm4323_vm2 = vcmp.eq.s32.totalorder %v18404_v48, %v16834_v15  ;;  %v4165_v16 = vrot.slane %v4164_v12, 1 }
 0x386   : > { %vm15599_vm4 = vmpackc.low %vm4323_vm2, %vm4322_vm1 }
 0x387   : > { %v4166_v18 = vadd.f32 %v4165_v16, %v4164_v12 }
 0x389   : > { %16547 = vrcp.f32 %v4166_v18  ;;  %v18626_v18 = vld [vmem:[%s16789_s26 + $0x20] ss:$0 sm:$0xff] }
 0x38a   : > { %16549 = vrcp.f32 %v4307_v19 }
 0x38b   : > { %15540 = vmatpush3.bf16.xpose.msk.msra.mxu0 %vm15539_vm7, %v16702_v9  ;;  %vm4179_vm7 = vcmp.eq.s32.totalorder %v18400_v46, %v16798_v7 }
 0x38c   : > { %15564 = vmatpush3.bf16.xpose.msk.msra.mxu1 %vm15563_vm8, %v16702_v9  ;;  %15541 = vmatprep.subr.bf16.mxu0 %v16699_v1  ;;  %vm4180_vm8 = vcmp.eq.s32.totalorder %v18400_v46, %v16801_v8 }
 0x38d   : > { %15565 = vmatprep.subr.bf16.mxu1 %v16699_v1  ;;  %vm15572_vm11 = vmpackc.low %vm4180_vm8, %vm4179_vm7  ;;  %vm4324_vm7 = vcmp.eq.s32.totalorder %v18404_v48, %v16851_v20  ;;  %vm4325_vm8 = vcmp.eq.s32.totalorder %v18404_v48, %v16854_v21 }
 0x38e   : > { %vm15602_vm10 = vmpackc.low %vm4325_vm8, %vm4324_vm7 }
 0x393   : > { %15543 = vmatpush3.bf16.xpose.msk.msra.mxu0 %vm15542_vm14, %v16702_v9  ;;  %vm4181_vm14 = vcmp.eq.s32.totalorder %v18400_v46, %v16831_v14  ;;  %v16548_v22 = vpop.eup %16547 }
 0x394   : > { %15567 = vmatpush3.bf16.xpose.msk.msra.mxu1 %vm15566_vm15, %v16702_v9  ;;  %15568 = vmatprep.subr.bf16.mxu0 %v16699_v1  ;;  %vm4182_vm15 = vcmp.eq.s32.totalorder %v18400_v46, %v16834_v15  ;;  %v16550_v23 = vpop.eup %16549 }
 0x395   : > { %15592 = vmatprep.subr.bf16.mxu1 %v16699_v1  ;;  %vm15575_vm3 = vmpackc.low %vm4182_vm15, %vm4181_vm14  ;;  %vm4326_vm14 = vcmp.eq.s32.totalorder %v18404_v48, %v16869_v26  ;;  %vm4327_vm15 = vcmp.eq.s32.totalorder %v18404_v48, %v16872_v27  ;;  %v4310_v25 = vmul.f32 %v16550_v23, %v16550_v23 }
 0x396   : > { %vm15605_vm2 = vmpackc.low %vm4327_vm15, %vm4326_vm14 }
 0x397   : > { %v4311_v29 = vmul.f32 %v4310_v25, %v4310_v25 }
 0x399   : > { %v4312_v34 = vmul.f32 %v4311_v29, %v4310_v25  ;;  %v10445_v25 = vld [vmem:[%s16814_s30 + $0x80] sm:$0x7] }
 0x39a   : > { %13599 = vmatmul.mubr.f32.vlgmr.msra.gmra.mrb[26].mxu0 %v3890_v49  ;;  %v4584_v49 = vrot.slane %v4583_v47, 4  ;;  %v4723_v29 = vmul.f32 %v10445_v25, %v10445_v25 }
 0x39b   : > { %15570 = vmatpush3.bf16.xpose.msk.msra.mxu0 %vm15569_vm5, %v16702_v9  ;;  %13634 = vmatmul.mubr.f32.vlgmr.msra.gmra.mrb[26].mxu1 %v4031_v50  ;;  %vm4183_vm5 = vcmp.eq.s32.totalorder %v18400_v46, %v16851_v20  ;;  %v4313_v39 = vmul.f32 0.5, %v4312_v34 }
 0x39c   : > { %15594 = vmatpush3.bf16.xpose.msk.msra.mxu1 %vm15593_vm6, %v16702_v9  ;;  %15571 = vmatprep.subr.bf16.mxu0 %v16699_v1  ;;  %vm4184_vm6 = vcmp.eq.s32.totalorder %v18400_v46, %v16854_v21  ;;  %v4585_v51 = vadd.f32 %v4584_v49, %v4583_v47 }
 0x39d   : > { %15595 = vmatprep.subr.bf16.mxu1 %v16699_v1  ;;  %13668 = vmatprep.mubr.msk.f32.mxu0 %vm16700_vm0, %v16701_v3  ;;  %vm15578_vm9 = vmpackc.low %vm4184_vm6, %vm4183_vm5  ;;  %vm4328_vm5 = vcmp.eq.s32.totalorder %v18404_v48, %v16887_v32  ;;  %vm4329_vm6 = vcmp.eq.s32.totalorder %v18404_v48, %v16890_v33 }
 0x39e   : > { %13703 = vmatprep.mubr.msk.f32.mxu1 %vm16700_vm0, %v16701_v3  ;;  %vm15608_vm8 = vmpackc.low %vm4329_vm6, %vm4328_vm5  ;;  %v4586_v57 = vrot.slane %v4585_v51, 2 }
 0x3a3   : > { %15573 = vmatpush3.bf16.xpose.msk.msra.mxu0 %vm15572_vm11, %v16702_v9  ;;  %vm4185_vm11 = vcmp.eq.s32.totalorder %v18400_v46, %v16869_v26 }
 0x3a4   : > { %15597 = vmatpush3.bf16.xpose.msk.msra.mxu1 %vm15596_vm13, %v16702_v9  ;;  %15574 = vmatprep.subr.bf16.mxu0 %v16699_v1  ;;  %vm4186_vm13 = vcmp.eq.s32.totalorder %v18400_v46, %v16872_v27 }
 0x3a5   : > { %15598 = vmatprep.subr.bf16.mxu1 %v16699_v1  ;;  %vm15581_vm1 = vmpackc.low %vm4186_vm13, %vm4185_vm11  ;;  %vm4330_vm11 = vcmp.eq.s32.totalorder %v18404_v48, %v16905_v36  ;;  %vm4331_vm13 = vcmp.eq.s32.totalorder %v18404_v48, %v16908_v37 }
 0x3a6   : > { %vm15611_vm15 = vmpackc.low %vm4331_vm13, %vm4330_vm11 }
 0x3ab   : > { %15576 = vmatpush3.bf16.xpose.msk.msra.mxu0 %vm15575_vm3, %v16702_v9  ;;  %vm4187_vm3 = vcmp.eq.s32.totalorder %v18400_v46, %v16887_v32 }
 0x3ac   : > { %15600 = vmatpush3.bf16.xpose.msk.msra.mxu1 %vm15599_vm4, %v16702_v9  ;;  %15577 = vmatprep.subr.bf16.mxu0 %v16699_v1  ;;  %vm4188_vm4 = vcmp.eq.s32.totalorder %v18400_v46, %v16890_v33 }
 0x3ad   : > { %v3163_v61 = vpop.f32.mrb[20].mxu0  ;;  %15601 = vmatprep.subr.bf16.mxu1 %v16699_v1  ;;  %vm15584_vm7 = vmpackc.low %vm4188_vm4, %vm4187_vm3  ;;  %vm4332_vm3 = vcmp.eq.s32.totalorder %v18404_v48, %v16923_v40  ;;  %vm4333_vm4 = vcmp.eq.s32.totalorder %v18404_v48, %v16926_v41 }
 0x3ae   : > { %v3167_v63 = vadd.f32 %v3163_v61, %v18349_v24  ;;  %v13390_v0 = vpop.f32.mrb[21].mxu0  ;;  %v3304_v5 = vpop.f32.mrb[20].mxu1  ;;  %v4169_v24 = vmul.f32 %v16548_v22, %v16548_v22  ;;  %vm15614_vm6 = vmpackc.low %vm4333_vm4, %vm4332_vm3  ;;  %v4587_v61 = vadd.f32 %v4586_v57, %v4585_v51  ;;  %v18630_v22 = vld [vmem:[%s16789_s26 + $0x21] ss:$0 sm:$0xff] }
 0x3af   : > { %v13425_v10 = vpop.f32.mrb[21].mxu1 }
 0x3b0   : > { %v18462_v11 = vadd.f32 %v3304_v5, %v3167_v63  ;;  %v4170_v28 = vmul.f32 %v4169_v24, %v4169_v24  ;;  %v4588_v63 = vrot.slane %v4587_v61, 1 }
 0x3b2   : > { %v4171_v30 = vmul.f32 %v4170_v28, %v4169_v24  ;;  %v4589_v5 = vadd.f32 %v4588_v63, %v4587_v61  ;;  %v10480_v28 = vld [vmem:[%s16814_s30 + $0x84] sm:$0x7] }
 0x3b3   : > { %15579 = vmatpush3.bf16.xpose.msk.msra.mxu0 %vm15578_vm9, %v16702_v9  ;;  %vm4189_vm9 = vcmp.eq.s32.totalorder %v18400_v46, %v16905_v36 }
 0x3b4   : > { %15603 = vmatpush3.bf16.xpose.msk.msra.mxu1 %vm15602_vm10, %v16702_v9  ;;  %15580 = vmatprep.subr.bf16.mxu0 %v16699_v1  ;;  %vm4190_vm10 = vcmp.eq.s32.totalorder %v18400_v46, %v16908_v37  ;;  %v4172_v38 = vmul.f32 0.5, %v4171_v30  ;;  %v4864_v30 = vmul.f32 %v10480_v28, %v10480_v28 }
 0x3b5   : > { %15604 = vmatprep.subr.bf16.mxu1 %v16699_v1  ;;  %vm15587_vm14 = vmpackc.low %vm4190_vm10, %vm4189_vm9  ;;  %vm4600_vm9 = vcmp.eq.s32.totalorder %v18517_v35, %v16777_v2  ;;  %vm4601_vm10 = vcmp.eq.s32.totalorder %v18517_v35, %v16784_v4 }
 0x3b6   : > { %vm15641_vm13 = vmpackc.low %vm4601_vm10, %vm4600_vm9  ;;  %v4865_v34 = vsel %vm213_vm12, %v4864_v30, 0.0 }
 0x3bb   : > { %15582 = vmatpush3.bf16.xpose.msk.msra.mxu0 %vm15581_vm1, %v16702_v9  ;;  %vm4191_vm1 = vcmp.eq.s32.totalorder %v18400_v46, %v16923_v40 }
 0x3bc   : > { %15606 = vmatpush3.bf16.xpose.msk.msra.mxu1 %vm15605_vm2, %v16702_v9  ;;  %15583 = vmatprep.subr.bf16.mxu0 %v16699_v1  ;;  %vm4192_vm2 = vcmp.eq.s32.totalorder %v18400_v46, %v16926_v41  ;;  %v4442_v46 = vsel %vm213_vm12, %v4441_v44, 0.0 }
 0x3bd   : > { %15607 = vmatprep.subr.bf16.mxu1 %v16699_v1  ;;  %vm15590_vm5 = vmpackc.low %vm4192_vm2, %vm4191_vm1  ;;  %vm4602_vm1 = vcmp.eq.s32.totalorder %v18517_v35, %v16798_v7  ;;  %vm4603_vm2 = vcmp.eq.s32.totalorder %v18517_v35, %v16801_v8  ;;  %v4443_v48 = vrot.slane %v4442_v46, 4 }
 0x3be   : > { %vm15644_vm4 = vmpackc.low %vm4603_vm2, %vm4602_vm1 }
 0x3bf   : > { %v4444_v50 = vadd.f32 %v4443_v48, %v4442_v46 }
 0x3c1   : > { %v4445_v53 = vrot.slane %v4444_v50, 2 }
 0x3c3   : > { %15585 = vmatpush3.bf16.xpose.msk.msra.mxu0 %vm15584_vm7, %v16702_v9  ;;  %vm4459_vm7 = vcmp.eq.s32.totalorder %v18513_v31, %v16777_v2  ;;  %v4446_v60 = vadd.f32 %v4445_v53, %v4444_v50 }
 0x3c4   : > { %15609 = vmatpush3.bf16.xpose.msk.msra.mxu1 %vm15608_vm8, %v16702_v9  ;;  %15586 = vmatprep.subr.bf16.mxu0 %v16699_v1  ;;  %vm4460_vm8 = vcmp.eq.s32.totalorder %v18513_v31, %v16784_v4 }
 0x3c5   : > { %15610 = vmatprep.subr.bf16.mxu1 %v16699_v1  ;;  %vm15617_vm11 = vmpackc.low %vm4460_vm8, %vm4459_vm7  ;;  %vm4604_vm7 = vcmp.eq.s32.totalorder %v18517_v35, %v16831_v14  ;;  %vm4605_vm8 = vcmp.eq.s32.totalorder %v18517_v35, %v16834_v15  ;;  %v4447_v62 = vrot.slane %v4446_v60, 1 }
 0x3c6   : > { %vm15647_vm10 = vmpackc.low %vm4605_vm8, %vm4604_vm7 }
 0x3c7   : > { %v4448_v0 = vadd.f32 %v4447_v62, %v4446_v60 }
 0x3c9   : > { %16551 = vrcp.f32 %v4448_v0  ;;  %v18739_v0 = vld [vmem:[%s16789_s26 + $0x22] ss:$0 sm:$0xff] }
 0x3ca   : > { %16553 = vrcp.f32 %v4589_v5 }
 0x3cb   : > { %15588 = vmatpush3.bf16.xpose.msk.msra.mxu0 %vm15587_vm14, %v16702_v9  ;;  %vm4461_vm14 = vcmp.eq.s32.totalorder %v18513_v31, %v16798_v7 }
 0x3cc   : > { %15612 = vmatpush3.bf16.xpose.msk.msra.mxu1 %vm15611_vm15, %v16702_v9  ;;  %15589 = vmatprep.subr.bf16.mxu0 %v16699_v1  ;;  %vm4462_vm15 = vcmp.eq.s32.totalorder %v18513_v31, %v16801_v8 }
 0x3cd   : > { %15613 = vmatprep.subr.bf16.mxu1 %v16699_v1  ;;  %vm15620_vm3 = vmpackc.low %vm4462_vm15, %vm4461_vm14  ;;  %vm4606_vm14 = vcmp.eq.s32.totalorder %v18517_v35, %v16851_v20  ;;  %vm4607_vm15 = vcmp.eq.s32.totalorder %v18517_v35, %v16854_v21 }
 0x3ce   : > { %vm15650_vm2 = vmpackc.low %vm4607_vm15, %vm4606_vm14 }
 0x3d3   : > { %15591 = vmatpush3.bf16.xpose.msk.msra.mxu0 %vm15590_vm5, %v16702_v9  ;;  %vm4463_vm5 = vcmp.eq.s32.totalorder %v18513_v31, %v16831_v14  ;;  %v16552_v6 = vpop.eup %16551 }
 0x3d4   : > { %15615 = vmatpush3.bf16.xpose.msk.msra.mxu1 %vm15614_vm6, %v16702_v9  ;;  %15616 = vmatprep.subr.bf16.mxu0 %v16699_v1  ;;  %vm4464_vm6 = vcmp.eq.s32.totalorder %v18513_v31, %v16834_v15  ;;  %v16554_v10 = vpop.eup %16553 }
 0x3d5   : > { %15640 = vmatprep.subr.bf16.mxu1 %v16699_v1  ;;  %vm15623_vm9 = vmpackc.low %vm4464_vm6, %vm4463_vm5  ;;  %vm4608_vm5 = vcmp.eq.s32.totalorder %v18517_v35, %v16869_v26  ;;  %vm4609_vm6 = vcmp.eq.s32.totalorder %v18517_v35, %v16872_v27  ;;  %v4592_v12 = vmul.f32 %v16554_v10, %v16554_v10 }
 0x3d6   : > { %vm15653_vm8 = vmpackc.low %vm4609_vm6, %vm4608_vm5 }
 0x3d7   : > { %v4593_v16 = vmul.f32 %v4592_v12, %v4592_v12 }
 0x3d9   : > { %v4594_v19 = vmul.f32 %v4593_v16, %v4592_v12  ;;  %v10515_v12 = vld [vmem:[%s16814_s30 + $0x88] sm:$0x7] }
 0x3da   : > { %13669 = vmatmul.mubr.f32.vlgmr.msra.gmra.mrb[28].mxu0 %v4172_v38  ;;  %v4866_v38 = vrot.slane %v4865_v34, 4  ;;  %v5005_v16 = vmul.f32 %v10515_v12, %v10515_v12 }
 0x3db   : > { %15618 = vmatpush3.bf16.xpose.msk.msra.mxu0 %vm15617_vm11, %v16702_v9  ;;  %13704 = vmatmul.mubr.f32.vlgmr.msra.gmra.mrb[28].mxu1 %v4313_v39  ;;  %vm4465_vm11 = vcmp.eq.s32.totalorder %v18513_v31, %v16851_v20  ;;  %v4595_v24 = vmul.f32 0.5, %v4594_v19 }
 0x3dc   : > { %15642 = vmatpush3.bf16.xpose.msk.msra.mxu1 %vm15641_vm13, %v16702_v9  ;;  %15619 = vmatprep.subr.bf16.mxu0 %v16699_v1  ;;  %vm4466_vm13 = vcmp.eq.s32.totalorder %v18513_v31, %v16854_v21  ;;  %v4867_v42 = vadd.f32 %v4866_v38, %v4865_v34 }
 0x3dd   : > { %15643 = vmatprep.subr.bf16.mxu1 %v16699_v1  ;;  %13738 = vmatprep.mubr.msk.f32.mxu0 %vm16700_vm0, %v16701_v3  ;;  %vm15626_vm1 = vmpackc.low %vm4466_vm13, %vm4465_vm11  ;;  %vm4610_vm11 = vcmp.eq.s32.totalorder %v18517_v35, %v16887_v32  ;;  %vm4611_vm13 = vcmp.eq.s32.totalorder %v18517_v35, %v16890_v33 }
 0x3de   : > { %13773 = vmatprep.mubr.msk.f32.mxu1 %vm16700_vm0, %v16701_v3  ;;  %vm15656_vm15 = vmpackc.low %vm4611_vm13, %vm4610_vm11  ;;  %v4868_v48 = vrot.slane %v4867_v42, 2 }
 0x3e3   : > { %15621 = vmatpush3.bf16.xpose.msk.msra.mxu0 %vm15620_vm3, %v16702_v9  ;;  %vm4467_vm3 = vcmp.eq.s32.totalorder %v18513_v31, %v16869_v26 }
 0x3e4   : > { %15645 = vmatpush3.bf16.xpose.msk.msra.mxu1 %vm15644_vm4, %v16702_v9  ;;  %15622 = vmatprep.subr.bf16.mxu0 %v16699_v1  ;;  %vm4468_vm4 = vcmp.eq.s32.totalorder %v18513_v31, %v16872_v27 }
 0x3e5   : > { %15646 = vmatprep.subr.bf16.mxu1 %v16699_v1  ;;  %vm15629_vm7 = vmpackc.low %vm4468_vm4, %vm4467_vm3  ;;  %vm4612_vm3 = vcmp.eq.s32.totalorder %v18517_v35, %v16905_v36  ;;  %vm4613_vm4 = vcmp.eq.s32.totalorder %v18517_v35, %v16908_v37 }
 0x3e6   : > { %vm15659_vm6 = vmpackc.low %vm4613_vm4, %vm4612_vm3 }
 0x3eb   : > { %15624 = vmatpush3.bf16.xpose.msk.msra.mxu0 %vm15623_vm9, %v16702_v9  ;;  %vm4469_vm9 = vcmp.eq.s32.totalorder %v18513_v31, %v16887_v32 }
 0x3ec   : > { %15648 = vmatpush3.bf16.xpose.msk.msra.mxu1 %vm15647_vm10, %v16702_v9  ;;  %15625 = vmatprep.subr.bf16.mxu0 %v16699_v1  ;;  %vm4470_vm10 = vcmp.eq.s32.totalorder %v18513_v31, %v16890_v33 }
 0x3ed   : > { %v3445_v52 = vpop.f32.mrb[22].mxu0  ;;  %15649 = vmatprep.subr.bf16.mxu1 %v16699_v1  ;;  %vm15632_vm14 = vmpackc.low %vm4470_vm10, %vm4469_vm9  ;;  %vm4614_vm9 = vcmp.eq.s32.totalorder %v18517_v35, %v16923_v40  ;;  %vm4615_vm10 = vcmp.eq.s32.totalorder %v18517_v35, %v16926_v41 }
 0x3ee   : > { %v3449_v54 = vadd.f32 %v3445_v52, %v18462_v11  ;;  %v13460_v55 = vpop.f32.mrb[23].mxu0  ;;  %v3586_v56 = vpop.f32.mrb[22].mxu1  ;;  %v4451_v11 = vmul.f32 %v16552_v6, %v16552_v6  ;;  %vm15662_vm13 = vmpackc.low %vm4615_vm10, %vm4614_vm9  ;;  %v4869_v52 = vadd.f32 %v4868_v48, %v4867_v42  ;;  %v18743_v6 = vld [vmem:[%s16789_s26 + $0x23] ss:$0 sm:$0xff] }
 0x3ef   : > { %v13495_v58 = vpop.f32.mrb[23].mxu1 }
 0x3f0   : > { %v18575_v59 = vadd.f32 %v3586_v56, %v3449_v54  ;;  %v4452_v13 = vmul.f32 %v4451_v11, %v4451_v11  ;;  %v4870_v54 = vrot.slane %v4869_v52, 1 }
 0x3f2   : > { %v4453_v17 = vmul.f32 %v4452_v13, %v4451_v11  ;;  %v4871_v56 = vadd.f32 %v4870_v54, %v4869_v52  ;;  %v10550_v13 = vld [vmem:[%s16814_s30 + $0x8c] sm:$0x7] }
 0x3f3   : > { %15627 = vmatpush3.bf16.xpose.msk.msra.mxu0 %vm15626_vm1, %v16702_v9  ;;  %vm4471_vm1 = vcmp.eq.s32.totalorder %v18513_v31, %v16905_v36 }
 0x3f4   : > { %15651 = vmatpush3.bf16.xpose.msk.msra.mxu1 %vm15650_vm2, %v16702_v9  ;;  %15628 = vmatprep.subr.bf16.mxu0 %v16699_v1  ;;  %vm4472_vm2 = vcmp.eq.s32.totalorder %v18513_v31, %v16908_v37  ;;  %v4454_v23 = vmul.f32 0.5, %v4453_v17  ;;  %v5146_v17 = vmul.f32 %v10550_v13, %v10550_v13 }
 0x3f5   : > { %15652 = vmatprep.subr.bf16.mxu1 %v16699_v1  ;;  %vm15635_vm5 = vmpackc.low %vm4472_vm2, %vm4471_vm1  ;;  %vm4882_vm1 = vcmp.eq.s32.totalorder %v18630_v22, %v16777_v2  ;;  %vm4883_vm2 = vcmp.eq.s32.totalorder %v18630_v22, %v16784_v4 }
 0x3f6   : > { %vm15689_vm4 = vmpackc.low %vm4883_vm2, %vm4882_vm1  ;;  %v5147_v19 = vsel %vm213_vm12, %v5146_v17, 0.0 }
 0x3fb   : > { %15630 = vmatpush3.bf16.xpose.msk.msra.mxu0 %vm15629_vm7, %v16702_v9  ;;  %vm4473_vm7 = vcmp.eq.s32.totalorder %v18513_v31, %v16923_v40 }
 0x3fc   : > { %15654 = vmatpush3.bf16.xpose.msk.msra.mxu1 %vm15653_vm8, %v16702_v9  ;;  %15631 = vmatprep.subr.bf16.mxu0 %v16699_v1  ;;  %vm4474_vm8 = vcmp.eq.s32.totalorder %v18513_v31, %v16926_v41  ;;  %v4724_v31 = vsel %vm213_vm12, %v4723_v29, 0.0 }
 0x3fd   : > { %15655 = vmatprep.subr.bf16.mxu1 %v16699_v1  ;;  %vm15638_vm11 = vmpackc.low %vm4474_vm8, %vm4473_vm7  ;;  %vm4884_vm7 = vcmp.eq.s32.totalorder %v18630_v22, %v16798_v7  ;;  %vm4885_vm8 = vcmp.eq.s32.totalorder %v18630_v22, %v16801_v8  ;;  %v4725_v35 = vrot.slane %v4724_v31, 4 }
 0x3fe   : > { %vm15692_vm10 = vmpackc.low %vm4885_vm8, %vm4884_vm7 }
 0x3ff   : > { %v4726_v39 = vadd.f32 %v4725_v35, %v4724_v31 }
 0x401   : > { %v4727_v44 = vrot.slane %v4726_v39, 2 }
 0x403   : > { %15633 = vmatpush3.bf16.xpose.msk.msra.mxu0 %vm15632_vm14, %v16702_v9  ;;  %vm4741_vm14 = vcmp.eq.s32.totalorder %v18626_v18, %v16777_v2  ;;  %v4728_v51 = vadd.f32 %v4727_v44, %v4726_v39 }
 0x404   : > { %15657 = vmatpush3.bf16.xpose.msk.msra.mxu1 %vm15656_vm15, %v16702_v9  ;;  %15634 = vmatprep.subr.bf16.mxu0 %v16699_v1  ;;  %vm4742_vm15 = vcmp.eq.s32.totalorder %v18626_v18, %v16784_v4 }
 0x405   : > { %15658 = vmatprep.subr.bf16.mxu1 %v16699_v1  ;;  %vm15665_vm3 = vmpackc.low %vm4742_vm15, %vm4741_vm14  ;;  %vm4886_vm14 = vcmp.eq.s32.totalorder %v18630_v22, %v16831_v14  ;;  %vm4887_vm15 = vcmp.eq.s32.totalorder %v18630_v22, %v16834_v15  ;;  %v4729_v53 = vrot.slane %v4728_v51, 1 }
 0x406   : > { %vm15695_vm2 = vmpackc.low %vm4887_vm15, %vm4886_vm14 }
 0x407   : > { %v4730_v55 = vadd.f32 %v4729_v53, %v4728_v51 }
 0x409   : > { %16555 = vrcp.f32 %v4730_v55  ;;  %v18852_v55 = vld [vmem:[%s16789_s26 + $0x24] ss:$0 sm:$0xff] }
 0x40a   : > { %16557 = vrcp.f32 %v4871_v56 }
 0x40b   : > { %15636 = vmatpush3.bf16.xpose.msk.msra.mxu0 %vm15635_vm5, %v16702_v9  ;;  %vm4743_vm5 = vcmp.eq.s32.totalorder %v18626_v18, %v16798_v7 }
 0x40c   : > { %15660 = vmatpush3.bf16.xpose.msk.msra.mxu1 %vm15659_vm6, %v16702_v9  ;;  %15637 = vmatprep.subr.bf16.mxu0 %v16699_v1  ;;  %vm4744_vm6 = vcmp.eq.s32.totalorder %v18626_v18, %v16801_v8 }
 0x40d   : > { %15661 = vmatprep.subr.bf16.mxu1 %v16699_v1  ;;  %vm15668_vm9 = vmpackc.low %vm4744_vm6, %vm4743_vm5  ;;  %vm4888_vm5 = vcmp.eq.s32.totalorder %v18630_v22, %v16851_v20  ;;  %vm4889_vm6 = vcmp.eq.s32.totalorder %v18630_v22, %v16854_v21 }
 0x40e   : > { %vm15698_vm8 = vmpackc.low %vm4889_vm6, %vm4888_vm5 }
 0x413   : > { %15639 = vmatpush3.bf16.xpose.msk.msra.mxu0 %vm15638_vm11, %v16702_v9  ;;  %vm4745_vm11 = vcmp.eq.s32.totalorder %v18626_v18, %v16831_v14  ;;  %v16556_v57 = vpop.eup %16555 }
 0x414   : > { %15663 = vmatpush3.bf16.xpose.msk.msra.mxu1 %vm15662_vm13, %v16702_v9  ;;  %15664 = vmatprep.subr.bf16.mxu0 %v16699_v1  ;;  %vm4746_vm13 = vcmp.eq.s32.totalorder %v18626_v18, %v16834_v15  ;;  %v16558_v58 = vpop.eup %16557 }
 0x415   : > { %15688 = vmatprep.subr.bf16.mxu1 %v16699_v1  ;;  %vm15671_vm1 = vmpackc.low %vm4746_vm13, %vm4745_vm11  ;;  %vm4890_vm11 = vcmp.eq.s32.totalorder %v18630_v22, %v16869_v26  ;;  %vm4891_vm13 = vcmp.eq.s32.totalorder %v18630_v22, %v16872_v27  ;;  %v4874_v60 = vmul.f32 %v16558_v58, %v16558_v58 }
 0x416   : > { %vm15701_vm15 = vmpackc.low %vm4891_vm13, %vm4890_vm11 }
 0x417   : > { %v4875_v62 = vmul.f32 %v4874_v60, %v4874_v60 }
 0x419   : > { %v4876_v5 = vmul.f32 %v4875_v62, %v4874_v60  ;;  %v10585_v60 = vld [vmem:[%s16814_s30 + $0x90] sm:$0x7] }
 0x41a   : > { %13739 = vmatmul.mubr.f32.vlgmr.msra.gmra.mrb[30].mxu0 %v4454_v23  ;;  %v5148_v23 = vrot.slane %v5147_v19, 4  ;;  %v5287_v62 = vmul.f32 %v10585_v60, %v10585_v60 }
 0x41b   : > { %15666 = vmatpush3.bf16.xpose.msk.msra.mxu0 %vm15665_vm3, %v16702_v9  ;;  %13774 = vmatmul.mubr.f32.vlgmr.msra.gmra.mrb[30].mxu1 %v4595_v24  ;;  %vm4747_vm3 = vcmp.eq.s32.totalorder %v18626_v18, %v16851_v20  ;;  %v4877_v11 = vmul.f32 0.5, %v4876_v5 }
 0x41c   : > { %15690 = vmatpush3.bf16.xpose.msk.msra.mxu1 %vm15689_vm4, %v16702_v9  ;;  %15667 = vmatprep.subr.bf16.mxu0 %v16699_v1  ;;  %vm4748_vm4 = vcmp.eq.s32.totalorder %v18626_v18, %v16854_v21  ;;  %v5149_v25 = vadd.f32 %v5148_v23, %v5147_v19 }
 0x41d   : > { %15691 = vmatprep.subr.bf16.mxu1 %v16699_v1  ;;  %13808 = vmatprep.mubr.msk.f32.mxu0 %vm16700_vm0, %v16701_v3  ;;  %vm15674_vm7 = vmpackc.low %vm4748_vm4, %vm4747_vm3  ;;  %vm4892_vm3 = vcmp.eq.s32.totalorder %v18630_v22, %v16887_v32  ;;  %vm4893_vm4 = vcmp.eq.s32.totalorder %v18630_v22, %v16890_v33 }
 0x41e   : > { %13843 = vmatprep.mubr.msk.f32.mxu1 %vm16700_vm0, %v16701_v3  ;;  %vm15704_vm6 = vmpackc.low %vm4893_vm4, %vm4892_vm3  ;;  %v5150_v35 = vrot.slane %v5149_v25, 2 }
 0x423   : > { %15669 = vmatpush3.bf16.xpose.msk.msra.mxu0 %vm15668_vm9, %v16702_v9  ;;  %vm4749_vm9 = vcmp.eq.s32.totalorder %v18626_v18, %v16869_v26 }
 0x424   : > { %15693 = vmatpush3.bf16.xpose.msk.msra.mxu1 %vm15692_vm10, %v16702_v9  ;;  %15670 = vmatprep.subr.bf16.mxu0 %v16699_v1  ;;  %vm4750_vm10 = vcmp.eq.s32.totalorder %v18626_v18, %v16872_v27 }
 0x425   : > { %15694 = vmatprep.subr.bf16.mxu1 %v16699_v1  ;;  %vm15677_vm14 = vmpackc.low %vm4750_vm10, %vm4749_vm9  ;;  %vm4894_vm9 = vcmp.eq.s32.totalorder %v18630_v22, %v16905_v36  ;;  %vm4895_vm10 = vcmp.eq.s32.totalorder %v18630_v22, %v16908_v37 }
 0x426   : > { %vm15707_vm13 = vmpackc.low %vm4895_vm10, %vm4894_vm9 }
 0x42b   : > { %15672 = vmatpush3.bf16.xpose.msk.msra.mxu0 %vm15671_vm1, %v16702_v9  ;;  %vm4751_vm1 = vcmp.eq.s32.totalorder %v18626_v18, %v16887_v32 }
 0x42c   : > { %15696 = vmatpush3.bf16.xpose.msk.msra.mxu1 %vm15695_vm2, %v16702_v9  ;;  %15673 = vmatprep.subr.bf16.mxu0 %v16699_v1  ;;  %vm4752_vm2 = vcmp.eq.s32.totalorder %v18626_v18, %v16890_v33 }
 0x42d   : > { %v3727_v43 = vpop.f32.mrb[24].mxu0  ;;  %15697 = vmatprep.subr.bf16.mxu1 %v16699_v1  ;;  %vm15680_vm5 = vmpackc.low %vm4752_vm2, %vm4751_vm1  ;;  %vm4896_vm1 = vcmp.eq.s32.totalorder %v18630_v22, %v16923_v40  ;;  %vm4897_vm2 = vcmp.eq.s32.totalorder %v18630_v22, %v16926_v41 }
 0x42e   : > { %v3731_v45 = vadd.f32 %v3727_v43, %v18575_v59  ;;  %v13530_v46 = vpop.f32.mrb[25].mxu0  ;;  %v3868_v47 = vpop.f32.mrb[24].mxu1  ;;  %v4733_v59 = vmul.f32 %v16556_v57, %v16556_v57  ;;  %vm15710_vm4 = vmpackc.low %vm4897_vm2, %vm4896_vm1  ;;  %v5151_v43 = vadd.f32 %v5150_v35, %v5149_v25  ;;  %v18856_v57 = vld [vmem:[%s16789_s26 + $0x25] ss:$0 sm:$0xff] }
 0x42f   : > { %v13565_v49 = vpop.f32.mrb[25].mxu1 }
 0x430   : > { %v18688_v50 = vadd.f32 %v3868_v47, %v3731_v45  ;;  %v4734_v61 = vmul.f32 %v4733_v59, %v4733_v59  ;;  %v5152_v45 = vrot.slane %v5151_v43, 1 }
 0x432   : > { %v4735_v63 = vmul.f32 %v4734_v61, %v4733_v59  ;;  %v5153_v47 = vadd.f32 %v5152_v45, %v5151_v43  ;;  %v10620_v61 = vld [vmem:[%s16814_s30 + $0x94] sm:$0x7] }
 0x433   : > { %15675 = vmatpush3.bf16.xpose.msk.msra.mxu0 %vm15674_vm7, %v16702_v9  ;;  %vm4753_vm7 = vcmp.eq.s32.totalorder %v18626_v18, %v16905_v36 }
 0x434   : > { %15699 = vmatpush3.bf16.xpose.msk.msra.mxu1 %vm15698_vm8, %v16702_v9  ;;  %15676 = vmatprep.subr.bf16.mxu0 %v16699_v1  ;;  %vm4754_vm8 = vcmp.eq.s32.totalorder %v18626_v18, %v16908_v37  ;;  %v4736_v10 = vmul.f32 0.5, %v4735_v63  ;;  %v5428_v63 = vmul.f32 %v10620_v61, %v10620_v61 }
 0x435   : > { %15700 = vmatprep.subr.bf16.mxu1 %v16699_v1  ;;  %vm15683_vm11 = vmpackc.low %vm4754_vm8, %vm4753_vm7  ;;  %vm5164_vm7 = vcmp.eq.s32.totalorder %v18743_v6, %v16777_v2  ;;  %vm5165_vm8 = vcmp.eq.s32.totalorder %v18743_v6, %v16784_v4 }
 0x436   : > { %vm15737_vm10 = vmpackc.low %vm5165_vm8, %vm5164_vm7  ;;  %v5429_v5 = vsel %vm213_vm12, %v5428_v63, 0.0 }
 0x43b   : > { %15678 = vmatpush3.bf16.xpose.msk.msra.mxu0 %vm15677_vm14, %v16702_v9  ;;  %vm4755_vm14 = vcmp.eq.s32.totalorder %v18626_v18, %v16923_v40 }
 0x43c   : > { %15702 = vmatpush3.bf16.xpose.msk.msra.mxu1 %vm15701_vm15, %v16702_v9  ;;  %15679 = vmatprep.subr.bf16.mxu0 %v16699_v1  ;;  %vm4756_vm15 = vcmp.eq.s32.totalorder %v18626_v18, %v16926_v41  ;;  %v5006_v18 = vsel %vm213_vm12, %v5005_v16, 0.0 }
 0x43d   : > { %15703 = vmatprep.subr.bf16.mxu1 %v16699_v1  ;;  %vm15686_vm3 = vmpackc.low %vm4756_vm15, %vm4755_vm14  ;;  %vm5166_vm14 = vcmp.eq.s32.totalorder %v18743_v6, %v16798_v7  ;;  %vm5167_vm15 = vcmp.eq.s32.totalorder %v18743_v6, %v16801_v8  ;;  %v5007_v22 = vrot.slane %v5006_v18, 4 }
 0x43e   : > { %vm15740_vm2 = vmpackc.low %vm5167_vm15, %vm5166_vm14 }
 0x43f   : > { %v5008_v24 = vadd.f32 %v5007_v22, %v5006_v18 }
 0x441   : > { %v5009_v29 = vrot.slane %v5008_v24, 2 }
 0x443   : > { %15681 = vmatpush3.bf16.xpose.msk.msra.mxu0 %vm15680_vm5, %v16702_v9  ;;  %vm5023_vm5 = vcmp.eq.s32.totalorder %v18739_v0, %v16777_v2  ;;  %v5010_v42 = vadd.f32 %v5009_v29, %v5008_v24 }
 0x444   : > { %15705 = vmatpush3.bf16.xpose.msk.msra.mxu1 %vm15704_vm6, %v16702_v9  ;;  %15682 = vmatprep.subr.bf16.mxu0 %v16699_v1  ;;  %vm5024_vm6 = vcmp.eq.s32.totalorder %v18739_v0, %v16784_v4 }
 0x445   : > { %15706 = vmatprep.subr.bf16.mxu1 %v16699_v1  ;;  %vm15713_vm9 = vmpackc.low %vm5024_vm6, %vm5023_vm5  ;;  %vm5168_vm5 = vcmp.eq.s32.totalorder %v18743_v6, %v16831_v14  ;;  %vm5169_vm6 = vcmp.eq.s32.totalorder %v18743_v6, %v16834_v15  ;;  %v5011_v44 = vrot.slane %v5010_v42, 1 }
 0x446   : > { %vm15743_vm8 = vmpackc.low %vm5169_vm6, %vm5168_vm5 }
 0x447   : > { %v5012_v46 = vadd.f32 %v5011_v44, %v5010_v42 }
 0x449   : > { %16559 = vrcp.f32 %v5012_v46  ;;  %v18965_v46 = vld [vmem:[%s16789_s26 + $0x26] ss:$0 sm:$0xff] }
 0x44a   : > { %16561 = vrcp.f32 %v5153_v47 }
 0x44b   : > { %15684 = vmatpush3.bf16.xpose.msk.msra.mxu0 %vm15683_vm11, %v16702_v9  ;;  %vm5025_vm11 = vcmp.eq.s32.totalorder %v18739_v0, %v16798_v7 }
 0x44c   : > { %15708 = vmatpush3.bf16.xpose.msk.msra.mxu1 %vm15707_vm13, %v16702_v9  ;;  %15685 = vmatprep.subr.bf16.mxu0 %v16699_v1  ;;  %vm5026_vm13 = vcmp.eq.s32.totalorder %v18739_v0, %v16801_v8 }
 0x44d   : > { %15709 = vmatprep.subr.bf16.mxu1 %v16699_v1  ;;  %vm15716_vm1 = vmpackc.low %vm5026_vm13, %vm5025_vm11  ;;  %vm5170_vm11 = vcmp.eq.s32.totalorder %v18743_v6, %v16851_v20  ;;  %vm5171_vm13 = vcmp.eq.s32.totalorder %v18743_v6, %v16854_v21 }
 0x44e   : > { %vm15746_vm15 = vmpackc.low %vm5171_vm13, %vm5170_vm11 }
 0x453   : > { %15687 = vmatpush3.bf16.xpose.msk.msra.mxu0 %vm15686_vm3, %v16702_v9  ;;  %vm5027_vm3 = vcmp.eq.s32.totalorder %v18739_v0, %v16831_v14  ;;  %v16560_v48 = vpop.eup %16559 }
 0x454   : > { %15711 = vmatpush3.bf16.xpose.msk.msra.mxu1 %vm15710_vm4, %v16702_v9  ;;  %15712 = vmatprep.subr.bf16.mxu0 %v16699_v1  ;;  %vm5028_vm4 = vcmp.eq.s32.totalorder %v18739_v0, %v16834_v15  ;;  %v16562_v49 = vpop.eup %16561 }
 0x455   : > { %15736 = vmatprep.subr.bf16.mxu1 %v16699_v1  ;;  %vm15719_vm7 = vmpackc.low %vm5028_vm4, %vm5027_vm3  ;;  %vm5172_vm3 = vcmp.eq.s32.totalorder %v18743_v6, %v16869_v26  ;;  %vm5173_vm4 = vcmp.eq.s32.totalorder %v18743_v6, %v16872_v27  ;;  %v5156_v51 = vmul.f32 %v16562_v49, %v16562_v49 }
 0x456   : > { %vm15749_vm6 = vmpackc.low %vm5173_vm4, %vm5172_vm3 }
 0x457   : > { %v5157_v53 = vmul.f32 %v5156_v51, %v5156_v51 }
 0x459   : > { %v5158_v56 = vmul.f32 %v5157_v53, %v5156_v51  ;;  %v10655_v51 = vld [vmem:[%s16814_s30 + $0x98] sm:$0x7] }
 0x45a   : > { %13809 = vmatmul.mubr.f32.vlgmr.msra.gmra.mrb[32].mxu0 %v4736_v10  ;;  %v5430_v10 = vrot.slane %v5429_v5, 4  ;;  %v5569_v53 = vmul.f32 %v10655_v51, %v10655_v51 }
 0x45b   : > { %15714 = vmatpush3.bf16.xpose.msk.msra.mxu0 %vm15713_vm9, %v16702_v9  ;;  %13844 = vmatmul.mubr.f32.vlgmr.msra.gmra.mrb[32].mxu1 %v4877_v11  ;;  %vm5029_vm9 = vcmp.eq.s32.totalorder %v18739_v0, %v16851_v20  ;;  %v5159_v59 = vmul.f32 0.5, %v5158_v56 }
 0x45c   : > { %15738 = vmatpush3.bf16.xpose.msk.msra.mxu1 %vm15737_vm10, %v16702_v9  ;;  %15715 = vmatprep.subr.bf16.mxu0 %v16699_v1  ;;  %vm5030_vm10 = vcmp.eq.s32.totalorder %v18739_v0, %v16854_v21  ;;  %v5431_v12 = vadd.f32 %v5430_v10, %v5429_v5 }
 0x45d   : > { %15739 = vmatprep.subr.bf16.mxu1 %v16699_v1  ;;  %13878 = vmatprep.mubr.msk.f32.mxu0 %vm16700_vm0, %v16701_v3  ;;  %vm15722_vm14 = vmpackc.low %vm5030_vm10, %vm5029_vm9  ;;  %vm5174_vm9 = vcmp.eq.s32.totalorder %v18743_v6, %v16887_v32  ;;  %vm5175_vm10 = vcmp.eq.s32.totalorder %v18743_v6, %v16890_v33 }
 0x45e   : > { %13913 = vmatprep.mubr.msk.f32.mxu1 %vm16700_vm0, %v16701_v3  ;;  %vm15752_vm13 = vmpackc.low %vm5175_vm10, %vm5174_vm9  ;;  %v5432_v22 = vrot.slane %v5431_v12, 2 }
 0x463   : > { %15717 = vmatpush3.bf16.xpose.msk.msra.mxu0 %vm15716_vm1, %v16702_v9  ;;  %vm5031_vm1 = vcmp.eq.s32.totalorder %v18739_v0, %v16869_v26 }
 0x464   : > { %15741 = vmatpush3.bf16.xpose.msk.msra.mxu1 %vm15740_vm2, %v16702_v9  ;;  %15718 = vmatprep.subr.bf16.mxu0 %v16699_v1  ;;  %vm5032_vm2 = vcmp.eq.s32.totalorder %v18739_v0, %v16872_v27 }
 0x465   : > { %15742 = vmatprep.subr.bf16.mxu1 %v16699_v1  ;;  %vm15725_vm5 = vmpackc.low %vm5032_vm2, %vm5031_vm1  ;;  %vm5176_vm1 = vcmp.eq.s32.totalorder %v18743_v6, %v16905_v36  ;;  %vm5177_vm2 = vcmp.eq.s32.totalorder %v18743_v6, %v16908_v37 }
 0x466   : > { %vm15755_vm4 = vmpackc.low %vm5177_vm2, %vm5176_vm1 }
 0x46b   : > { %15720 = vmatpush3.bf16.xpose.msk.msra.mxu0 %vm15719_vm7, %v16702_v9  ;;  %vm5033_vm7 = vcmp.eq.s32.totalorder %v18739_v0, %v16887_v32 }
 0x46c   : > { %15744 = vmatpush3.bf16.xpose.msk.msra.mxu1 %vm15743_vm8, %v16702_v9  ;;  %15721 = vmatprep.subr.bf16.mxu0 %v16699_v1  ;;  %vm5034_vm8 = vcmp.eq.s32.totalorder %v18739_v0, %v16890_v33 }
 0x46d   : > { %v4009_v28 = vpop.f32.mrb[26].mxu0  ;;  %15745 = vmatprep.subr.bf16.mxu1 %v16699_v1  ;;  %vm15728_vm11 = vmpackc.low %vm5034_vm8, %vm5033_vm7  ;;  %vm5178_vm7 = vcmp.eq.s32.totalorder %v18743_v6, %v16923_v40  ;;  %vm5179_vm8 = vcmp.eq.s32.totalorder %v18743_v6, %v16926_v41 }
 0x46e   : > { %v4013_v30 = vadd.f32 %v4009_v28, %v18688_v50  ;;  %v13600_v31 = vpop.f32.mrb[27].mxu0  ;;  %v4150_v34 = vpop.f32.mrb[26].mxu1  ;;  %v5015_v50 = vmul.f32 %v16560_v48, %v16560_v48  ;;  %vm15758_vm10 = vmpackc.low %vm5179_vm8, %vm5178_vm7  ;;  %v5433_v28 = vadd.f32 %v5432_v22, %v5431_v12  ;;  %v18969_v48 = vld [vmem:[%s16789_s26 + $0x27] ss:$0 sm:$0xff] }
 0x46f   : > { %v13635_v38 = vpop.f32.mrb[27].mxu1 }
 0x470   : > { %v18801_v39 = vadd.f32 %v4150_v34, %v4013_v30  ;;  %v5016_v52 = vmul.f32 %v5015_v50, %v5015_v50  ;;  %v5434_v30 = vrot.slane %v5433_v28, 1 }
 0x472   : > { %v5017_v54 = vmul.f32 %v5016_v52, %v5015_v50  ;;  %v5435_v34 = vadd.f32 %v5434_v30, %v5433_v28  ;;  %v10690_v52 = vld [vmem:[%s16814_s30 + $0x9c] sm:$0x7] }
 0x473   : > { %15723 = vmatpush3.bf16.xpose.msk.msra.mxu0 %vm15722_vm14, %v16702_v9  ;;  %vm5035_vm14 = vcmp.eq.s32.totalorder %v18739_v0, %v16905_v36 }
 0x474   : > { %15747 = vmatpush3.bf16.xpose.msk.msra.mxu1 %vm15746_vm15, %v16702_v9  ;;  %15724 = vmatprep.subr.bf16.mxu0 %v16699_v1  ;;  %vm5036_vm15 = vcmp.eq.s32.totalorder %v18739_v0, %v16908_v37  ;;  %v5018_v58 = vmul.f32 0.5, %v5017_v54  ;;  %v5710_v54 = vmul.f32 %v10690_v52, %v10690_v52 }
 0x475   : > { %15748 = vmatprep.subr.bf16.mxu1 %v16699_v1  ;;  %vm15731_vm3 = vmpackc.low %vm5036_vm15, %vm5035_vm14  ;;  %vm5446_vm14 = vcmp.eq.s32.totalorder %v18856_v57, %v16777_v2  ;;  %vm5447_vm15 = vcmp.eq.s32.totalorder %v18856_v57, %v16784_v4 }
 0x476   : > { %vm15785_vm2 = vmpackc.low %vm5447_vm15, %vm5446_vm14  ;;  %v5711_v56 = vsel %vm213_vm12, %v5710_v54, 0.0 }
 0x47b   : > { %15726 = vmatpush3.bf16.xpose.msk.msra.mxu0 %vm15725_vm5, %v16702_v9  ;;  %vm5037_vm5 = vcmp.eq.s32.totalorder %v18739_v0, %v16923_v40 }
 0x47c   : > { %15750 = vmatpush3.bf16.xpose.msk.msra.mxu1 %vm15749_vm6, %v16702_v9  ;;  %15727 = vmatprep.subr.bf16.mxu0 %v16699_v1  ;;  %vm5038_vm6 = vcmp.eq.s32.totalorder %v18739_v0, %v16926_v41  ;;  %v5288_v0 = vsel %vm213_vm12, %v5287_v62, 0.0 }
 0x47d   : > { %15751 = vmatprep.subr.bf16.mxu1 %v16699_v1  ;;  %vm15734_vm9 = vmpackc.low %vm5038_vm6, %vm5037_vm5  ;;  %vm5448_vm5 = vcmp.eq.s32.totalorder %v18856_v57, %v16798_v7  ;;  %vm5449_vm6 = vcmp.eq.s32.totalorder %v18856_v57, %v16801_v8  ;;  %v5289_v6 = vrot.slane %v5288_v0, 4 }
 0x47e   : > { %vm15788_vm8 = vmpackc.low %vm5449_vm6, %vm5448_vm5 }
 0x47f   : > { %v5290_v11 = vadd.f32 %v5289_v6, %v5288_v0 }
 0x481   : > { %v5291_v16 = vrot.slane %v5290_v11, 2 }
 0x483   : > { %15729 = vmatpush3.bf16.xpose.msk.msra.mxu0 %vm15728_vm11, %v16702_v9  ;;  %vm5305_vm11 = vcmp.eq.s32.totalorder %v18852_v55, %v16777_v2  ;;  %v5292_v25 = vadd.f32 %v5291_v16, %v5290_v11 }
 0x484   : > { %15753 = vmatpush3.bf16.xpose.msk.msra.mxu1 %vm15752_vm13, %v16702_v9  ;;  %15730 = vmatprep.subr.bf16.mxu0 %v16699_v1  ;;  %vm5306_vm13 = vcmp.eq.s32.totalorder %v18852_v55, %v16784_v4 }
 0x485   : > { %15754 = vmatprep.subr.bf16.mxu1 %v16699_v1  ;;  %vm15761_vm1 = vmpackc.low %vm5306_vm13, %vm5305_vm11  ;;  %vm5450_vm11 = vcmp.eq.s32.totalorder %v18856_v57, %v16831_v14  ;;  %vm5451_vm13 = vcmp.eq.s32.totalorder %v18856_v57, %v16834_v15  ;;  %v5293_v29 = vrot.slane %v5292_v25, 1 }
 0x486   : > { %vm15791_vm15 = vmpackc.low %vm5451_vm13, %vm5450_vm11 }
 0x487   : > { %v5294_v31 = vadd.f32 %v5293_v29, %v5292_v25 }
 0x489   : > { %16563 = vrcp.f32 %v5294_v31  ;;  %v19078_v31 = vld [vmem:[%s16789_s26 + $0x28] ss:$0 sm:$0xff] }
 0x48a   : > { %16565 = vrcp.f32 %v5435_v34 }
 0x48b   : > { %15732 = vmatpush3.bf16.xpose.msk.msra.mxu0 %vm15731_vm3, %v16702_v9  ;;  %vm5307_vm3 = vcmp.eq.s32.totalorder %v18852_v55, %v16798_v7 }
 0x48c   : > { %15756 = vmatpush3.bf16.xpose.msk.msra.mxu1 %vm15755_vm4, %v16702_v9  ;;  %15733 = vmatprep.subr.bf16.mxu0 %v16699_v1  ;;  %vm5308_vm4 = vcmp.eq.s32.totalorder %v18852_v55, %v16801_v8 }
 0x48d   : > { %15757 = vmatprep.subr.bf16.mxu1 %v16699_v1  ;;  %vm15764_vm7 = vmpackc.low %vm5308_vm4, %vm5307_vm3  ;;  %vm5452_vm3 = vcmp.eq.s32.totalorder %v18856_v57, %v16851_v20  ;;  %vm5453_vm4 = vcmp.eq.s32.totalorder %v18856_v57, %v16854_v21 }
 0x48e   : > { %vm15794_vm6 = vmpackc.low %vm5453_vm4, %vm5452_vm3 }
 0x493   : > { %15735 = vmatpush3.bf16.xpose.msk.msra.mxu0 %vm15734_vm9, %v16702_v9  ;;  %vm5309_vm9 = vcmp.eq.s32.totalorder %v18852_v55, %v16831_v14  ;;  %v16564_v35 = vpop.eup %16563 }
 0x494   : > { %15759 = vmatpush3.bf16.xpose.msk.msra.mxu1 %vm15758_vm10, %v16702_v9  ;;  %15760 = vmatprep.subr.bf16.mxu0 %v16699_v1  ;;  %vm5310_vm10 = vcmp.eq.s32.totalorder %v18852_v55, %v16834_v15  ;;  %v16566_v38 = vpop.eup %16565 }
 0x495   : > { %15784 = vmatprep.subr.bf16.mxu1 %v16699_v1  ;;  %vm15767_vm14 = vmpackc.low %vm5310_vm10, %vm5309_vm9  ;;  %vm5454_vm9 = vcmp.eq.s32.totalorder %v18856_v57, %v16869_v26  ;;  %vm5455_vm10 = vcmp.eq.s32.totalorder %v18856_v57, %v16872_v27  ;;  %v5438_v42 = vmul.f32 %v16566_v38, %v16566_v38 }
 0x496   : > { %vm15797_vm13 = vmpackc.low %vm5455_vm10, %vm5454_vm9 }
 0x497   : > { %v5439_v44 = vmul.f32 %v5438_v42, %v5438_v42 }
 0x499   : > { %v5440_v47 = vmul.f32 %v5439_v44, %v5438_v42  ;;  %v10725_v42 = vld [vmem:[%s16814_s30 + $0xa0] sm:$0x7] }
 0x49a   : > { %13879 = vmatmul.mubr.f32.vlgmr.msra.gmra.mrb[34].mxu0 %v5018_v58  ;;  %v5712_v58 = vrot.slane %v5711_v56, 4  ;;  %v5851_v44 = vmul.f32 %v10725_v42, %v10725_v42 }
 0x49b   : > { %15762 = vmatpush3.bf16.xpose.msk.msra.mxu0 %vm15761_vm1, %v16702_v9  ;;  %13914 = vmatmul.mubr.f32.vlgmr.msra.gmra.mrb[34].mxu1 %v5159_v59  ;;  %vm5311_vm1 = vcmp.eq.s32.totalorder %v18852_v55, %v16851_v20  ;;  %v5441_v50 = vmul.f32 0.5, %v5440_v47 }
 0x49c   : > { %15786 = vmatpush3.bf16.xpose.msk.msra.mxu1 %vm15785_vm2, %v16702_v9  ;;  %15763 = vmatprep.subr.bf16.mxu0 %v16699_v1  ;;  %vm5312_vm2 = vcmp.eq.s32.totalorder %v18852_v55, %v16854_v21  ;;  %v5713_v60 = vadd.f32 %v5712_v58, %v5711_v56 }
 0x49d   : > { %15787 = vmatprep.subr.bf16.mxu1 %v16699_v1  ;;  %13948 = vmatprep.mubr.msk.f32.mxu0 %vm16700_vm0, %v16701_v3  ;;  %vm15770_vm5 = vmpackc.low %vm5312_vm2, %vm5311_vm1  ;;  %vm5456_vm1 = vcmp.eq.s32.totalorder %v18856_v57, %v16887_v32  ;;  %vm5457_vm2 = vcmp.eq.s32.totalorder %v18856_v57, %v16890_v33 }
 0x49e   : > { %13983 = vmatprep.mubr.msk.f32.mxu1 %vm16700_vm0, %v16701_v3  ;;  %vm15800_vm4 = vmpackc.low %vm5457_vm2, %vm5456_vm1  ;;  %v5714_v6 = vrot.slane %v5713_v60, 2 }
 0x4a3   : > { %15765 = vmatpush3.bf16.xpose.msk.msra.mxu0 %vm15764_vm7, %v16702_v9  ;;  %vm5313_vm7 = vcmp.eq.s32.totalorder %v18852_v55, %v16869_v26 }
 0x4a4   : > { %15789 = vmatpush3.bf16.xpose.msk.msra.mxu1 %vm15788_vm8, %v16702_v9  ;;  %15766 = vmatprep.subr.bf16.mxu0 %v16699_v1  ;;  %vm5314_vm8 = vcmp.eq.s32.totalorder %v18852_v55, %v16872_v27 }
 0x4a5   : > { %15790 = vmatprep.subr.bf16.mxu1 %v16699_v1  ;;  %vm15773_vm11 = vmpackc.low %vm5314_vm8, %vm5313_vm7  ;;  %vm5458_vm7 = vcmp.eq.s32.totalorder %v18856_v57, %v16905_v36  ;;  %vm5459_vm8 = vcmp.eq.s32.totalorder %v18856_v57, %v16908_v37 }
 0x4a6   : > { %vm15803_vm10 = vmpackc.low %vm5459_vm8, %vm5458_vm7 }
 0x4ab   : > { %15768 = vmatpush3.bf16.xpose.msk.msra.mxu0 %vm15767_vm14, %v16702_v9  ;;  %vm5315_vm14 = vcmp.eq.s32.totalorder %v18852_v55, %v16887_v32 }
 0x4ac   : > { %15792 = vmatpush3.bf16.xpose.msk.msra.mxu1 %vm15791_vm15, %v16702_v9  ;;  %15769 = vmatprep.subr.bf16.mxu0 %v16699_v1  ;;  %vm5316_vm15 = vcmp.eq.s32.totalorder %v18852_v55, %v16890_v33 }
 0x4ad   : > { %v4291_v13 = vpop.f32.mrb[28].mxu0  ;;  %15793 = vmatprep.subr.bf16.mxu1 %v16699_v1  ;;  %vm15776_vm3 = vmpackc.low %vm5316_vm15, %vm5315_vm14  ;;  %vm5460_vm14 = vcmp.eq.s32.totalorder %v18856_v57, %v16923_v40  ;;  %vm5461_vm15 = vcmp.eq.s32.totalorder %v18856_v57, %v16926_v41 }
 0x4ae   : > { %v4295_v17 = vadd.f32 %v4291_v13, %v18801_v39  ;;  %v13670_v18 = vpop.f32.mrb[29].mxu0  ;;  %v4432_v19 = vpop.f32.mrb[28].mxu1  ;;  %v5297_v39 = vmul.f32 %v16564_v35, %v16564_v35  ;;  %vm15806_vm2 = vmpackc.low %vm5461_vm15, %vm5460_vm14  ;;  %v5715_v13 = vadd.f32 %v5714_v6, %v5713_v60  ;;  %v19082_v35 = vld [vmem:[%s16789_s26 + $0x29] ss:$0 sm:$0xff] }
 0x4af   : > { %v13705_v23 = vpop.f32.mrb[29].mxu1 }
 0x4b0   : > { %v18914_v24 = vadd.f32 %v4432_v19, %v4295_v17  ;;  %v5298_v43 = vmul.f32 %v5297_v39, %v5297_v39  ;;  %v5716_v17 = vrot.slane %v5715_v13, 1 }
 0x4b2   : > { %v5299_v45 = vmul.f32 %v5298_v43, %v5297_v39  ;;  %v5717_v19 = vadd.f32 %v5716_v17, %v5715_v13  ;;  %v10760_v43 = vld [vmem:[%s16814_s30 + $0xa4] sm:$0x7] }
 0x4b3   : > { %15771 = vmatpush3.bf16.xpose.msk.msra.mxu0 %vm15770_vm5, %v16702_v9  ;;  %vm5317_vm5 = vcmp.eq.s32.totalorder %v18852_v55, %v16905_v36 }
 0x4b4   : > { %15795 = vmatpush3.bf16.xpose.msk.msra.mxu1 %vm15794_vm6, %v16702_v9  ;;  %15772 = vmatprep.subr.bf16.mxu0 %v16699_v1  ;;  %vm5318_vm6 = vcmp.eq.s32.totalorder %v18852_v55, %v16908_v37  ;;  %v5300_v49 = vmul.f32 0.5, %v5299_v45  ;;  %v5992_v45 = vmul.f32 %v10760_v43, %v10760_v43 }
 0x4b5   : > { %15796 = vmatprep.subr.bf16.mxu1 %v16699_v1  ;;  %vm15779_vm9 = vmpackc.low %vm5318_vm6, %vm5317_vm5  ;;  %vm5728_vm5 = vcmp.eq.s32.totalorder %v18969_v48, %v16777_v2  ;;  %vm5729_vm6 = vcmp.eq.s32.totalorder %v18969_v48, %v16784_v4 }
 0x4b6   : > { %vm15833_vm8 = vmpackc.low %vm5729_vm6, %vm5728_vm5  ;;  %v5993_v47 = vsel %vm213_vm12, %v5992_v45, 0.0 }
 0x4bb   : > { %15774 = vmatpush3.bf16.xpose.msk.msra.mxu0 %vm15773_vm11, %v16702_v9  ;;  %vm5319_vm11 = vcmp.eq.s32.totalorder %v18852_v55, %v16923_v40 }
 0x4bc   : > { %15798 = vmatpush3.bf16.xpose.msk.msra.mxu1 %vm15797_vm13, %v16702_v9  ;;  %15775 = vmatprep.subr.bf16.mxu0 %v16699_v1  ;;  %vm5320_vm13 = vcmp.eq.s32.totalorder %v18852_v55, %v16926_v41  ;;  %v5570_v55 = vsel %vm213_vm12, %v5569_v53, 0.0 }
 0x4bd   : > { %15799 = vmatprep.subr.bf16.mxu1 %v16699_v1  ;;  %vm15782_vm1 = vmpackc.low %vm5320_vm13, %vm5319_vm11  ;;  %vm5730_vm11 = vcmp.eq.s32.totalorder %v18969_v48, %v16798_v7  ;;  %vm5731_vm13 = vcmp.eq.s32.totalorder %v18969_v48, %v16801_v8  ;;  %v5571_v57 = vrot.slane %v5570_v55, 4 }
 0x4be   : > { %vm15836_vm15 = vmpackc.low %vm5731_vm13, %vm5730_vm11 }
 0x4bf   : > { %v5572_v59 = vadd.f32 %v5571_v57, %v5570_v55 }
 0x4c1   : > { %v5573_v62 = vrot.slane %v5572_v59, 2 }
 0x4c3   : > { %15777 = vmatpush3.bf16.xpose.msk.msra.mxu0 %vm15776_vm3, %v16702_v9  ;;  %vm5587_vm3 = vcmp.eq.s32.totalorder %v18965_v46, %v16777_v2  ;;  %v5574_v12 = vadd.f32 %v5573_v62, %v5572_v59 }
 0x4c4   : > { %15801 = vmatpush3.bf16.xpose.msk.msra.mxu1 %vm15800_vm4, %v16702_v9  ;;  %15778 = vmatprep.subr.bf16.mxu0 %v16699_v1  ;;  %vm5588_vm4 = vcmp.eq.s32.totalorder %v18965_v46, %v16784_v4 }
 0x4c5   : > { %15802 = vmatprep.subr.bf16.mxu1 %v16699_v1  ;;  %vm15809_vm7 = vmpackc.low %vm5588_vm4, %vm5587_vm3  ;;  %vm5732_vm3 = vcmp.eq.s32.totalorder %v18969_v48, %v16831_v14  ;;  %vm5733_vm4 = vcmp.eq.s32.totalorder %v18969_v48, %v16834_v15  ;;  %v5575_v16 = vrot.slane %v5574_v12, 1 }
 0x4c6   : > { %vm15839_vm6 = vmpackc.low %vm5733_vm4, %vm5732_vm3 }
 0x4c7   : > { %v5576_v18 = vadd.f32 %v5575_v16, %v5574_v12 }
 0x4c9   : > { %16567 = vrcp.f32 %v5576_v18  ;;  %v19191_v18 = vld [vmem:[%s16789_s26 + $0x2a] ss:$0 sm:$0xff] }
 0x4ca   : > { %16569 = vrcp.f32 %v5717_v19 }
 0x4cb   : > { %15780 = vmatpush3.bf16.xpose.msk.msra.mxu0 %vm15779_vm9, %v16702_v9  ;;  %vm5589_vm9 = vcmp.eq.s32.totalorder %v18965_v46, %v16798_v7 }
 0x4cc   : > { %15804 = vmatpush3.bf16.xpose.msk.msra.mxu1 %vm15803_vm10, %v16702_v9  ;;  %15781 = vmatprep.subr.bf16.mxu0 %v16699_v1  ;;  %vm5590_vm10 = vcmp.eq.s32.totalorder %v18965_v46, %v16801_v8 }
 0x4cd   : > { %15805 = vmatprep.subr.bf16.mxu1 %v16699_v1  ;;  %vm15812_vm14 = vmpackc.low %vm5590_vm10, %vm5589_vm9  ;;  %vm5734_vm9 = vcmp.eq.s32.totalorder %v18969_v48, %v16851_v20  ;;  %vm5735_vm10 = vcmp.eq.s32.totalorder %v18969_v48, %v16854_v21 }
 0x4ce   : > { %vm15842_vm13 = vmpackc.low %vm5735_vm10, %vm5734_vm9 }
 0x4d3   : > { %15783 = vmatpush3.bf16.xpose.msk.msra.mxu0 %vm15782_vm1, %v16702_v9  ;;  %vm5591_vm1 = vcmp.eq.s32.totalorder %v18965_v46, %v16831_v14  ;;  %v16568_v22 = vpop.eup %16567 }
 0x4d4   : > { %15807 = vmatpush3.bf16.xpose.msk.msra.mxu1 %vm15806_vm2, %v16702_v9  ;;  %15808 = vmatprep.subr.bf16.mxu0 %v16699_v1  ;;  %vm5592_vm2 = vcmp.eq.s32.totalorder %v18965_v46, %v16834_v15  ;;  %v16570_v23 = vpop.eup %16569 }
 0x4d5   : > { %15832 = vmatprep.subr.bf16.mxu1 %v16699_v1  ;;  %vm15815_vm5 = vmpackc.low %vm5592_vm2, %vm5591_vm1  ;;  %vm5736_vm1 = vcmp.eq.s32.totalorder %v18969_v48, %v16869_v26  ;;  %vm5737_vm2 = vcmp.eq.s32.totalorder %v18969_v48, %v16872_v27  ;;  %v5720_v25 = vmul.f32 %v16570_v23, %v16570_v23 }
 0x4d6   : > { %vm15845_vm4 = vmpackc.low %vm5737_vm2, %vm5736_vm1 }
 0x4d7   : > { %v5721_v29 = vmul.f32 %v5720_v25, %v5720_v25 }
 0x4d9   : > { %v5722_v34 = vmul.f32 %v5721_v29, %v5720_v25  ;;  %v10795_v25 = vld [vmem:[%s16814_s30 + $0xa8] sm:$0x7] }
 0x4da   : > { %13949 = vmatmul.mubr.f32.vlgmr.msra.gmra.mrb[36].mxu0 %v5300_v49  ;;  %v5994_v49 = vrot.slane %v5993_v47, 4  ;;  %v6133_v29 = vmul.f32 %v10795_v25, %v10795_v25 }
 0x4db   : > { %15810 = vmatpush3.bf16.xpose.msk.msra.mxu0 %vm15809_vm7, %v16702_v9  ;;  %13984 = vmatmul.mubr.f32.vlgmr.msra.gmra.mrb[36].mxu1 %v5441_v50  ;;  %vm5593_vm7 = vcmp.eq.s32.totalorder %v18965_v46, %v16851_v20  ;;  %v5723_v39 = vmul.f32 0.5, %v5722_v34 }
 0x4dc   : > { %15834 = vmatpush3.bf16.xpose.msk.msra.mxu1 %vm15833_vm8, %v16702_v9  ;;  %15811 = vmatprep.subr.bf16.mxu0 %v16699_v1  ;;  %vm5594_vm8 = vcmp.eq.s32.totalorder %v18965_v46, %v16854_v21  ;;  %v5995_v51 = vadd.f32 %v5994_v49, %v5993_v47 }
 0x4dd   : > { %15835 = vmatprep.subr.bf16.mxu1 %v16699_v1  ;;  %14018 = vmatprep.mubr.msk.f32.mxu0 %vm16700_vm0, %v16701_v3  ;;  %vm15818_vm11 = vmpackc.low %vm5594_vm8, %vm5593_vm7  ;;  %vm5738_vm7 = vcmp.eq.s32.totalorder %v18969_v48, %v16887_v32  ;;  %vm5739_vm8 = vcmp.eq.s32.totalorder %v18969_v48, %v16890_v33 }
 0x4de   : > { %14053 = vmatprep.mubr.msk.f32.mxu1 %vm16700_vm0, %v16701_v3  ;;  %vm15848_vm10 = vmpackc.low %vm5739_vm8, %vm5738_vm7  ;;  %v5996_v57 = vrot.slane %v5995_v51, 2 }
 0x4e3   : > { %15813 = vmatpush3.bf16.xpose.msk.msra.mxu0 %vm15812_vm14, %v16702_v9  ;;  %vm5595_vm14 = vcmp.eq.s32.totalorder %v18965_v46, %v16869_v26 }
 0x4e4   : > { %15837 = vmatpush3.bf16.xpose.msk.msra.mxu1 %vm15836_vm15, %v16702_v9  ;;  %15814 = vmatprep.subr.bf16.mxu0 %v16699_v1  ;;  %vm5596_vm15 = vcmp.eq.s32.totalorder %v18965_v46, %v16872_v27 }
 0x4e5   : > { %15838 = vmatprep.subr.bf16.mxu1 %v16699_v1  ;;  %vm15821_vm3 = vmpackc.low %vm5596_vm15, %vm5595_vm14  ;;  %vm5740_vm14 = vcmp.eq.s32.totalorder %v18969_v48, %v16905_v36  ;;  %vm5741_vm15 = vcmp.eq.s32.totalorder %v18969_v48, %v16908_v37 }
 0x4e6   : > { %vm15851_vm2 = vmpackc.low %vm5741_vm15, %vm5740_vm14 }
 0x4eb   : > { %15816 = vmatpush3.bf16.xpose.msk.msra.mxu0 %vm15815_vm5, %v16702_v9  ;;  %vm5597_vm5 = vcmp.eq.s32.totalorder %v18965_v46, %v16887_v32 }
 0x4ec   : > { %15840 = vmatpush3.bf16.xpose.msk.msra.mxu1 %vm15839_vm6, %v16702_v9  ;;  %15817 = vmatprep.subr.bf16.mxu0 %v16699_v1  ;;  %vm5598_vm6 = vcmp.eq.s32.totalorder %v18965_v46, %v16890_v33 }
 0x4ed   : > { %v4573_v61 = vpop.f32.mrb[30].mxu0  ;;  %15841 = vmatprep.subr.bf16.mxu1 %v16699_v1  ;;  %vm15824_vm9 = vmpackc.low %vm5598_vm6, %vm5597_vm5  ;;  %vm5742_vm5 = vcmp.eq.s32.totalorder %v18969_v48, %v16923_v40  ;;  %vm5743_vm6 = vcmp.eq.s32.totalorder %v18969_v48, %v16926_v41 }
 0x4ee   : > { %v4577_v63 = vadd.f32 %v4573_v61, %v18914_v24  ;;  %v13740_v0 = vpop.f32.mrb[31].mxu0  ;;  %v4714_v5 = vpop.f32.mrb[30].mxu1  ;;  %v5579_v24 = vmul.f32 %v16568_v22, %v16568_v22  ;;  %vm15854_vm8 = vmpackc.low %vm5743_vm6, %vm5742_vm5  ;;  %v5997_v61 = vadd.f32 %v5996_v57, %v5995_v51  ;;  %v19195_v22 = vld [vmem:[%s16789_s26 + $0x2b] ss:$0 sm:$0xff] }
 0x4ef   : > { %v13775_v10 = vpop.f32.mrb[31].mxu1 }
 0x4f0   : > { %v19027_v11 = vadd.f32 %v4714_v5, %v4577_v63  ;;  %v5580_v28 = vmul.f32 %v5579_v24, %v5579_v24  ;;  %v5998_v63 = vrot.slane %v5997_v61, 1 }
 0x4f2   : > { %v5581_v30 = vmul.f32 %v5580_v28, %v5579_v24  ;;  %v5999_v5 = vadd.f32 %v5998_v63, %v5997_v61  ;;  %v10830_v28 = vld [vmem:[%s16814_s30 + $0xac] sm:$0x7] }
 0x4f3   : > { %15819 = vmatpush3.bf16.xpose.msk.msra.mxu0 %vm15818_vm11, %v16702_v9  ;;  %vm5599_vm11 = vcmp.eq.s32.totalorder %v18965_v46, %v16905_v36 }
 0x4f4   : > { %15843 = vmatpush3.bf16.xpose.msk.msra.mxu1 %vm15842_vm13, %v16702_v9  ;;  %15820 = vmatprep.subr.bf16.mxu0 %v16699_v1  ;;  %vm5600_vm13 = vcmp.eq.s32.totalorder %v18965_v46, %v16908_v37  ;;  %v5582_v38 = vmul.f32 0.5, %v5581_v30  ;;  %v6274_v30 = vmul.f32 %v10830_v28, %v10830_v28 }
 0x4f5   : > { %15844 = vmatprep.subr.bf16.mxu1 %v16699_v1  ;;  %vm15827_vm1 = vmpackc.low %vm5600_vm13, %vm5599_vm11  ;;  %vm6010_vm11 = vcmp.eq.s32.totalorder %v19082_v35, %v16777_v2  ;;  %vm6011_vm13 = vcmp.eq.s32.totalorder %v19082_v35, %v16784_v4 }
 0x4f6   : > { %vm15881_vm15 = vmpackc.low %vm6011_vm13, %vm6010_vm11  ;;  %v6275_v34 = vsel %vm213_vm12, %v6274_v30, 0.0 }
 0x4fb   : > { %15822 = vmatpush3.bf16.xpose.msk.msra.mxu0 %vm15821_vm3, %v16702_v9  ;;  %vm5601_vm3 = vcmp.eq.s32.totalorder %v18965_v46, %v16923_v40 }
 0x4fc   : > { %15846 = vmatpush3.bf16.xpose.msk.msra.mxu1 %vm15845_vm4, %v16702_v9  ;;  %15823 = vmatprep.subr.bf16.mxu0 %v16699_v1  ;;  %vm5602_vm4 = vcmp.eq.s32.totalorder %v18965_v46, %v16926_v41  ;;  %v5852_v46 = vsel %vm213_vm12, %v5851_v44, 0.0 }
 0x4fd   : > { %15847 = vmatprep.subr.bf16.mxu1 %v16699_v1  ;;  %vm15830_vm7 = vmpackc.low %vm5602_vm4, %vm5601_vm3  ;;  %vm6012_vm3 = vcmp.eq.s32.totalorder %v19082_v35, %v16798_v7  ;;  %vm6013_vm4 = vcmp.eq.s32.totalorder %v19082_v35, %v16801_v8  ;;  %v5853_v48 = vrot.slane %v5852_v46, 4 }
 0x4fe   : > { %vm15884_vm6 = vmpackc.low %vm6013_vm4, %vm6012_vm3 }
 0x4ff   : > { %v5854_v50 = vadd.f32 %v5853_v48, %v5852_v46 }
 0x501   : > { %v5855_v53 = vrot.slane %v5854_v50, 2 }
 0x503   : > { %15825 = vmatpush3.bf16.xpose.msk.msra.mxu0 %vm15824_vm9, %v16702_v9  ;;  %vm5869_vm9 = vcmp.eq.s32.totalorder %v19078_v31, %v16777_v2  ;;  %v5856_v60 = vadd.f32 %v5855_v53, %v5854_v50 }
 0x504   : > { %15849 = vmatpush3.bf16.xpose.msk.msra.mxu1 %vm15848_vm10, %v16702_v9  ;;  %15826 = vmatprep.subr.bf16.mxu0 %v16699_v1  ;;  %vm5870_vm10 = vcmp.eq.s32.totalorder %v19078_v31, %v16784_v4 }
 0x505   : > { %15850 = vmatprep.subr.bf16.mxu1 %v16699_v1  ;;  %vm15857_vm14 = vmpackc.low %vm5870_vm10, %vm5869_vm9  ;;  %vm6014_vm9 = vcmp.eq.s32.totalorder %v19082_v35, %v16831_v14  ;;  %vm6015_vm10 = vcmp.eq.s32.totalorder %v19082_v35, %v16834_v15  ;;  %v5857_v62 = vrot.slane %v5856_v60, 1 }
 0x506   : > { %vm15887_vm13 = vmpackc.low %vm6015_vm10, %vm6014_vm9 }
 0x507   : > { %v5858_v0 = vadd.f32 %v5857_v62, %v5856_v60 }
 0x509   : > { %16571 = vrcp.f32 %v5858_v0  ;;  %v19304_v0 = vld [vmem:[%s16789_s26 + $0x2c] ss:$0 sm:$0xff] }
 0x50a   : > { %16573 = vrcp.f32 %v5999_v5 }
 0x50b   : > { %15828 = vmatpush3.bf16.xpose.msk.msra.mxu0 %vm15827_vm1, %v16702_v9  ;;  %vm5871_vm1 = vcmp.eq.s32.totalorder %v19078_v31, %v16798_v7 }
 0x50c   : > { %15852 = vmatpush3.bf16.xpose.msk.msra.mxu1 %vm15851_vm2, %v16702_v9  ;;  %15829 = vmatprep.subr.bf16.mxu0 %v16699_v1  ;;  %vm5872_vm2 = vcmp.eq.s32.totalorder %v19078_v31, %v16801_v8 }
 0x50d   : > { %15853 = vmatprep.subr.bf16.mxu1 %v16699_v1  ;;  %vm15860_vm5 = vmpackc.low %vm5872_vm2, %vm5871_vm1  ;;  %vm6016_vm1 = vcmp.eq.s32.totalorder %v19082_v35, %v16851_v20  ;;  %vm6017_vm2 = vcmp.eq.s32.totalorder %v19082_v35, %v16854_v21 }
 0x50e   : > { %vm15890_vm4 = vmpackc.low %vm6017_vm2, %vm6016_vm1 }
 0x513   : > { %15831 = vmatpush3.bf16.xpose.msk.msra.mxu0 %vm15830_vm7, %v16702_v9  ;;  %vm5873_vm7 = vcmp.eq.s32.totalorder %v19078_v31, %v16831_v14  ;;  %v16572_v6 = vpop.eup %16571 }
 0x514   : > { %15855 = vmatpush3.bf16.xpose.msk.msra.mxu1 %vm15854_vm8, %v16702_v9  ;;  %15856 = vmatprep.subr.bf16.mxu0 %v16699_v1  ;;  %vm5874_vm8 = vcmp.eq.s32.totalorder %v19078_v31, %v16834_v15  ;;  %v16574_v10 = vpop.eup %16573 }
 0x515   : > { %15880 = vmatprep.subr.bf16.mxu1 %v16699_v1  ;;  %vm15863_vm11 = vmpackc.low %vm5874_vm8, %vm5873_vm7  ;;  %vm6018_vm7 = vcmp.eq.s32.totalorder %v19082_v35, %v16869_v26  ;;  %vm6019_vm8 = vcmp.eq.s32.totalorder %v19082_v35, %v16872_v27  ;;  %v6002_v12 = vmul.f32 %v16574_v10, %v16574_v10 }
 0x516   : > { %vm15893_vm10 = vmpackc.low %vm6019_vm8, %vm6018_vm7 }
 0x517   : > { %v6003_v16 = vmul.f32 %v6002_v12, %v6002_v12 }
 0x519   : > { %v6004_v19 = vmul.f32 %v6003_v16, %v6002_v12  ;;  %v10865_v12 = vld [vmem:[%s16814_s30 + $0xb0] sm:$0x7] }
 0x51a   : > { %14019 = vmatmul.mubr.f32.vlgmr.msra.gmra.mrb[38].mxu0 %v5582_v38  ;;  %v6276_v38 = vrot.slane %v6275_v34, 4  ;;  %v6415_v16 = vmul.f32 %v10865_v12, %v10865_v12 }
 0x51b   : > { %15858 = vmatpush3.bf16.xpose.msk.msra.mxu0 %vm15857_vm14, %v16702_v9  ;;  %14054 = vmatmul.mubr.f32.vlgmr.msra.gmra.mrb[38].mxu1 %v5723_v39  ;;  %vm5875_vm14 = vcmp.eq.s32.totalorder %v19078_v31, %v16851_v20  ;;  %v6005_v24 = vmul.f32 0.5, %v6004_v19 }
 0x51c   : > { %15882 = vmatpush3.bf16.xpose.msk.msra.mxu1 %vm15881_vm15, %v16702_v9  ;;  %15859 = vmatprep.subr.bf16.mxu0 %v16699_v1  ;;  %vm5876_vm15 = vcmp.eq.s32.totalorder %v19078_v31, %v16854_v21  ;;  %v6277_v42 = vadd.f32 %v6276_v38, %v6275_v34 }
 0x51d   : > { %15883 = vmatprep.subr.bf16.mxu1 %v16699_v1  ;;  %14088 = vmatprep.mubr.msk.f32.mxu0 %vm16700_vm0, %v16701_v3  ;;  %vm15866_vm3 = vmpackc.low %vm5876_vm15, %vm5875_vm14  ;;  %vm6020_vm14 = vcmp.eq.s32.totalorder %v19082_v35, %v16887_v32  ;;  %vm6021_vm15 = vcmp.eq.s32.totalorder %v19082_v35, %v16890_v33 }
 0x51e   : > { %14123 = vmatprep.mubr.msk.f32.mxu1 %vm16700_vm0, %v16701_v3  ;;  %vm15896_vm2 = vmpackc.low %vm6021_vm15, %vm6020_vm14  ;;  %v6278_v48 = vrot.slane %v6277_v42, 2 }
 0x523   : > { %15861 = vmatpush3.bf16.xpose.msk.msra.mxu0 %vm15860_vm5, %v16702_v9  ;;  %vm5877_vm5 = vcmp.eq.s32.totalorder %v19078_v31, %v16869_v26 }
 0x524   : > { %15885 = vmatpush3.bf16.xpose.msk.msra.mxu1 %vm15884_vm6, %v16702_v9  ;;  %15862 = vmatprep.subr.bf16.mxu0 %v16699_v1  ;;  %vm5878_vm6 = vcmp.eq.s32.totalorder %v19078_v31, %v16872_v27 }
 0x525   : > { %15886 = vmatprep.subr.bf16.mxu1 %v16699_v1  ;;  %vm15869_vm9 = vmpackc.low %vm5878_vm6, %vm5877_vm5  ;;  %vm6022_vm5 = vcmp.eq.s32.totalorder %v19082_v35, %v16905_v36  ;;  %vm6023_vm6 = vcmp.eq.s32.totalorder %v19082_v35, %v16908_v37 }
 0x526   : > { %vm15899_vm8 = vmpackc.low %vm6023_vm6, %vm6022_vm5 }
 0x52b   : > { %15864 = vmatpush3.bf16.xpose.msk.msra.mxu0 %vm15863_vm11, %v16702_v9  ;;  %vm5879_vm11 = vcmp.eq.s32.totalorder %v19078_v31, %v16887_v32 }
 0x52c   : > { %15888 = vmatpush3.bf16.xpose.msk.msra.mxu1 %vm15887_vm13, %v16702_v9  ;;  %15865 = vmatprep.subr.bf16.mxu0 %v16699_v1  ;;  %vm5880_vm13 = vcmp.eq.s32.totalorder %v19078_v31, %v16890_v33 }
 0x52d   : > { %v4855_v52 = vpop.f32.mrb[32].mxu0  ;;  %15889 = vmatprep.subr.bf16.mxu1 %v16699_v1  ;;  %vm15872_vm1 = vmpackc.low %vm5880_vm13, %vm5879_vm11  ;;  %vm6024_vm11 = vcmp.eq.s32.totalorder %v19082_v35, %v16923_v40  ;;  %vm6025_vm13 = vcmp.eq.s32.totalorder %v19082_v35, %v16926_v41 }
 0x52e   : > { %v4859_v54 = vadd.f32 %v4855_v52, %v19027_v11  ;;  %v13810_v55 = vpop.f32.mrb[33].mxu0  ;;  %v4996_v56 = vpop.f32.mrb[32].mxu1  ;;  %v5861_v11 = vmul.f32 %v16572_v6, %v16572_v6  ;;  %vm15902_vm15 = vmpackc.low %vm6025_vm13, %vm6024_vm11  ;;  %v6279_v52 = vadd.f32 %v6278_v48, %v6277_v42  ;;  %v19308_v6 = vld [vmem:[%s16789_s26 + $0x2d] ss:$0 sm:$0xff] }
 0x52f   : > { %v13845_v58 = vpop.f32.mrb[33].mxu1 }
 0x530   : > { %v19140_v59 = vadd.f32 %v4996_v56, %v4859_v54  ;;  %v5862_v13 = vmul.f32 %v5861_v11, %v5861_v11  ;;  %v6280_v54 = vrot.slane %v6279_v52, 1 }
 0x532   : > { %v5863_v17 = vmul.f32 %v5862_v13, %v5861_v11  ;;  %v6281_v56 = vadd.f32 %v6280_v54, %v6279_v52  ;;  %v10900_v13 = vld [vmem:[%s16814_s30 + $0xb4] sm:$0x7] }
 0x533   : > { %15867 = vmatpush3.bf16.xpose.msk.msra.mxu0 %vm15866_vm3, %v16702_v9  ;;  %vm5881_vm3 = vcmp.eq.s32.totalorder %v19078_v31, %v16905_v36 }
 0x534   : > { %15891 = vmatpush3.bf16.xpose.msk.msra.mxu1 %vm15890_vm4, %v16702_v9  ;;  %15868 = vmatprep.subr.bf16.mxu0 %v16699_v1  ;;  %vm5882_vm4 = vcmp.eq.s32.totalorder %v19078_v31, %v16908_v37  ;;  %v5864_v23 = vmul.f32 0.5, %v5863_v17  ;;  %v6556_v17 = vmul.f32 %v10900_v13, %v10900_v13 }
 0x535   : > { %15892 = vmatprep.subr.bf16.mxu1 %v16699_v1  ;;  %vm15875_vm7 = vmpackc.low %vm5882_vm4, %vm5881_vm3  ;;  %vm6292_vm3 = vcmp.eq.s32.totalorder %v19195_v22, %v16777_v2  ;;  %vm6293_vm4 = vcmp.eq.s32.totalorder %v19195_v22, %v16784_v4 }
 0x536   : > { %vm15929_vm6 = vmpackc.low %vm6293_vm4, %vm6292_vm3  ;;  %v6557_v19 = vsel %vm213_vm12, %v6556_v17, 0.0 }
 0x53b   : > { %15870 = vmatpush3.bf16.xpose.msk.msra.mxu0 %vm15869_vm9, %v16702_v9  ;;  %vm5883_vm9 = vcmp.eq.s32.totalorder %v19078_v31, %v16923_v40 }
 0x53c   : > { %15894 = vmatpush3.bf16.xpose.msk.msra.mxu1 %vm15893_vm10, %v16702_v9  ;;  %15871 = vmatprep.subr.bf16.mxu0 %v16699_v1  ;;  %vm5884_vm10 = vcmp.eq.s32.totalorder %v19078_v31, %v16926_v41  ;;  %v6134_v31 = vsel %vm213_vm12, %v6133_v29, 0.0 }
 0x53d   : > { %15895 = vmatprep.subr.bf16.mxu1 %v16699_v1  ;;  %vm15878_vm14 = vmpackc.low %vm5884_vm10, %vm5883_vm9  ;;  %vm6294_vm9 = vcmp.eq.s32.totalorder %v19195_v22, %v16798_v7  ;;  %vm6295_vm10 = vcmp.eq.s32.totalorder %v19195_v22, %v16801_v8  ;;  %v6135_v35 = vrot.slane %v6134_v31, 4 }
 0x53e   : > { %vm15932_vm13 = vmpackc.low %vm6295_vm10, %vm6294_vm9 }
 0x53f   : > { %v6136_v39 = vadd.f32 %v6135_v35, %v6134_v31 }
 0x541   : > { %v6137_v44 = vrot.slane %v6136_v39, 2 }
 0x543   : > { %15873 = vmatpush3.bf16.xpose.msk.msra.mxu0 %vm15872_vm1, %v16702_v9  ;;  %vm6151_vm1 = vcmp.eq.s32.totalorder %v19191_v18, %v16777_v2  ;;  %v6138_v51 = vadd.f32 %v6137_v44, %v6136_v39 }
 0x544   : > { %15897 = vmatpush3.bf16.xpose.msk.msra.mxu1 %vm15896_vm2, %v16702_v9  ;;  %15874 = vmatprep.subr.bf16.mxu0 %v16699_v1  ;;  %vm6152_vm2 = vcmp.eq.s32.totalorder %v19191_v18, %v16784_v4 }
 0x545   : > { %15898 = vmatprep.subr.bf16.mxu1 %v16699_v1  ;;  %vm15905_vm5 = vmpackc.low %vm6152_vm2, %vm6151_vm1  ;;  %vm6296_vm1 = vcmp.eq.s32.totalorder %v19195_v22, %v16831_v14  ;;  %vm6297_vm2 = vcmp.eq.s32.totalorder %v19195_v22, %v16834_v15  ;;  %v6139_v53 = vrot.slane %v6138_v51, 1 }
 0x546   : > { %vm15935_vm4 = vmpackc.low %vm6297_vm2, %vm6296_vm1 }
 0x547   : > { %v6140_v55 = vadd.f32 %v6139_v53, %v6138_v51 }
 0x549   : > { %16575 = vrcp.f32 %v6140_v55  ;;  %v19417_v55 = vld [vmem:[%s16789_s26 + $0x2e] ss:$0 sm:$0xff] }
 0x54a   : > { %16577 = vrcp.f32 %v6281_v56 }
 0x54b   : > { %15876 = vmatpush3.bf16.xpose.msk.msra.mxu0 %vm15875_vm7, %v16702_v9  ;;  %vm6153_vm7 = vcmp.eq.s32.totalorder %v19191_v18, %v16798_v7 }
 0x54c   : > { %15900 = vmatpush3.bf16.xpose.msk.msra.mxu1 %vm15899_vm8, %v16702_v9  ;;  %15877 = vmatprep.subr.bf16.mxu0 %v16699_v1  ;;  %vm6154_vm8 = vcmp.eq.s32.totalorder %v19191_v18, %v16801_v8 }
 0x54d   : > { %15901 = vmatprep.subr.bf16.mxu1 %v16699_v1  ;;  %vm15908_vm11 = vmpackc.low %vm6154_vm8, %vm6153_vm7  ;;  %vm6298_vm7 = vcmp.eq.s32.totalorder %v19195_v22, %v16851_v20  ;;  %vm6299_vm8 = vcmp.eq.s32.totalorder %v19195_v22, %v16854_v21 }
 0x54e   : > { %vm15938_vm10 = vmpackc.low %vm6299_vm8, %vm6298_vm7 }
 0x553   : > { %15879 = vmatpush3.bf16.xpose.msk.msra.mxu0 %vm15878_vm14, %v16702_v9  ;;  %vm6155_vm14 = vcmp.eq.s32.totalorder %v19191_v18, %v16831_v14  ;;  %v16576_v57 = vpop.eup %16575 }
 0x554   : > { %15903 = vmatpush3.bf16.xpose.msk.msra.mxu1 %vm15902_vm15, %v16702_v9  ;;  %15904 = vmatprep.subr.bf16.mxu0 %v16699_v1  ;;  %vm6156_vm15 = vcmp.eq.s32.totalorder %v19191_v18, %v16834_v15  ;;  %v16578_v58 = vpop.eup %16577 }
 0x555   : > { %15928 = vmatprep.subr.bf16.mxu1 %v16699_v1  ;;  %vm15911_vm3 = vmpackc.low %vm6156_vm15, %vm6155_vm14  ;;  %vm6300_vm14 = vcmp.eq.s32.totalorder %v19195_v22, %v16869_v26  ;;  %vm6301_vm15 = vcmp.eq.s32.totalorder %v19195_v22, %v16872_v27  ;;  %v6284_v60 = vmul.f32 %v16578_v58, %v16578_v58 }
 0x556   : > { %vm15941_vm2 = vmpackc.low %vm6301_vm15, %vm6300_vm14 }
 0x557   : > { %v6285_v62 = vmul.f32 %v6284_v60, %v6284_v60 }
 0x559   : > { %v6286_v5 = vmul.f32 %v6285_v62, %v6284_v60  ;;  %v10935_v60 = vld [vmem:[%s16814_s30 + $0xb8] sm:$0x7] }
 0x55a   : > { %14089 = vmatmul.mubr.f32.vlgmr.msra.gmra.mrb[40].mxu0 %v5864_v23  ;;  %v6558_v23 = vrot.slane %v6557_v19, 4  ;;  %v6697_v62 = vmul.f32 %v10935_v60, %v10935_v60 }
 0x55b   : > { %15906 = vmatpush3.bf16.xpose.msk.msra.mxu0 %vm15905_vm5, %v16702_v9  ;;  %14124 = vmatmul.mubr.f32.vlgmr.msra.gmra.mrb[40].mxu1 %v6005_v24  ;;  %vm6157_vm5 = vcmp.eq.s32.totalorder %v19191_v18, %v16851_v20  ;;  %v6287_v11 = vmul.f32 0.5, %v6286_v5 }
 0x55c   : > { %15930 = vmatpush3.bf16.xpose.msk.msra.mxu1 %vm15929_vm6, %v16702_v9  ;;  %15907 = vmatprep.subr.bf16.mxu0 %v16699_v1  ;;  %vm6158_vm6 = vcmp.eq.s32.totalorder %v19191_v18, %v16854_v21  ;;  %v6559_v25 = vadd.f32 %v6558_v23, %v6557_v19 }
 0x55d   : > { %15931 = vmatprep.subr.bf16.mxu1 %v16699_v1  ;;  %14158 = vmatprep.mubr.msk.f32.mxu0 %vm16700_vm0, %v16701_v3  ;;  %vm15914_vm9 = vmpackc.low %vm6158_vm6, %vm6157_vm5  ;;  %vm6302_vm5 = vcmp.eq.s32.totalorder %v19195_v22, %v16887_v32  ;;  %vm6303_vm6 = vcmp.eq.s32.totalorder %v19195_v22, %v16890_v33 }
 0x55e   : > { %14193 = vmatprep.mubr.msk.f32.mxu1 %vm16700_vm0, %v16701_v3  ;;  %vm15944_vm8 = vmpackc.low %vm6303_vm6, %vm6302_vm5  ;;  %v6560_v35 = vrot.slane %v6559_v25, 2 }
 0x563   : > { %15909 = vmatpush3.bf16.xpose.msk.msra.mxu0 %vm15908_vm11, %v16702_v9  ;;  %vm6159_vm11 = vcmp.eq.s32.totalorder %v19191_v18, %v16869_v26 }
 0x564   : > { %15933 = vmatpush3.bf16.xpose.msk.msra.mxu1 %vm15932_vm13, %v16702_v9  ;;  %15910 = vmatprep.subr.bf16.mxu0 %v16699_v1  ;;  %vm6160_vm13 = vcmp.eq.s32.totalorder %v19191_v18, %v16872_v27 }
 0x565   : > { %15934 = vmatprep.subr.bf16.mxu1 %v16699_v1  ;;  %vm15917_vm1 = vmpackc.low %vm6160_vm13, %vm6159_vm11  ;;  %vm6304_vm11 = vcmp.eq.s32.totalorder %v19195_v22, %v16905_v36  ;;  %vm6305_vm13 = vcmp.eq.s32.totalorder %v19195_v22, %v16908_v37 }
 0x566   : > { %vm15947_vm15 = vmpackc.low %vm6305_vm13, %vm6304_vm11 }
 0x56b   : > { %15912 = vmatpush3.bf16.xpose.msk.msra.mxu0 %vm15911_vm3, %v16702_v9  ;;  %vm6161_vm3 = vcmp.eq.s32.totalorder %v19191_v18, %v16887_v32 }
 0x56c   : > { %15936 = vmatpush3.bf16.xpose.msk.msra.mxu1 %vm15935_vm4, %v16702_v9  ;;  %15913 = vmatprep.subr.bf16.mxu0 %v16699_v1  ;;  %vm6162_vm4 = vcmp.eq.s32.totalorder %v19191_v18, %v16890_v33 }
 0x56d   : > { %v5137_v43 = vpop.f32.mrb[34].mxu0  ;;  %15937 = vmatprep.subr.bf16.mxu1 %v16699_v1  ;;  %vm15920_vm7 = vmpackc.low %vm6162_vm4, %vm6161_vm3  ;;  %vm6306_vm3 = vcmp.eq.s32.totalorder %v19195_v22, %v16923_v40  ;;  %vm6307_vm4 = vcmp.eq.s32.totalorder %v19195_v22, %v16926_v41 }
 0x56e   : > { %v5141_v45 = vadd.f32 %v5137_v43, %v19140_v59  ;;  %v13880_v46 = vpop.f32.mrb[35].mxu0  ;;  %v5278_v47 = vpop.f32.mrb[34].mxu1  ;;  %v6143_v59 = vmul.f32 %v16576_v57, %v16576_v57  ;;  %vm15950_vm6 = vmpackc.low %vm6307_vm4, %vm6306_vm3  ;;  %v6561_v43 = vadd.f32 %v6560_v35, %v6559_v25  ;;  %v19421_v57 = vld [vmem:[%s16789_s26 + $0x2f] ss:$0 sm:$0xff] }
 0x56f   : > { %v13915_v49 = vpop.f32.mrb[35].mxu1 }
 0x570   : > { %v19253_v50 = vadd.f32 %v5278_v47, %v5141_v45  ;;  %v6144_v61 = vmul.f32 %v6143_v59, %v6143_v59  ;;  %v6562_v45 = vrot.slane %v6561_v43, 1 }
 0x572   : > { %v6145_v63 = vmul.f32 %v6144_v61, %v6143_v59  ;;  %v6563_v47 = vadd.f32 %v6562_v45, %v6561_v43  ;;  %v10970_v61 = vld [vmem:[%s16814_s30 + $0xbc] sm:$0x7] }
 0x573   : > { %15915 = vmatpush3.bf16.xpose.msk.msra.mxu0 %vm15914_vm9, %v16702_v9  ;;  %vm6163_vm9 = vcmp.eq.s32.totalorder %v19191_v18, %v16905_v36 }
 0x574   : > { %15939 = vmatpush3.bf16.xpose.msk.msra.mxu1 %vm15938_vm10, %v16702_v9  ;;  %15916 = vmatprep.subr.bf16.mxu0 %v16699_v1  ;;  %vm6164_vm10 = vcmp.eq.s32.totalorder %v19191_v18, %v16908_v37  ;;  %v6146_v10 = vmul.f32 0.5, %v6145_v63  ;;  %v6838_v63 = vmul.f32 %v10970_v61, %v10970_v61 }
 0x575   : > { %15940 = vmatprep.subr.bf16.mxu1 %v16699_v1  ;;  %vm15923_vm14 = vmpackc.low %vm6164_vm10, %vm6163_vm9  ;;  %vm6574_vm9 = vcmp.eq.s32.totalorder %v19308_v6, %v16777_v2  ;;  %vm6575_vm10 = vcmp.eq.s32.totalorder %v19308_v6, %v16784_v4 }
 0x576   : > { %vm15977_vm13 = vmpackc.low %vm6575_vm10, %vm6574_vm9  ;;  %v6839_v5 = vsel %vm213_vm12, %v6838_v63, 0.0 }
 0x57b   : > { %15918 = vmatpush3.bf16.xpose.msk.msra.mxu0 %vm15917_vm1, %v16702_v9  ;;  %vm6165_vm1 = vcmp.eq.s32.totalorder %v19191_v18, %v16923_v40 }
 0x57c   : > { %15942 = vmatpush3.bf16.xpose.msk.msra.mxu1 %vm15941_vm2, %v16702_v9  ;;  %15919 = vmatprep.subr.bf16.mxu0 %v16699_v1  ;;  %vm6166_vm2 = vcmp.eq.s32.totalorder %v19191_v18, %v16926_v41  ;;  %v6416_v18 = vsel %vm213_vm12, %v6415_v16, 0.0 }
 0x57d   : > { %15943 = vmatprep.subr.bf16.mxu1 %v16699_v1  ;;  %vm15926_vm5 = vmpackc.low %vm6166_vm2, %vm6165_vm1  ;;  %vm6576_vm1 = vcmp.eq.s32.totalorder %v19308_v6, %v16798_v7  ;;  %vm6577_vm2 = vcmp.eq.s32.totalorder %v19308_v6, %v16801_v8  ;;  %v6417_v22 = vrot.slane %v6416_v18, 4 }
 0x57e   : > { %vm15980_vm4 = vmpackc.low %vm6577_vm2, %vm6576_vm1 }
 0x57f   : > { %v6418_v24 = vadd.f32 %v6417_v22, %v6416_v18 }
 0x581   : > { %v6419_v29 = vrot.slane %v6418_v24, 2 }
 0x583   : > { %15921 = vmatpush3.bf16.xpose.msk.msra.mxu0 %vm15920_vm7, %v16702_v9  ;;  %vm6433_vm7 = vcmp.eq.s32.totalorder %v19304_v0, %v16777_v2  ;;  %v6420_v42 = vadd.f32 %v6419_v29, %v6418_v24 }
 0x584   : > { %15945 = vmatpush3.bf16.xpose.msk.msra.mxu1 %vm15944_vm8, %v16702_v9  ;;  %15922 = vmatprep.subr.bf16.mxu0 %v16699_v1  ;;  %vm6434_vm8 = vcmp.eq.s32.totalorder %v19304_v0, %v16784_v4 }
 0x585   : > { %15946 = vmatprep.subr.bf16.mxu1 %v16699_v1  ;;  %vm15953_vm11 = vmpackc.low %vm6434_vm8, %vm6433_vm7  ;;  %vm6578_vm7 = vcmp.eq.s32.totalorder %v19308_v6, %v16831_v14  ;;  %vm6579_vm8 = vcmp.eq.s32.totalorder %v19308_v6, %v16834_v15  ;;  %v6421_v44 = vrot.slane %v6420_v42, 1 }
 0x586   : > { %vm15983_vm10 = vmpackc.low %vm6579_vm8, %vm6578_vm7 }
 0x587   : > { %v6422_v46 = vadd.f32 %v6421_v44, %v6420_v42 }
 0x589   : > { %16579 = vrcp.f32 %v6422_v46  ;;  %v19530_v46 = vld [vmem:[%s16789_s26 + $0x30] ss:$0 sm:$0xff] }
 0x58a   : > { %16581 = vrcp.f32 %v6563_v47 }
 0x58b   : > { %15924 = vmatpush3.bf16.xpose.msk.msra.mxu0 %vm15923_vm14, %v16702_v9  ;;  %vm6435_vm14 = vcmp.eq.s32.totalorder %v19304_v0, %v16798_v7 }
 0x58c   : > { %15948 = vmatpush3.bf16.xpose.msk.msra.mxu1 %vm15947_vm15, %v16702_v9  ;;  %15925 = vmatprep.subr.bf16.mxu0 %v16699_v1  ;;  %vm6436_vm15 = vcmp.eq.s32.totalorder %v19304_v0, %v16801_v8 }
 0x58d   : > { %15949 = vmatprep.subr.bf16.mxu1 %v16699_v1  ;;  %vm15956_vm3 = vmpackc.low %vm6436_vm15, %vm6435_vm14  ;;  %vm6580_vm14 = vcmp.eq.s32.totalorder %v19308_v6, %v16851_v20  ;;  %vm6581_vm15 = vcmp.eq.s32.totalorder %v19308_v6, %v16854_v21 }
 0x58e   : > { %vm15986_vm2 = vmpackc.low %vm6581_vm15, %vm6580_vm14 }
 0x593   : > { %15927 = vmatpush3.bf16.xpose.msk.msra.mxu0 %vm15926_vm5, %v16702_v9  ;;  %vm6437_vm5 = vcmp.eq.s32.totalorder %v19304_v0, %v16831_v14  ;;  %v16580_v48 = vpop.eup %16579 }
 0x594   : > { %15951 = vmatpush3.bf16.xpose.msk.msra.mxu1 %vm15950_vm6, %v16702_v9  ;;  %15952 = vmatprep.subr.bf16.mxu0 %v16699_v1  ;;  %vm6438_vm6 = vcmp.eq.s32.totalorder %v19304_v0, %v16834_v15  ;;  %v16582_v49 = vpop.eup %16581 }
 0x595   : > { %15976 = vmatprep.subr.bf16.mxu1 %v16699_v1  ;;  %vm15959_vm9 = vmpackc.low %vm6438_vm6, %vm6437_vm5  ;;  %vm6582_vm5 = vcmp.eq.s32.totalorder %v19308_v6, %v16869_v26  ;;  %vm6583_vm6 = vcmp.eq.s32.totalorder %v19308_v6, %v16872_v27  ;;  %v6566_v51 = vmul.f32 %v16582_v49, %v16582_v49 }
 0x596   : > { %vm15989_vm8 = vmpackc.low %vm6583_vm6, %vm6582_vm5 }
 0x597   : > { %v6567_v53 = vmul.f32 %v6566_v51, %v6566_v51 }
 0x599   : > { %v6568_v56 = vmul.f32 %v6567_v53, %v6566_v51  ;;  %v11005_v51 = vld [vmem:[%s16814_s30 + $0xc0] sm:$0x7] }
 0x59a   : > { %14159 = vmatmul.mubr.f32.vlgmr.msra.gmra.mrb[42].mxu0 %v6146_v10  ;;  %v6840_v10 = vrot.slane %v6839_v5, 4  ;;  %v6979_v53 = vmul.f32 %v11005_v51, %v11005_v51 }
 0x59b   : > { %15954 = vmatpush3.bf16.xpose.msk.msra.mxu0 %vm15953_vm11, %v16702_v9  ;;  %14194 = vmatmul.mubr.f32.vlgmr.msra.gmra.mrb[42].mxu1 %v6287_v11  ;;  %vm6439_vm11 = vcmp.eq.s32.totalorder %v19304_v0, %v16851_v20  ;;  %v6569_v59 = vmul.f32 0.5, %v6568_v56 }
 0x59c   : > { %15978 = vmatpush3.bf16.xpose.msk.msra.mxu1 %vm15977_vm13, %v16702_v9  ;;  %15955 = vmatprep.subr.bf16.mxu0 %v16699_v1  ;;  %vm6440_vm13 = vcmp.eq.s32.totalorder %v19304_v0, %v16854_v21  ;;  %v6841_v12 = vadd.f32 %v6840_v10, %v6839_v5 }
 0x59d   : > { %15979 = vmatprep.subr.bf16.mxu1 %v16699_v1  ;;  %14228 = vmatprep.mubr.msk.f32.mxu0 %vm16700_vm0, %v16701_v3  ;;  %vm15962_vm1 = vmpackc.low %vm6440_vm13, %vm6439_vm11  ;;  %vm6584_vm11 = vcmp.eq.s32.totalorder %v19308_v6, %v16887_v32  ;;  %vm6585_vm13 = vcmp.eq.s32.totalorder %v19308_v6, %v16890_v33 }
 0x59e   : > { %14263 = vmatprep.mubr.msk.f32.mxu1 %vm16700_vm0, %v16701_v3  ;;  %vm15992_vm15 = vmpackc.low %vm6585_vm13, %vm6584_vm11  ;;  %v6842_v22 = vrot.slane %v6841_v12, 2 }
 0x5a3   : > { %15957 = vmatpush3.bf16.xpose.msk.msra.mxu0 %vm15956_vm3, %v16702_v9  ;;  %vm6441_vm3 = vcmp.eq.s32.totalorder %v19304_v0, %v16869_v26 }
 0x5a4   : > { %15981 = vmatpush3.bf16.xpose.msk.msra.mxu1 %vm15980_vm4, %v16702_v9  ;;  %15958 = vmatprep.subr.bf16.mxu0 %v16699_v1  ;;  %vm6442_vm4 = vcmp.eq.s32.totalorder %v19304_v0, %v16872_v27 }
 0x5a5   : > { %15982 = vmatprep.subr.bf16.mxu1 %v16699_v1  ;;  %vm15965_vm7 = vmpackc.low %vm6442_vm4, %vm6441_vm3  ;;  %vm6586_vm3 = vcmp.eq.s32.totalorder %v19308_v6, %v16905_v36  ;;  %vm6587_vm4 = vcmp.eq.s32.totalorder %v19308_v6, %v16908_v37 }
 0x5a6   : > { %vm15995_vm6 = vmpackc.low %vm6587_vm4, %vm6586_vm3 }
 0x5ab   : > { %15960 = vmatpush3.bf16.xpose.msk.msra.mxu0 %vm15959_vm9, %v16702_v9  ;;  %vm6443_vm9 = vcmp.eq.s32.totalorder %v19304_v0, %v16887_v32 }
 0x5ac   : > { %15984 = vmatpush3.bf16.xpose.msk.msra.mxu1 %vm15983_vm10, %v16702_v9  ;;  %15961 = vmatprep.subr.bf16.mxu0 %v16699_v1  ;;  %vm6444_vm10 = vcmp.eq.s32.totalorder %v19304_v0, %v16890_v33 }
 0x5ad   : > { %v5419_v28 = vpop.f32.mrb[36].mxu0  ;;  %15985 = vmatprep.subr.bf16.mxu1 %v16699_v1  ;;  %vm15968_vm14 = vmpackc.low %vm6444_vm10, %vm6443_vm9  ;;  %vm6588_vm9 = vcmp.eq.s32.totalorder %v19308_v6, %v16923_v40  ;;  %vm6589_vm10 = vcmp.eq.s32.totalorder %v19308_v6, %v16926_v41 }
 0x5ae   : > { %v5423_v30 = vadd.f32 %v5419_v28, %v19253_v50  ;;  %v13950_v31 = vpop.f32.mrb[37].mxu0  ;;  %v5560_v34 = vpop.f32.mrb[36].mxu1  ;;  %v6425_v50 = vmul.f32 %v16580_v48, %v16580_v48  ;;  %vm15998_vm13 = vmpackc.low %vm6589_vm10, %vm6588_vm9  ;;  %v6843_v28 = vadd.f32 %v6842_v22, %v6841_v12  ;;  %v19534_v48 = vld [vmem:[%s16789_s26 + $0x31] ss:$0 sm:$0xff] }
 0x5af   : > { %v13985_v38 = vpop.f32.mrb[37].mxu1 }
 0x5b0   : > { %v19366_v39 = vadd.f32 %v5560_v34, %v5423_v30  ;;  %v6426_v52 = vmul.f32 %v6425_v50, %v6425_v50  ;;  %v6844_v30 = vrot.slane %v6843_v28, 1 }
 0x5b2   : > { %v6427_v54 = vmul.f32 %v6426_v52, %v6425_v50  ;;  %v6845_v34 = vadd.f32 %v6844_v30, %v6843_v28  ;;  %v11040_v52 = vld [vmem:[%s16814_s30 + $0xc4] sm:$0x7] }
 0x5b3   : > { %15963 = vmatpush3.bf16.xpose.msk.msra.mxu0 %vm15962_vm1, %v16702_v9  ;;  %vm6445_vm1 = vcmp.eq.s32.totalorder %v19304_v0, %v16905_v36 }
 0x5b4   : > { %15987 = vmatpush3.bf16.xpose.msk.msra.mxu1 %vm15986_vm2, %v16702_v9  ;;  %15964 = vmatprep.subr.bf16.mxu0 %v16699_v1  ;;  %vm6446_vm2 = vcmp.eq.s32.totalorder %v19304_v0, %v16908_v37  ;;  %v6428_v58 = vmul.f32 0.5, %v6427_v54  ;;  %v7120_v54 = vmul.f32 %v11040_v52, %v11040_v52 }
 0x5b5   : > { %15988 = vmatprep.subr.bf16.mxu1 %v16699_v1  ;;  %vm15971_vm5 = vmpackc.low %vm6446_vm2, %vm6445_vm1  ;;  %vm6856_vm1 = vcmp.eq.s32.totalorder %v19421_v57, %v16777_v2  ;;  %vm6857_vm2 = vcmp.eq.s32.totalorder %v19421_v57, %v16784_v4 }
 0x5b6   : > { %vm16025_vm4 = vmpackc.low %vm6857_vm2, %vm6856_vm1  ;;  %v7121_v56 = vsel %vm213_vm12, %v7120_v54, 0.0 }
 0x5bb   : > { %15966 = vmatpush3.bf16.xpose.msk.msra.mxu0 %vm15965_vm7, %v16702_v9  ;;  %vm6447_vm7 = vcmp.eq.s32.totalorder %v19304_v0, %v16923_v40 }
 0x5bc   : > { %15990 = vmatpush3.bf16.xpose.msk.msra.mxu1 %vm15989_vm8, %v16702_v9  ;;  %15967 = vmatprep.subr.bf16.mxu0 %v16699_v1  ;;  %vm6448_vm8 = vcmp.eq.s32.totalorder %v19304_v0, %v16926_v41  ;;  %v6698_v0 = vsel %vm213_vm12, %v6697_v62, 0.0 }
 0x5bd   : > { %15991 = vmatprep.subr.bf16.mxu1 %v16699_v1  ;;  %vm15974_vm11 = vmpackc.low %vm6448_vm8, %vm6447_vm7  ;;  %vm6858_vm7 = vcmp.eq.s32.totalorder %v19421_v57, %v16798_v7  ;;  %vm6859_vm8 = vcmp.eq.s32.totalorder %v19421_v57, %v16801_v8  ;;  %v6699_v6 = vrot.slane %v6698_v0, 4 }
 0x5be   : > { %vm16028_vm10 = vmpackc.low %vm6859_vm8, %vm6858_vm7 }
 0x5bf   : > { %v6700_v11 = vadd.f32 %v6699_v6, %v6698_v0 }
 0x5c1   : > { %v6701_v16 = vrot.slane %v6700_v11, 2 }
 0x5c3   : > { %15969 = vmatpush3.bf16.xpose.msk.msra.mxu0 %vm15968_vm14, %v16702_v9  ;;  %vm6715_vm14 = vcmp.eq.s32.totalorder %v19417_v55, %v16777_v2  ;;  %v6702_v25 = vadd.f32 %v6701_v16, %v6700_v11 }
 0x5c4   : > { %15993 = vmatpush3.bf16.xpose.msk.msra.mxu1 %vm15992_vm15, %v16702_v9  ;;  %15970 = vmatprep.subr.bf16.mxu0 %v16699_v1  ;;  %vm6716_vm15 = vcmp.eq.s32.totalorder %v19417_v55, %v16784_v4 }
 0x5c5   : > { %15994 = vmatprep.subr.bf16.mxu1 %v16699_v1  ;;  %vm16001_vm3 = vmpackc.low %vm6716_vm15, %vm6715_vm14  ;;  %vm6860_vm14 = vcmp.eq.s32.totalorder %v19421_v57, %v16831_v14  ;;  %vm6861_vm15 = vcmp.eq.s32.totalorder %v19421_v57, %v16834_v15  ;;  %v6703_v29 = vrot.slane %v6702_v25, 1 }
 0x5c6   : > { %vm16031_vm2 = vmpackc.low %vm6861_vm15, %vm6860_vm14 }
 0x5c7   : > { %v6704_v31 = vadd.f32 %v6703_v29, %v6702_v25 }
 0x5c9   : > { %16583 = vrcp.f32 %v6704_v31  ;;  %v19643_v31 = vld [vmem:[%s16789_s26 + $0x32] ss:$0 sm:$0xff] }
 0x5ca   : > { %16585 = vrcp.f32 %v6845_v34 }
 0x5cb   : > { %15972 = vmatpush3.bf16.xpose.msk.msra.mxu0 %vm15971_vm5, %v16702_v9  ;;  %vm6717_vm5 = vcmp.eq.s32.totalorder %v19417_v55, %v16798_v7 }
 0x5cc   : > { %15996 = vmatpush3.bf16.xpose.msk.msra.mxu1 %vm15995_vm6, %v16702_v9  ;;  %15973 = vmatprep.subr.bf16.mxu0 %v16699_v1  ;;  %vm6718_vm6 = vcmp.eq.s32.totalorder %v19417_v55, %v16801_v8 }
 0x5cd   : > { %15997 = vmatprep.subr.bf16.mxu1 %v16699_v1  ;;  %vm16004_vm9 = vmpackc.low %vm6718_vm6, %vm6717_vm5  ;;  %vm6862_vm5 = vcmp.eq.s32.totalorder %v19421_v57, %v16851_v20  ;;  %vm6863_vm6 = vcmp.eq.s32.totalorder %v19421_v57, %v16854_v21 }
 0x5ce   : > { %vm16034_vm8 = vmpackc.low %vm6863_vm6, %vm6862_vm5 }
 0x5d3   : > { %15975 = vmatpush3.bf16.xpose.msk.msra.mxu0 %vm15974_vm11, %v16702_v9  ;;  %vm6719_vm11 = vcmp.eq.s32.totalorder %v19417_v55, %v16831_v14  ;;  %v16584_v35 = vpop.eup %16583 }
 0x5d4   : > { %15999 = vmatpush3.bf16.xpose.msk.msra.mxu1 %vm15998_vm13, %v16702_v9  ;;  %16000 = vmatprep.subr.bf16.mxu0 %v16699_v1  ;;  %vm6720_vm13 = vcmp.eq.s32.totalorder %v19417_v55, %v16834_v15  ;;  %v16586_v38 = vpop.eup %16585 }
 0x5d5   : > { %16024 = vmatprep.subr.bf16.mxu1 %v16699_v1  ;;  %vm16007_vm1 = vmpackc.low %vm6720_vm13, %vm6719_vm11  ;;  %vm6864_vm11 = vcmp.eq.s32.totalorder %v19421_v57, %v16869_v26  ;;  %vm6865_vm13 = vcmp.eq.s32.totalorder %v19421_v57, %v16872_v27  ;;  %v6848_v42 = vmul.f32 %v16586_v38, %v16586_v38 }
 0x5d6   : > { %vm16037_vm15 = vmpackc.low %vm6865_vm13, %vm6864_vm11 }
 0x5d7   : > { %v6849_v44 = vmul.f32 %v6848_v42, %v6848_v42 }
 0x5d9   : > { %v6850_v47 = vmul.f32 %v6849_v44, %v6848_v42  ;;  %v11075_v42 = vld [vmem:[%s16814_s30 + $0xc8] sm:$0x7] }
 0x5da   : > { %14229 = vmatmul.mubr.f32.vlgmr.msra.gmra.mrb[44].mxu0 %v6428_v58  ;;  %v7122_v58 = vrot.slane %v7121_v56, 4  ;;  %v7261_v44 = vmul.f32 %v11075_v42, %v11075_v42 }
 0x5db   : > { %16002 = vmatpush3.bf16.xpose.msk.msra.mxu0 %vm16001_vm3, %v16702_v9  ;;  %14264 = vmatmul.mubr.f32.vlgmr.msra.gmra.mrb[44].mxu1 %v6569_v59  ;;  %vm6721_vm3 = vcmp.eq.s32.totalorder %v19417_v55, %v16851_v20  ;;  %v6851_v50 = vmul.f32 0.5, %v6850_v47 }
 0x5dc   : > { %16026 = vmatpush3.bf16.xpose.msk.msra.mxu1 %vm16025_vm4, %v16702_v9  ;;  %16003 = vmatprep.subr.bf16.mxu0 %v16699_v1  ;;  %vm6722_vm4 = vcmp.eq.s32.totalorder %v19417_v55, %v16854_v21  ;;  %v7123_v60 = vadd.f32 %v7122_v58, %v7121_v56 }
 0x5dd   : > { %16027 = vmatprep.subr.bf16.mxu1 %v16699_v1  ;;  %14298 = vmatprep.mubr.msk.f32.mxu0 %vm16700_vm0, %v16701_v3  ;;  %vm16010_vm7 = vmpackc.low %vm6722_vm4, %vm6721_vm3  ;;  %vm6866_vm3 = vcmp.eq.s32.totalorder %v19421_v57, %v16887_v32  ;;  %vm6867_vm4 = vcmp.eq.s32.totalorder %v19421_v57, %v16890_v33 }
 0x5de   : > { %14333 = vmatprep.mubr.msk.f32.mxu1 %vm16700_vm0, %v16701_v3  ;;  %vm16040_vm6 = vmpackc.low %vm6867_vm4, %vm6866_vm3  ;;  %v7124_v6 = vrot.slane %v7123_v60, 2 }
 0x5e3   : > { %16005 = vmatpush3.bf16.xpose.msk.msra.mxu0 %vm16004_vm9, %v16702_v9  ;;  %vm6723_vm9 = vcmp.eq.s32.totalorder %v19417_v55, %v16869_v26 }
 0x5e4   : > { %16029 = vmatpush3.bf16.xpose.msk.msra.mxu1 %vm16028_vm10, %v16702_v9  ;;  %16006 = vmatprep.subr.bf16.mxu0 %v16699_v1  ;;  %vm6724_vm10 = vcmp.eq.s32.totalorder %v19417_v55, %v16872_v27 }
 0x5e5   : > { %16030 = vmatprep.subr.bf16.mxu1 %v16699_v1  ;;  %vm16013_vm14 = vmpackc.low %vm6724_vm10, %vm6723_vm9  ;;  %vm6868_vm9 = vcmp.eq.s32.totalorder %v19421_v57, %v16905_v36  ;;  %vm6869_vm10 = vcmp.eq.s32.totalorder %v19421_v57, %v16908_v37 }
 0x5e6   : > { %vm16043_vm13 = vmpackc.low %vm6869_vm10, %vm6868_vm9 }
 0x5eb   : > { %16008 = vmatpush3.bf16.xpose.msk.msra.mxu0 %vm16007_vm1, %v16702_v9  ;;  %vm6725_vm1 = vcmp.eq.s32.totalorder %v19417_v55, %v16887_v32 }
 0x5ec   : > { %16032 = vmatpush3.bf16.xpose.msk.msra.mxu1 %vm16031_vm2, %v16702_v9  ;;  %16009 = vmatprep.subr.bf16.mxu0 %v16699_v1  ;;  %vm6726_vm2 = vcmp.eq.s32.totalorder %v19417_v55, %v16890_v33 }
 0x5ed   : > { %v5701_v13 = vpop.f32.mrb[38].mxu0  ;;  %16033 = vmatprep.subr.bf16.mxu1 %v16699_v1  ;;  %vm16016_vm5 = vmpackc.low %vm6726_vm2, %vm6725_vm1  ;;  %vm6870_vm1 = vcmp.eq.s32.totalorder %v19421_v57, %v16923_v40  ;;  %vm6871_vm2 = vcmp.eq.s32.totalorder %v19421_v57, %v16926_v41 }
 0x5ee   : > { %v5705_v17 = vadd.f32 %v5701_v13, %v19366_v39  ;;  %v14020_v18 = vpop.f32.mrb[39].mxu0  ;;  %v5842_v19 = vpop.f32.mrb[38].mxu1  ;;  %v6707_v39 = vmul.f32 %v16584_v35, %v16584_v35  ;;  %vm16046_vm4 = vmpackc.low %vm6871_vm2, %vm6870_vm1  ;;  %v7125_v13 = vadd.f32 %v7124_v6, %v7123_v60  ;;  %v19647_v35 = vld [vmem:[%s16789_s26 + $0x33] ss:$0 sm:$0xff] }
 0x5ef   : > { %v14055_v23 = vpop.f32.mrb[39].mxu1 }
 0x5f0   : > { %v19479_v24 = vadd.f32 %v5842_v19, %v5705_v17  ;;  %v6708_v43 = vmul.f32 %v6707_v39, %v6707_v39  ;;  %v7126_v17 = vrot.slane %v7125_v13, 1 }
 0x5f2   : > { %v6709_v45 = vmul.f32 %v6708_v43, %v6707_v39  ;;  %v7127_v19 = vadd.f32 %v7126_v17, %v7125_v13  ;;  %v11110_v43 = vld [vmem:[%s16814_s30 + $0xcc] sm:$0x7] }
 0x5f3   : > { %16011 = vmatpush3.bf16.xpose.msk.msra.mxu0 %vm16010_vm7, %v16702_v9  ;;  %vm6727_vm7 = vcmp.eq.s32.totalorder %v19417_v55, %v16905_v36 }
 0x5f4   : > { %16035 = vmatpush3.bf16.xpose.msk.msra.mxu1 %vm16034_vm8, %v16702_v9  ;;  %16012 = vmatprep.subr.bf16.mxu0 %v16699_v1  ;;  %vm6728_vm8 = vcmp.eq.s32.totalorder %v19417_v55, %v16908_v37  ;;  %v6710_v49 = vmul.f32 0.5, %v6709_v45  ;;  %v7402_v45 = vmul.f32 %v11110_v43, %v11110_v43 }
 0x5f5   : > { %16036 = vmatprep.subr.bf16.mxu1 %v16699_v1  ;;  %vm16019_vm11 = vmpackc.low %vm6728_vm8, %vm6727_vm7  ;;  %vm7138_vm7 = vcmp.eq.s32.totalorder %v19534_v48, %v16777_v2  ;;  %vm7139_vm8 = vcmp.eq.s32.totalorder %v19534_v48, %v16784_v4 }
 0x5f6   : > { %vm16073_vm10 = vmpackc.low %vm7139_vm8, %vm7138_vm7  ;;  %v7403_v47 = vsel %vm213_vm12, %v7402_v45, 0.0 }
 0x5fb   : > { %16014 = vmatpush3.bf16.xpose.msk.msra.mxu0 %vm16013_vm14, %v16702_v9  ;;  %vm6729_vm14 = vcmp.eq.s32.totalorder %v19417_v55, %v16923_v40 }
 0x5fc   : > { %16038 = vmatpush3.bf16.xpose.msk.msra.mxu1 %vm16037_vm15, %v16702_v9  ;;  %16015 = vmatprep.subr.bf16.mxu0 %v16699_v1  ;;  %vm6730_vm15 = vcmp.eq.s32.totalorder %v19417_v55, %v16926_v41  ;;  %v6980_v55 = vsel %vm213_vm12, %v6979_v53, 0.0 }
 0x5fd   : > { %16039 = vmatprep.subr.bf16.mxu1 %v16699_v1  ;;  %vm16022_vm3 = vmpackc.low %vm6730_vm15, %vm6729_vm14  ;;  %vm7140_vm14 = vcmp.eq.s32.totalorder %v19534_v48, %v16798_v7  ;;  %vm7141_vm15 = vcmp.eq.s32.totalorder %v19534_v48, %v16801_v8  ;;  %v6981_v57 = vrot.slane %v6980_v55, 4 }
 0x5fe   : > { %vm16076_vm2 = vmpackc.low %vm7141_vm15, %vm7140_vm14 }
 0x5ff   : > { %v6982_v59 = vadd.f32 %v6981_v57, %v6980_v55 }
 0x601   : > { %v6983_v62 = vrot.slane %v6982_v59, 2 }
 0x603   : > { %16017 = vmatpush3.bf16.xpose.msk.msra.mxu0 %vm16016_vm5, %v16702_v9  ;;  %vm6997_vm5 = vcmp.eq.s32.totalorder %v19530_v46, %v16777_v2  ;;  %v6984_v12 = vadd.f32 %v6983_v62, %v6982_v59 }
 0x604   : > { %16041 = vmatpush3.bf16.xpose.msk.msra.mxu1 %vm16040_vm6, %v16702_v9  ;;  %16018 = vmatprep.subr.bf16.mxu0 %v16699_v1  ;;  %vm6998_vm6 = vcmp.eq.s32.totalorder %v19530_v46, %v16784_v4 }
 0x605   : > { %16042 = vmatprep.subr.bf16.mxu1 %v16699_v1  ;;  %vm16049_vm9 = vmpackc.low %vm6998_vm6, %vm6997_vm5  ;;  %vm7142_vm5 = vcmp.eq.s32.totalorder %v19534_v48, %v16831_v14  ;;  %vm7143_vm6 = vcmp.eq.s32.totalorder %v19534_v48, %v16834_v15  ;;  %v6985_v16 = vrot.slane %v6984_v12, 1 }
 0x606   : > { %vm16079_vm8 = vmpackc.low %vm7143_vm6, %vm7142_vm5 }
 0x607   : > { %v6986_v18 = vadd.f32 %v6985_v16, %v6984_v12 }
 0x609   : > { %16587 = vrcp.f32 %v6986_v18  ;;  %v19756_v18 = vld [vmem:[%s16789_s26 + $0x34] ss:$0 sm:$0xff] }
 0x60a   : > { %16589 = vrcp.f32 %v7127_v19 }
 0x60b   : > { %16020 = vmatpush3.bf16.xpose.msk.msra.mxu0 %vm16019_vm11, %v16702_v9  ;;  %vm6999_vm11 = vcmp.eq.s32.totalorder %v19530_v46, %v16798_v7 }
 0x60c   : > { %16044 = vmatpush3.bf16.xpose.msk.msra.mxu1 %vm16043_vm13, %v16702_v9  ;;  %16021 = vmatprep.subr.bf16.mxu0 %v16699_v1  ;;  %vm7000_vm13 = vcmp.eq.s32.totalorder %v19530_v46, %v16801_v8 }
 0x60d   : > { %16045 = vmatprep.subr.bf16.mxu1 %v16699_v1  ;;  %vm16052_vm1 = vmpackc.low %vm7000_vm13, %vm6999_vm11  ;;  %vm7144_vm11 = vcmp.eq.s32.totalorder %v19534_v48, %v16851_v20  ;;  %vm7145_vm13 = vcmp.eq.s32.totalorder %v19534_v48, %v16854_v21 }
 0x60e   : > { %vm16082_vm15 = vmpackc.low %vm7145_vm13, %vm7144_vm11 }
 0x613   : > { %16023 = vmatpush3.bf16.xpose.msk.msra.mxu0 %vm16022_vm3, %v16702_v9  ;;  %vm7001_vm3 = vcmp.eq.s32.totalorder %v19530_v46, %v16831_v14  ;;  %v16588_v22 = vpop.eup %16587 }
 0x614   : > { %16047 = vmatpush3.bf16.xpose.msk.msra.mxu1 %vm16046_vm4, %v16702_v9  ;;  %16048 = vmatprep.subr.bf16.mxu0 %v16699_v1  ;;  %vm7002_vm4 = vcmp.eq.s32.totalorder %v19530_v46, %v16834_v15  ;;  %v16590_v23 = vpop.eup %16589 }
 0x615   : > { %16072 = vmatprep.subr.bf16.mxu1 %v16699_v1  ;;  %vm16055_vm7 = vmpackc.low %vm7002_vm4, %vm7001_vm3  ;;  %vm7146_vm3 = vcmp.eq.s32.totalorder %v19534_v48, %v16869_v26  ;;  %vm7147_vm4 = vcmp.eq.s32.totalorder %v19534_v48, %v16872_v27  ;;  %v7130_v25 = vmul.f32 %v16590_v23, %v16590_v23 }
 0x616   : > { %vm16085_vm6 = vmpackc.low %vm7147_vm4, %vm7146_vm3 }
 0x617   : > { %v7131_v29 = vmul.f32 %v7130_v25, %v7130_v25 }
 0x619   : > { %v7132_v34 = vmul.f32 %v7131_v29, %v7130_v25  ;;  %v11145_v25 = vld [vmem:[%s16814_s30 + $0xd0] sm:$0x7] }
 0x61a   : > { %14299 = vmatmul.mubr.f32.vlgmr.msra.gmra.mrb[46].mxu0 %v6710_v49  ;;  %v7404_v49 = vrot.slane %v7403_v47, 4  ;;  %v7543_v29 = vmul.f32 %v11145_v25, %v11145_v25 }
 0x61b   : > { %16050 = vmatpush3.bf16.xpose.msk.msra.mxu0 %vm16049_vm9, %v16702_v9  ;;  %14334 = vmatmul.mubr.f32.vlgmr.msra.gmra.mrb[46].mxu1 %v6851_v50  ;;  %vm7003_vm9 = vcmp.eq.s32.totalorder %v19530_v46, %v16851_v20  ;;  %v7133_v39 = vmul.f32 0.5, %v7132_v34 }
 0x61c   : > { %16074 = vmatpush3.bf16.xpose.msk.msra.mxu1 %vm16073_vm10, %v16702_v9  ;;  %16051 = vmatprep.subr.bf16.mxu0 %v16699_v1  ;;  %vm7004_vm10 = vcmp.eq.s32.totalorder %v19530_v46, %v16854_v21  ;;  %v7405_v51 = vadd.f32 %v7404_v49, %v7403_v47 }
 0x61d   : > { %16075 = vmatprep.subr.bf16.mxu1 %v16699_v1  ;;  %14368 = vmatprep.mubr.msk.f32.mxu0 %vm16700_vm0, %v16701_v3  ;;  %vm16058_vm14 = vmpackc.low %vm7004_vm10, %vm7003_vm9  ;;  %vm7148_vm9 = vcmp.eq.s32.totalorder %v19534_v48, %v16887_v32  ;;  %vm7149_vm10 = vcmp.eq.s32.totalorder %v19534_v48, %v16890_v33 }
 0x61e   : > { %14403 = vmatprep.mubr.msk.f32.mxu1 %vm16700_vm0, %v16701_v3  ;;  %vm16088_vm13 = vmpackc.low %vm7149_vm10, %vm7148_vm9  ;;  %v7406_v57 = vrot.slane %v7405_v51, 2 }
 0x623   : > { %16053 = vmatpush3.bf16.xpose.msk.msra.mxu0 %vm16052_vm1, %v16702_v9  ;;  %vm7005_vm1 = vcmp.eq.s32.totalorder %v19530_v46, %v16869_v26 }
 0x624   : > { %16077 = vmatpush3.bf16.xpose.msk.msra.mxu1 %vm16076_vm2, %v16702_v9  ;;  %16054 = vmatprep.subr.bf16.mxu0 %v16699_v1  ;;  %vm7006_vm2 = vcmp.eq.s32.totalorder %v19530_v46, %v16872_v27 }
 0x625   : > { %16078 = vmatprep.subr.bf16.mxu1 %v16699_v1  ;;  %vm16061_vm5 = vmpackc.low %vm7006_vm2, %vm7005_vm1  ;;  %vm7150_vm1 = vcmp.eq.s32.totalorder %v19534_v48, %v16905_v36  ;;  %vm7151_vm2 = vcmp.eq.s32.totalorder %v19534_v48, %v16908_v37 }
 0x626   : > { %vm16091_vm4 = vmpackc.low %vm7151_vm2, %vm7150_vm1 }
 0x62b   : > { %16056 = vmatpush3.bf16.xpose.msk.msra.mxu0 %vm16055_vm7, %v16702_v9  ;;  %vm7007_vm7 = vcmp.eq.s32.totalorder %v19530_v46, %v16887_v32 }
 0x62c   : > { %16080 = vmatpush3.bf16.xpose.msk.msra.mxu1 %vm16079_vm8, %v16702_v9  ;;  %16057 = vmatprep.subr.bf16.mxu0 %v16699_v1  ;;  %vm7008_vm8 = vcmp.eq.s32.totalorder %v19530_v46, %v16890_v33 }
 0x62d   : > { %v5983_v61 = vpop.f32.mrb[40].mxu0  ;;  %16081 = vmatprep.subr.bf16.mxu1 %v16699_v1  ;;  %vm16064_vm11 = vmpackc.low %vm7008_vm8, %vm7007_vm7  ;;  %vm7152_vm7 = vcmp.eq.s32.totalorder %v19534_v48, %v16923_v40  ;;  %vm7153_vm8 = vcmp.eq.s32.totalorder %v19534_v48, %v16926_v41 }
 0x62e   : > { %v5987_v63 = vadd.f32 %v5983_v61, %v19479_v24  ;;  %v14090_v0 = vpop.f32.mrb[41].mxu0  ;;  %v6124_v5 = vpop.f32.mrb[40].mxu1  ;;  %v6989_v24 = vmul.f32 %v16588_v22, %v16588_v22  ;;  %vm16094_vm10 = vmpackc.low %vm7153_vm8, %vm7152_vm7  ;;  %v7407_v61 = vadd.f32 %v7406_v57, %v7405_v51  ;;  %v19760_v22 = vld [vmem:[%s16789_s26 + $0x35] ss:$0 sm:$0xff] }
 0x62f   : > { %v14125_v10 = vpop.f32.mrb[41].mxu1 }
 0x630   : > { %v19592_v11 = vadd.f32 %v6124_v5, %v5987_v63  ;;  %v6990_v28 = vmul.f32 %v6989_v24, %v6989_v24  ;;  %v7408_v63 = vrot.slane %v7407_v61, 1 }
 0x632   : > { %v6991_v30 = vmul.f32 %v6990_v28, %v6989_v24  ;;  %v7409_v5 = vadd.f32 %v7408_v63, %v7407_v61  ;;  %v11180_v28 = vld [vmem:[%s16814_s30 + $0xd4] sm:$0x7] }
 0x633   : > { %16059 = vmatpush3.bf16.xpose.msk.msra.mxu0 %vm16058_vm14, %v16702_v9  ;;  %vm7009_vm14 = vcmp.eq.s32.totalorder %v19530_v46, %v16905_v36 }
 0x634   : > { %16083 = vmatpush3.bf16.xpose.msk.msra.mxu1 %vm16082_vm15, %v16702_v9  ;;  %16060 = vmatprep.subr.bf16.mxu0 %v16699_v1  ;;  %vm7010_vm15 = vcmp.eq.s32.totalorder %v19530_v46, %v16908_v37  ;;  %v6992_v38 = vmul.f32 0.5, %v6991_v30  ;;  %v7684_v30 = vmul.f32 %v11180_v28, %v11180_v28 }
 0x635   : > { %16084 = vmatprep.subr.bf16.mxu1 %v16699_v1  ;;  %vm16067_vm3 = vmpackc.low %vm7010_vm15, %vm7009_vm14  ;;  %vm7420_vm14 = vcmp.eq.s32.totalorder %v19647_v35, %v16777_v2  ;;  %vm7421_vm15 = vcmp.eq.s32.totalorder %v19647_v35, %v16784_v4 }
 0x636   : > { %vm16121_vm2 = vmpackc.low %vm7421_vm15, %vm7420_vm14  ;;  %v7685_v34 = vsel %vm213_vm12, %v7684_v30, 0.0 }
 0x63b   : > { %16062 = vmatpush3.bf16.xpose.msk.msra.mxu0 %vm16061_vm5, %v16702_v9  ;;  %vm7011_vm5 = vcmp.eq.s32.totalorder %v19530_v46, %v16923_v40 }
 0x63c   : > { %16086 = vmatpush3.bf16.xpose.msk.msra.mxu1 %vm16085_vm6, %v16702_v9  ;;  %16063 = vmatprep.subr.bf16.mxu0 %v16699_v1  ;;  %vm7012_vm6 = vcmp.eq.s32.totalorder %v19530_v46, %v16926_v41  ;;  %v7262_v46 = vsel %vm213_vm12, %v7261_v44, 0.0 }
 0x63d   : > { %16087 = vmatprep.subr.bf16.mxu1 %v16699_v1  ;;  %vm16070_vm9 = vmpackc.low %vm7012_vm6, %vm7011_vm5  ;;  %vm7422_vm5 = vcmp.eq.s32.totalorder %v19647_v35, %v16798_v7  ;;  %vm7423_vm6 = vcmp.eq.s32.totalorder %v19647_v35, %v16801_v8  ;;  %v7263_v48 = vrot.slane %v7262_v46, 4 }
 0x63e   : > { %vm16124_vm8 = vmpackc.low %vm7423_vm6, %vm7422_vm5 }
 0x63f   : > { %v7264_v50 = vadd.f32 %v7263_v48, %v7262_v46 }
 0x641   : > { %v7265_v53 = vrot.slane %v7264_v50, 2 }
 0x643   : > { %16065 = vmatpush3.bf16.xpose.msk.msra.mxu0 %vm16064_vm11, %v16702_v9  ;;  %vm7279_vm11 = vcmp.eq.s32.totalorder %v19643_v31, %v16777_v2  ;;  %v7266_v60 = vadd.f32 %v7265_v53, %v7264_v50 }
 0x644   : > { %16089 = vmatpush3.bf16.xpose.msk.msra.mxu1 %vm16088_vm13, %v16702_v9  ;;  %16066 = vmatprep.subr.bf16.mxu0 %v16699_v1  ;;  %vm7280_vm13 = vcmp.eq.s32.totalorder %v19643_v31, %v16784_v4 }
 0x645   : > { %16090 = vmatprep.subr.bf16.mxu1 %v16699_v1  ;;  %vm16097_vm1 = vmpackc.low %vm7280_vm13, %vm7279_vm11  ;;  %vm7424_vm11 = vcmp.eq.s32.totalorder %v19647_v35, %v16831_v14  ;;  %vm7425_vm13 = vcmp.eq.s32.totalorder %v19647_v35, %v16834_v15  ;;  %v7267_v62 = vrot.slane %v7266_v60, 1 }
 0x646   : > { %vm16127_vm15 = vmpackc.low %vm7425_vm13, %vm7424_vm11 }
 0x647   : > { %v7268_v0 = vadd.f32 %v7267_v62, %v7266_v60 }
 0x649   : > { %16591 = vrcp.f32 %v7268_v0  ;;  %v19869_v0 = vld [vmem:[%s16789_s26 + $0x36] ss:$0 sm:$0xff] }
 0x64a   : > { %16593 = vrcp.f32 %v7409_v5 }
 0x64b   : > { %16068 = vmatpush3.bf16.xpose.msk.msra.mxu0 %vm16067_vm3, %v16702_v9  ;;  %vm7281_vm3 = vcmp.eq.s32.totalorder %v19643_v31, %v16798_v7 }
 0x64c   : > { %16092 = vmatpush3.bf16.xpose.msk.msra.mxu1 %vm16091_vm4, %v16702_v9  ;;  %16069 = vmatprep.subr.bf16.mxu0 %v16699_v1  ;;  %vm7282_vm4 = vcmp.eq.s32.totalorder %v19643_v31, %v16801_v8 }
 0x64d   : > { %16093 = vmatprep.subr.bf16.mxu1 %v16699_v1  ;;  %vm16100_vm7 = vmpackc.low %vm7282_vm4, %vm7281_vm3  ;;  %vm7426_vm3 = vcmp.eq.s32.totalorder %v19647_v35, %v16851_v20  ;;  %vm7427_vm4 = vcmp.eq.s32.totalorder %v19647_v35, %v16854_v21 }
 0x64e   : > { %vm16130_vm6 = vmpackc.low %vm7427_vm4, %vm7426_vm3 }
 0x653   : > { %16071 = vmatpush3.bf16.xpose.msk.msra.mxu0 %vm16070_vm9, %v16702_v9  ;;  %vm7283_vm9 = vcmp.eq.s32.totalorder %v19643_v31, %v16831_v14  ;;  %v16592_v6 = vpop.eup %16591 }
 0x654   : > { %16095 = vmatpush3.bf16.xpose.msk.msra.mxu1 %vm16094_vm10, %v16702_v9  ;;  %16096 = vmatprep.subr.bf16.mxu0 %v16699_v1  ;;  %vm7284_vm10 = vcmp.eq.s32.totalorder %v19643_v31, %v16834_v15  ;;  %v16594_v10 = vpop.eup %16593 }
 0x655   : > { %16120 = vmatprep.subr.bf16.mxu1 %v16699_v1  ;;  %vm16103_vm14 = vmpackc.low %vm7284_vm10, %vm7283_vm9  ;;  %vm7428_vm9 = vcmp.eq.s32.totalorder %v19647_v35, %v16869_v26  ;;  %vm7429_vm10 = vcmp.eq.s32.totalorder %v19647_v35, %v16872_v27  ;;  %v7412_v12 = vmul.f32 %v16594_v10, %v16594_v10 }
 0x656   : > { %vm16133_vm13 = vmpackc.low %vm7429_vm10, %vm7428_vm9 }
 0x657   : > { %v7413_v16 = vmul.f32 %v7412_v12, %v7412_v12 }
 0x659   : > { %v7414_v19 = vmul.f32 %v7413_v16, %v7412_v12  ;;  %v11215_v12 = vld [vmem:[%s16814_s30 + $0xd8] sm:$0x7] }
 0x65a   : > { %14369 = vmatmul.mubr.f32.vlgmr.msra.gmra.mrb[48].mxu0 %v6992_v38  ;;  %v7686_v38 = vrot.slane %v7685_v34, 4  ;;  %v7825_v16 = vmul.f32 %v11215_v12, %v11215_v12 }
 0x65b   : > { %16098 = vmatpush3.bf16.xpose.msk.msra.mxu0 %vm16097_vm1, %v16702_v9  ;;  %14404 = vmatmul.mubr.f32.vlgmr.msra.gmra.mrb[48].mxu1 %v7133_v39  ;;  %vm7285_vm1 = vcmp.eq.s32.totalorder %v19643_v31, %v16851_v20  ;;  %v7415_v24 = vmul.f32 0.5, %v7414_v19 }
 0x65c   : > { %16122 = vmatpush3.bf16.xpose.msk.msra.mxu1 %vm16121_vm2, %v16702_v9  ;;  %16099 = vmatprep.subr.bf16.mxu0 %v16699_v1  ;;  %vm7286_vm2 = vcmp.eq.s32.totalorder %v19643_v31, %v16854_v21  ;;  %v7687_v42 = vadd.f32 %v7686_v38, %v7685_v34 }
 0x65d   : > { %16123 = vmatprep.subr.bf16.mxu1 %v16699_v1  ;;  %14438 = vmatprep.mubr.msk.f32.mxu0 %vm16700_vm0, %v16701_v3  ;;  %vm16106_vm5 = vmpackc.low %vm7286_vm2, %vm7285_vm1  ;;  %vm7430_vm1 = vcmp.eq.s32.totalorder %v19647_v35, %v16887_v32  ;;  %vm7431_vm2 = vcmp.eq.s32.totalorder %v19647_v35, %v16890_v33 }
 0x65e   : > { %14473 = vmatprep.mubr.msk.f32.mxu1 %vm16700_vm0, %v16701_v3  ;;  %vm16136_vm4 = vmpackc.low %vm7431_vm2, %vm7430_vm1  ;;  %v7688_v48 = vrot.slane %v7687_v42, 2 }
 0x663   : > { %16101 = vmatpush3.bf16.xpose.msk.msra.mxu0 %vm16100_vm7, %v16702_v9  ;;  %vm7287_vm7 = vcmp.eq.s32.totalorder %v19643_v31, %v16869_v26 }
 0x664   : > { %16125 = vmatpush3.bf16.xpose.msk.msra.mxu1 %vm16124_vm8, %v16702_v9  ;;  %16102 = vmatprep.subr.bf16.mxu0 %v16699_v1  ;;  %vm7288_vm8 = vcmp.eq.s32.totalorder %v19643_v31, %v16872_v27 }
 0x665   : > { %16126 = vmatprep.subr.bf16.mxu1 %v16699_v1  ;;  %vm16109_vm11 = vmpackc.low %vm7288_vm8, %vm7287_vm7  ;;  %vm7432_vm7 = vcmp.eq.s32.totalorder %v19647_v35, %v16905_v36  ;;  %vm7433_vm8 = vcmp.eq.s32.totalorder %v19647_v35, %v16908_v37 }
 0x666   : > { %vm16139_vm10 = vmpackc.low %vm7433_vm8, %vm7432_vm7 }
 0x66b   : > { %16104 = vmatpush3.bf16.xpose.msk.msra.mxu0 %vm16103_vm14, %v16702_v9  ;;  %vm7289_vm14 = vcmp.eq.s32.totalorder %v19643_v31, %v16887_v32 }
 0x66c   : > { %16128 = vmatpush3.bf16.xpose.msk.msra.mxu1 %vm16127_vm15, %v16702_v9  ;;  %16105 = vmatprep.subr.bf16.mxu0 %v16699_v1  ;;  %vm7290_vm15 = vcmp.eq.s32.totalorder %v19643_v31, %v16890_v33 }
 0x66d   : > { %v6265_v52 = vpop.f32.mrb[42].mxu0  ;;  %16129 = vmatprep.subr.bf16.mxu1 %v16699_v1  ;;  %vm16112_vm3 = vmpackc.low %vm7290_vm15, %vm7289_vm14  ;;  %vm7434_vm14 = vcmp.eq.s32.totalorder %v19647_v35, %v16923_v40  ;;  %vm7435_vm15 = vcmp.eq.s32.totalorder %v19647_v35, %v16926_v41 }
 0x66e   : > { %v6269_v54 = vadd.f32 %v6265_v52, %v19592_v11  ;;  %v14160_v55 = vpop.f32.mrb[43].mxu0  ;;  %v6406_v56 = vpop.f32.mrb[42].mxu1  ;;  %v7271_v11 = vmul.f32 %v16592_v6, %v16592_v6  ;;  %vm16142_vm2 = vmpackc.low %vm7435_vm15, %vm7434_vm14  ;;  %v7689_v52 = vadd.f32 %v7688_v48, %v7687_v42  ;;  %v19873_v6 = vld [vmem:[%s16789_s26 + $0x37] ss:$0 sm:$0xff] }
 0x66f   : > { %v14195_v58 = vpop.f32.mrb[43].mxu1 }
 0x670   : > { %v19705_v59 = vadd.f32 %v6406_v56, %v6269_v54  ;;  %v7272_v13 = vmul.f32 %v7271_v11, %v7271_v11  ;;  %v7690_v54 = vrot.slane %v7689_v52, 1 }
 0x672   : > { %v7273_v17 = vmul.f32 %v7272_v13, %v7271_v11  ;;  %v7691_v56 = vadd.f32 %v7690_v54, %v7689_v52  ;;  %v11250_v13 = vld [vmem:[%s16814_s30 + $0xdc] sm:$0x7] }
 0x673   : > { %16107 = vmatpush3.bf16.xpose.msk.msra.mxu0 %vm16106_vm5, %v16702_v9  ;;  %vm7291_vm5 = vcmp.eq.s32.totalorder %v19643_v31, %v16905_v36 }
 0x674   : > { %16131 = vmatpush3.bf16.xpose.msk.msra.mxu1 %vm16130_vm6, %v16702_v9  ;;  %16108 = vmatprep.subr.bf16.mxu0 %v16699_v1  ;;  %vm7292_vm6 = vcmp.eq.s32.totalorder %v19643_v31, %v16908_v37  ;;  %v7274_v23 = vmul.f32 0.5, %v7273_v17  ;;  %v7966_v17 = vmul.f32 %v11250_v13, %v11250_v13 }
 0x675   : > { %16132 = vmatprep.subr.bf16.mxu1 %v16699_v1  ;;  %vm16115_vm9 = vmpackc.low %vm7292_vm6, %vm7291_vm5  ;;  %vm7702_vm5 = vcmp.eq.s32.totalorder %v19760_v22, %v16777_v2  ;;  %vm7703_vm6 = vcmp.eq.s32.totalorder %v19760_v22, %v16784_v4 }
 0x676   : > { %vm16169_vm8 = vmpackc.low %vm7703_vm6, %vm7702_vm5  ;;  %v7967_v19 = vsel %vm213_vm12, %v7966_v17, 0.0 }
 0x67b   : > { %16110 = vmatpush3.bf16.xpose.msk.msra.mxu0 %vm16109_vm11, %v16702_v9  ;;  %vm7293_vm11 = vcmp.eq.s32.totalorder %v19643_v31, %v16923_v40 }
 0x67c   : > { %16134 = vmatpush3.bf16.xpose.msk.msra.mxu1 %vm16133_vm13, %v16702_v9  ;;  %16111 = vmatprep.subr.bf16.mxu0 %v16699_v1  ;;  %vm7294_vm13 = vcmp.eq.s32.totalorder %v19643_v31, %v16926_v41  ;;  %v7544_v31 = vsel %vm213_vm12, %v7543_v29, 0.0 }
 0x67d   : > { %16135 = vmatprep.subr.bf16.mxu1 %v16699_v1  ;;  %vm16118_vm1 = vmpackc.low %vm7294_vm13, %vm7293_vm11  ;;  %vm7704_vm11 = vcmp.eq.s32.totalorder %v19760_v22, %v16798_v7  ;;  %vm7705_vm13 = vcmp.eq.s32.totalorder %v19760_v22, %v16801_v8  ;;  %v7545_v35 = vrot.slane %v7544_v31, 4 }
 0x67e   : > { %vm16172_vm15 = vmpackc.low %vm7705_vm13, %vm7704_vm11 }
 0x67f   : > { %v7546_v39 = vadd.f32 %v7545_v35, %v7544_v31 }
 0x681   : > { %v7547_v44 = vrot.slane %v7546_v39, 2 }
 0x683   : > { %16113 = vmatpush3.bf16.xpose.msk.msra.mxu0 %vm16112_vm3, %v16702_v9  ;;  %vm7561_vm3 = vcmp.eq.s32.totalorder %v19756_v18, %v16777_v2  ;;  %v7548_v51 = vadd.f32 %v7547_v44, %v7546_v39 }
 0x684   : > { %16137 = vmatpush3.bf16.xpose.msk.msra.mxu1 %vm16136_vm4, %v16702_v9  ;;  %16114 = vmatprep.subr.bf16.mxu0 %v16699_v1  ;;  %vm7562_vm4 = vcmp.eq.s32.totalorder %v19756_v18, %v16784_v4 }
 0x685   : > { %16138 = vmatprep.subr.bf16.mxu1 %v16699_v1  ;;  %vm16145_vm7 = vmpackc.low %vm7562_vm4, %vm7561_vm3  ;;  %vm7706_vm3 = vcmp.eq.s32.totalorder %v19760_v22, %v16831_v14  ;;  %vm7707_vm4 = vcmp.eq.s32.totalorder %v19760_v22, %v16834_v15  ;;  %v7549_v53 = vrot.slane %v7548_v51, 1 }
 0x686   : > { %vm16175_vm6 = vmpackc.low %vm7707_vm4, %vm7706_vm3 }
 0x687   : > { %v7550_v55 = vadd.f32 %v7549_v53, %v7548_v51 }
 0x689   : > { %16595 = vrcp.f32 %v7550_v55  ;;  %v19982_v55 = vld [vmem:[%s16789_s26 + $0x38] ss:$0 sm:$0xff] }
 0x68a   : > { %16597 = vrcp.f32 %v7691_v56 }
 0x68b   : > { %16116 = vmatpush3.bf16.xpose.msk.msra.mxu0 %vm16115_vm9, %v16702_v9  ;;  %vm7563_vm9 = vcmp.eq.s32.totalorder %v19756_v18, %v16798_v7 }
 0x68c   : > { %16140 = vmatpush3.bf16.xpose.msk.msra.mxu1 %vm16139_vm10, %v16702_v9  ;;  %16117 = vmatprep.subr.bf16.mxu0 %v16699_v1  ;;  %vm7564_vm10 = vcmp.eq.s32.totalorder %v19756_v18, %v16801_v8 }
 0x68d   : > { %16141 = vmatprep.subr.bf16.mxu1 %v16699_v1  ;;  %vm16148_vm14 = vmpackc.low %vm7564_vm10, %vm7563_vm9  ;;  %vm7708_vm9 = vcmp.eq.s32.totalorder %v19760_v22, %v16851_v20  ;;  %vm7709_vm10 = vcmp.eq.s32.totalorder %v19760_v22, %v16854_v21 }
 0x68e   : > { %vm16178_vm13 = vmpackc.low %vm7709_vm10, %vm7708_vm9 }
 0x693   : > { %16119 = vmatpush3.bf16.xpose.msk.msra.mxu0 %vm16118_vm1, %v16702_v9  ;;  %vm7565_vm1 = vcmp.eq.s32.totalorder %v19756_v18, %v16831_v14  ;;  %v16596_v57 = vpop.eup %16595 }
 0x694   : > { %16143 = vmatpush3.bf16.xpose.msk.msra.mxu1 %vm16142_vm2, %v16702_v9  ;;  %16144 = vmatprep.subr.bf16.mxu0 %v16699_v1  ;;  %vm7566_vm2 = vcmp.eq.s32.totalorder %v19756_v18, %v16834_v15  ;;  %v16598_v58 = vpop.eup %16597 }
 0x695   : > { %16168 = vmatprep.subr.bf16.mxu1 %v16699_v1  ;;  %vm16151_vm5 = vmpackc.low %vm7566_vm2, %vm7565_vm1  ;;  %vm7710_vm1 = vcmp.eq.s32.totalorder %v19760_v22, %v16869_v26  ;;  %vm7711_vm2 = vcmp.eq.s32.totalorder %v19760_v22, %v16872_v27  ;;  %v7694_v60 = vmul.f32 %v16598_v58, %v16598_v58 }
 0x696   : > { %vm16181_vm4 = vmpackc.low %vm7711_vm2, %vm7710_vm1 }
 0x697   : > { %v7695_v62 = vmul.f32 %v7694_v60, %v7694_v60 }
 0x699   : > { %v7696_v5 = vmul.f32 %v7695_v62, %v7694_v60  ;;  %v11285_v60 = vld [vmem:[%s16814_s30 + $0xe0] sm:$0x7] }
 0x69a   : > { %14439 = vmatmul.mubr.f32.vlgmr.msra.gmra.mrb[50].mxu0 %v7274_v23  ;;  %v7968_v23 = vrot.slane %v7967_v19, 4  ;;  %v8107_v62 = vmul.f32 %v11285_v60, %v11285_v60 }
 0x69b   : > { %16146 = vmatpush3.bf16.xpose.msk.msra.mxu0 %vm16145_vm7, %v16702_v9  ;;  %14474 = vmatmul.mubr.f32.vlgmr.msra.gmra.mrb[50].mxu1 %v7415_v24  ;;  %vm7567_vm7 = vcmp.eq.s32.totalorder %v19756_v18, %v16851_v20  ;;  %v7697_v11 = vmul.f32 0.5, %v7696_v5 }
 0x69c   : > { %16170 = vmatpush3.bf16.xpose.msk.msra.mxu1 %vm16169_vm8, %v16702_v9  ;;  %16147 = vmatprep.subr.bf16.mxu0 %v16699_v1  ;;  %vm7568_vm8 = vcmp.eq.s32.totalorder %v19756_v18, %v16854_v21  ;;  %v7969_v25 = vadd.f32 %v7968_v23, %v7967_v19 }
 0x69d   : > { %16171 = vmatprep.subr.bf16.mxu1 %v16699_v1  ;;  %14508 = vmatprep.mubr.msk.f32.mxu0 %vm16700_vm0, %v16701_v3  ;;  %vm16154_vm11 = vmpackc.low %vm7568_vm8, %vm7567_vm7  ;;  %vm7712_vm7 = vcmp.eq.s32.totalorder %v19760_v22, %v16887_v32  ;;  %vm7713_vm8 = vcmp.eq.s32.totalorder %v19760_v22, %v16890_v33 }
 0x69e   : > { %14543 = vmatprep.mubr.msk.f32.mxu1 %vm16700_vm0, %v16701_v3  ;;  %vm16184_vm10 = vmpackc.low %vm7713_vm8, %vm7712_vm7  ;;  %v7970_v35 = vrot.slane %v7969_v25, 2 }
 0x6a3   : > { %16149 = vmatpush3.bf16.xpose.msk.msra.mxu0 %vm16148_vm14, %v16702_v9  ;;  %vm7569_vm14 = vcmp.eq.s32.totalorder %v19756_v18, %v16869_v26 }
 0x6a4   : > { %16173 = vmatpush3.bf16.xpose.msk.msra.mxu1 %vm16172_vm15, %v16702_v9  ;;  %16150 = vmatprep.subr.bf16.mxu0 %v16699_v1  ;;  %vm7570_vm15 = vcmp.eq.s32.totalorder %v19756_v18, %v16872_v27 }
 0x6a5   : > { %16174 = vmatprep.subr.bf16.mxu1 %v16699_v1  ;;  %vm16157_vm3 = vmpackc.low %vm7570_vm15, %vm7569_vm14  ;;  %vm7714_vm14 = vcmp.eq.s32.totalorder %v19760_v22, %v16905_v36  ;;  %vm7715_vm15 = vcmp.eq.s32.totalorder %v19760_v22, %v16908_v37 }
 0x6a6   : > { %vm16187_vm2 = vmpackc.low %vm7715_vm15, %vm7714_vm14 }
 0x6ab   : > { %16152 = vmatpush3.bf16.xpose.msk.msra.mxu0 %vm16151_vm5, %v16702_v9  ;;  %vm7571_vm5 = vcmp.eq.s32.totalorder %v19756_v18, %v16887_v32 }
 0x6ac   : > { %16176 = vmatpush3.bf16.xpose.msk.msra.mxu1 %vm16175_vm6, %v16702_v9  ;;  %16153 = vmatprep.subr.bf16.mxu0 %v16699_v1  ;;  %vm7572_vm6 = vcmp.eq.s32.totalorder %v19756_v18, %v16890_v33 }
 0x6ad   : > { %v6547_v43 = vpop.f32.mrb[44].mxu0  ;;  %16177 = vmatprep.subr.bf16.mxu1 %v16699_v1  ;;  %vm16160_vm9 = vmpackc.low %vm7572_vm6, %vm7571_vm5  ;;  %vm7716_vm5 = vcmp.eq.s32.totalorder %v19760_v22, %v16923_v40  ;;  %vm7717_vm6 = vcmp.eq.s32.totalorder %v19760_v22, %v16926_v41 }
 0x6ae   : > { %v6551_v45 = vadd.f32 %v6547_v43, %v19705_v59  ;;  %v14230_v46 = vpop.f32.mrb[45].mxu0  ;;  %v6688_v47 = vpop.f32.mrb[44].mxu1  ;;  %v7553_v59 = vmul.f32 %v16596_v57, %v16596_v57  ;;  %vm16190_vm8 = vmpackc.low %vm7717_vm6, %vm7716_vm5  ;;  %v7971_v43 = vadd.f32 %v7970_v35, %v7969_v25  ;;  %v19986_v57 = vld [vmem:[%s16789_s26 + $0x39] ss:$0 sm:$0xff] }
 0x6af   : > { %v14265_v49 = vpop.f32.mrb[45].mxu1 }
 0x6b0   : > { %v19818_v50 = vadd.f32 %v6688_v47, %v6551_v45  ;;  %v7554_v61 = vmul.f32 %v7553_v59, %v7553_v59  ;;  %v7972_v45 = vrot.slane %v7971_v43, 1 }
 0x6b2   : > { %v7555_v63 = vmul.f32 %v7554_v61, %v7553_v59  ;;  %v7973_v47 = vadd.f32 %v7972_v45, %v7971_v43  ;;  %v11320_v61 = vld [vmem:[%s16814_s30 + $0xe4] sm:$0x7] }
 0x6b3   : > { %16155 = vmatpush3.bf16.xpose.msk.msra.mxu0 %vm16154_vm11, %v16702_v9  ;;  %vm7573_vm11 = vcmp.eq.s32.totalorder %v19756_v18, %v16905_v36 }
 0x6b4   : > { %16179 = vmatpush3.bf16.xpose.msk.msra.mxu1 %vm16178_vm13, %v16702_v9  ;;  %16156 = vmatprep.subr.bf16.mxu0 %v16699_v1  ;;  %vm7574_vm13 = vcmp.eq.s32.totalorder %v19756_v18, %v16908_v37  ;;  %v7556_v10 = vmul.f32 0.5, %v7555_v63  ;;  %v8248_v63 = vmul.f32 %v11320_v61, %v11320_v61 }
 0x6b5   : > { %16180 = vmatprep.subr.bf16.mxu1 %v16699_v1  ;;  %vm16163_vm1 = vmpackc.low %vm7574_vm13, %vm7573_vm11  ;;  %vm7984_vm11 = vcmp.eq.s32.totalorder %v19873_v6, %v16777_v2  ;;  %vm7985_vm13 = vcmp.eq.s32.totalorder %v19873_v6, %v16784_v4 }
 0x6b6   : > { %vm16217_vm15 = vmpackc.low %vm7985_vm13, %vm7984_vm11  ;;  %v8249_v5 = vsel %vm213_vm12, %v8248_v63, 0.0 }
 0x6bb   : > { %16158 = vmatpush3.bf16.xpose.msk.msra.mxu0 %vm16157_vm3, %v16702_v9  ;;  %vm7575_vm3 = vcmp.eq.s32.totalorder %v19756_v18, %v16923_v40 }
 0x6bc   : > { %16182 = vmatpush3.bf16.xpose.msk.msra.mxu1 %vm16181_vm4, %v16702_v9  ;;  %16159 = vmatprep.subr.bf16.mxu0 %v16699_v1  ;;  %vm7576_vm4 = vcmp.eq.s32.totalorder %v19756_v18, %v16926_v41  ;;  %v7826_v18 = vsel %vm213_vm12, %v7825_v16, 0.0 }
 0x6bd   : > { %16183 = vmatprep.subr.bf16.mxu1 %v16699_v1  ;;  %vm16166_vm7 = vmpackc.low %vm7576_vm4, %vm7575_vm3  ;;  %vm7986_vm3 = vcmp.eq.s32.totalorder %v19873_v6, %v16798_v7  ;;  %vm7987_vm4 = vcmp.eq.s32.totalorder %v19873_v6, %v16801_v8  ;;  %v7827_v22 = vrot.slane %v7826_v18, 4 }
 0x6be   : > { %vm16220_vm6 = vmpackc.low %vm7987_vm4, %vm7986_vm3 }
 0x6bf   : > { %v7828_v24 = vadd.f32 %v7827_v22, %v7826_v18 }
 0x6c1   : > { %v7829_v29 = vrot.slane %v7828_v24, 2 }
 0x6c3   : > { %16161 = vmatpush3.bf16.xpose.msk.msra.mxu0 %vm16160_vm9, %v16702_v9  ;;  %vm7843_vm9 = vcmp.eq.s32.totalorder %v19869_v0, %v16777_v2  ;;  %v7830_v42 = vadd.f32 %v7829_v29, %v7828_v24 }
 0x6c4   : > { %16185 = vmatpush3.bf16.xpose.msk.msra.mxu1 %vm16184_vm10, %v16702_v9  ;;  %16162 = vmatprep.subr.bf16.mxu0 %v16699_v1  ;;  %vm7844_vm10 = vcmp.eq.s32.totalorder %v19869_v0, %v16784_v4 }
 0x6c5   : > { %16186 = vmatprep.subr.bf16.mxu1 %v16699_v1  ;;  %vm16193_vm14 = vmpackc.low %vm7844_vm10, %vm7843_vm9  ;;  %vm7988_vm9 = vcmp.eq.s32.totalorder %v19873_v6, %v16831_v14  ;;  %vm7989_vm10 = vcmp.eq.s32.totalorder %v19873_v6, %v16834_v15  ;;  %v7831_v44 = vrot.slane %v7830_v42, 1 }
 0x6c6   : > { %vm16223_vm13 = vmpackc.low %vm7989_vm10, %vm7988_vm9 }
 0x6c7   : > { %v7832_v46 = vadd.f32 %v7831_v44, %v7830_v42 }
 0x6c9   : > { %16599 = vrcp.f32 %v7832_v46  ;;  %v20095_v46 = vld [vmem:[%s16789_s26 + $0x3a] ss:$0 sm:$0xff] }
 0x6ca   : > { %16601 = vrcp.f32 %v7973_v47 }
 0x6cb   : > { %16164 = vmatpush3.bf16.xpose.msk.msra.mxu0 %vm16163_vm1, %v16702_v9  ;;  %vm7845_vm1 = vcmp.eq.s32.totalorder %v19869_v0, %v16798_v7 }
 0x6cc   : > { %16188 = vmatpush3.bf16.xpose.msk.msra.mxu1 %vm16187_vm2, %v16702_v9  ;;  %16165 = vmatprep.subr.bf16.mxu0 %v16699_v1  ;;  %vm7846_vm2 = vcmp.eq.s32.totalorder %v19869_v0, %v16801_v8 }
 0x6cd   : > { %16189 = vmatprep.subr.bf16.mxu1 %v16699_v1  ;;  %vm16196_vm5 = vmpackc.low %vm7846_vm2, %vm7845_vm1  ;;  %vm7990_vm1 = vcmp.eq.s32.totalorder %v19873_v6, %v16851_v20  ;;  %vm7991_vm2 = vcmp.eq.s32.totalorder %v19873_v6, %v16854_v21 }
 0x6ce   : > { %vm16226_vm4 = vmpackc.low %vm7991_vm2, %vm7990_vm1 }
 0x6d3   : > { %16167 = vmatpush3.bf16.xpose.msk.msra.mxu0 %vm16166_vm7, %v16702_v9  ;;  %vm7847_vm7 = vcmp.eq.s32.totalorder %v19869_v0, %v16831_v14  ;;  %v16600_v48 = vpop.eup %16599 }
 0x6d4   : > { %16191 = vmatpush3.bf16.xpose.msk.msra.mxu1 %vm16190_vm8, %v16702_v9  ;;  %16192 = vmatprep.subr.bf16.mxu0 %v16699_v1  ;;  %vm7848_vm8 = vcmp.eq.s32.totalorder %v19869_v0, %v16834_v15  ;;  %v16602_v49 = vpop.eup %16601 }
 0x6d5   : > { %16216 = vmatprep.subr.bf16.mxu1 %v16699_v1  ;;  %vm16199_vm11 = vmpackc.low %vm7848_vm8, %vm7847_vm7  ;;  %vm7992_vm7 = vcmp.eq.s32.totalorder %v19873_v6, %v16869_v26  ;;  %vm7993_vm8 = vcmp.eq.s32.totalorder %v19873_v6, %v16872_v27  ;;  %v7976_v51 = vmul.f32 %v16602_v49, %v16602_v49 }
 0x6d6   : > { %vm16229_vm10 = vmpackc.low %vm7993_vm8, %vm7992_vm7 }
 0x6d7   : > { %v7977_v53 = vmul.f32 %v7976_v51, %v7976_v51 }
 0x6d9   : > { %v7978_v56 = vmul.f32 %v7977_v53, %v7976_v51  ;;  %v11355_v51 = vld [vmem:[%s16814_s30 + $0xe8] sm:$0x7] }
 0x6da   : > { %14509 = vmatmul.mubr.f32.vlgmr.msra.gmra.mrb[52].mxu0 %v7556_v10  ;;  %v8250_v10 = vrot.slane %v8249_v5, 4  ;;  %v8389_v53 = vmul.f32 %v11355_v51, %v11355_v51 }
 0x6db   : > { %16194 = vmatpush3.bf16.xpose.msk.msra.mxu0 %vm16193_vm14, %v16702_v9  ;;  %14544 = vmatmul.mubr.f32.vlgmr.msra.gmra.mrb[52].mxu1 %v7697_v11  ;;  %vm7849_vm14 = vcmp.eq.s32.totalorder %v19869_v0, %v16851_v20  ;;  %v7979_v59 = vmul.f32 0.5, %v7978_v56 }
 0x6dc   : > { %16218 = vmatpush3.bf16.xpose.msk.msra.mxu1 %vm16217_vm15, %v16702_v9  ;;  %16195 = vmatprep.subr.bf16.mxu0 %v16699_v1  ;;  %vm7850_vm15 = vcmp.eq.s32.totalorder %v19869_v0, %v16854_v21  ;;  %v8251_v12 = vadd.f32 %v8250_v10, %v8249_v5 }
 0x6dd   : > { %16219 = vmatprep.subr.bf16.mxu1 %v16699_v1  ;;  %14578 = vmatprep.mubr.msk.f32.mxu0 %vm16700_vm0, %v16701_v3  ;;  %vm16202_vm3 = vmpackc.low %vm7850_vm15, %vm7849_vm14  ;;  %vm7994_vm14 = vcmp.eq.s32.totalorder %v19873_v6, %v16887_v32  ;;  %vm7995_vm15 = vcmp.eq.s32.totalorder %v19873_v6, %v16890_v33 }
 0x6de   : > { %14613 = vmatprep.mubr.msk.f32.mxu1 %vm16700_vm0, %v16701_v3  ;;  %vm16232_vm2 = vmpackc.low %vm7995_vm15, %vm7994_vm14  ;;  %v8252_v22 = vrot.slane %v8251_v12, 2 }
 0x6e3   : > { %16197 = vmatpush3.bf16.xpose.msk.msra.mxu0 %vm16196_vm5, %v16702_v9  ;;  %vm7851_vm5 = vcmp.eq.s32.totalorder %v19869_v0, %v16869_v26 }
 0x6e4   : > { %16221 = vmatpush3.bf16.xpose.msk.msra.mxu1 %vm16220_vm6, %v16702_v9  ;;  %16198 = vmatprep.subr.bf16.mxu0 %v16699_v1  ;;  %vm7852_vm6 = vcmp.eq.s32.totalorder %v19869_v0, %v16872_v27 }
 0x6e5   : > { %16222 = vmatprep.subr.bf16.mxu1 %v16699_v1  ;;  %vm16205_vm9 = vmpackc.low %vm7852_vm6, %vm7851_vm5  ;;  %vm7996_vm5 = vcmp.eq.s32.totalorder %v19873_v6, %v16905_v36  ;;  %vm7997_vm6 = vcmp.eq.s32.totalorder %v19873_v6, %v16908_v37 }
 0x6e6   : > { %vm16235_vm8 = vmpackc.low %vm7997_vm6, %vm7996_vm5 }
 0x6eb   : > { %16200 = vmatpush3.bf16.xpose.msk.msra.mxu0 %vm16199_vm11, %v16702_v9  ;;  %vm7853_vm11 = vcmp.eq.s32.totalorder %v19869_v0, %v16887_v32 }
 0x6ec   : > { %16224 = vmatpush3.bf16.xpose.msk.msra.mxu1 %vm16223_vm13, %v16702_v9  ;;  %16201 = vmatprep.subr.bf16.mxu0 %v16699_v1  ;;  %vm7854_vm13 = vcmp.eq.s32.totalorder %v19869_v0, %v16890_v33 }
 0x6ed   : > { %v6829_v28 = vpop.f32.mrb[46].mxu0  ;;  %16225 = vmatprep.subr.bf16.mxu1 %v16699_v1  ;;  %vm16208_vm1 = vmpackc.low %vm7854_vm13, %vm7853_vm11  ;;  %vm7998_vm11 = vcmp.eq.s32.totalorder %v19873_v6, %v16923_v40  ;;  %vm7999_vm13 = vcmp.eq.s32.totalorder %v19873_v6, %v16926_v41 }
 0x6ee   : > { %v6833_v30 = vadd.f32 %v6829_v28, %v19818_v50  ;;  %v14300_v31 = vpop.f32.mrb[47].mxu0  ;;  %v6970_v34 = vpop.f32.mrb[46].mxu1  ;;  %v7835_v50 = vmul.f32 %v16600_v48, %v16600_v48  ;;  %vm16238_vm15 = vmpackc.low %vm7999_vm13, %vm7998_vm11  ;;  %v8253_v28 = vadd.f32 %v8252_v22, %v8251_v12  ;;  %v20099_v48 = vld [vmem:[%s16789_s26 + $0x3b] ss:$0 sm:$0xff] }
 0x6ef   : > { %v14335_v38 = vpop.f32.mrb[47].mxu1 }
 0x6f0   : > { %v19931_v39 = vadd.f32 %v6970_v34, %v6833_v30  ;;  %v7836_v52 = vmul.f32 %v7835_v50, %v7835_v50  ;;  %v8254_v30 = vrot.slane %v8253_v28, 1 }
 0x6f2   : > { %v7837_v54 = vmul.f32 %v7836_v52, %v7835_v50  ;;  %v8255_v34 = vadd.f32 %v8254_v30, %v8253_v28  ;;  %v11390_v52 = vld [vmem:[%s16814_s30 + $0xec] sm:$0x7] }
 0x6f3   : > { %16203 = vmatpush3.bf16.xpose.msk.msra.mxu0 %vm16202_vm3, %v16702_v9  ;;  %vm7855_vm3 = vcmp.eq.s32.totalorder %v19869_v0, %v16905_v36 }
 0x6f4   : > { %16227 = vmatpush3.bf16.xpose.msk.msra.mxu1 %vm16226_vm4, %v16702_v9  ;;  %16204 = vmatprep.subr.bf16.mxu0 %v16699_v1  ;;  %vm7856_vm4 = vcmp.eq.s32.totalorder %v19869_v0, %v16908_v37  ;;  %v7838_v58 = vmul.f32 0.5, %v7837_v54  ;;  %v8530_v54 = vmul.f32 %v11390_v52, %v11390_v52 }
 0x6f5   : > { %16228 = vmatprep.subr.bf16.mxu1 %v16699_v1  ;;  %vm16211_vm7 = vmpackc.low %vm7856_vm4, %vm7855_vm3  ;;  %vm8266_vm3 = vcmp.eq.s32.totalorder %v19986_v57, %v16777_v2  ;;  %vm8267_vm4 = vcmp.eq.s32.totalorder %v19986_v57, %v16784_v4 }
 0x6f6   : > { %vm16265_vm6 = vmpackc.low %vm8267_vm4, %vm8266_vm3  ;;  %v8531_v56 = vsel %vm213_vm12, %v8530_v54, 0.0 }
 0x6fb   : > { %16206 = vmatpush3.bf16.xpose.msk.msra.mxu0 %vm16205_vm9, %v16702_v9  ;;  %vm7857_vm9 = vcmp.eq.s32.totalorder %v19869_v0, %v16923_v40 }
 0x6fc   : > { %16230 = vmatpush3.bf16.xpose.msk.msra.mxu1 %vm16229_vm10, %v16702_v9  ;;  %16207 = vmatprep.subr.bf16.mxu0 %v16699_v1  ;;  %vm7858_vm10 = vcmp.eq.s32.totalorder %v19869_v0, %v16926_v41  ;;  %v8108_v0 = vsel %vm213_vm12, %v8107_v62, 0.0 }
 0x6fd   : > { %16231 = vmatprep.subr.bf16.mxu1 %v16699_v1  ;;  %vm16214_vm14 = vmpackc.low %vm7858_vm10, %vm7857_vm9  ;;  %vm8268_vm9 = vcmp.eq.s32.totalorder %v19986_v57, %v16798_v7  ;;  %vm8269_vm10 = vcmp.eq.s32.totalorder %v19986_v57, %v16801_v8  ;;  %v8109_v6 = vrot.slane %v8108_v0, 4 }
 0x6fe   : > { %vm16268_vm13 = vmpackc.low %vm8269_vm10, %vm8268_vm9 }
 0x6ff   : > { %v8110_v11 = vadd.f32 %v8109_v6, %v8108_v0 }
 0x701   : > { %v8111_v16 = vrot.slane %v8110_v11, 2 }
 0x703   : > { %16209 = vmatpush3.bf16.xpose.msk.msra.mxu0 %vm16208_vm1, %v16702_v9  ;;  %vm8125_vm1 = vcmp.eq.s32.totalorder %v19982_v55, %v16777_v2  ;;  %v8112_v25 = vadd.f32 %v8111_v16, %v8110_v11 }
 0x704   : > { %16233 = vmatpush3.bf16.xpose.msk.msra.mxu1 %vm16232_vm2, %v16702_v9  ;;  %16210 = vmatprep.subr.bf16.mxu0 %v16699_v1  ;;  %vm8126_vm2 = vcmp.eq.s32.totalorder %v19982_v55, %v16784_v4 }
 0x705   : > { %16234 = vmatprep.subr.bf16.mxu1 %v16699_v1  ;;  %vm16241_vm5 = vmpackc.low %vm8126_vm2, %vm8125_vm1  ;;  %vm8270_vm1 = vcmp.eq.s32.totalorder %v19986_v57, %v16831_v14  ;;  %vm8271_vm2 = vcmp.eq.s32.totalorder %v19986_v57, %v16834_v15  ;;  %v8113_v29 = vrot.slane %v8112_v25, 1 }
 0x706   : > { %vm16271_vm4 = vmpackc.low %vm8271_vm2, %vm8270_vm1 }
 0x707   : > { %v8114_v31 = vadd.f32 %v8113_v29, %v8112_v25 }
 0x709   : > { %16603 = vrcp.f32 %v8114_v31  ;;  %v20208_v31 = vld [vmem:[%s16789_s26 + $0x3c] ss:$0 sm:$0xff] }
 0x70a   : > { %16605 = vrcp.f32 %v8255_v34 }
 0x70b   : > { %16212 = vmatpush3.bf16.xpose.msk.msra.mxu0 %vm16211_vm7, %v16702_v9  ;;  %vm8127_vm7 = vcmp.eq.s32.totalorder %v19982_v55, %v16798_v7 }
 0x70c   : > { %16236 = vmatpush3.bf16.xpose.msk.msra.mxu1 %vm16235_vm8, %v16702_v9  ;;  %16213 = vmatprep.subr.bf16.mxu0 %v16699_v1  ;;  %vm8128_vm8 = vcmp.eq.s32.totalorder %v19982_v55, %v16801_v8 }
 0x70d   : > { %16237 = vmatprep.subr.bf16.mxu1 %v16699_v1  ;;  %vm16244_vm11 = vmpackc.low %vm8128_vm8, %vm8127_vm7  ;;  %vm8272_vm7 = vcmp.eq.s32.totalorder %v19986_v57, %v16851_v20  ;;  %vm8273_vm8 = vcmp.eq.s32.totalorder %v19986_v57, %v16854_v21 }
 0x70e   : > { %vm16274_vm10 = vmpackc.low %vm8273_vm8, %vm8272_vm7 }
 0x713   : > { %16215 = vmatpush3.bf16.xpose.msk.msra.mxu0 %vm16214_vm14, %v16702_v9  ;;  %vm8129_vm14 = vcmp.eq.s32.totalorder %v19982_v55, %v16831_v14  ;;  %v16604_v35 = vpop.eup %16603 }
 0x714   : > { %16239 = vmatpush3.bf16.xpose.msk.msra.mxu1 %vm16238_vm15, %v16702_v9  ;;  %16240 = vmatprep.subr.bf16.mxu0 %v16699_v1  ;;  %vm8130_vm15 = vcmp.eq.s32.totalorder %v19982_v55, %v16834_v15  ;;  %v16606_v38 = vpop.eup %16605 }
 0x715   : > { %16264 = vmatprep.subr.bf16.mxu1 %v16699_v1  ;;  %vm16247_vm3 = vmpackc.low %vm8130_vm15, %vm8129_vm14  ;;  %vm8274_vm14 = vcmp.eq.s32.totalorder %v19986_v57, %v16869_v26  ;;  %vm8275_vm15 = vcmp.eq.s32.totalorder %v19986_v57, %v16872_v27  ;;  %v8258_v42 = vmul.f32 %v16606_v38, %v16606_v38 }
 0x716   : > { %vm16277_vm2 = vmpackc.low %vm8275_vm15, %vm8274_vm14 }
 0x717   : > { %v8259_v44 = vmul.f32 %v8258_v42, %v8258_v42 }
 0x719   : > { %v8260_v47 = vmul.f32 %v8259_v44, %v8258_v42  ;;  %v11425_v42 = vld [vmem:[%s16814_s30 + $0xf0] sm:$0x7] }
 0x71a   : > { %14579 = vmatmul.mubr.f32.vlgmr.msra.gmra.mrb[54].mxu0 %v7838_v58  ;;  %v8532_v58 = vrot.slane %v8531_v56, 4  ;;  %v8671_v44 = vmul.f32 %v11425_v42, %v11425_v42 }
 0x71b   : > { %16242 = vmatpush3.bf16.xpose.msk.msra.mxu0 %vm16241_vm5, %v16702_v9  ;;  %14614 = vmatmul.mubr.f32.vlgmr.msra.gmra.mrb[54].mxu1 %v7979_v59  ;;  %vm8131_vm5 = vcmp.eq.s32.totalorder %v19982_v55, %v16851_v20  ;;  %v8261_v50 = vmul.f32 0.5, %v8260_v47 }
 0x71c   : > { %16266 = vmatpush3.bf16.xpose.msk.msra.mxu1 %vm16265_vm6, %v16702_v9  ;;  %16243 = vmatprep.subr.bf16.mxu0 %v16699_v1  ;;  %vm8132_vm6 = vcmp.eq.s32.totalorder %v19982_v55, %v16854_v21  ;;  %v8533_v60 = vadd.f32 %v8532_v58, %v8531_v56 }
 0x71d   : > { %16267 = vmatprep.subr.bf16.mxu1 %v16699_v1  ;;  %14648 = vmatprep.mubr.msk.f32.mxu0 %vm16700_vm0, %v16701_v3  ;;  %vm16250_vm9 = vmpackc.low %vm8132_vm6, %vm8131_vm5  ;;  %vm8276_vm5 = vcmp.eq.s32.totalorder %v19986_v57, %v16887_v32  ;;  %vm8277_vm6 = vcmp.eq.s32.totalorder %v19986_v57, %v16890_v33 }
 0x71e   : > { %14683 = vmatprep.mubr.msk.f32.mxu1 %vm16700_vm0, %v16701_v3  ;;  %vm16280_vm8 = vmpackc.low %vm8277_vm6, %vm8276_vm5  ;;  %v8534_v6 = vrot.slane %v8533_v60, 2 }
 0x723   : > { %16245 = vmatpush3.bf16.xpose.msk.msra.mxu0 %vm16244_vm11, %v16702_v9  ;;  %vm8133_vm11 = vcmp.eq.s32.totalorder %v19982_v55, %v16869_v26 }
 0x724   : > { %16269 = vmatpush3.bf16.xpose.msk.msra.mxu1 %vm16268_vm13, %v16702_v9  ;;  %16246 = vmatprep.subr.bf16.mxu0 %v16699_v1  ;;  %vm8134_vm13 = vcmp.eq.s32.totalorder %v19982_v55, %v16872_v27 }
 0x725   : > { %16270 = vmatprep.subr.bf16.mxu1 %v16699_v1  ;;  %vm16253_vm1 = vmpackc.low %vm8134_vm13, %vm8133_vm11  ;;  %vm8278_vm11 = vcmp.eq.s32.totalorder %v19986_v57, %v16905_v36  ;;  %vm8279_vm13 = vcmp.eq.s32.totalorder %v19986_v57, %v16908_v37 }
 0x726   : > { %vm16283_vm15 = vmpackc.low %vm8279_vm13, %vm8278_vm11 }
 0x72b   : > { %16248 = vmatpush3.bf16.xpose.msk.msra.mxu0 %vm16247_vm3, %v16702_v9  ;;  %vm8135_vm3 = vcmp.eq.s32.totalorder %v19982_v55, %v16887_v32 }
 0x72c   : > { %16272 = vmatpush3.bf16.xpose.msk.msra.mxu1 %vm16271_vm4, %v16702_v9  ;;  %16249 = vmatprep.subr.bf16.mxu0 %v16699_v1  ;;  %vm8136_vm4 = vcmp.eq.s32.totalorder %v19982_v55, %v16890_v33 }
 0x72d   : > { %v7111_v13 = vpop.f32.mrb[48].mxu0  ;;  %16273 = vmatprep.subr.bf16.mxu1 %v16699_v1  ;;  %vm16256_vm7 = vmpackc.low %vm8136_vm4, %vm8135_vm3  ;;  %vm8280_vm3 = vcmp.eq.s32.totalorder %v19986_v57, %v16923_v40  ;;  %vm8281_vm4 = vcmp.eq.s32.totalorder %v19986_v57, %v16926_v41 }
 0x72e   : > { %v7115_v17 = vadd.f32 %v7111_v13, %v19931_v39  ;;  %v14370_v18 = vpop.f32.mrb[49].mxu0  ;;  %v7252_v19 = vpop.f32.mrb[48].mxu1  ;;  %v8117_v39 = vmul.f32 %v16604_v35, %v16604_v35  ;;  %vm16286_vm6 = vmpackc.low %vm8281_vm4, %vm8280_vm3  ;;  %v8535_v13 = vadd.f32 %v8534_v6, %v8533_v60  ;;  %v20212_v35 = vld [vmem:[%s16789_s26 + $0x3d] ss:$0 sm:$0xff] }
 0x72f   : > { %v14405_v23 = vpop.f32.mrb[49].mxu1 }
 0x730   : > { %v20044_v24 = vadd.f32 %v7252_v19, %v7115_v17  ;;  %v8118_v43 = vmul.f32 %v8117_v39, %v8117_v39  ;;  %v8536_v17 = vrot.slane %v8535_v13, 1 }
 0x732   : > { %v8119_v45 = vmul.f32 %v8118_v43, %v8117_v39  ;;  %v8537_v19 = vadd.f32 %v8536_v17, %v8535_v13  ;;  %v11460_v43 = vld [vmem:[%s16814_s30 + $0xf4] sm:$0x7] }
 0x733   : > { %16251 = vmatpush3.bf16.xpose.msk.msra.mxu0 %vm16250_vm9, %v16702_v9  ;;  %vm8137_vm9 = vcmp.eq.s32.totalorder %v19982_v55, %v16905_v36 }
 0x734   : > { %16275 = vmatpush3.bf16.xpose.msk.msra.mxu1 %vm16274_vm10, %v16702_v9  ;;  %16252 = vmatprep.subr.bf16.mxu0 %v16699_v1  ;;  %vm8138_vm10 = vcmp.eq.s32.totalorder %v19982_v55, %v16908_v37  ;;  %v8120_v49 = vmul.f32 0.5, %v8119_v45  ;;  %v8812_v45 = vmul.f32 %v11460_v43, %v11460_v43 }
 0x735   : > { %16276 = vmatprep.subr.bf16.mxu1 %v16699_v1  ;;  %vm16259_vm14 = vmpackc.low %vm8138_vm10, %vm8137_vm9  ;;  %vm8548_vm9 = vcmp.eq.s32.totalorder %v20099_v48, %v16777_v2  ;;  %vm8549_vm10 = vcmp.eq.s32.totalorder %v20099_v48, %v16784_v4 }
 0x736   : > { %vm16313_vm13 = vmpackc.low %vm8549_vm10, %vm8548_vm9  ;;  %v8813_v47 = vsel %vm213_vm12, %v8812_v45, 0.0 }
 0x73b   : > { %16254 = vmatpush3.bf16.xpose.msk.msra.mxu0 %vm16253_vm1, %v16702_v9  ;;  %vm8139_vm1 = vcmp.eq.s32.totalorder %v19982_v55, %v16923_v40 }
 0x73c   : > { %16278 = vmatpush3.bf16.xpose.msk.msra.mxu1 %vm16277_vm2, %v16702_v9  ;;  %16255 = vmatprep.subr.bf16.mxu0 %v16699_v1  ;;  %vm8140_vm2 = vcmp.eq.s32.totalorder %v19982_v55, %v16926_v41  ;;  %v8390_v55 = vsel %vm213_vm12, %v8389_v53, 0.0 }
 0x73d   : > { %16279 = vmatprep.subr.bf16.mxu1 %v16699_v1  ;;  %vm16262_vm5 = vmpackc.low %vm8140_vm2, %vm8139_vm1  ;;  %vm8550_vm1 = vcmp.eq.s32.totalorder %v20099_v48, %v16798_v7  ;;  %vm8551_vm2 = vcmp.eq.s32.totalorder %v20099_v48, %v16801_v8  ;;  %v8391_v57 = vrot.slane %v8390_v55, 4 }
 0x73e   : > { %vm16316_vm4 = vmpackc.low %vm8551_vm2, %vm8550_vm1 }
 0x73f   : > { %v8392_v59 = vadd.f32 %v8391_v57, %v8390_v55 }
 0x741   : > { %v8393_v62 = vrot.slane %v8392_v59, 2 }
 0x743   : > { %16257 = vmatpush3.bf16.xpose.msk.msra.mxu0 %vm16256_vm7, %v16702_v9  ;;  %vm8407_vm7 = vcmp.eq.s32.totalorder %v20095_v46, %v16777_v2  ;;  %v8394_v12 = vadd.f32 %v8393_v62, %v8392_v59 }
 0x744   : > { %16281 = vmatpush3.bf16.xpose.msk.msra.mxu1 %vm16280_vm8, %v16702_v9  ;;  %16258 = vmatprep.subr.bf16.mxu0 %v16699_v1  ;;  %vm8408_vm8 = vcmp.eq.s32.totalorder %v20095_v46, %v16784_v4 }
 0x745   : > { %16282 = vmatprep.subr.bf16.mxu1 %v16699_v1  ;;  %vm16289_vm11 = vmpackc.low %vm8408_vm8, %vm8407_vm7  ;;  %vm8552_vm7 = vcmp.eq.s32.totalorder %v20099_v48, %v16831_v14  ;;  %vm8553_vm8 = vcmp.eq.s32.totalorder %v20099_v48, %v16834_v15  ;;  %v8395_v16 = vrot.slane %v8394_v12, 1 }
 0x746   : > { %vm16319_vm10 = vmpackc.low %vm8553_vm8, %vm8552_vm7 }
 0x747   : > { %v8396_v18 = vadd.f32 %v8395_v16, %v8394_v12 }
 0x749   : > { %16607 = vrcp.f32 %v8396_v18  ;;  %v20321_v18 = vld [vmem:[%s16789_s26 + $0x3e] ss:$0 sm:$0xff] }
 0x74a   : > { %16609 = vrcp.f32 %v8537_v19 }
 0x74b   : > { %16260 = vmatpush3.bf16.xpose.msk.msra.mxu0 %vm16259_vm14, %v16702_v9  ;;  %vm8409_vm14 = vcmp.eq.s32.totalorder %v20095_v46, %v16798_v7 }
 0x74c   : > { %16284 = vmatpush3.bf16.xpose.msk.msra.mxu1 %vm16283_vm15, %v16702_v9  ;;  %16261 = vmatprep.subr.bf16.mxu0 %v16699_v1  ;;  %vm8410_vm15 = vcmp.eq.s32.totalorder %v20095_v46, %v16801_v8 }
 0x74d   : > { %16285 = vmatprep.subr.bf16.mxu1 %v16699_v1  ;;  %vm16292_vm3 = vmpackc.low %vm8410_vm15, %vm8409_vm14  ;;  %vm8554_vm14 = vcmp.eq.s32.totalorder %v20099_v48, %v16851_v20  ;;  %vm8555_vm15 = vcmp.eq.s32.totalorder %v20099_v48, %v16854_v21 }
 0x74e   : > { %vm16322_vm2 = vmpackc.low %vm8555_vm15, %vm8554_vm14 }
 0x753   : > { %16263 = vmatpush3.bf16.xpose.msk.msra.mxu0 %vm16262_vm5, %v16702_v9  ;;  %vm8411_vm5 = vcmp.eq.s32.totalorder %v20095_v46, %v16831_v14  ;;  %v16608_v22 = vpop.eup %16607 }
 0x754   : > { %16287 = vmatpush3.bf16.xpose.msk.msra.mxu1 %vm16286_vm6, %v16702_v9  ;;  %16288 = vmatprep.subr.bf16.mxu0 %v16699_v1  ;;  %vm8412_vm6 = vcmp.eq.s32.totalorder %v20095_v46, %v16834_v15  ;;  %v16610_v23 = vpop.eup %16609 }
 0x755   : > { %16312 = vmatprep.subr.bf16.mxu1 %v16699_v1  ;;  %vm16295_vm9 = vmpackc.low %vm8412_vm6, %vm8411_vm5  ;;  %vm8556_vm5 = vcmp.eq.s32.totalorder %v20099_v48, %v16869_v26  ;;  %vm8557_vm6 = vcmp.eq.s32.totalorder %v20099_v48, %v16872_v27  ;;  %v8540_v25 = vmul.f32 %v16610_v23, %v16610_v23 }
 0x756   : > { %vm16325_vm8 = vmpackc.low %vm8557_vm6, %vm8556_vm5 }
 0x757   : > { %v8541_v29 = vmul.f32 %v8540_v25, %v8540_v25 }
 0x759   : > { %v8542_v34 = vmul.f32 %v8541_v29, %v8540_v25  ;;  %v11495_v25 = vld [vmem:[%s16814_s30 + $0xf8] sm:$0x7] }
 0x75a   : > { %14649 = vmatmul.mubr.f32.vlgmr.msra.gmra.mrb[56].mxu0 %v8120_v49  ;;  %v8814_v49 = vrot.slane %v8813_v47, 4 }
 0x75b   : > { %16290 = vmatpush3.bf16.xpose.msk.msra.mxu0 %vm16289_vm11, %v16702_v9  ;;  %14684 = vmatmul.mubr.f32.vlgmr.msra.gmra.mrb[56].mxu1 %v8261_v50  ;;  %vm8413_vm11 = vcmp.eq.s32.totalorder %v20095_v46, %v16851_v20  ;;  %v8543_v39 = vmul.f32 0.5, %v8542_v34 }
 0x75c   : > { %16314 = vmatpush3.bf16.xpose.msk.msra.mxu1 %vm16313_vm13, %v16702_v9  ;;  %16291 = vmatprep.subr.bf16.mxu0 %v16699_v1  ;;  %vm8414_vm13 = vcmp.eq.s32.totalorder %v20095_v46, %v16854_v21  ;;  %v8815_v51 = vadd.f32 %v8814_v49, %v8813_v47 }
 0x75d   : > { %16315 = vmatprep.subr.bf16.mxu1 %v16699_v1  ;;  %14718 = vmatprep.mubr.msk.f32.mxu0 %vm16700_vm0, %v16701_v3  ;;  %vm16298_vm1 = vmpackc.low %vm8414_vm13, %vm8413_vm11  ;;  %vm8558_vm11 = vcmp.eq.s32.totalorder %v20099_v48, %v16887_v32  ;;  %vm8559_vm13 = vcmp.eq.s32.totalorder %v20099_v48, %v16890_v33 }
 0x75e   : > { %14753 = vmatprep.mubr.msk.f32.mxu1 %vm16700_vm0, %v16701_v3  ;;  %vm16328_vm15 = vmpackc.low %vm8559_vm13, %vm8558_vm11  ;;  %v8816_v57 = vrot.slane %v8815_v51, 2 }
 0x763   : > { %16293 = vmatpush3.bf16.xpose.msk.msra.mxu0 %vm16292_vm3, %v16702_v9  ;;  %vm8415_vm3 = vcmp.eq.s32.totalorder %v20095_v46, %v16869_v26 }
 0x764   : > { %16317 = vmatpush3.bf16.xpose.msk.msra.mxu1 %vm16316_vm4, %v16702_v9  ;;  %16294 = vmatprep.subr.bf16.mxu0 %v16699_v1  ;;  %vm8416_vm4 = vcmp.eq.s32.totalorder %v20095_v46, %v16872_v27 }
 0x765   : > { %16318 = vmatprep.subr.bf16.mxu1 %v16699_v1  ;;  %vm16301_vm7 = vmpackc.low %vm8416_vm4, %vm8415_vm3  ;;  %vm8560_vm3 = vcmp.eq.s32.totalorder %v20099_v48, %v16905_v36  ;;  %vm8561_vm4 = vcmp.eq.s32.totalorder %v20099_v48, %v16908_v37 }
 0x766   : > { %vm16331_vm6 = vmpackc.low %vm8561_vm4, %vm8560_vm3 }
 0x76b   : > { %16296 = vmatpush3.bf16.xpose.msk.msra.mxu0 %vm16295_vm9, %v16702_v9  ;;  %vm8417_vm9 = vcmp.eq.s32.totalorder %v20095_v46, %v16887_v32 }
 0x76c   : > { %16320 = vmatpush3.bf16.xpose.msk.msra.mxu1 %vm16319_vm10, %v16702_v9  ;;  %16297 = vmatprep.subr.bf16.mxu0 %v16699_v1  ;;  %vm8418_vm10 = vcmp.eq.s32.totalorder %v20095_v46, %v16890_v33 }
 0x76d   : > { %v7393_v61 = vpop.f32.mrb[50].mxu0  ;;  %16321 = vmatprep.subr.bf16.mxu1 %v16699_v1  ;;  %vm16304_vm14 = vmpackc.low %vm8418_vm10, %vm8417_vm9  ;;  %vm8562_vm9 = vcmp.eq.s32.totalorder %v20099_v48, %v16923_v40  ;;  %vm8563_vm10 = vcmp.eq.s32.totalorder %v20099_v48, %v16926_v41 }
 0x76e   : > { %v7397_v63 = vadd.f32 %v7393_v61, %v20044_v24  ;;  %v14440_v0 = vpop.f32.mrb[51].mxu0  ;;  %v7534_v5 = vpop.f32.mrb[50].mxu1  ;;  %v8399_v24 = vmul.f32 %v16608_v22, %v16608_v22  ;;  %vm16334_vm13 = vmpackc.low %vm8563_vm10, %vm8562_vm9  ;;  %v8817_v61 = vadd.f32 %v8816_v57, %v8815_v51  ;;  %v20325_v22 = vld [vmem:[%s16789_s26 + $0x3f] ss:$0 sm:$0xff] }
 0x76f   : > { %v14475_v10 = vpop.f32.mrb[51].mxu1 }
 0x770   : > { %v20157_v11 = vadd.f32 %v7534_v5, %v7397_v63  ;;  %v8400_v28 = vmul.f32 %v8399_v24, %v8399_v24  ;;  %v8818_v63 = vrot.slane %v8817_v61, 1 }
 0x772   : > { %v8401_v30 = vmul.f32 %v8400_v28, %v8399_v24  ;;  %v8819_v5 = vadd.f32 %v8818_v63, %v8817_v61  ;;  %v11530_v28 = vld [vmem:[%s16814_s30 + $0xfc] sm:$0x7] }
 0x773   : > { %16299 = vmatpush3.bf16.xpose.msk.msra.mxu0 %vm16298_vm1, %v16702_v9  ;;  %vm8419_vm1 = vcmp.eq.s32.totalorder %v20095_v46, %v16905_v36 }
 0x774   : > { %16323 = vmatpush3.bf16.xpose.msk.msra.mxu1 %vm16322_vm2, %v16702_v9  ;;  %16300 = vmatprep.subr.bf16.mxu0 %v16699_v1  ;;  %vm8420_vm2 = vcmp.eq.s32.totalorder %v20095_v46, %v16908_v37  ;;  %v8402_v38 = vmul.f32 0.5, %v8401_v30 }
 0x775   : > { %16324 = vmatprep.subr.bf16.mxu1 %v16699_v1  ;;  %vm16307_vm5 = vmpackc.low %vm8420_vm2, %vm8419_vm1  ;;  %vm8830_vm1 = vcmp.eq.s32.totalorder %v20212_v35, %v16777_v2  ;;  %vm8831_vm2 = vcmp.eq.s32.totalorder %v20212_v35, %v16784_v4 }
 0x776   : > { %vm16361_vm4 = vmpackc.low %vm8831_vm2, %vm8830_vm1 }
 0x77b   : > { %16302 = vmatpush3.bf16.xpose.msk.msra.mxu0 %vm16301_vm7, %v16702_v9  ;;  %vm8421_vm7 = vcmp.eq.s32.totalorder %v20095_v46, %v16923_v40 }
 0x77c   : > { %16326 = vmatpush3.bf16.xpose.msk.msra.mxu1 %vm16325_vm8, %v16702_v9  ;;  %16303 = vmatprep.subr.bf16.mxu0 %v16699_v1  ;;  %vm8422_vm8 = vcmp.eq.s32.totalorder %v20095_v46, %v16926_v41  ;;  %v8672_v46 = vsel %vm213_vm12, %v8671_v44, 0.0 }
 0x77d   : > { %16327 = vmatprep.subr.bf16.mxu1 %v16699_v1  ;;  %vm16310_vm11 = vmpackc.low %vm8422_vm8, %vm8421_vm7  ;;  %vm8832_vm7 = vcmp.eq.s32.totalorder %v20212_v35, %v16798_v7  ;;  %vm8833_vm8 = vcmp.eq.s32.totalorder %v20212_v35, %v16801_v8  ;;  %v8673_v48 = vrot.slane %v8672_v46, 4 }
 0x77e   : > { %vm16364_vm10 = vmpackc.low %vm8833_vm8, %vm8832_vm7 }
 0x77f   : > { %v8674_v50 = vadd.f32 %v8673_v48, %v8672_v46 }
 0x781   : > { %v8675_v53 = vrot.slane %v8674_v50, 2 }
 0x783   : > { %16305 = vmatpush3.bf16.xpose.msk.msra.mxu0 %vm16304_vm14, %v16702_v9  ;;  %vm8689_vm14 = vcmp.eq.s32.totalorder %v20208_v31, %v16777_v2  ;;  %v8676_v60 = vadd.f32 %v8675_v53, %v8674_v50 }
 0x784   : > { %16329 = vmatpush3.bf16.xpose.msk.msra.mxu1 %vm16328_vm15, %v16702_v9  ;;  %16306 = vmatprep.subr.bf16.mxu0 %v16699_v1  ;;  %vm8690_vm15 = vcmp.eq.s32.totalorder %v20208_v31, %v16784_v4 }
 0x785   : > { %16330 = vmatprep.subr.bf16.mxu1 %v16699_v1  ;;  %vm16337_vm3 = vmpackc.low %vm8690_vm15, %vm8689_vm14  ;;  %vm8834_vm14 = vcmp.eq.s32.totalorder %v20212_v35, %v16831_v14  ;;  %vm8835_vm15 = vcmp.eq.s32.totalorder %v20212_v35, %v16834_v15  ;;  %v8677_v62 = vrot.slane %v8676_v60, 1 }
 0x786   : > { %vm16367_vm2 = vmpackc.low %vm8835_vm15, %vm8834_vm14 }
 0x787   : > { %v8678_v0 = vadd.f32 %v8677_v62, %v8676_v60 }
 0x789   : > { %16611 = vrcp.f32 %v8678_v0 }
 0x78a   : > { %16613 = vrcp.f32 %v8819_v5 }
 0x78b   : > { %16308 = vmatpush3.bf16.xpose.msk.msra.mxu0 %vm16307_vm5, %v16702_v9  ;;  %vm8691_vm5 = vcmp.eq.s32.totalorder %v20208_v31, %v16798_v7 }
 0x78c   : > { %16332 = vmatpush3.bf16.xpose.msk.msra.mxu1 %vm16331_vm6, %v16702_v9  ;;  %16309 = vmatprep.subr.bf16.mxu0 %v16699_v1  ;;  %vm8692_vm6 = vcmp.eq.s32.totalorder %v20208_v31, %v16801_v8 }
 0x78d   : > { %16333 = vmatprep.subr.bf16.mxu1 %v16699_v1  ;;  %vm16340_vm9 = vmpackc.low %vm8692_vm6, %vm8691_vm5  ;;  %vm8836_vm5 = vcmp.eq.s32.totalorder %v20212_v35, %v16851_v20  ;;  %vm8837_vm6 = vcmp.eq.s32.totalorder %v20212_v35, %v16854_v21 }
 0x78e   : > { %vm16370_vm8 = vmpackc.low %vm8837_vm6, %vm8836_vm5 }
 0x793   : > { %16311 = vmatpush3.bf16.xpose.msk.msra.mxu0 %vm16310_vm11, %v16702_v9  ;;  %vm8693_vm11 = vcmp.eq.s32.totalorder %v20208_v31, %v16831_v14  ;;  %v16612_v6 = vpop.eup %16611 }
 0x794   : > { %16335 = vmatpush3.bf16.xpose.msk.msra.mxu1 %vm16334_vm13, %v16702_v9  ;;  %16336 = vmatprep.subr.bf16.mxu0 %v16699_v1  ;;  %vm8694_vm13 = vcmp.eq.s32.totalorder %v20208_v31, %v16834_v15  ;;  %v16614_v10 = vpop.eup %16613 }
 0x795   : > { %16360 = vmatprep.subr.bf16.mxu1 %v16699_v1  ;;  %vm16343_vm1 = vmpackc.low %vm8694_vm13, %vm8693_vm11  ;;  %vm8838_vm11 = vcmp.eq.s32.totalorder %v20212_v35, %v16869_v26  ;;  %vm8839_vm13 = vcmp.eq.s32.totalorder %v20212_v35, %v16872_v27  ;;  %v8822_v12 = vmul.f32 %v16614_v10, %v16614_v10 }
 0x796   : > { %vm16373_vm15 = vmpackc.low %vm8839_vm13, %vm8838_vm11 }
 0x797   : > { %v8823_v16 = vmul.f32 %v8822_v12, %v8822_v12 }
 0x799   : > { %v8824_v19 = vmul.f32 %v8823_v16, %v8822_v12  ;;  %v9231_v16 = vld [vmem:[%s172_s4] sm:$0x1] }
 0x79a   : > { %14719 = vmatmul.mubr.f32.vlgmr.msra.gmra.mrb[58].mxu0 %v8402_v38 }
 0x79b   : > { %16338 = vmatpush3.bf16.xpose.msk.msra.mxu0 %vm16337_vm3, %v16702_v9  ;;  %14754 = vmatmul.mubr.f32.vlgmr.msra.gmra.mrb[58].mxu1 %v8543_v39  ;;  %vm8695_vm3 = vcmp.eq.s32.totalorder %v20208_v31, %v16851_v20  ;;  %v8825_v24 = vmul.f32 0.5, %v8824_v19 }
 0x79c   : > { %16362 = vmatpush3.bf16.xpose.msk.msra.mxu1 %vm16361_vm4, %v16702_v9  ;;  %16339 = vmatprep.subr.bf16.mxu0 %v16699_v1  ;;  %vm8696_vm4 = vcmp.eq.s32.totalorder %v20208_v31, %v16854_v21 }
 0x79d   : > { %16363 = vmatprep.subr.bf16.mxu1 %v16699_v1  ;;  %14788 = vmatprep.mubr.msk.f32.mxu0 %vm16700_vm0, %v16701_v3  ;;  %vm16346_vm7 = vmpackc.low %vm8696_vm4, %vm8695_vm3  ;;  %vm8840_vm3 = vcmp.eq.s32.totalorder %v20212_v35, %v16887_v32  ;;  %vm8841_vm4 = vcmp.eq.s32.totalorder %v20212_v35, %v16890_v33 }
 0x79e   : > { %14823 = vmatprep.mubr.msk.f32.mxu1 %vm16700_vm0, %v16701_v3  ;;  %vm16376_vm6 = vmpackc.low %vm8841_vm4, %vm8840_vm3 }
 0x7a3   : > { %16341 = vmatpush3.bf16.xpose.msk.msra.mxu0 %vm16340_vm9, %v16702_v9  ;;  %vm8697_vm9 = vcmp.eq.s32.totalorder %v20208_v31, %v16869_v26 }
 0x7a4   : > { %16365 = vmatpush3.bf16.xpose.msk.msra.mxu1 %vm16364_vm10, %v16702_v9  ;;  %16342 = vmatprep.subr.bf16.mxu0 %v16699_v1  ;;  %vm8698_vm10 = vcmp.eq.s32.totalorder %v20208_v31, %v16872_v27 }
 0x7a5   : > { %16366 = vmatprep.subr.bf16.mxu1 %v16699_v1  ;;  %vm16349_vm14 = vmpackc.low %vm8698_vm10, %vm8697_vm9  ;;  %vm8842_vm9 = vcmp.eq.s32.totalorder %v20212_v35, %v16905_v36  ;;  %vm8843_vm10 = vcmp.eq.s32.totalorder %v20212_v35, %v16908_v37 }
 0x7a6   : > { %vm16379_vm13 = vmpackc.low %vm8843_vm10, %vm8842_vm9 }
 0x7ab   : > { %16344 = vmatpush3.bf16.xpose.msk.msra.mxu0 %vm16343_vm1, %v16702_v9  ;;  %vm8699_vm1 = vcmp.eq.s32.totalorder %v20208_v31, %v16887_v32 }
 0x7ac   : > { %16368 = vmatpush3.bf16.xpose.msk.msra.mxu1 %vm16367_vm2, %v16702_v9  ;;  %16345 = vmatprep.subr.bf16.mxu0 %v16699_v1  ;;  %vm8700_vm2 = vcmp.eq.s32.totalorder %v20208_v31, %v16890_v33 }
 0x7ad   : > { %v7675_v52 = vpop.f32.mrb[52].mxu0  ;;  %16369 = vmatprep.subr.bf16.mxu1 %v16699_v1  ;;  %vm16352_vm5 = vmpackc.low %vm8700_vm2, %vm8699_vm1  ;;  %vm8844_vm1 = vcmp.eq.s32.totalorder %v20212_v35, %v16923_v40  ;;  %vm8845_vm2 = vcmp.eq.s32.totalorder %v20212_v35, %v16926_v41 }
 0x7ae   : > { %v7679_v54 = vadd.f32 %v7675_v52, %v20157_v11  ;;  %v14510_v55 = vpop.f32.mrb[53].mxu0  ;;  %v7816_v56 = vpop.f32.mrb[52].mxu1  ;;  %v8681_v11 = vmul.f32 %v16612_v6, %v16612_v6  ;;  %vm16382_vm4 = vmpackc.low %vm8845_vm2, %vm8844_vm1 }
 0x7af   : > { %v14545_v58 = vpop.f32.mrb[53].mxu1 }
 0x7b0   : > { %v20270_v59 = vadd.f32 %v7816_v56, %v7679_v54  ;;  %v8682_v13 = vmul.f32 %v8681_v11, %v8681_v11 }
 0x7b2   : > { %v8683_v17 = vmul.f32 %v8682_v13, %v8681_v11 }
 0x7b3   : > { %16347 = vmatpush3.bf16.xpose.msk.msra.mxu0 %vm16346_vm7, %v16702_v9  ;;  %vm8701_vm7 = vcmp.eq.s32.totalorder %v20208_v31, %v16905_v36 }
 0x7b4   : > { %16371 = vmatpush3.bf16.xpose.msk.msra.mxu1 %vm16370_vm8, %v16702_v9  ;;  %16348 = vmatprep.subr.bf16.mxu0 %v16699_v1  ;;  %vm8702_vm8 = vcmp.eq.s32.totalorder %v20208_v31, %v16908_v37  ;;  %v8684_v23 = vmul.f32 0.5, %v8683_v17 }
 0x7b5   : > { %16372 = vmatprep.subr.bf16.mxu1 %v16699_v1  ;;  %vm16355_vm11 = vmpackc.low %vm8702_vm8, %vm8701_vm7  ;;  %vm9112_vm7 = vcmp.eq.s32.totalorder %v20325_v22, %v16777_v2  ;;  %vm9113_vm8 = vcmp.eq.s32.totalorder %v20325_v22, %v16784_v4 }
 0x7b6   : > { %vm16409_vm10 = vmpackc.low %vm9113_vm8, %vm9112_vm7  ;;  %vm8977_vm7 = vcmp.eq.s32.totalorder %v20321_v18, %v16851_v20  ;;  %vm8978_vm8 = vcmp.eq.s32.totalorder %v20321_v18, %v16854_v21 }
 0x7bb   : > { %16350 = vmatpush3.bf16.xpose.msk.msra.mxu0 %vm16349_vm14, %v16702_v9  ;;  %vm8703_vm14 = vcmp.eq.s32.totalorder %v20208_v31, %v16923_v40 }
 0x7bc   : > { %16374 = vmatpush3.bf16.xpose.msk.msra.mxu1 %vm16373_vm15, %v16702_v9  ;;  %16351 = vmatprep.subr.bf16.mxu0 %v16699_v1  ;;  %vm8704_vm15 = vcmp.eq.s32.totalorder %v20208_v31, %v16926_v41 }
 0x7bd   : > { %16375 = vmatprep.subr.bf16.mxu1 %v16699_v1  ;;  %vm16358_vm3 = vmpackc.low %vm8704_vm15, %vm8703_vm14  ;;  %vm9114_vm14 = vcmp.eq.s32.totalorder %v20325_v22, %v16798_v7  ;;  %vm9115_vm15 = vcmp.eq.s32.totalorder %v20325_v22, %v16801_v8 }
 0x7be   : > { %vm16412_vm2 = vmpackc.low %vm9115_vm15, %vm9114_vm14  ;;  %vm8979_vm14 = vcmp.eq.s32.totalorder %v20321_v18, %v16869_v26  ;;  %vm8980_vm15 = vcmp.eq.s32.totalorder %v20321_v18, %v16872_v27 }
 0x7c3   : > { %16353 = vmatpush3.bf16.xpose.msk.msra.mxu0 %vm16352_vm5, %v16702_v9  ;;  %vm8971_vm5 = vcmp.eq.s32.totalorder %v20321_v18, %v16777_v2  ;;  %v8953_v2 = vmul.f32 %v11495_v25, %v11495_v25 }
 0x7c4   : > { %16377 = vmatpush3.bf16.xpose.msk.msra.mxu1 %vm16376_vm6, %v16702_v9  ;;  %16354 = vmatprep.subr.bf16.mxu0 %v16699_v1  ;;  %vm8972_vm6 = vcmp.eq.s32.totalorder %v20321_v18, %v16784_v4  ;;  %v9094_v4 = vmul.f32 %v11530_v28, %v11530_v28 }
 0x7c5   : > { %16378 = vmatprep.subr.bf16.mxu1 %v16699_v1  ;;  %vm16385_vm9 = vmpackc.low %vm8972_vm6, %vm8971_vm5  ;;  %v8954_v29 = vsel %vm213_vm12, %v8953_v2, 0.0  ;;  %vm9117_vm5 = vcmp.eq.s32.totalorder %v20325_v22, %v16834_v15 }
 0x7c6   : > { %v9095_v30 = vsel %vm213_vm12, %v9094_v4, 0.0 }
 0x7cb   : > { %16356 = vmatpush3.bf16.xpose.msk.msra.mxu0 %vm16355_vm11, %v16702_v9  ;;  %vm8973_vm11 = vcmp.eq.s32.totalorder %v20321_v18, %v16798_v7  ;;  %v8955_v7 = vrot.slane %v8954_v29, 4 }
 0x7cc   : > { %16380 = vmatpush3.bf16.xpose.msk.msra.mxu1 %vm16379_vm13, %v16702_v9  ;;  %16357 = vmatprep.subr.bf16.mxu0 %v16699_v1  ;;  %vm8974_vm13 = vcmp.eq.s32.totalorder %v20321_v18, %v16801_v8  ;;  %v9096_v8 = vrot.slane %v9095_v30, 4 }
 0x7cd   : > { %16381 = vmatprep.subr.bf16.mxu1 %v16699_v1  ;;  %vm16388_vm1 = vmpackc.low %vm8974_vm13, %vm8973_vm11  ;;  %v8956_v31 = vadd.f32 %v8955_v7, %v8954_v29 }
 0x7ce   : > { %v9097_v34 = vadd.f32 %v9096_v8, %v9095_v30  ;;  %vm16394_vm11 = vmpackc.low %vm8978_vm8, %vm8977_vm7 }
 0x7d0   : > { %v9098_v42 = vrot.slane %v9097_v34, 2 }
 0x7d2   : > { %v9099_v46 = vadd.f32 %v9098_v42, %v9097_v34 }
 0x7d3   : > { %16359 = vmatpush3.bf16.xpose.msk.msra.mxu0 %vm16358_vm3, %v16702_v9  ;;  %vm8975_vm3 = vcmp.eq.s32.totalorder %v20321_v18, %v16831_v14 }
 0x7d4   : > { %16383 = vmatpush3.bf16.xpose.msk.msra.mxu1 %vm16382_vm4, %v16702_v9  ;;  %16384 = vmatprep.subr.bf16.mxu0 %v16699_v1  ;;  %vm8976_vm4 = vcmp.eq.s32.totalorder %v20321_v18, %v16834_v15 }
 0x7d5   : > { %16408 = vmatprep.subr.bf16.mxu1 %v16699_v1  ;;  %vm16391_vm12 = vmpackc.low %vm8976_vm4, %vm8975_vm3 }
 0x7d6   : > { %vm16397_vm3 = vmpackc.low %vm8980_vm15, %vm8979_vm14 }
 0x7da   : > { %14789 = vmatmul.mubr.f32.vlgmr.msra.gmra.mrb[60].mxu0 %v8684_v23 }
 0x7db   : > { %16386 = vmatpush3.bf16.xpose.msk.msra.mxu0 %vm16385_vm9, %v16702_v9  ;;  %14824 = vmatmul.mubr.f32.vlgmr.msra.gmra.mrb[60].mxu1 %v8825_v24  ;;  %vm9118_vm9 = vcmp.eq.s32.totalorder %v20325_v22, %v16851_v20 }
 0x7dc   : > { %16410 = vmatpush3.bf16.xpose.msk.msra.mxu1 %vm16409_vm10, %v16702_v9  ;;  %16387 = vmatprep.subr.bf16.mxu0 %v16699_v1  ;;  %vm9119_vm10 = vcmp.eq.s32.totalorder %v20325_v22, %v16854_v21  ;;  %v9100_v21 = vrot.slane %v9099_v46, 1 }
 0x7dd   : > { %16411 = vmatprep.subr.bf16.mxu1 %v16699_v1  ;;  %14858 = vmatprep.mubr.msk.f32.mxu0 %vm16700_vm0, %v16701_v3  ;;  %vm16418_vm13 = vmpackc.low %vm9119_vm10, %vm9118_vm9  ;;  %vm8983_vm9 = vcmp.eq.s32.totalorder %v20321_v18, %v16905_v36  ;;  %vm8984_vm10 = vcmp.eq.s32.totalorder %v20321_v18, %v16908_v37 }
 0x7de   : > { %14893 = vmatprep.mubr.msk.f32.mxu1 %vm16700_vm0, %v16701_v3  ;;  %vm9116_vm0 = vcmp.eq.s32.totalorder %v20325_v22, %v16831_v14  ;;  %v8957_v14 = vrot.slane %v8956_v31, 2  ;;  %v9101_v48 = vadd.f32 %v9100_v21, %v9099_v46  ;;  %vm16403_vm14 = vmpackc.low %vm8984_vm10, %vm8983_vm9 }
 0x7df   : > { %vm16415_vm6 = vmpackc.low %vm9117_vm5, %vm9116_vm0  ;;  %vm8981_vm0 = vcmp.eq.s32.totalorder %v20321_v18, %v16887_v32  ;;  %vm8982_vm5 = vcmp.eq.s32.totalorder %v20321_v18, %v16890_v33 }
 0x7e0   : > { %v8958_v45 = vadd.f32 %v8957_v14, %v8956_v31  ;;  %vm16400_vm7 = vmpackc.low %vm8982_vm5, %vm8981_vm0 }
 0x7e2   : > { %v8959_v20 = vrot.slane %v8958_v45, 1 }
 0x7e3   : > { %16389 = vmatpush3.bf16.xpose.msk.msra.mxu0 %vm16388_vm1, %v16702_v9  ;;  %vm9120_vm1 = vcmp.eq.s32.totalorder %v20325_v22, %v16869_v26 }
 0x7e4   : > { %16413 = vmatpush3.bf16.xpose.msk.msra.mxu1 %vm16412_vm2, %v16702_v9  ;;  %16390 = vmatprep.subr.bf16.mxu0 %v16699_v1  ;;  %vm9121_vm2 = vcmp.eq.s32.totalorder %v20325_v22, %v16872_v27  ;;  %v8960_v47 = vadd.f32 %v8959_v20, %v8958_v45 }
 0x7e5   : > { %16414 = vmatprep.subr.bf16.mxu1 %v16699_v1  ;;  %vm16421_vm4 = vmpackc.low %vm9121_vm2, %vm9120_vm1  ;;  %vm8985_vm1 = vcmp.eq.s32.totalorder %v20321_v18, %v16923_v40  ;;  %vm8986_vm2 = vcmp.eq.s32.totalorder %v20321_v18, %v16926_v41 }
 0x7e6   : > { %16615 = vrcp.f32 %v8960_v47  ;;  %vm16406_vm0 = vmpackc.low %vm8986_vm2, %vm8985_vm1 }
 0x7e7   : > { %16617 = vrcp.f32 %v9101_v48 }
 0x7eb   : > { %16392 = vmatpush3.bf16.xpose.msk.msra.mxu0 %vm16391_vm12, %v16702_v9  ;;  %vm9122_vm12 = vcmp.eq.s32.totalorder %v20325_v22, %v16887_v32 }
 0x7ec   : > { %16416 = vmatpush3.bf16.xpose.msk.msra.mxu1 %vm16415_vm6, %v16702_v9  ;;  %16393 = vmatprep.subr.bf16.mxu0 %v16699_v1  ;;  %vm9123_vm6 = vcmp.eq.s32.totalorder %v20325_v22, %v16890_v33 }
 0x7ed   : > { %v7957_v35 = vpop.f32.mrb[54].mxu0  ;;  %16417 = vmatprep.subr.bf16.mxu1 %v16699_v1  ;;  %vm16424_vm8 = vmpackc.low %vm9123_vm6, %vm9122_vm12 }
 0x7ee   : > { %v7961_v15 = vadd.f32 %v7957_v35, %v20270_v59  ;;  %v14580_v38 = vpop.f32.mrb[55].mxu0  ;;  %v8098_v39 = vpop.f32.mrb[54].mxu1 }
 0x7ef   : > { %v14615_v43 = vpop.f32.mrb[55].mxu1 }
 0x7f0   : > { %v20383_v44 = vadd.f32 %v8098_v39, %v7961_v15  ;;  %v16616_v26 = vpop.eup %16615 }
 0x7f1   : > { %v16618_v27 = vpop.eup %16617  ;;  %v8963_v32 = vmul.f32 %v16616_v26, %v16616_v26 }
 0x7f2   : > { %v9104_v33 = vmul.f32 %v16618_v27, %v16618_v27 }
 0x7f3   : > { %16395 = vmatpush3.bf16.xpose.msk.msra.mxu0 %vm16394_vm11, %v16702_v9  ;;  %vm9124_vm11 = vcmp.eq.s32.totalorder %v20325_v22, %v16905_v36  ;;  %v8964_v36 = vmul.f32 %v8963_v32, %v8963_v32 }
 0x7f4   : > { %16419 = vmatpush3.bf16.xpose.msk.msra.mxu1 %vm16418_vm13, %v16702_v9  ;;  %16396 = vmatprep.subr.bf16.mxu0 %v16699_v1  ;;  %vm9125_vm13 = vcmp.eq.s32.totalorder %v20325_v22, %v16908_v37  ;;  %v9105_v37 = vmul.f32 %v9104_v33, %v9104_v33 }
 0x7f5   : > { %16420 = vmatprep.subr.bf16.mxu1 %v16699_v1  ;;  %vm16427_vm15 = vmpackc.low %vm9125_vm13, %vm9124_vm11  ;;  %v8965_v49 = vmul.f32 %v8964_v36, %v8963_v32 }
 0x7f6   : > { %v9106_v50 = vmul.f32 %v9105_v37, %v9104_v33 }
 0x7f7   : > { %v8966_v51 = vmul.f32 0.5, %v8965_v49 }
 0x7f8   : > { %v9107_v52 = vmul.f32 0.5, %v9106_v50 }
 0x7fb   : > { %16398 = vmatpush3.bf16.xpose.msk.msra.mxu0 %vm16397_vm3, %v16702_v9  ;;  %vm9126_vm3 = vcmp.eq.s32.totalorder %v20325_v22, %v16923_v40 }
 0x7fc   : > { %16422 = vmatpush3.bf16.xpose.msk.msra.mxu1 %vm16421_vm4, %v16702_v9  ;;  %16399 = vmatprep.subr.bf16.mxu0 %v16699_v1  ;;  %vm9127_vm4 = vcmp.eq.s32.totalorder %v20325_v22, %v16926_v41 }
 0x7fd   : > { %16423 = vmatprep.subr.bf16.mxu1 %v16699_v1  ;;  %vm16430_vm5 = vmpackc.low %vm9127_vm4, %vm9126_vm3 }
 0x803   : > { %16401 = vmatpush3.bf16.xpose.msk.msra.mxu0 %vm16400_vm7, %v16702_v9 }
 0x804   : > { %16425 = vmatpush3.bf16.xpose.msk.msra.mxu1 %vm16424_vm8, %v16702_v9  ;;  %16402 = vmatprep.subr.bf16.mxu0 %v16699_v1 }
 0x805   : > { %16426 = vmatprep.subr.bf16.mxu1 %v16699_v1 }
 0x80b   : > { %16404 = vmatpush3.bf16.xpose.msk.msra.mxu0 %vm16403_vm14, %v16702_v9 }
 0x80c   : > { %16428 = vmatpush3.bf16.xpose.msk.msra.mxu1 %vm16427_vm15, %v16702_v9  ;;  %16405 = vmatprep.subr.bf16.mxu0 %v16699_v1 }
 0x80d   : > { %16429 = vmatprep.subr.bf16.mxu1 %v16699_v1 }
 0x813   : > { %16407 = vmatpush3.bf16.xpose.msk.msra.mxu0 %vm16406_vm0, %v16702_v9 }
 0x814   : > { %16431 = vmatpush3.bf16.xpose.msk.msra.mxu1 %vm16430_vm5, %v16702_v9 }
 0x81a   : > { %14859 = vmatmul.mubr.f32.vlgmr.msra.gmra.mrb[62].mxu0 %v8966_v51 }
 0x81b   : > { %14894 = vmatmul.mubr.f32.vlgmr.msra.gmra.mrb[62].mxu1 %v9107_v52 }
 0x82d   : > { %v8239_v1 = vpop.f32.mrb[56].mxu0 }
 0x82e   : > { %v8243_v40 = vadd.f32 %v8239_v1, %v20383_v44  ;;  %v14650_v53 = vpop.f32.mrb[57].mxu0  ;;  %v8380_v41 = vpop.f32.mrb[56].mxu1 }
 0x82f   : > { %v14685_v54 = vpop.f32.mrb[57].mxu1 }
 0x830   : > { %v8384_v55 = vadd.f32 %v8380_v41, %v8243_v40 }
 0x86d   : > { %v8521_v56 = vpop.f32.mrb[58].mxu0 }
 0x86e   : > { %v8525_v57 = vadd.f32 %v8521_v56, %v8384_v55  ;;  %v14720_v58 = vpop.f32.mrb[59].mxu0  ;;  %v8662_v9 = vpop.f32.mrb[58].mxu1 }
 0x86f   : > { %v14755_v59 = vpop.f32.mrb[59].mxu1 }
 0x870   : > { %v8666_v60 = vadd.f32 %v8662_v9, %v8525_v57 }
 0x8ad   : > { %v8803_v61 = vpop.f32.mrb[60].mxu0 }
 0x8ae   : > { %v8807_v62 = vadd.f32 %v8803_v61, %v8666_v60  ;;  %v14790_v63 = vpop.f32.mrb[61].mxu0  ;;  %v8944_v0 = vpop.f32.mrb[60].mxu1 }
 0x8af   : > { %v14825_v5 = vpop.f32.mrb[61].mxu1 }
 0x8b0   : > { %v8948_v6 = vadd.f32 %v8944_v0, %v8807_v62 }
 0x8ed   : > { %v9085_v10 = vpop.f32.mrb[62].mxu0 }
 0x8ee   : > { %v9089_v11 = vadd.f32 %v9085_v10, %v8948_v6  ;;  %v14860_v12 = vpop.f32.mrb[63].mxu0  ;;  %v9226_v13 = vpop.f32.mrb[62].mxu1 }
 0x8ef   : > { %v14895_v3 = vpop.f32.mrb[63].mxu1 }
 0x8f0   : > { %v9230_v17 = vadd.f32 %v9226_v13, %v9089_v11 }
 0x8f2   : > { %v9232_v18 = vadd.f32 %v9231_v16, %v9230_v17 }
 0x8f4   : > { %9233 = vst [vmem:[%s172_s4] sm:$0x1] %v9232_v18 }
 0x8f5   : > { %16632 = shalt.err (!%p16629_p5)
}
 0x8f6   : > { %s16633_s24 = scalar_lea.hbm %s20442_s15, 16  ;;  %s16637_s27 = scalar_lea.hbm %s20491_s2, 32 }
 0x8f7   : > { %p16634_p6 = scmp.ne.s32.totalorder %s20442_s15, %s16633_s24  ;;  %p16638_p10 = scmp.lt.u32.totalorder %s20442_s15, %s20491_s2 }
 0x8f8   : > { %p16639_p11 = scmp.lt.u32.totalorder %s16637_s27, %s16633_s24  ;;  %p16641_p13 = scmp.lt.u32.totalorder %s16633_s24, %s20442_s15 }
 0x8f9   : > { %p16635_p7 = pnand %p16634_p6, %p16759_p4 }
 0x8fa   : > { %p16640_p12 = por %p16639_p11, %p16638_p10 }
 0x8fb   : > { %p16636_p9 = pneg %p16635_p7 }
 0x8fc   : > { %p16642_p0 = por %p16641_p13, %p16640_p12 }
 0x8fe   : > { %p16643_p1 = pnand %p16642_p0, %p16636_p9 }
 0x900   : > { %16646 = shalt.err (!%p16643_p1)
}
 0x901   : > { %16432 = dma.vmem_to_hbm [thread:$0]  (%p16759_p4), %s20444_s6, 16, %s20442_s15, %s9235_s16  }
 0x902 PF: > { %p16438_p2 = scmp.ge.s32.totalorder %s16697_s14, 2  ;;  %s9259_s30 = sand.u32 1, %s16677_s9  }
 0x903   : > { %s9260_s3 = scalar_lea.sflag [#allocation3], %s9259_s30 }
 0x904   : > { %p16435_p3 = pnand %p16438_p2, %p16766_p8 }
 0x906   : > { %16672 = dma.done.wait (!%p16435_p3), %s9260_s3, 16  }
 0x907   : > { %16674 = vsyncadd (!%p16435_p3), %s9260_s3, 4294967280  ;;  %s15_s14 = sadd.s32 1, %s16697_s14   ;;  %s20494_s9 = smov %s16681_s10 }
 0x908   : > { %p12_p5 = scmp.ge.s32.totalorder %s15_s14, 4   ;;  %s20495_s10 = smov %s16685_s11 }
 0x909   : > { %s20496_s11 = smov %s16772_s22  ;;  %s20497_s12 = smov %s16693_s13 }
 0x90a   : > { %s20498_s13 = smov %s20500_s17  ;;  %14 = sbr.rel (!%p12_p5) target bundleno = 4 (0x4), region = 196 }
 0x911   :  { %9264 = vsyncpa [#allocation3], 1 }
 0x912   :  { %9266 = vsyncpa [#allocation3 + $0x1], 1 }

</bundles_post_ra>
